<compile_context>
chip_gen: v7x
topology: tpu7x:2x2x1
jax: 0.10.0
libtpu: 0.0.40
codegen_flags: <defaults>
</compile_context>

<pallas_src>
import math
from functools import partial

import numpy as np

import jax
import jax.numpy as jnp
from jax.experimental import pallas as pl
from jax.experimental.pallas import tpu as pltpu


def _round_up(x, m):
    return ((x + m - 1) // m) * m


# ----------------------------- Pallas kernel ------------------------------ #

def bidir_gru_kernel(x_ref, w_ih_ref, w_hh_ref, b_gi_ref, b_hn_ref,
                     out_f_ref, out_b_ref, hn_ref, gif_ref, gib_ref):
    """One bidirectional GRU layer over the whole sequence (single grid step).

    x_ref    : (T*Bp, Dp)       time-major input, row t*Bp+b (compute dtype)
    w_ih_ref : (2, Dp, 3Hp)     [fwd, bwd] input->gate weights (compute dtype)
    w_hh_ref : (2, Hp, 3Hp)     [fwd, bwd] hidden->gate weights (compute dtype)
    b_gi_ref : (2, 1, 3Hp)      input bias with r/z hidden biases folded (f32)
    b_hn_ref : (2, 1, Hp)       hidden n-gate bias (f32)
    out_f_ref: (T, Bp, Hp)      forward hidden at every step (compute dtype)
    out_b_ref: (T, Bp, Hp)      backward hidden at every step (compute dtype)
    hn_ref   : (2, Bp, Hp)      final hidden states [fwd, bwd] (f32)
    gif/gib  : VMEM (C*Bp, 3Hp) f32 — streamed per-chunk input projections
    """
    T, Bp, Hp = out_f_ref.shape
    CB = gif_ref.shape[0]
    C = CB // Bp                      # time steps per streamed gi chunk
    nc = T // C                       # number of chunks
    cdtype = x_ref.dtype
    f32 = jnp.float32

    # Loop-invariant weights / biases: load once.
    w_ih_f = w_ih_ref[0]
    w_ih_b = w_ih_ref[1]
    w_hh_f = w_hh_ref[0]
    w_hh_b = w_hh_ref[1]
    b_gi_f = b_gi_ref[0]
    b_gi_b = b_gi_ref[1]
    b_hn_f = b_hn_ref[0]
    b_hn_b = b_hn_ref[1]

    def gru_update(gi, gh, b_hn, h):
        # All f32; gi already contains b_ih (+ folded b_hr / b_hz).
        r = jax.nn.sigmoid(gi[:, :Hp] + gh[:, :Hp])
        z = jax.nn.sigmoid(gi[:, Hp:2 * Hp] + gh[:, Hp:2 * Hp])
        n = jnp.tanh(gi[:, 2 * Hp:] + r * (gh[:, 2 * Hp:] + b_hn))
        return (1.0 - z) * n + z * h

    # Bounded inner-loop unroll (review: 4-8); must divide the chunk length.
    unroll = next(u for u in (8, 4, 2, 1) if C % u == 0)

    def chunk_body(c, carry):
        h_f, h_b = carry                                    # (Bp, Hp) f32
        # Streamed, hoisted input projection for this time chunk: one MXU
        # matmul per direction, off the serial h->h critical path.
        row_f = pl.multiple_of(c * CB, CB)                  # fwd chunk rows
        row_b = pl.multiple_of((nc - 1 - c) * CB, CB)       # bwd chunk rows
        gif_ref[...] = jnp.dot(x_ref[pl.ds(row_f, CB), :], w_ih_f,
                               preferred_element_type=f32) + b_gi_f
        gib_ref[...] = jnp.dot(x_ref[pl.ds(row_b, CB), :], w_ih_b,
                               preferred_element_type=f32) + b_gi_b

        def step(i, hh):
            h_f, h_b = hh
            s_f = c * C + i                                 # fwd global time
            s_b = T - 1 - s_f                               # bwd global time
            gi_f = gif_ref[pl.ds(pl.multiple_of(i * Bp, Bp), Bp), :]
            gi_b = gib_ref[pl.ds(pl.multiple_of((C - 1 - i) * Bp, Bp), Bp), :]
            # Two per-direction (Bp,Hp)@(Hp,3Hp) matmuls (tuple carry: no
            # per-step lane concat, no block-diagonal zero FLOPs); operands
            # in the compute dtype, accumulation + carry in f32.
            gh_f = jnp.dot(h_f.astype(cdtype), w_hh_f,
                           preferred_element_type=f32)
            gh_b = jnp.dot(h_b.astype(cdtype), w_hh_b,
                           preferred_element_type=f32)
            h_f = gru_update(gi_f, gh_f, b_hn_f, h_f)
            h_b = gru_update(gi_b, gh_b, b_hn_b, h_b)
            # Lane-dense (Bp, Hp) stores at a dynamic leading index: no
            # masked / lane-offset stores on the serial path.
            out_f_ref[s_f, :, :] = h_f.astype(out_f_ref.dtype)
            out_b_ref[s_b, :, :] = h_b.astype(out_b_ref.dtype)
            return (h_f, h_b)

        return jax.lax.fori_loop(0, C, step, (h_f, h_b), unroll=unroll)

    h0 = jnp.zeros((Bp, Hp), f32)                           # init_hidden(): 0
    h_f, h_b = jax.lax.fori_loop(0, nc, chunk_body, (h0, h0))
    hn_ref[0, :, :] = h_f
    hn_ref[1, :, :] = h_b


# --------------------------- layer wrapper (glue) -------------------------- #

def bidir_gru_layer_pallas(x_tm, w_ih, w_hh, b_gi, b_hn, *, time_chunk,
                           compute_dtype):
    """One fused bidirectional GRU layer over the full sequence.

    x_tm: (T, Bp, Dp) time-major, lane/sublane padded input.
    Returns out_f, out_b (each (T, Bp, Hp), compute dtype), hn (2, Bp, Hp) f32.
    """
    T, Bp, Dp = x_tm.shape
    Hp = w_hh.shape[1]
    C = time_chunk
    assert T % C == 0

    x2d = x_tm.reshape(T * Bp, Dp).astype(compute_dtype)
    w_ih = w_ih.astype(compute_dtype)
    w_hh = w_hh.astype(compute_dtype)

    csize = np.dtype(compute_dtype).itemsize
    # Single-buffered VMEM actually needed; sized explicitly so the default
    # scoped limit (16/32 MiB) is never the deciding factor.
    vmem_bytes = (
        T * Bp * Dp * csize                      # x slab
        + 2 * T * Bp * Hp * csize                # out_f, out_b slabs
        + 2 * (Dp + Hp) * 3 * Hp * csize         # w_ih, w_hh
        + 2 * C * Bp * 3 * Hp * 4                # gi chunk scratch (f32)
        + 2 * (4 * Hp + Bp * Hp) * 4             # biases + hn (f32)
    )
    vmem_limit = int(min(128 << 20, max(2 * vmem_bytes + (4 << 20), 16 << 20)))

    out_shape = (
        jax.ShapeDtypeStruct((T, Bp, Hp), compute_dtype),
        jax.ShapeDtypeStruct((T, Bp, Hp), compute_dtype),
        jax.ShapeDtypeStruct((2, Bp, Hp), jnp.float32),
    )
    scratch_shapes = [pltpu.VMEM((C * Bp, 3 * Hp), jnp.float32),
                      pltpu.VMEM((C * Bp, 3 * Hp), jnp.float32)]
    in_shapes = [(T * Bp, Dp), (2, Dp, 3 * Hp), (2, Hp, 3 * Hp),
                 (2, 1, 3 * Hp), (2, 1, Hp)]
    out_block_shapes = [(T, Bp, Hp), (T, Bp, Hp), (2, Bp, Hp)]

    def build_spec(shape, single_buffered):
        index_map = lambda i: (0,) * len(shape)
        if single_buffered:
            # grid=(1,): double-buffering resident slabs is a pure VMEM tax.
            return pl.BlockSpec(shape, index_map, pipeline_mode=pl.Buffered(1))
        return pl.BlockSpec(shape, index_map)

    def call(single_buffered):
        return pl.pallas_call(
            bidir_gru_kernel,
            out_shape=out_shape,
            grid=(1,),
            in_specs=[build_spec(s, single_buffered) for s in in_shapes],
            out_specs=tuple(build_spec(s, single_buffered)
                            for s in out_block_shapes),
            scratch_shapes=scratch_shapes,
            compiler_params=pltpu.CompilerParams(
                dimension_semantics=("arbitrary",),
                vmem_limit_bytes=vmem_limit),
        )(x2d, w_ih, w_hh, b_gi, b_hn)

    try:
        return call(True)
    except Exception:
        # Fallback for jax versions where Buffered(1) / pipeline_mode is not
        # accepted on this path; everything else is identical.
        return call(False)


def fuse_layer_weights(p_fwd, p_bwd, H, Hp, Dp, row_groups):
    """Pad / fuse per-direction GRU weights into lane-aligned stacked tensors.

    row_groups: (dst_row, src_row) pairs for the H-row blocks of w_ih, i.e.
    where the real input features live inside the padded Dp-wide input.
    Padded gate columns / rows are zero, so padded hidden dims stay exactly 0.
    """
    def pad_gate_cols(m):
        out = jnp.zeros(m.shape[:-1] + (3 * Hp,), jnp.float32)
        for g in range(3):
            out = out.at[..., g * Hp:g * Hp + H].set(m[..., g * H:(g + 1) * H])
        return out

    def pad_w_ih(w):
        wc = pad_gate_cols(w)
        out = jnp.zeros((Dp, 3 * Hp), jnp.float32)
        for dst, src in row_groups:
            out = out.at[dst:dst + H, :].set(wc[src:src + H, :])
        return out

    def pad_w_hh(w):
        out = jnp.zeros((Hp, 3 * Hp), jnp.float32)
        return out.at[:H, :].set(pad_gate_cols(w))

    def gi_bias(p):
        # Fold the r/z parts of b_hh into the hoisted input-projection bias;
        # only the n-gate hidden bias stays inside r * (gh_n + b_hn).
        b_rz = p["b_ih"][:, :2 * H] + p["b_hh"][:, :2 * H]
        b = jnp.concatenate([b_rz, p["b_ih"][:, 2 * H:]], axis=-1)
        return pad_gate_cols(b)

    def hn_bias(p):
        out = jnp.zeros((1, Hp), jnp.float32)
        return out.at[:, :H].set(p["b_hh"][:, 2 * H:])

    w_ih = jnp.stack([pad_w_ih(p_fwd["w_ih"]), pad_w_ih(p_bwd["w_ih"])])
    w_hh = jnp.stack([pad_w_hh(p_fwd["w_hh"]), pad_w_hh(p_bwd["w_hh"])])
    b_gi = jnp.stack([gi_bias(p_fwd), gi_bias(p_bwd)])
    b_hn = jnp.stack([hn_bias(p_fwd), hn_bias(p_bwd)])
    return w_ih, w_hh, b_gi, b_hn


# ------------------------------ Encoder glue ------------------------------ #

def encoder_forward(params, tokens, num_layers, *, compute_dtype=jnp.bfloat16,
                    time_chunk=None):
    """Eval-mode forward of the Encoder: embedding -> bidirectional GRU stack."""
    B, T = tokens.shape
    H = params["embedding"].shape[1]
    LANE, SUB = 128, 8
    Hp = _round_up(H, LANE)           # lane-aligned hidden width
    Bp = _round_up(B, SUB)            # sublane-aligned batch
    Dp0 = _round_up(H, LANE)          # lane-aligned embedding width (layer 0)

    # Time chunk for streaming gi through VMEM: largest divisor of T that is
    # <= time_chunk and keeps chunk row offsets aligned to the (possibly
    # packed) sublane tile of the compute dtype.
    pack = max(1, 4 // np.dtype(compute_dtype).itemsize)
    tgt = T if time_chunk is None else max(1, min(time_chunk, T))
    divisors = [d for d in range(1, T + 1) if T % d == 0]
    valid = [d for d in divisors if (d * Bp) % (SUB * pack) == 0] or [T]
    C = max([d for d in valid if d <= tgt] or [min(valid)])

    # Embedding lookup (gather) stays in plain JAX.
    emb = jnp.take(params["embedding"], tokens, axis=0)          # (B, T, H)
    # TODO(synk): nn.Dropout / inter-layer GRU dropout are identity in eval
    # mode and are not modeled for training.
    x = jnp.transpose(emb, (1, 0, 2)).astype(jnp.float32)        # (T, B, H)
    x = jnp.pad(x, ((0, 0), (0, Bp - B), (0, Dp0 - H)))          # (T, Bp, Dp0)

    hn_list = []
    for l in range(num_layers):
        if l == 0:
            Dp, row_groups = Dp0, [(0, 0)]
        else:
            Dp, row_groups = 2 * Hp, [(0, 0), (Hp, H)]
        w_ih, w_hh, b_gi, b_hn = fuse_layer_weights(
            params["gru"][(l, 0)], params["gru"][(l, 1)], H, Hp, Dp, row_groups)
        out_f, out_b, hn = bidir_gru_layer_pallas(
            x, w_ih, w_hh, b_gi, b_hn, time_chunk=C,
            compute_dtype=compute_dtype)
        hn_list.append(hn[0, :B, :H])      # forward final hidden (PyTorch order)
        hn_list.append(hn[1, :B, :H])      # backward final hidden
        # Stitch the lane-dense per-direction slabs into the next layer input
        # (layout plumbing at the layer boundary, outside the kernel).
        x = jnp.concatenate([out_f, out_b], axis=-1)             # (T, Bp, 2Hp)

    x = x.astype(jnp.float32)
    output = jnp.concatenate([x[:, :B, :H], x[:, :B, Hp:Hp + H]], axis=-1)
    output = jnp.transpose(output, (1, 0, 2))                    # (B, T, 2H)

    hn_all = jnp.stack(hn_list, axis=0)                          # (2L, B, H)
    hn = hn_all.reshape(2, num_layers, B, H).sum(axis=0)         # torch view+sum
    return output, hn


# ------------------------- pure-JAX reference (check) ---------------------- #

def gru_layer_ref(x_seq, w_ih, w_hh, b_ih, b_hh, *, reverse):
    T, B, D = x_seq.shape
    H = w_hh.shape[0]
    xs = x_seq[::-1] if reverse else x_seq

    def step(h, x):
        gi = x @ w_ih + b_ih
        gh = h @ w_hh + b_hh
        r = jax.nn.sigmoid(gi[:, :H] + gh[:, :H])
        z = jax.nn.sigmoid(gi[:, H:2 * H] + gh[:, H:2 * H])
        n = jnp.tanh(gi[:, 2 * H:] + r * gh[:, 2 * H:])
        h_new = (1.0 - z) * n + z * h
        return h_new, h_new

    h0 = jnp.zeros((B, H), jnp.float32)
    _, ys = jax.lax.scan(step, h0, xs)
    if reverse:
        ys = ys[::-1]
    return ys


def encoder_forward_ref(params, tokens, num_layers):
    B, T = tokens.shape
    H = params["embedding"].shape[1]
    emb = jnp.take(params["embedding"], tokens, axis=0)
    x = jnp.transpose(emb, (1, 0, 2))
    hn_list = []
    for l in range(num_layers):
        dir_outs = []
        for rev in (False, True):
            p = params["gru"][(l, int(rev))]
            out = gru_layer_ref(x, p["w_ih"], p["w_hh"], p["b_ih"], p["b_hh"],
                                reverse=rev)
            dir_outs.append(out)
            hn_list.append(out[0] if rev else out[T - 1])
        x = jnp.concatenate(dir_outs, axis=-1)
    output = jnp.transpose(x, (1, 0, 2))
    hn_all = jnp.stack(hn_list, axis=0)
    hn = hn_all.reshape(2, num_layers, B, H).sum(axis=0)
    return output, hn


# --------------------------------- params --------------------------------- #

def init_params(key, vocab_size, hidden_size, num_layers, pad_token_id):
    H = hidden_size
    keys = jax.random.split(key, 1 + 4 * num_layers * 2)
    emb = 0.1 * jax.random.normal(keys[0], (vocab_size, H), jnp.float32)
    emb = emb.at[pad_token_id].set(0.0)              # padding_idx row == 0

    bound = 1.0 / math.sqrt(H)
    gru = {}
    ki = 1
    for l in range(num_layers):
        d_in = H if l == 0 else 2 * H
        for d in range(2):                           # 0 = fwd, 1 = bwd
            u = partial(jax.random.uniform, minval=-bound, maxval=bound,
                        dtype=jnp.float32)
            gru[(l, d)] = dict(
                w_ih=u(keys[ki + 0], (d_in, 3 * H)),
                w_hh=u(keys[ki + 1], (H, 3 * H)),
                b_ih=u(keys[ki + 2], (1, 3 * H)),
                b_hh=u(keys[ki + 3], (1, 3 * H)),
            )
            ki += 4
    return {"embedding": emb, "gru": gru}


# ----------------------------------- main ---------------------------------- #

if __name__ == "__main__":
    vocab_size = 50
    hidden_size = 32
    num_layers = 2
    pad_token_id = 0
    B, T = 2, 8

    key = jax.random.PRNGKey(0)
    k_params, k_tok = jax.random.split(key)
    params = init_params(k_params, vocab_size, hidden_size, num_layers,
                         pad_token_id)

    tokens = jax.random.randint(k_tok, (B, T), 0, vocab_size, dtype=jnp.int32)
    tokens = tokens.at[:, -2:].set(pad_token_id)     # a couple of pad tokens

    out_exp, hn_exp = encoder_forward_ref(params, tokens, num_layers)

    # f32 compute path: tight structural check (padding, chunked gi streaming,
    # bias folding, per-direction matmuls) against the pure-JAX reference.
    out32, hn32 = encoder_forward(params, tokens, num_layers,
                                  compute_dtype=jnp.float32, time_chunk=4)
    out32, hn32 = jax.block_until_ready((out32, hn32))
    assert out32.shape == (B, T, 2 * hidden_size), out32.shape
    assert hn32.shape == (num_layers, B, hidden_size), hn32.shape
    assert jnp.allclose(out32, out_exp, rtol=1e-4, atol=1e-4)
    assert jnp.allclose(hn32, hn_exp, rtol=1e-4, atol=1e-4)

    # Default bf16-operand path (f32 accumulation + f32 carry): looser check.
    out16, hn16 = encoder_forward(params, tokens, num_layers, time_chunk=4)
    out16, hn16 = jax.block_until_ready((out16, hn16))
    assert out16.shape == (B, T, 2 * hidden_size), out16.shape
    assert hn16.shape == (num_layers, B, hidden_size), hn16.shape
    assert jnp.allclose(out16, out_exp, rtol=5e-2, atol=5e-2)
    assert jnp.allclose(hn16, hn_exp, rtol=5e-2, atol=5e-2)

    print("KERNEL_OK")
</pallas_src>

<mosaic_0001>
module attributes {stable_mosaic.version = 11 : i64} {
  func.func @bidir_gru_kernel(%arg0: i32, %arg1: memref<64x128xf32, #tpu.memory_space<vmem>>, %arg2: memref<2x128x384xf32, #tpu.memory_space<vmem>>, %arg3: memref<2x128x384xf32, #tpu.memory_space<vmem>>, %arg4: memref<2x1x384xf32, #tpu.memory_space<vmem>>, %arg5: memref<2x1x128xf32, #tpu.memory_space<vmem>>, %arg6: memref<8x8x128xf32, #tpu.memory_space<vmem>>, %arg7: memref<8x8x128xf32, #tpu.memory_space<vmem>>, %arg8: memref<2x8x128xf32, #tpu.memory_space<vmem>>, %arg9: memref<32x384xf32, #tpu.memory_space<vmem>>, %arg10: memref<32x384xf32, #tpu.memory_space<vmem>>) attributes {dimension_semantics = [#tpu.dimension_semantics<arbitrary>], iteration_bounds = array<i64: 1>, scalar_prefetch = 0 : i64, scratch_operands = 2 : i64, tpu.core_type = #tpu.core_type<tc>, window_params = [{pipeline_mode = #tpu.pipeline_mode<synchronous>, transform_indices = @transform_0, window_bounds = array<i64: 64, 128>}, {pipeline_mode = #tpu.pipeline_mode<synchronous>, transform_indices = @transform_1, window_bounds = array<i64: 2, 128, 384>}, {pipeline_mode = #tpu.pipeline_mode<synchronous>, transform_indices = @transform_2, window_bounds = array<i64: 2, 128, 384>}, {pipeline_mode = #tpu.pipeline_mode<synchronous>, transform_indices = @transform_3, window_bounds = array<i64: 2, 1, 384>}, {pipeline_mode = #tpu.pipeline_mode<synchronous>, transform_indices = @transform_4, window_bounds = array<i64: 2, 1, 128>}, {pipeline_mode = #tpu.pipeline_mode<synchronous>, transform_indices = @transform_5, window_bounds = array<i64: 8, 8, 128>}, {pipeline_mode = #tpu.pipeline_mode<synchronous>, transform_indices = @transform_6, window_bounds = array<i64: 8, 8, 128>}, {pipeline_mode = #tpu.pipeline_mode<synchronous>, transform_indices = @transform_7, window_bounds = array<i64: 2, 8, 128>}]} {
    %c0 = arith.constant 0 : index
    %c0_0 = arith.constant 0 : index
    %c0_1 = arith.constant 0 : index
    %0 = vector.load %arg2[%c0, %c0_0, %c0_1] : memref<2x128x384xf32, #tpu.memory_space<vmem>>, vector<1x128x384xf32>
    %1 = vector.shape_cast %0 : vector<1x128x384xf32> to vector<128x384xf32>
    %c1 = arith.constant 1 : index
    %c0_2 = arith.constant 0 : index
    %c0_3 = arith.constant 0 : index
    %2 = vector.load %arg2[%c1, %c0_2, %c0_3] : memref<2x128x384xf32, #tpu.memory_space<vmem>>, vector<1x128x384xf32>
    %3 = vector.shape_cast %2 : vector<1x128x384xf32> to vector<128x384xf32>
    %c0_4 = arith.constant 0 : index
    %c0_5 = arith.constant 0 : index
    %c0_6 = arith.constant 0 : index
    %4 = vector.load %arg3[%c0_4, %c0_5, %c0_6] : memref<2x128x384xf32, #tpu.memory_space<vmem>>, vector<1x128x384xf32>
    %5 = vector.shape_cast %4 : vector<1x128x384xf32> to vector<128x384xf32>
    %c1_7 = arith.constant 1 : index
    %c0_8 = arith.constant 0 : index
    %c0_9 = arith.constant 0 : index
    %6 = vector.load %arg3[%c1_7, %c0_8, %c0_9] : memref<2x128x384xf32, #tpu.memory_space<vmem>>, vector<1x128x384xf32>
    %7 = vector.shape_cast %6 : vector<1x128x384xf32> to vector<128x384xf32>
    %c0_10 = arith.constant 0 : index
    %c0_11 = arith.constant 0 : index
    %c0_12 = arith.constant 0 : index
    %8 = vector.load %arg4[%c0_10, %c0_11, %c0_12] : memref<2x1x384xf32, #tpu.memory_space<vmem>>, vector<1x1x384xf32>
    %9 = vector.shape_cast %8 : vector<1x1x384xf32> to vector<1x384xf32>
    %c1_13 = arith.constant 1 : index
    %c0_14 = arith.constant 0 : index
    %c0_15 = arith.constant 0 : index
    %10 = vector.load %arg4[%c1_13, %c0_14, %c0_15] : memref<2x1x384xf32, #tpu.memory_space<vmem>>, vector<1x1x384xf32>
    %11 = vector.shape_cast %10 : vector<1x1x384xf32> to vector<1x384xf32>
    %c0_16 = arith.constant 0 : index
    %c0_17 = arith.constant 0 : index
    %c0_18 = arith.constant 0 : index
    %12 = vector.load %arg5[%c0_16, %c0_17, %c0_18] : memref<2x1x128xf32, #tpu.memory_space<vmem>>, vector<1x1x128xf32>
    %13 = vector.shape_cast %12 : vector<1x1x128xf32> to vector<1x128xf32>
    %c1_19 = arith.constant 1 : index
    %c0_20 = arith.constant 0 : index
    %c0_21 = arith.constant 0 : index
    %14 = vector.load %arg5[%c1_19, %c0_20, %c0_21] : memref<2x1x128xf32, #tpu.memory_space<vmem>>, vector<1x1x128xf32>
    %15 = vector.shape_cast %14 : vector<1x1x128xf32> to vector<1x128xf32>
    %cst = arith.constant 0.000000e+00 : f32
    %16 = vector.broadcast %cst : f32 to vector<8x128xf32>
    %c0_i32 = arith.constant 0 : i32
    %c2_i32 = arith.constant 2 : i32
    %17 = arith.addi %c0_i32, %c2_i32 : i32
    %c1_i32 = arith.constant 1 : i32
    %18:2 = scf.for %arg11 = %c0_i32 to %17 step %c1_i32 iter_args(%arg12 = %16, %arg13 = %16) -> (vector<8x128xf32>, vector<8x128xf32>)  : i32 {
      %c32_i32 = arith.constant 32 : i32
      %25 = arith.muli %arg11, %c32_i32 : i32
      %26 = tpu.assume_multiple %25, 32 : i32
      %c1_i32_29 = arith.constant 1 : i32
      %27 = arith.subi %c1_i32_29, %arg11 : i32
      %c32_i32_30 = arith.constant 32 : i32
      %28 = arith.muli %27, %c32_i32_30 : i32
      %29 = tpu.assume_multiple %28, 32 : i32
      %30 = arith.index_cast %26 : i32 to index
      %c0_31 = arith.constant 0 : index
      %31 = vector.load %arg1[%30, %c0_31] : memref<64x128xf32, #tpu.memory_space<vmem>>, vector<32x128xf32>
      %cst_32 = arith.constant dense<0.000000e+00> : vector<32x384xf32>
      %32 = tpu.matmul %31, %1, %cst_32 {dimension_numbers = #tpu.dot_dimension_numbers<[1], [0], [0], [1], [0, 0, 1, 1], [], []>} : vector<32x128xf32>, vector<128x384xf32>, vector<32x384xf32> -> vector<32x384xf32>
      %33 = vector.broadcast %9 : vector<1x384xf32> to vector<32x384xf32>
      %34 = arith.addf %32, %33 : vector<32x384xf32>
      %c0_33 = arith.constant 0 : index
      %c0_34 = arith.constant 0 : index
      %35 = vector.load %arg9[%c0_33, %c0_34] : memref<32x384xf32, #tpu.memory_space<vmem>>, vector<32x384xf32>
      tpu.vector_store %arg9[%c0_33, %c0_34], %34 {strides = array<i32>} : memref<32x384xf32, #tpu.memory_space<vmem>>, vector<32x384xf32>,
      %36 = arith.index_cast %29 : i32 to index
      %c0_35 = arith.constant 0 : index
      %37 = vector.load %arg1[%36, %c0_35] : memref<64x128xf32, #tpu.memory_space<vmem>>, vector<32x128xf32>
      %cst_36 = arith.constant dense<0.000000e+00> : vector<32x384xf32>
      %38 = tpu.matmul %37, %3, %cst_36 {dimension_numbers = #tpu.dot_dimension_numbers<[1], [0], [0], [1], [0, 0, 1, 1], [], []>} : vector<32x128xf32>, vector<128x384xf32>, vector<32x384xf32> -> vector<32x384xf32>
      %39 = vector.broadcast %11 : vector<1x384xf32> to vector<32x384xf32>
      %40 = arith.addf %38, %39 : vector<32x384xf32>
      %c0_37 = arith.constant 0 : index
      %c0_38 = arith.constant 0 : index
      %41 = vector.load %arg10[%c0_37, %c0_38] : memref<32x384xf32, #tpu.memory_space<vmem>>, vector<32x384xf32>
      tpu.vector_store %arg10[%c0_37, %c0_38], %40 {strides = array<i32>} : memref<32x384xf32, #tpu.memory_space<vmem>>, vector<32x384xf32>,
      %c0_i32_39 = arith.constant 0 : i32
      %c4_i32 = arith.constant 4 : i32
      %42 = arith.muli %arg11, %c4_i32 : i32
      %43 = arith.addi %42, %c0_i32_39 : i32
      %c7_i32 = arith.constant 7 : i32
      %44 = arith.subi %c7_i32, %43 : i32
      %c8_i32 = arith.constant 8 : i32
      %45 = arith.muli %c0_i32_39, %c8_i32 : i32
      %46 = tpu.assume_multiple %45, 8 : i32
      %47 = arith.index_cast %46 : i32 to index
      %c0_40 = arith.constant 0 : index
      %48 = vector.load %arg9[%47, %c0_40] : memref<32x384xf32, #tpu.memory_space<vmem>>, vector<8x384xf32>
      %c3_i32 = arith.constant 3 : i32
      %49 = arith.subi %c3_i32, %c0_i32_39 : i32
      %c8_i32_41 = arith.constant 8 : i32
      %50 = arith.muli %49, %c8_i32_41 : i32
      %51 = tpu.assume_multiple %50, 8 : i32
      %52 = arith.index_cast %51 : i32 to index
      %c0_42 = arith.constant 0 : index
      %53 = vector.load %arg10[%52, %c0_42] : memref<32x384xf32, #tpu.memory_space<vmem>>, vector<8x384xf32>
      %cst_43 = arith.constant dense<0.000000e+00> : vector<8x384xf32>
      %54 = tpu.matmul %arg12, %5, %cst_43 {dimension_numbers = #tpu.dot_dimension_numbers<[1], [0], [0], [1], [0, 0, 1, 1], [], []>} : vector<8x128xf32>, vector<128x384xf32>, vector<8x384xf32> -> vector<8x384xf32>
      %cst_44 = arith.constant dense<0.000000e+00> : vector<8x384xf32>
      %55 = tpu.matmul %arg13, %7, %cst_44 {dimension_numbers = #tpu.dot_dimension_numbers<[1], [0], [0], [1], [0, 0, 1, 1], [], []>} : vector<8x128xf32>, vector<128x384xf32>, vector<8x384xf32> -> vector<8x384xf32>
      %56 = vector.extract_strided_slice %48 {offsets = [0, 0], sizes = [8, 128], strides = [1, 1]} : vector<8x384xf32> to vector<8x128xf32>
      %57 = vector.extract_strided_slice %54 {offsets = [0, 0], sizes = [8, 128], strides = [1, 1]} : vector<8x384xf32> to vector<8x128xf32>
      %58 = arith.addf %56, %57 : vector<8x128xf32>
      %59 = arith.negf %58 : vector<8x128xf32>
      %60 = math.exp %59 : vector<8x128xf32>
      %cst_45 = arith.constant 1.000000e+00 : f32
      %61 = vector.broadcast %cst_45 : f32 to vector<8x128xf32>
      %62 = arith.addf %61, %60 : vector<8x128xf32>
      %63 = arith.divf %61, %62 : vector<8x128xf32>
      %64 = vector.extract_strided_slice %48 {offsets = [0, 128], sizes = [8, 128], strides = [1, 1]} : vector<8x384xf32> to vector<8x128xf32>
      %65 = vector.extract_strided_slice %54 {offsets = [0, 128], sizes = [8, 128], strides = [1, 1]} : vector<8x384xf32> to vector<8x128xf32>
      %66 = arith.addf %64, %65 : vector<8x128xf32>
      %67 = arith.negf %66 : vector<8x128xf32>
      %68 = math.exp %67 : vector<8x128xf32>
      %cst_46 = arith.constant 1.000000e+00 : f32
      %69 = vector.broadcast %cst_46 : f32 to vector<8x128xf32>
      %70 = arith.addf %69, %68 : vector<8x128xf32>
      %71 = arith.divf %69, %70 : vector<8x128xf32>
      %72 = vector.extract_strided_slice %48 {offsets = [0, 256], sizes = [8, 128], strides = [1, 1]} : vector<8x384xf32> to vector<8x128xf32>
      %73 = vector.extract_strided_slice %54 {offsets = [0, 256], sizes = [8, 128], strides = [1, 1]} : vector<8x384xf32> to vector<8x128xf32>
      %74 = vector.broadcast %13 : vector<1x128xf32> to vector<8x128xf32>
      %75 = arith.addf %73, %74 : vector<8x128xf32>
      %76 = arith.mulf %63, %75 : vector<8x128xf32>
      %77 = arith.addf %72, %76 : vector<8x128xf32>
      %78 = math.tanh %77 : vector<8x128xf32>
      %cst_47 = arith.constant 1.000000e+00 : f32
      %79 = vector.broadcast %cst_47 : f32 to vector<8x128xf32>
      %80 = arith.subf %79, %71 : vector<8x128xf32>
      %81 = arith.mulf %80, %78 : vector<8x128xf32>
      %82 = arith.mulf %71, %arg12 : vector<8x128xf32>
      %83 = arith.addf %81, %82 : vector<8x128xf32>
      %84 = vector.extract_strided_slice %53 {offsets = [0, 0], sizes = [8, 128], strides = [1, 1]} : vector<8x384xf32> to vector<8x128xf32>
      %85 = vector.extract_strided_slice %55 {offsets = [0, 0], sizes = [8, 128], strides = [1, 1]} : vector<8x384xf32> to vector<8x128xf32>
      %86 = arith.addf %84, %85 : vector<8x128xf32>
      %87 = arith.negf %86 : vector<8x128xf32>
      %88 = math.exp %87 : vector<8x128xf32>
      %cst_48 = arith.constant 1.000000e+00 : f32
      %89 = vector.broadcast %cst_48 : f32 to vector<8x128xf32>
      %90 = arith.addf %89, %88 : vector<8x128xf32>
      %91 = arith.divf %89, %90 : vector<8x128xf32>
      %92 = vector.extract_strided_slice %53 {offsets = [0, 128], sizes = [8, 128], strides = [1, 1]} : vector<8x384xf32> to vector<8x128xf32>
      %93 = vector.extract_strided_slice %55 {offsets = [0, 128], sizes = [8, 128], strides = [1, 1]} : vector<8x384xf32> to vector<8x128xf32>
      %94 = arith.addf %92, %93 : vector<8x128xf32>
      %95 = arith.negf %94 : vector<8x128xf32>
      %96 = math.exp %95 : vector<8x128xf32>
      %cst_49 = arith.constant 1.000000e+00 : f32
      %97 = vector.broadcast %cst_49 : f32 to vector<8x128xf32>
      %98 = arith.addf %97, %96 : vector<8x128xf32>
      %99 = arith.divf %97, %98 : vector<8x128xf32>
      %100 = vector.extract_strided_slice %53 {offsets = [0, 256], sizes = [8, 128], strides = [1, 1]} : vector<8x384xf32> to vector<8x128xf32>
      %101 = vector.extract_strided_slice %55 {offsets = [0, 256], sizes = [8, 128], strides = [1, 1]} : vector<8x384xf32> to vector<8x128xf32>
      %102 = vector.broadcast %15 : vector<1x128xf32> to vector<8x128xf32>
      %103 = arith.addf %101, %102 : vector<8x128xf32>
      %104 = arith.mulf %91, %103 : vector<8x128xf32>
      %105 = arith.addf %100, %104 : vector<8x128xf32>
      %106 = math.tanh %105 : vector<8x128xf32>
      %cst_50 = arith.constant 1.000000e+00 : f32
      %107 = vector.broadcast %cst_50 : f32 to vector<8x128xf32>
      %108 = arith.subf %107, %99 : vector<8x128xf32>
      %109 = arith.mulf %108, %106 : vector<8x128xf32>
      %110 = arith.mulf %99, %arg13 : vector<8x128xf32>
      %111 = arith.addf %109, %110 : vector<8x128xf32>
      %112 = arith.index_cast %43 : i32 to index
      %c0_51 = arith.constant 0 : index
      %c0_52 = arith.constant 0 : index
      %113 = vector.load %arg6[%112, %c0_51, %c0_52] : memref<8x8x128xf32, #tpu.memory_space<vmem>>, vector<1x8x128xf32>
      %114 = vector.shape_cast %113 : vector<1x8x128xf32> to vector<8x128xf32>
      %115 = vector.shape_cast %83 : vector<8x128xf32> to vector<1x8x128xf32>
      tpu.vector_store %arg6[%112, %c0_51, %c0_52], %115 {strides = array<i32>} : memref<8x8x128xf32, #tpu.memory_space<vmem>>, vector<1x8x128xf32>,
      %116 = arith.index_cast %44 : i32 to index
      %c0_53 = arith.constant 0 : index
      %c0_54 = arith.constant 0 : index
      %117 = vector.load %arg7[%116, %c0_53, %c0_54] : memref<8x8x128xf32, #tpu.memory_space<vmem>>, vector<1x8x128xf32>
      %118 = vector.shape_cast %117 : vector<1x8x128xf32> to vector<8x128xf32>
      %119 = vector.shape_cast %111 : vector<8x128xf32> to vector<1x8x128xf32>
      tpu.vector_store %arg7[%116, %c0_53, %c0_54], %119 {strides = array<i32>} : memref<8x8x128xf32, #tpu.memory_space<vmem>>, vector<1x8x128xf32>,
      %c1_i32_55 = arith.constant 1 : i32
      %c4_i32_56 = arith.constant 4 : i32
      %120 = arith.muli %arg11, %c4_i32_56 : i32
      %121 = arith.addi %120, %c1_i32_55 : i32
      %c7_i32_57 = arith.constant 7 : i32
      %122 = arith.subi %c7_i32_57, %121 : i32
      %c8_i32_58 = arith.constant 8 : i32
      %123 = arith.muli %c1_i32_55, %c8_i32_58 : i32
      %124 = tpu.assume_multiple %123, 8 : i32
      %125 = arith.index_cast %124 : i32 to index
      %c0_59 = arith.constant 0 : index
      %126 = vector.load %arg9[%125, %c0_59] : memref<32x384xf32, #tpu.memory_space<vmem>>, vector<8x384xf32>
      %c3_i32_60 = arith.constant 3 : i32
      %127 = arith.subi %c3_i32_60, %c1_i32_55 : i32
      %c8_i32_61 = arith.constant 8 : i32
      %128 = arith.muli %127, %c8_i32_61 : i32
      %129 = tpu.assume_multiple %128, 8 : i32
      %130 = arith.index_cast %129 : i32 to index
      %c0_62 = arith.constant 0 : index
      %131 = vector.load %arg10[%130, %c0_62] : memref<32x384xf32, #tpu.memory_space<vmem>>, vector<8x384xf32>
      %cst_63 = arith.constant dense<0.000000e+00> : vector<8x384xf32>
      %132 = tpu.matmul %83, %5, %cst_63 {dimension_numbers = #tpu.dot_dimension_numbers<[1], [0], [0], [1], [0, 0, 1, 1], [], []>} : vector<8x128xf32>, vector<128x384xf32>, vector<8x384xf32> -> vector<8x384xf32>
      %cst_64 = arith.constant dense<0.000000e+00> : vector<8x384xf32>
      %133 = tpu.matmul %111, %7, %cst_64 {dimension_numbers = #tpu.dot_dimension_numbers<[1], [0], [0], [1], [0, 0, 1, 1], [], []>} : vector<8x128xf32>, vector<128x384xf32>, vector<8x384xf32> -> vector<8x384xf32>
      %134 = vector.extract_strided_slice %126 {offsets = [0, 0], sizes = [8, 128], strides = [1, 1]} : vector<8x384xf32> to vector<8x128xf32>
      %135 = vector.extract_strided_slice %132 {offsets = [0, 0], sizes = [8, 128], strides = [1, 1]} : vector<8x384xf32> to vector<8x128xf32>
      %136 = arith.addf %134, %135 : vector<8x128xf32>
      %137 = arith.negf %136 : vector<8x128xf32>
      %138 = math.exp %137 : vector<8x128xf32>
      %cst_65 = arith.constant 1.000000e+00 : f32
      %139 = vector.broadcast %cst_65 : f32 to vector<8x128xf32>
      %140 = arith.addf %139, %138 : vector<8x128xf32>
      %141 = arith.divf %139, %140 : vector<8x128xf32>
      %142 = vector.extract_strided_slice %126 {offsets = [0, 128], sizes = [8, 128], strides = [1, 1]} : vector<8x384xf32> to vector<8x128xf32>
      %143 = vector.extract_strided_slice %132 {offsets = [0, 128], sizes = [8, 128], strides = [1, 1]} : vector<8x384xf32> to vector<8x128xf32>
      %144 = arith.addf %142, %143 : vector<8x128xf32>
      %145 = arith.negf %144 : vector<8x128xf32>
      %146 = math.exp %145 : vector<8x128xf32>
      %cst_66 = arith.constant 1.000000e+00 : f32
      %147 = vector.broadcast %cst_66 : f32 to vector<8x128xf32>
      %148 = arith.addf %147, %146 : vector<8x128xf32>
      %149 = arith.divf %147, %148 : vector<8x128xf32>
      %150 = vector.extract_strided_slice %126 {offsets = [0, 256], sizes = [8, 128], strides = [1, 1]} : vector<8x384xf32> to vector<8x128xf32>
      %151 = vector.extract_strided_slice %132 {offsets = [0, 256], sizes = [8, 128], strides = [1, 1]} : vector<8x384xf32> to vector<8x128xf32>
      %152 = vector.broadcast %13 : vector<1x128xf32> to vector<8x128xf32>
      %153 = arith.addf %151, %152 : vector<8x128xf32>
      %154 = arith.mulf %141, %153 : vector<8x128xf32>
      %155 = arith.addf %150, %154 : vector<8x128xf32>
      %156 = math.tanh %155 : vector<8x128xf32>
      %cst_67 = arith.constant 1.000000e+00 : f32
      %157 = vector.broadcast %cst_67 : f32 to vector<8x128xf32>
      %158 = arith.subf %157, %149 : vector<8x128xf32>
      %159 = arith.mulf %158, %156 : vector<8x128xf32>
      %160 = arith.mulf %149, %83 : vector<8x128xf32>
      %161 = arith.addf %159, %160 : vector<8x128xf32>
      %162 = vector.extract_strided_slice %131 {offsets = [0, 0], sizes = [8, 128], strides = [1, 1]} : vector<8x384xf32> to vector<8x128xf32>
      %163 = vector.extract_strided_slice %133 {offsets = [0, 0], sizes = [8, 128], strides = [1, 1]} : vector<8x384xf32> to vector<8x128xf32>
      %164 = arith.addf %162, %163 : vector<8x128xf32>
      %165 = arith.negf %164 : vector<8x128xf32>
      %166 = math.exp %165 : vector<8x128xf32>
      %cst_68 = arith.constant 1.000000e+00 : f32
      %167 = vector.broadcast %cst_68 : f32 to vector<8x128xf32>
      %168 = arith.addf %167, %166 : vector<8x128xf32>
      %169 = arith.divf %167, %168 : vector<8x128xf32>
      %170 = vector.extract_strided_slice %131 {offsets = [0, 128], sizes = [8, 128], strides = [1, 1]} : vector<8x384xf32> to vector<8x128xf32>
      %171 = vector.extract_strided_slice %133 {offsets = [0, 128], sizes = [8, 128], strides = [1, 1]} : vector<8x384xf32> to vector<8x128xf32>
      %172 = arith.addf %170, %171 : vector<8x128xf32>
      %173 = arith.negf %172 : vector<8x128xf32>
      %174 = math.exp %173 : vector<8x128xf32>
      %cst_69 = arith.constant 1.000000e+00 : f32
      %175 = vector.broadcast %cst_69 : f32 to vector<8x128xf32>
      %176 = arith.addf %175, %174 : vector<8x128xf32>
      %177 = arith.divf %175, %176 : vector<8x128xf32>
      %178 = vector.extract_strided_slice %131 {offsets = [0, 256], sizes = [8, 128], strides = [1, 1]} : vector<8x384xf32> to vector<8x128xf32>
      %179 = vector.extract_strided_slice %133 {offsets = [0, 256], sizes = [8, 128], strides = [1, 1]} : vector<8x384xf32> to vector<8x128xf32>
      %180 = vector.broadcast %15 : vector<1x128xf32> to vector<8x128xf32>
      %181 = arith.addf %179, %180 : vector<8x128xf32>
      %182 = arith.mulf %169, %181 : vector<8x128xf32>
      %183 = arith.addf %178, %182 : vector<8x128xf32>
      %184 = math.tanh %183 : vector<8x128xf32>
      %cst_70 = arith.constant 1.000000e+00 : f32
      %185 = vector.broadcast %cst_70 : f32 to vector<8x128xf32>
      %186 = arith.subf %185, %177 : vector<8x128xf32>
      %187 = arith.mulf %186, %184 : vector<8x128xf32>
      %188 = arith.mulf %177, %111 : vector<8x128xf32>
      %189 = arith.addf %187, %188 : vector<8x128xf32>
      %190 = arith.index_cast %121 : i32 to index
      %c0_71 = arith.constant 0 : index
      %c0_72 = arith.constant 0 : index
      %191 = vector.load %arg6[%190, %c0_71, %c0_72] : memref<8x8x128xf32, #tpu.memory_space<vmem>>, vector<1x8x128xf32>
      %192 = vector.shape_cast %191 : vector<1x8x128xf32> to vector<8x128xf32>
      %193 = vector.shape_cast %161 : vector<8x128xf32> to vector<1x8x128xf32>
      tpu.vector_store %arg6[%190, %c0_71, %c0_72], %193 {strides = array<i32>} : memref<8x8x128xf32, #tpu.memory_space<vmem>>, vector<1x8x128xf32>,
      %194 = arith.index_cast %122 : i32 to index
      %c0_73 = arith.constant 0 : index
      %c0_74 = arith.constant 0 : index
      %195 = vector.load %arg7[%194, %c0_73, %c0_74] : memref<8x8x128xf32, #tpu.memory_space<vmem>>, vector<1x8x128xf32>
      %196 = vector.shape_cast %195 : vector<1x8x128xf32> to vector<8x128xf32>
      %197 = vector.shape_cast %189 : vector<8x128xf32> to vector<1x8x128xf32>
      tpu.vector_store %arg7[%194, %c0_73, %c0_74], %197 {strides = array<i32>} : memref<8x8x128xf32, #tpu.memory_space<vmem>>, vector<1x8x128xf32>,
      %c2_i32_75 = arith.constant 2 : i32
      %c4_i32_76 = arith.constant 4 : i32
      %198 = arith.muli %arg11, %c4_i32_76 : i32
      %199 = arith.addi %198, %c2_i32_75 : i32
      %c7_i32_77 = arith.constant 7 : i32
      %200 = arith.subi %c7_i32_77, %199 : i32
      %c8_i32_78 = arith.constant 8 : i32
      %201 = arith.muli %c2_i32_75, %c8_i32_78 : i32
      %202 = tpu.assume_multiple %201, 8 : i32
      %203 = arith.index_cast %202 : i32 to index
      %c0_79 = arith.constant 0 : index
      %204 = vector.load %arg9[%203, %c0_79] : memref<32x384xf32, #tpu.memory_space<vmem>>, vector<8x384xf32>
      %c3_i32_80 = arith.constant 3 : i32
      %205 = arith.subi %c3_i32_80, %c2_i32_75 : i32
      %c8_i32_81 = arith.constant 8 : i32
      %206 = arith.muli %205, %c8_i32_81 : i32
      %207 = tpu.assume_multiple %206, 8 : i32
      %208 = arith.index_cast %207 : i32 to index
      %c0_82 = arith.constant 0 : index
      %209 = vector.load %arg10[%208, %c0_82] : memref<32x384xf32, #tpu.memory_space<vmem>>, vector<8x384xf32>
      %cst_83 = arith.constant dense<0.000000e+00> : vector<8x384xf32>
      %210 = tpu.matmul %161, %5, %cst_83 {dimension_numbers = #tpu.dot_dimension_numbers<[1], [0], [0], [1], [0, 0, 1, 1], [], []>} : vector<8x128xf32>, vector<128x384xf32>, vector<8x384xf32> -> vector<8x384xf32>
      %cst_84 = arith.constant dense<0.000000e+00> : vector<8x384xf32>
      %211 = tpu.matmul %189, %7, %cst_84 {dimension_numbers = #tpu.dot_dimension_numbers<[1], [0], [0], [1], [0, 0, 1, 1], [], []>} : vector<8x128xf32>, vector<128x384xf32>, vector<8x384xf32> -> vector<8x384xf32>
      %212 = vector.extract_strided_slice %204 {offsets = [0, 0], sizes = [8, 128], strides = [1, 1]} : vector<8x384xf32> to vector<8x128xf32>
      %213 = vector.extract_strided_slice %210 {offsets = [0, 0], sizes = [8, 128], strides = [1, 1]} : vector<8x384xf32> to vector<8x128xf32>
      %214 = arith.addf %212, %213 : vector<8x128xf32>
      %215 = arith.negf %214 : vector<8x128xf32>
      %216 = math.exp %215 : vector<8x128xf32>
      %cst_85 = arith.constant 1.000000e+00 : f32
      %217 = vector.broadcast %cst_85 : f32 to vector<8x128xf32>
      %218 = arith.addf %217, %216 : vector<8x128xf32>
      %219 = arith.divf %217, %218 : vector<8x128xf32>
      %220 = vector.extract_strided_slice %204 {offsets = [0, 128], sizes = [8, 128], strides = [1, 1]} : vector<8x384xf32> to vector<8x128xf32>
      %221 = vector.extract_strided_slice %210 {offsets = [0, 128], sizes = [8, 128], strides = [1, 1]} : vector<8x384xf32> to vector<8x128xf32>
      %222 = arith.addf %220, %221 : vector<8x128xf32>
      %223 = arith.negf %222 : vector<8x128xf32>
      %224 = math.exp %223 : vector<8x128xf32>
      %cst_86 = arith.constant 1.000000e+00 : f32
      %225 = vector.broadcast %cst_86 : f32 to vector<8x128xf32>
      %226 = arith.addf %225, %224 : vector<8x128xf32>
      %227 = arith.divf %225, %226 : vector<8x128xf32>
      %228 = vector.extract_strided_slice %204 {offsets = [0, 256], sizes = [8, 128], strides = [1, 1]} : vector<8x384xf32> to vector<8x128xf32>
      %229 = vector.extract_strided_slice %210 {offsets = [0, 256], sizes = [8, 128], strides = [1, 1]} : vector<8x384xf32> to vector<8x128xf32>
      %230 = vector.broadcast %13 : vector<1x128xf32> to vector<8x128xf32>
      %231 = arith.addf %229, %230 : vector<8x128xf32>
      %232 = arith.mulf %219, %231 : vector<8x128xf32>
      %233 = arith.addf %228, %232 : vector<8x128xf32>
      %234 = math.tanh %233 : vector<8x128xf32>
      %cst_87 = arith.constant 1.000000e+00 : f32
      %235 = vector.broadcast %cst_87 : f32 to vector<8x128xf32>
      %236 = arith.subf %235, %227 : vector<8x128xf32>
      %237 = arith.mulf %236, %234 : vector<8x128xf32>
      %238 = arith.mulf %227, %161 : vector<8x128xf32>
      %239 = arith.addf %237, %238 : vector<8x128xf32>
      %240 = vector.extract_strided_slice %209 {offsets = [0, 0], sizes = [8, 128], strides = [1, 1]} : vector<8x384xf32> to vector<8x128xf32>
      %241 = vector.extract_strided_slice %211 {offsets = [0, 0], sizes = [8, 128], strides = [1, 1]} : vector<8x384xf32> to vector<8x128xf32>
      %242 = arith.addf %240, %241 : vector<8x128xf32>
      %243 = arith.negf %242 : vector<8x128xf32>
      %244 = math.exp %243 : vector<8x128xf32>
      %cst_88 = arith.constant 1.000000e+00 : f32
      %245 = vector.broadcast %cst_88 : f32 to vector<8x128xf32>
      %246 = arith.addf %245, %244 : vector<8x128xf32>
      %247 = arith.divf %245, %246 : vector<8x128xf32>
      %248 = vector.extract_strided_slice %209 {offsets = [0, 128], sizes = [8, 128], strides = [1, 1]} : vector<8x384xf32> to vector<8x128xf32>
      %249 = vector.extract_strided_slice %211 {offsets = [0, 128], sizes = [8, 128], strides = [1, 1]} : vector<8x384xf32> to vector<8x128xf32>
      %250 = arith.addf %248, %249 : vector<8x128xf32>
      %251 = arith.negf %250 : vector<8x128xf32>
      %252 = math.exp %251 : vector<8x128xf32>
      %cst_89 = arith.constant 1.000000e+00 : f32
      %253 = vector.broadcast %cst_89 : f32 to vector<8x128xf32>
      %254 = arith.addf %253, %252 : vector<8x128xf32>
      %255 = arith.divf %253, %254 : vector<8x128xf32>
      %256 = vector.extract_strided_slice %209 {offsets = [0, 256], sizes = [8, 128], strides = [1, 1]} : vector<8x384xf32> to vector<8x128xf32>
      %257 = vector.extract_strided_slice %211 {offsets = [0, 256], sizes = [8, 128], strides = [1, 1]} : vector<8x384xf32> to vector<8x128xf32>
      %258 = vector.broadcast %15 : vector<1x128xf32> to vector<8x128xf32>
      %259 = arith.addf %257, %258 : vector<8x128xf32>
      %260 = arith.mulf %247, %259 : vector<8x128xf32>
      %261 = arith.addf %256, %260 : vector<8x128xf32>
      %262 = math.tanh %261 : vector<8x128xf32>
      %cst_90 = arith.constant 1.000000e+00 : f32
      %263 = vector.broadcast %cst_90 : f32 to vector<8x128xf32>
      %264 = arith.subf %263, %255 : vector<8x128xf32>
      %265 = arith.mulf %264, %262 : vector<8x128xf32>
      %266 = arith.mulf %255, %189 : vector<8x128xf32>
      %267 = arith.addf %265, %266 : vector<8x128xf32>
      %268 = arith.index_cast %199 : i32 to index
      %c0_91 = arith.constant 0 : index
      %c0_92 = arith.constant 0 : index
      %269 = vector.load %arg6[%268, %c0_91, %c0_92] : memref<8x8x128xf32, #tpu.memory_space<vmem>>, vector<1x8x128xf32>
      %270 = vector.shape_cast %269 : vector<1x8x128xf32> to vector<8x128xf32>
      %271 = vector.shape_cast %239 : vector<8x128xf32> to vector<1x8x128xf32>
      tpu.vector_store %arg6[%268, %c0_91, %c0_92], %271 {strides = array<i32>} : memref<8x8x128xf32, #tpu.memory_space<vmem>>, vector<1x8x128xf32>,
      %272 = arith.index_cast %200 : i32 to index
      %c0_93 = arith.constant 0 : index
      %c0_94 = arith.constant 0 : index
      %273 = vector.load %arg7[%272, %c0_93, %c0_94] : memref<8x8x128xf32, #tpu.memory_space<vmem>>, vector<1x8x128xf32>
      %274 = vector.shape_cast %273 : vector<1x8x128xf32> to vector<8x128xf32>
      %275 = vector.shape_cast %267 : vector<8x128xf32> to vector<1x8x128xf32>
      tpu.vector_store %arg7[%272, %c0_93, %c0_94], %275 {strides = array<i32>} : memref<8x8x128xf32, #tpu.memory_space<vmem>>, vector<1x8x128xf32>,
      %c3_i32_95 = arith.constant 3 : i32
      %c4_i32_96 = arith.constant 4 : i32
      %276 = arith.muli %arg11, %c4_i32_96 : i32
      %277 = arith.addi %276, %c3_i32_95 : i32
      %c7_i32_97 = arith.constant 7 : i32
      %278 = arith.subi %c7_i32_97, %277 : i32
      %c8_i32_98 = arith.constant 8 : i32
      %279 = arith.muli %c3_i32_95, %c8_i32_98 : i32
      %280 = tpu.assume_multiple %279, 8 : i32
      %281 = arith.index_cast %280 : i32 to index
      %c0_99 = arith.constant 0 : index
      %282 = vector.load %arg9[%281, %c0_99] : memref<32x384xf32, #tpu.memory_space<vmem>>, vector<8x384xf32>
      %c3_i32_100 = arith.constant 3 : i32
      %283 = arith.subi %c3_i32_100, %c3_i32_95 : i32
      %c8_i32_101 = arith.constant 8 : i32
      %284 = arith.muli %283, %c8_i32_101 : i32
      %285 = tpu.assume_multiple %284, 8 : i32
      %286 = arith.index_cast %285 : i32 to index
      %c0_102 = arith.constant 0 : index
      %287 = vector.load %arg10[%286, %c0_102] : memref<32x384xf32, #tpu.memory_space<vmem>>, vector<8x384xf32>
      %cst_103 = arith.constant dense<0.000000e+00> : vector<8x384xf32>
      %288 = tpu.matmul %239, %5, %cst_103 {dimension_numbers = #tpu.dot_dimension_numbers<[1], [0], [0], [1], [0, 0, 1, 1], [], []>} : vector<8x128xf32>, vector<128x384xf32>, vector<8x384xf32> -> vector<8x384xf32>
      %cst_104 = arith.constant dense<0.000000e+00> : vector<8x384xf32>
      %289 = tpu.matmul %267, %7, %cst_104 {dimension_numbers = #tpu.dot_dimension_numbers<[1], [0], [0], [1], [0, 0, 1, 1], [], []>} : vector<8x128xf32>, vector<128x384xf32>, vector<8x384xf32> -> vector<8x384xf32>
      %290 = vector.extract_strided_slice %282 {offsets = [0, 0], sizes = [8, 128], strides = [1, 1]} : vector<8x384xf32> to vector<8x128xf32>
      %291 = vector.extract_strided_slice %288 {offsets = [0, 0], sizes = [8, 128], strides = [1, 1]} : vector<8x384xf32> to vector<8x128xf32>
      %292 = arith.addf %290, %291 : vector<8x128xf32>
      %293 = arith.negf %292 : vector<8x128xf32>
      %294 = math.exp %293 : vector<8x128xf32>
      %cst_105 = arith.constant 1.000000e+00 : f32
      %295 = vector.broadcast %cst_105 : f32 to vector<8x128xf32>
      %296 = arith.addf %295, %294 : vector<8x128xf32>
      %297 = arith.divf %295, %296 : vector<8x128xf32>
      %298 = vector.extract_strided_slice %282 {offsets = [0, 128], sizes = [8, 128], strides = [1, 1]} : vector<8x384xf32> to vector<8x128xf32>
      %299 = vector.extract_strided_slice %288 {offsets = [0, 128], sizes = [8, 128], strides = [1, 1]} : vector<8x384xf32> to vector<8x128xf32>
      %300 = arith.addf %298, %299 : vector<8x128xf32>
      %301 = arith.negf %300 : vector<8x128xf32>
      %302 = math.exp %301 : vector<8x128xf32>
      %cst_106 = arith.constant 1.000000e+00 : f32
      %303 = vector.broadcast %cst_106 : f32 to vector<8x128xf32>
      %304 = arith.addf %303, %302 : vector<8x128xf32>
      %305 = arith.divf %303, %304 : vector<8x128xf32>
      %306 = vector.extract_strided_slice %282 {offsets = [0, 256], sizes = [8, 128], strides = [1, 1]} : vector<8x384xf32> to vector<8x128xf32>
      %307 = vector.extract_strided_slice %288 {offsets = [0, 256], sizes = [8, 128], strides = [1, 1]} : vector<8x384xf32> to vector<8x128xf32>
      %308 = vector.broadcast %13 : vector<1x128xf32> to vector<8x128xf32>
      %309 = arith.addf %307, %308 : vector<8x128xf32>
      %310 = arith.mulf %297, %309 : vector<8x128xf32>
      %311 = arith.addf %306, %310 : vector<8x128xf32>
      %312 = math.tanh %311 : vector<8x128xf32>
      %cst_107 = arith.constant 1.000000e+00 : f32
      %313 = vector.broadcast %cst_107 : f32 to vector<8x128xf32>
      %314 = arith.subf %313, %305 : vector<8x128xf32>
      %315 = arith.mulf %314, %312 : vector<8x128xf32>
      %316 = arith.mulf %305, %239 : vector<8x128xf32>
      %317 = arith.addf %315, %316 : vector<8x128xf32>
      %318 = vector.extract_strided_slice %287 {offsets = [0, 0], sizes = [8, 128], strides = [1, 1]} : vector<8x384xf32> to vector<8x128xf32>
      %319 = vector.extract_strided_slice %289 {offsets = [0, 0], sizes = [8, 128], strides = [1, 1]} : vector<8x384xf32> to vector<8x128xf32>
      %320 = arith.addf %318, %319 : vector<8x128xf32>
      %321 = arith.negf %320 : vector<8x128xf32>
      %322 = math.exp %321 : vector<8x128xf32>
      %cst_108 = arith.constant 1.000000e+00 : f32
      %323 = vector.broadcast %cst_108 : f32 to vector<8x128xf32>
      %324 = arith.addf %323, %322 : vector<8x128xf32>
      %325 = arith.divf %323, %324 : vector<8x128xf32>
      %326 = vector.extract_strided_slice %287 {offsets = [0, 128], sizes = [8, 128], strides = [1, 1]} : vector<8x384xf32> to vector<8x128xf32>
      %327 = vector.extract_strided_slice %289 {offsets = [0, 128], sizes = [8, 128], strides = [1, 1]} : vector<8x384xf32> to vector<8x128xf32>
      %328 = arith.addf %326, %327 : vector<8x128xf32>
      %329 = arith.negf %328 : vector<8x128xf32>
      %330 = math.exp %329 : vector<8x128xf32>
      %cst_109 = arith.constant 1.000000e+00 : f32
      %331 = vector.broadcast %cst_109 : f32 to vector<8x128xf32>
      %332 = arith.addf %331, %330 : vector<8x128xf32>
      %333 = arith.divf %331, %332 : vector<8x128xf32>
      %334 = vector.extract_strided_slice %287 {offsets = [0, 256], sizes = [8, 128], strides = [1, 1]} : vector<8x384xf32> to vector<8x128xf32>
      %335 = vector.extract_strided_slice %289 {offsets = [0, 256], sizes = [8, 128], strides = [1, 1]} : vector<8x384xf32> to vector<8x128xf32>
      %336 = vector.broadcast %15 : vector<1x128xf32> to vector<8x128xf32>
      %337 = arith.addf %335, %336 : vector<8x128xf32>
      %338 = arith.mulf %325, %337 : vector<8x128xf32>
      %339 = arith.addf %334, %338 : vector<8x128xf32>
      %340 = math.tanh %339 : vector<8x128xf32>
      %cst_110 = arith.constant 1.000000e+00 : f32
      %341 = vector.broadcast %cst_110 : f32 to vector<8x128xf32>
      %342 = arith.subf %341, %333 : vector<8x128xf32>
      %343 = arith.mulf %342, %340 : vector<8x128xf32>
      %344 = arith.mulf %333, %267 : vector<8x128xf32>
      %345 = arith.addf %343, %344 : vector<8x128xf32>
      %346 = arith.index_cast %277 : i32 to index
      %c0_111 = arith.constant 0 : index
      %c0_112 = arith.constant 0 : index
      %347 = vector.load %arg6[%346, %c0_111, %c0_112] : memref<8x8x128xf32, #tpu.memory_space<vmem>>, vector<1x8x128xf32>
      %348 = vector.shape_cast %347 : vector<1x8x128xf32> to vector<8x128xf32>
      %349 = vector.shape_cast %317 : vector<8x128xf32> to vector<1x8x128xf32>
      tpu.vector_store %arg6[%346, %c0_111, %c0_112], %349 {strides = array<i32>} : memref<8x8x128xf32, #tpu.memory_space<vmem>>, vector<1x8x128xf32>,
      %350 = arith.index_cast %278 : i32 to index
      %c0_113 = arith.constant 0 : index
      %c0_114 = arith.constant 0 : index
      %351 = vector.load %arg7[%350, %c0_113, %c0_114] : memref<8x8x128xf32, #tpu.memory_space<vmem>>, vector<1x8x128xf32>
      %352 = vector.shape_cast %351 : vector<1x8x128xf32> to vector<8x128xf32>
      %353 = vector.shape_cast %345 : vector<8x128xf32> to vector<1x8x128xf32>
      tpu.vector_store %arg7[%350, %c0_113, %c0_114], %353 {strides = array<i32>} : memref<8x8x128xf32, #tpu.memory_space<vmem>>, vector<1x8x128xf32>,
      %c4_i32_115 = arith.constant 4 : i32
      scf.yield %317, %345 : vector<8x128xf32>, vector<8x128xf32>
    }
    %c2_i32_22 = arith.constant 2 : i32
    %c0_23 = arith.constant 0 : index
    %c0_24 = arith.constant 0 : index
    %c0_25 = arith.constant 0 : index
    %19 = vector.load %arg8[%c0_23, %c0_24, %c0_25] : memref<2x8x128xf32, #tpu.memory_space<vmem>>, vector<1x8x128xf32>
    %20 = vector.shape_cast %19 : vector<1x8x128xf32> to vector<8x128xf32>
    %21 = vector.shape_cast %18#0 : vector<8x128xf32> to vector<1x8x128xf32>
    tpu.vector_store %arg8[%c0_23, %c0_24, %c0_25], %21 {strides = array<i32>} : memref<2x8x128xf32, #tpu.memory_space<vmem>>, vector<1x8x128xf32>,
    %c1_26 = arith.constant 1 : index
    %c0_27 = arith.constant 0 : index
    %c0_28 = arith.constant 0 : index
    %22 = vector.load %arg8[%c1_26, %c0_27, %c0_28] : memref<2x8x128xf32, #tpu.memory_space<vmem>>, vector<1x8x128xf32>
    %23 = vector.shape_cast %22 : vector<1x8x128xf32> to vector<8x128xf32>
    %24 = vector.shape_cast %18#1 : vector<8x128xf32> to vector<1x8x128xf32>
    tpu.vector_store %arg8[%c1_26, %c0_27, %c0_28], %24 {strides = array<i32>} : memref<2x8x128xf32, #tpu.memory_space<vmem>>, vector<1x8x128xf32>,
    return
  }
  func.func @transform_0(%arg0: i32) -> (i32, i32) {
    %c0_i32 = arith.constant 0 : i32
    %c0_i32_0 = arith.constant 0 : i32
    %c0_i32_1 = arith.constant 0 : i32
    return %c0_i32, %c0_i32_0 : i32, i32
  }
  func.func @transform_1(%arg0: i32) -> (i32, i32, i32) {
    %c0_i32 = arith.constant 0 : i32
    %c0_i32_0 = arith.constant 0 : i32
    %c0_i32_1 = arith.constant 0 : i32
    %c0_i32_2 = arith.constant 0 : i32
    return %c0_i32, %c0_i32_0, %c0_i32_1 : i32, i32, i32
  }
  func.func @transform_2(%arg0: i32) -> (i32, i32, i32) {
    %c0_i32 = arith.constant 0 : i32
    %c0_i32_0 = arith.constant 0 : i32
    %c0_i32_1 = arith.constant 0 : i32
    %c0_i32_2 = arith.constant 0 : i32
    return %c0_i32, %c0_i32_0, %c0_i32_1 : i32, i32, i32
  }
  func.func @transform_3(%arg0: i32) -> (i32, i32, i32) {
    %c0_i32 = arith.constant 0 : i32
    %c0_i32_0 = arith.constant 0 : i32
    %c0_i32_1 = arith.constant 0 : i32
    %c0_i32_2 = arith.constant 0 : i32
    return %c0_i32, %c0_i32_0, %c0_i32_1 : i32, i32, i32
  }
  func.func @transform_4(%arg0: i32) -> (i32, i32, i32) {
    %c0_i32 = arith.constant 0 : i32
    %c0_i32_0 = arith.constant 0 : i32
    %c0_i32_1 = arith.constant 0 : i32
    %c0_i32_2 = arith.constant 0 : i32
    return %c0_i32, %c0_i32_0, %c0_i32_1 : i32, i32, i32
  }
  func.func @transform_5(%arg0: i32) -> (i32, i32, i32) {
    %c0_i32 = arith.constant 0 : i32
    %c0_i32_0 = arith.constant 0 : i32
    %c0_i32_1 = arith.constant 0 : i32
    %c0_i32_2 = arith.constant 0 : i32
    return %c0_i32, %c0_i32_0, %c0_i32_1 : i32, i32, i32
  }
  func.func @transform_6(%arg0: i32) -> (i32, i32, i32) {
    %c0_i32 = arith.constant 0 : i32
    %c0_i32_0 = arith.constant 0 : i32
    %c0_i32_1 = arith.constant 0 : i32
    %c0_i32_2 = arith.constant 0 : i32
    return %c0_i32, %c0_i32_0, %c0_i32_1 : i32, i32, i32
  }
  func.func @transform_7(%arg0: i32) -> (i32, i32, i32) {
    %c0_i32 = arith.constant 0 : i32
    %c0_i32_0 = arith.constant 0 : i32
    %c0_i32_1 = arith.constant 0 : i32
    %c0_i32_2 = arith.constant 0 : i32
    return %c0_i32, %c0_i32_0, %c0_i32_1 : i32, i32, i32
  }
}

module attributes {stable_mosaic.version = 11 : i64} {
  func.func @bidir_gru_kernel(%arg0: i32, %arg1: memref<64x128xf32, #tpu.memory_space<vmem>>, %arg2: memref<2x128x384xf32, #tpu.memory_space<vmem>>, %arg3: memref<2x128x384xf32, #tpu.memory_space<vmem>>, %arg4: memref<2x1x384xf32, #tpu.memory_space<vmem>>, %arg5: memref<2x1x128xf32, #tpu.memory_space<vmem>>, %arg6: memref<8x8x128xf32, #tpu.memory_space<vmem>>, %arg7: memref<8x8x128xf32, #tpu.memory_space<vmem>>, %arg8: memref<2x8x128xf32, #tpu.memory_space<vmem>>, %arg9: memref<32x384xf32, #tpu.memory_space<vmem>>, %arg10: memref<32x384xf32, #tpu.memory_space<vmem>>) attributes {dimension_semantics = [#tpu.dimension_semantics<arbitrary>], iteration_bounds = array<i64: 1>, scalar_prefetch = 0 : i64, scratch_operands = 2 : i64, tpu.core_type = #tpu.core_type<tc>, window_params = [{pipeline_mode = #tpu.pipeline_mode<synchronous>, transform_indices = @transform_0, window_bounds = array<i64: 64, 128>}, {pipeline_mode = #tpu.pipeline_mode<synchronous>, transform_indices = @transform_1, window_bounds = array<i64: 2, 128, 384>}, {pipeline_mode = #tpu.pipeline_mode<synchronous>, transform_indices = @transform_2, window_bounds = array<i64: 2, 128, 384>}, {pipeline_mode = #tpu.pipeline_mode<synchronous>, transform_indices = @transform_3, window_bounds = array<i64: 2, 1, 384>}, {pipeline_mode = #tpu.pipeline_mode<synchronous>, transform_indices = @transform_4, window_bounds = array<i64: 2, 1, 128>}, {pipeline_mode = #tpu.pipeline_mode<synchronous>, transform_indices = @transform_5, window_bounds = array<i64: 8, 8, 128>}, {pipeline_mode = #tpu.pipeline_mode<synchronous>, transform_indices = @transform_6, window_bounds = array<i64: 8, 8, 128>}, {pipeline_mode = #tpu.pipeline_mode<synchronous>, transform_indices = @transform_7, window_bounds = array<i64: 2, 8, 128>}]} {
    %c0 = arith.constant 0 : index
    %c0_0 = arith.constant 0 : index
    %c0_1 = arith.constant 0 : index
    %0 = vector.load %arg2[%c0, %c0_0, %c0_1] : memref<2x128x384xf32, #tpu.memory_space<vmem>>, vector<1x128x384xf32>
    %1 = vector.shape_cast %0 : vector<1x128x384xf32> to vector<128x384xf32>
    %c1 = arith.constant 1 : index
    %c0_2 = arith.constant 0 : index
    %c0_3 = arith.constant 0 : index
    %2 = vector.load %arg2[%c1, %c0_2, %c0_3] : memref<2x128x384xf32, #tpu.memory_space<vmem>>, vector<1x128x384xf32>
    %3 = vector.shape_cast %2 : vector<1x128x384xf32> to vector<128x384xf32>
    %c0_4 = arith.constant 0 : index
    %c0_5 = arith.constant 0 : index
    %c0_6 = arith.constant 0 : index
    %4 = vector.load %arg3[%c0_4, %c0_5, %c0_6] : memref<2x128x384xf32, #tpu.memory_space<vmem>>, vector<1x128x384xf32>
    %5 = vector.shape_cast %4 : vector<1x128x384xf32> to vector<128x384xf32>
    %c1_7 = arith.constant 1 : index
    %c0_8 = arith.constant 0 : index
    %c0_9 = arith.constant 0 : index
    %6 = vector.load %arg3[%c1_7, %c0_8, %c0_9] : memref<2x128x384xf32, #tpu.memory_space<vmem>>, vector<1x128x384xf32>
    %7 = vector.shape_cast %6 : vector<1x128x384xf32> to vector<128x384xf32>
    %c0_10 = arith.constant 0 : index
    %c0_11 = arith.constant 0 : index
    %c0_12 = arith.constant 0 : index
    %8 = vector.load %arg4[%c0_10, %c0_11, %c0_12] : memref<2x1x384xf32, #tpu.memory_space<vmem>>, vector<1x1x384xf32>
    %9 = vector.shape_cast %8 : vector<1x1x384xf32> to vector<1x384xf32>
    %c1_13 = arith.constant 1 : index
    %c0_14 = arith.constant 0 : index
    %c0_15 = arith.constant 0 : index
    %10 = vector.load %arg4[%c1_13, %c0_14, %c0_15] : memref<2x1x384xf32, #tpu.memory_space<vmem>>, vector<1x1x384xf32>
    %11 = vector.shape_cast %10 : vector<1x1x384xf32> to vector<1x384xf32>
    %c0_16 = arith.constant 0 : index
    %c0_17 = arith.constant 0 : index
    %c0_18 = arith.constant 0 : index
    %12 = vector.load %arg5[%c0_16, %c0_17, %c0_18] : memref<2x1x128xf32, #tpu.memory_space<vmem>>, vector<1x1x128xf32>
    %13 = vector.shape_cast %12 : vector<1x1x128xf32> to vector<1x128xf32>
    %c1_19 = arith.constant 1 : index
    %c0_20 = arith.constant 0 : index
    %c0_21 = arith.constant 0 : index
    %14 = vector.load %arg5[%c1_19, %c0_20, %c0_21] : memref<2x1x128xf32, #tpu.memory_space<vmem>>, vector<1x1x128xf32>
    %15 = vector.shape_cast %14 : vector<1x1x128xf32> to vector<1x128xf32>
    %cst = arith.constant 0.000000e+00 : f32
    %16 = vector.broadcast %cst : f32 to vector<8x128xf32>
    %c0_i32 = arith.constant 0 : i32
    %c2_i32 = arith.constant 2 : i32
    %17 = arith.addi %c0_i32, %c2_i32 : i32
    %c1_i32 = arith.constant 1 : i32
    %18:2 = scf.for %arg11 = %c0_i32 to %17 step %c1_i32 iter_args(%arg12 = %16, %arg13 = %16) -> (vector<8x128xf32>, vector<8x128xf32>)  : i32 {
      %c32_i32 = arith.constant 32 : i32
      %25 = arith.muli %arg11, %c32_i32 : i32
      %26 = tpu.assume_multiple %25, 32 : i32
      %c1_i32_29 = arith.constant 1 : i32
      %27 = arith.subi %c1_i32_29, %arg11 : i32
      %c32_i32_30 = arith.constant 32 : i32
      %28 = arith.muli %27, %c32_i32_30 : i32
      %29 = tpu.assume_multiple %28, 32 : i32
      %30 = arith.index_cast %26 : i32 to index
      %c0_31 = arith.constant 0 : index
      %31 = vector.load %arg1[%30, %c0_31] : memref<64x128xf32, #tpu.memory_space<vmem>>, vector<32x128xf32>
      %cst_32 = arith.constant dense<0.000000e+00> : vector<32x384xf32>
      %32 = tpu.matmul %31, %1, %cst_32 {dimension_numbers = #tpu.dot_dimension_numbers<[1], [0], [0], [1], [0, 0, 1, 1], [], []>} : vector<32x128xf32>, vector<128x384xf32>, vector<32x384xf32> -> vector<32x384xf32>
      %33 = vector.broadcast %9 : vector<1x384xf32> to vector<32x384xf32>
      %34 = arith.addf %32, %33 : vector<32x384xf32>
      %c0_33 = arith.constant 0 : index
      %c0_34 = arith.constant 0 : index
      %35 = vector.load %arg9[%c0_33, %c0_34] : memref<32x384xf32, #tpu.memory_space<vmem>>, vector<32x384xf32>
      tpu.vector_store %arg9[%c0_33, %c0_34], %34 {strides = array<i32>} : memref<32x384xf32, #tpu.memory_space<vmem>>, vector<32x384xf32>,
      %36 = arith.index_cast %29 : i32 to index
      %c0_35 = arith.constant 0 : index
      %37 = vector.load %arg1[%36, %c0_35] : memref<64x128xf32, #tpu.memory_space<vmem>>, vector<32x128xf32>
      %cst_36 = arith.constant dense<0.000000e+00> : vector<32x384xf32>
      %38 = tpu.matmul %37, %3, %cst_36 {dimension_numbers = #tpu.dot_dimension_numbers<[1], [0], [0], [1], [0, 0, 1, 1], [], []>} : vector<32x128xf32>, vector<128x384xf32>, vector<32x384xf32> -> vector<32x384xf32>
      %39 = vector.broadcast %11 : vector<1x384xf32> to vector<32x384xf32>
      %40 = arith.addf %38, %39 : vector<32x384xf32>
      %c0_37 = arith.constant 0 : index
      %c0_38 = arith.constant 0 : index
      %41 = vector.load %arg10[%c0_37, %c0_38] : memref<32x384xf32, #tpu.memory_space<vmem>>, vector<32x384xf32>
      tpu.vector_store %arg10[%c0_37, %c0_38], %40 {strides = array<i32>} : memref<32x384xf32, #tpu.memory_space<vmem>>, vector<32x384xf32>,
      %c0_i32_39 = arith.constant 0 : i32
      %c4_i32 = arith.constant 4 : i32
      %42 = arith.muli %arg11, %c4_i32 : i32
      %43 = arith.addi %42, %c0_i32_39 : i32
      %c7_i32 = arith.constant 7 : i32
      %44 = arith.subi %c7_i32, %43 : i32
      %c8_i32 = arith.constant 8 : i32
      %45 = arith.muli %c0_i32_39, %c8_i32 : i32
      %46 = tpu.assume_multiple %45, 8 : i32
      %47 = arith.index_cast %46 : i32 to index
      %c0_40 = arith.constant 0 : index
      %48 = vector.load %arg9[%47, %c0_40] : memref<32x384xf32, #tpu.memory_space<vmem>>, vector<8x384xf32>
      %c3_i32 = arith.constant 3 : i32
      %49 = arith.subi %c3_i32, %c0_i32_39 : i32
      %c8_i32_41 = arith.constant 8 : i32
      %50 = arith.muli %49, %c8_i32_41 : i32
      %51 = tpu.assume_multiple %50, 8 : i32
      %52 = arith.index_cast %51 : i32 to index
      %c0_42 = arith.constant 0 : index
      %53 = vector.load %arg10[%52, %c0_42] : memref<32x384xf32, #tpu.memory_space<vmem>>, vector<8x384xf32>
      %cst_43 = arith.constant dense<0.000000e+00> : vector<8x384xf32>
      %54 = tpu.matmul %arg12, %5, %cst_43 {dimension_numbers = #tpu.dot_dimension_numbers<[1], [0], [0], [1], [0, 0, 1, 1], [], []>} : vector<8x128xf32>, vector<128x384xf32>, vector<8x384xf32> -> vector<8x384xf32>
      %cst_44 = arith.constant dense<0.000000e+00> : vector<8x384xf32>
      %55 = tpu.matmul %arg13, %7, %cst_44 {dimension_numbers = #tpu.dot_dimension_numbers<[1], [0], [0], [1], [0, 0, 1, 1], [], []>} : vector<8x128xf32>, vector<128x384xf32>, vector<8x384xf32> -> vector<8x384xf32>
      %56 = vector.extract_strided_slice %48 {offsets = [0, 0], sizes = [8, 128], strides = [1, 1]} : vector<8x384xf32> to vector<8x128xf32>
      %57 = vector.extract_strided_slice %54 {offsets = [0, 0], sizes = [8, 128], strides = [1, 1]} : vector<8x384xf32> to vector<8x128xf32>
      %58 = arith.addf %56, %57 : vector<8x128xf32>
      %59 = arith.negf %58 : vector<8x128xf32>
      %60 = math.exp %59 : vector<8x128xf32>
      %cst_45 = arith.constant 1.000000e+00 : f32
      %61 = vector.broadcast %cst_45 : f32 to vector<8x128xf32>
      %62 = arith.addf %61, %60 : vector<8x128xf32>
      %63 = arith.divf %61, %62 : vector<8x128xf32>
      %64 = vector.extract_strided_slice %48 {offsets = [0, 128], sizes = [8, 128], strides = [1, 1]} : vector<8x384xf32> to vector<8x128xf32>
      %65 = vector.extract_strided_slice %54 {offsets = [0, 128], sizes = [8, 128], strides = [1, 1]} : vector<8x384xf32> to vector<8x128xf32>
      %66 = arith.addf %64, %65 : vector<8x128xf32>
      %67 = arith.negf %66 : vector<8x128xf32>
      %68 = math.exp %67 : vector<8x128xf32>
      %cst_46 = arith.constant 1.000000e+00 : f32
      %69 = vector.broadcast %cst_46 : f32 to vector<8x128xf32>
      %70 = arith.addf %69, %68 : vector<8x128xf32>
      %71 = arith.divf %69, %70 : vector<8x128xf32>
      %72 = vector.extract_strided_slice %48 {offsets = [0, 256], sizes = [8, 128], strides = [1, 1]} : vector<8x384xf32> to vector<8x128xf32>
      %73 = vector.extract_strided_slice %54 {offsets = [0, 256], sizes = [8, 128], strides = [1, 1]} : vector<8x384xf32> to vector<8x128xf32>
      %74 = vector.broadcast %13 : vector<1x128xf32> to vector<8x128xf32>
      %75 = arith.addf %73, %74 : vector<8x128xf32>
      %76 = arith.mulf %63, %75 : vector<8x128xf32>
      %77 = arith.addf %72, %76 : vector<8x128xf32>
      %78 = math.tanh %77 : vector<8x128xf32>
      %cst_47 = arith.constant 1.000000e+00 : f32
      %79 = vector.broadcast %cst_47 : f32 to vector<8x128xf32>
      %80 = arith.subf %79, %71 : vector<8x128xf32>
      %81 = arith.mulf %80, %78 : vector<8x128xf32>
      %82 = arith.mulf %71, %arg12 : vector<8x128xf32>
      %83 = arith.addf %81, %82 : vector<8x128xf32>
      %84 = vector.extract_strided_slice %53 {offsets = [0, 0], sizes = [8, 128], strides = [1, 1]} : vector<8x384xf32> to vector<8x128xf32>
      %85 = vector.extract_strided_slice %55 {offsets = [0, 0], sizes = [8, 128], strides = [1, 1]} : vector<8x384xf32> to vector<8x128xf32>
      %86 = arith.addf %84, %85 : vector<8x128xf32>
      %87 = arith.negf %86 : vector<8x128xf32>
      %88 = math.exp %87 : vector<8x128xf32>
      %cst_48 = arith.constant 1.000000e+00 : f32
      %89 = vector.broadcast %cst_48 : f32 to vector<8x128xf32>
      %90 = arith.addf %89, %88 : vector<8x128xf32>
      %91 = arith.divf %89, %90 : vector<8x128xf32>
      %92 = vector.extract_strided_slice %53 {offsets = [0, 128], sizes = [8, 128], strides = [1, 1]} : vector<8x384xf32> to vector<8x128xf32>
      %93 = vector.extract_strided_slice %55 {offsets = [0, 128], sizes = [8, 128], strides = [1, 1]} : vector<8x384xf32> to vector<8x128xf32>
      %94 = arith.addf %92, %93 : vector<8x128xf32>
      %95 = arith.negf %94 : vector<8x128xf32>
      %96 = math.exp %95 : vector<8x128xf32>
      %cst_49 = arith.constant 1.000000e+00 : f32
      %97 = vector.broadcast %cst_49 : f32 to vector<8x128xf32>
      %98 = arith.addf %97, %96 : vector<8x128xf32>
      %99 = arith.divf %97, %98 : vector<8x128xf32>
      %100 = vector.extract_strided_slice %53 {offsets = [0, 256], sizes = [8, 128], strides = [1, 1]} : vector<8x384xf32> to vector<8x128xf32>
      %101 = vector.extract_strided_slice %55 {offsets = [0, 256], sizes = [8, 128], strides = [1, 1]} : vector<8x384xf32> to vector<8x128xf32>
      %102 = vector.broadcast %15 : vector<1x128xf32> to vector<8x128xf32>
      %103 = arith.addf %101, %102 : vector<8x128xf32>
      %104 = arith.mulf %91, %103 : vector<8x128xf32>
      %105 = arith.addf %100, %104 : vector<8x128xf32>
      %106 = math.tanh %105 : vector<8x128xf32>
      %cst_50 = arith.constant 1.000000e+00 : f32
      %107 = vector.broadcast %cst_50 : f32 to vector<8x128xf32>
      %108 = arith.subf %107, %99 : vector<8x128xf32>
      %109 = arith.mulf %108, %106 : vector<8x128xf32>
      %110 = arith.mulf %99, %arg13 : vector<8x128xf32>
      %111 = arith.addf %109, %110 : vector<8x128xf32>
      %112 = arith.index_cast %43 : i32 to index
      %c0_51 = arith.constant 0 : index
      %c0_52 = arith.constant 0 : index
      %113 = vector.load %arg6[%112, %c0_51, %c0_52] : memref<8x8x128xf32, #tpu.memory_space<vmem>>, vector<1x8x128xf32>
      %114 = vector.shape_cast %113 : vector<1x8x128xf32> to vector<8x128xf32>
      %115 = vector.shape_cast %83 : vector<8x128xf32> to vector<1x8x128xf32>
      tpu.vector_store %arg6[%112, %c0_51, %c0_52], %115 {strides = array<i32>} : memref<8x8x128xf32, #tpu.memory_space<vmem>>, vector<1x8x128xf32>,
      %116 = arith.index_cast %44 : i32 to index
      %c0_53 = arith.constant 0 : index
      %c0_54 = arith.constant 0 : index
      %117 = vector.load %arg7[%116, %c0_53, %c0_54] : memref<8x8x128xf32, #tpu.memory_space<vmem>>, vector<1x8x128xf32>
      %118 = vector.shape_cast %117 : vector<1x8x128xf32> to vector<8x128xf32>
      %119 = vector.shape_cast %111 : vector<8x128xf32> to vector<1x8x128xf32>
      tpu.vector_store %arg7[%116, %c0_53, %c0_54], %119 {strides = array<i32>} : memref<8x8x128xf32, #tpu.memory_space<vmem>>, vector<1x8x128xf32>,
      %c1_i32_55 = arith.constant 1 : i32
      %c4_i32_56 = arith.constant 4 : i32
      %120 = arith.muli %arg11, %c4_i32_56 : i32
      %121 = arith.addi %120, %c1_i32_55 : i32
      %c7_i32_57 = arith.constant 7 : i32
      %122 = arith.subi %c7_i32_57, %121 : i32
      %c8_i32_58 = arith.constant 8 : i32
      %123 = arith.muli %c1_i32_55, %c8_i32_58 : i32
      %124 = tpu.assume_multiple %123, 8 : i32
      %125 = arith.index_cast %124 : i32 to index
      %c0_59 = arith.constant 0 : index
      %126 = vector.load %arg9[%125, %c0_59] : memref<32x384xf32, #tpu.memory_space<vmem>>, vector<8x384xf32>
      %c3_i32_60 = arith.constant 3 : i32
      %127 = arith.subi %c3_i32_60, %c1_i32_55 : i32
      %c8_i32_61 = arith.constant 8 : i32
      %128 = arith.muli %127, %c8_i32_61 : i32
      %129 = tpu.assume_multiple %128, 8 : i32
      %130 = arith.index_cast %129 : i32 to index
      %c0_62 = arith.constant 0 : index
      %131 = vector.load %arg10[%130, %c0_62] : memref<32x384xf32, #tpu.memory_space<vmem>>, vector<8x384xf32>
      %cst_63 = arith.constant dense<0.000000e+00> : vector<8x384xf32>
      %132 = tpu.matmul %83, %5, %cst_63 {dimension_numbers = #tpu.dot_dimension_numbers<[1], [0], [0], [1], [0, 0, 1, 1], [], []>} : vector<8x128xf32>, vector<128x384xf32>, vector<8x384xf32> -> vector<8x384xf32>
      %cst_64 = arith.constant dense<0.000000e+00> : vector<8x384xf32>
      %133 = tpu.matmul %111, %7, %cst_64 {dimension_numbers = #tpu.dot_dimension_numbers<[1], [0], [0], [1], [0, 0, 1, 1], [], []>} : vector<8x128xf32>, vector<128x384xf32>, vector<8x384xf32> -> vector<8x384xf32>
      %134 = vector.extract_strided_slice %126 {offsets = [0, 0], sizes = [8, 128], strides = [1, 1]} : vector<8x384xf32> to vector<8x128xf32>
      %135 = vector.extract_strided_slice %132 {offsets = [0, 0], sizes = [8, 128], strides = [1, 1]} : vector<8x384xf32> to vector<8x128xf32>
      %136 = arith.addf %134, %135 : vector<8x128xf32>
      %137 = arith.negf %136 : vector<8x128xf32>
      %138 = math.exp %137 : vector<8x128xf32>
      %cst_65 = arith.constant 1.000000e+00 : f32
      %139 = vector.broadcast %cst_65 : f32 to vector<8x128xf32>
      %140 = arith.addf %139, %138 : vector<8x128xf32>
      %141 = arith.divf %139, %140 : vector<8x128xf32>
      %142 = vector.extract_strided_slice %126 {offsets = [0, 128], sizes = [8, 128], strides = [1, 1]} : vector<8x384xf32> to vector<8x128xf32>
      %143 = vector.extract_strided_slice %132 {offsets = [0, 128], sizes = [8, 128], strides = [1, 1]} : vector<8x384xf32> to vector<8x128xf32>
      %144 = arith.addf %142, %143 : vector<8x128xf32>
      %145 = arith.negf %144 : vector<8x128xf32>
      %146 = math.exp %145 : vector<8x128xf32>
      %cst_66 = arith.constant 1.000000e+00 : f32
      %147 = vector.broadcast %cst_66 : f32 to vector<8x128xf32>
      %148 = arith.addf %147, %146 : vector<8x128xf32>
      %149 = arith.divf %147, %148 : vector<8x128xf32>
      %150 = vector.extract_strided_slice %126 {offsets = [0, 256], sizes = [8, 128], strides = [1, 1]} : vector<8x384xf32> to vector<8x128xf32>
      %151 = vector.extract_strided_slice %132 {offsets = [0, 256], sizes = [8, 128], strides = [1, 1]} : vector<8x384xf32> to vector<8x128xf32>
      %152 = vector.broadcast %13 : vector<1x128xf32> to vector<8x128xf32>
      %153 = arith.addf %151, %152 : vector<8x128xf32>
      %154 = arith.mulf %141, %153 : vector<8x128xf32>
      %155 = arith.addf %150, %154 : vector<8x128xf32>
      %156 = math.tanh %155 : vector<8x128xf32>
      %cst_67 = arith.constant 1.000000e+00 : f32
      %157 = vector.broadcast %cst_67 : f32 to vector<8x128xf32>
      %158 = arith.subf %157, %149 : vector<8x128xf32>
      %159 = arith.mulf %158, %156 : vector<8x128xf32>
      %160 = arith.mulf %149, %83 : vector<8x128xf32>
      %161 = arith.addf %159, %160 : vector<8x128xf32>
      %162 = vector.extract_strided_slice %131 {offsets = [0, 0], sizes = [8, 128], strides = [1, 1]} : vector<8x384xf32> to vector<8x128xf32>
      %163 = vector.extract_strided_slice %133 {offsets = [0, 0], sizes = [8, 128], strides = [1, 1]} : vector<8x384xf32> to vector<8x128xf32>
      %164 = arith.addf %162, %163 : vector<8x128xf32>
      %165 = arith.negf %164 : vector<8x128xf32>
      %166 = math.exp %165 : vector<8x128xf32>
      %cst_68 = arith.constant 1.000000e+00 : f32
      %167 = vector.broadcast %cst_68 : f32 to vector<8x128xf32>
      %168 = arith.addf %167, %166 : vector<8x128xf32>
      %169 = arith.divf %167, %168 : vector<8x128xf32>
      %170 = vector.extract_strided_slice %131 {offsets = [0, 128], sizes = [8, 128], strides = [1, 1]} : vector<8x384xf32> to vector<8x128xf32>
      %171 = vector.extract_strided_slice %133 {offsets = [0, 128], sizes = [8, 128], strides = [1, 1]} : vector<8x384xf32> to vector<8x128xf32>
      %172 = arith.addf %170, %171 : vector<8x128xf32>
      %173 = arith.negf %172 : vector<8x128xf32>
      %174 = math.exp %173 : vector<8x128xf32>
      %cst_69 = arith.constant 1.000000e+00 : f32
      %175 = vector.broadcast %cst_69 : f32 to vector<8x128xf32>
      %176 = arith.addf %175, %174 : vector<8x128xf32>
      %177 = arith.divf %175, %176 : vector<8x128xf32>
      %178 = vector.extract_strided_slice %131 {offsets = [0, 256], sizes = [8, 128], strides = [1, 1]} : vector<8x384xf32> to vector<8x128xf32>
      %179 = vector.extract_strided_slice %133 {offsets = [0, 256], sizes = [8, 128], strides = [1, 1]} : vector<8x384xf32> to vector<8x128xf32>
      %180 = vector.broadcast %15 : vector<1x128xf32> to vector<8x128xf32>
      %181 = arith.addf %179, %180 : vector<8x128xf32>
      %182 = arith.mulf %169, %181 : vector<8x128xf32>
      %183 = arith.addf %178, %182 : vector<8x128xf32>
      %184 = math.tanh %183 : vector<8x128xf32>
      %cst_70 = arith.constant 1.000000e+00 : f32
      %185 = vector.broadcast %cst_70 : f32 to vector<8x128xf32>
      %186 = arith.subf %185, %177 : vector<8x128xf32>
      %187 = arith.mulf %186, %184 : vector<8x128xf32>
      %188 = arith.mulf %177, %111 : vector<8x128xf32>
      %189 = arith.addf %187, %188 : vector<8x128xf32>
      %190 = arith.index_cast %121 : i32 to index
      %c0_71 = arith.constant 0 : index
      %c0_72 = arith.constant 0 : index
      %191 = vector.load %arg6[%190, %c0_71, %c0_72] : memref<8x8x128xf32, #tpu.memory_space<vmem>>, vector<1x8x128xf32>
      %192 = vector.shape_cast %191 : vector<1x8x128xf32> to vector<8x128xf32>
      %193 = vector.shape_cast %161 : vector<8x128xf32> to vector<1x8x128xf32>
      tpu.vector_store %arg6[%190, %c0_71, %c0_72], %193 {strides = array<i32>} : memref<8x8x128xf32, #tpu.memory_space<vmem>>, vector<1x8x128xf32>,
      %194 = arith.index_cast %122 : i32 to index
      %c0_73 = arith.constant 0 : index
      %c0_74 = arith.constant 0 : index
      %195 = vector.load %arg7[%194, %c0_73, %c0_74] : memref<8x8x128xf32, #tpu.memory_space<vmem>>, vector<1x8x128xf32>
      %196 = vector.shape_cast %195 : vector<1x8x128xf32> to vector<8x128xf32>
      %197 = vector.shape_cast %189 : vector<8x128xf32> to vector<1x8x128xf32>
      tpu.vector_store %arg7[%194, %c0_73, %c0_74], %197 {strides = array<i32>} : memref<8x8x128xf32, #tpu.memory_space<vmem>>, vector<1x8x128xf32>,
      %c2_i32_75 = arith.constant 2 : i32
      %c4_i32_76 = arith.constant 4 : i32
      %198 = arith.muli %arg11, %c4_i32_76 : i32
      %199 = arith.addi %198, %c2_i32_75 : i32
      %c7_i32_77 = arith.constant 7 : i32
      %200 = arith.subi %c7_i32_77, %199 : i32
      %c8_i32_78 = arith.constant 8 : i32
      %201 = arith.muli %c2_i32_75, %c8_i32_78 : i32
      %202 = tpu.assume_multiple %201, 8 : i32
      %203 = arith.index_cast %202 : i32 to index
      %c0_79 = arith.constant 0 : index
      %204 = vector.load %arg9[%203, %c0_79] : memref<32x384xf32, #tpu.memory_space<vmem>>, vector<8x384xf32>
      %c3_i32_80 = arith.constant 3 : i32
      %205 = arith.subi %c3_i32_80, %c2_i32_75 : i32
      %c8_i32_81 = arith.constant 8 : i32
      %206 = arith.muli %205, %c8_i32_81 : i32
      %207 = tpu.assume_multiple %206, 8 : i32
      %208 = arith.index_cast %207 : i32 to index
      %c0_82 = arith.constant 0 : index
      %209 = vector.load %arg10[%208, %c0_82] : memref<32x384xf32, #tpu.memory_space<vmem>>, vector<8x384xf32>
      %cst_83 = arith.constant dense<0.000000e+00> : vector<8x384xf32>
      %210 = tpu.matmul %161, %5, %cst_83 {dimension_numbers = #tpu.dot_dimension_numbers<[1], [0], [0], [1], [0, 0, 1, 1], [], []>} : vector<8x128xf32>, vector<128x384xf32>, vector<8x384xf32> -> vector<8x384xf32>
      %cst_84 = arith.constant dense<0.000000e+00> : vector<8x384xf32>
      %211 = tpu.matmul %189, %7, %cst_84 {dimension_numbers = #tpu.dot_dimension_numbers<[1], [0], [0], [1], [0, 0, 1, 1], [], []>} : vector<8x128xf32>, vector<128x384xf32>, vector<8x384xf32> -> vector<8x384xf32>
      %212 = vector.extract_strided_slice %204 {offsets = [0, 0], sizes = [8, 128], strides = [1, 1]} : vector<8x384xf32> to vector<8x128xf32>
      %213 = vector.extract_strided_slice %210 {offsets = [0, 0], sizes = [8, 128], strides = [1, 1]} : vector<8x384xf32> to vector<8x128xf32>
      %214 = arith.addf %212, %213 : vector<8x128xf32>
      %215 = arith.negf %214 : vector<8x128xf32>
      %216 = math.exp %215 : vector<8x128xf32>
      %cst_85 = arith.constant 1.000000e+00 : f32
      %217 = vector.broadcast %cst_85 : f32 to vector<8x128xf32>
      %218 = arith.addf %217, %216 : vector<8x128xf32>
      %219 = arith.divf %217, %218 : vector<8x128xf32>
      %220 = vector.extract_strided_slice %204 {offsets = [0, 128], sizes = [8, 128], strides = [1, 1]} : vector<8x384xf32> to vector<8x128xf32>
      %221 = vector.extract_strided_slice %210 {offsets = [0, 128], sizes = [8, 128], strides = [1, 1]} : vector<8x384xf32> to vector<8x128xf32>
      %222 = arith.addf %220, %221 : vector<8x128xf32>
      %223 = arith.negf %222 : vector<8x128xf32>
      %224 = math.exp %223 : vector<8x128xf32>
      %cst_86 = arith.constant 1.000000e+00 : f32
      %225 = vector.broadcast %cst_86 : f32 to vector<8x128xf32>
      %226 = arith.addf %225, %224 : vector<8x128xf32>
      %227 = arith.divf %225, %226 : vector<8x128xf32>
      %228 = vector.extract_strided_slice %204 {offsets = [0, 256], sizes = [8, 128], strides = [1, 1]} : vector<8x384xf32> to vector<8x128xf32>
      %229 = vector.extract_strided_slice %210 {offsets = [0, 256], sizes = [8, 128], strides = [1, 1]} : vector<8x384xf32> to vector<8x128xf32>
      %230 = vector.broadcast %13 : vector<1x128xf32> to vector<8x128xf32>
      %231 = arith.addf %229, %230 : vector<8x128xf32>
      %232 = arith.mulf %219, %231 : vector<8x128xf32>
      %233 = arith.addf %228, %232 : vector<8x128xf32>
      %234 = math.tanh %233 : vector<8x128xf32>
      %cst_87 = arith.constant 1.000000e+00 : f32
      %235 = vector.broadcast %cst_87 : f32 to vector<8x128xf32>
      %236 = arith.subf %235, %227 : vector<8x128xf32>
      %237 = arith.mulf %236, %234 : vector<8x128xf32>
      %238 = arith.mulf %227, %161 : vector<8x128xf32>
      %239 = arith.addf %237, %238 : vector<8x128xf32>
      %240 = vector.extract_strided_slice %209 {offsets = [0, 0], sizes = [8, 128], strides = [1, 1]} : vector<8x384xf32> to vector<8x128xf32>
      %241 = vector.extract_strided_slice %211 {offsets = [0, 0], sizes = [8, 128], strides = [1, 1]} : vector<8x384xf32> to vector<8x128xf32>
      %242 = arith.addf %240, %241 : vector<8x128xf32>
      %243 = arith.negf %242 : vector<8x128xf32>
      %244 = math.exp %243 : vector<8x128xf32>
      %cst_88 = arith.constant 1.000000e+00 : f32
      %245 = vector.broadcast %cst_88 : f32 to vector<8x128xf32>
      %246 = arith.addf %245, %244 : vector<8x128xf32>
      %247 = arith.divf %245, %246 : vector<8x128xf32>
      %248 = vector.extract_strided_slice %209 {offsets = [0, 128], sizes = [8, 128], strides = [1, 1]} : vector<8x384xf32> to vector<8x128xf32>
      %249 = vector.extract_strided_slice %211 {offsets = [0, 128], sizes = [8, 128], strides = [1, 1]} : vector<8x384xf32> to vector<8x128xf32>
      %250 = arith.addf %248, %249 : vector<8x128xf32>
      %251 = arith.negf %250 : vector<8x128xf32>
      %252 = math.exp %251 : vector<8x128xf32>
      %cst_89 = arith.constant 1.000000e+00 : f32
      %253 = vector.broadcast %cst_89 : f32 to vector<8x128xf32>
      %254 = arith.addf %253, %252 : vector<8x128xf32>
      %255 = arith.divf %253, %254 : vector<8x128xf32>
      %256 = vector.extract_strided_slice %209 {offsets = [0, 256], sizes = [8, 128], strides = [1, 1]} : vector<8x384xf32> to vector<8x128xf32>
      %257 = vector.extract_strided_slice %211 {offsets = [0, 256], sizes = [8, 128], strides = [1, 1]} : vector<8x384xf32> to vector<8x128xf32>
      %258 = vector.broadcast %15 : vector<1x128xf32> to vector<8x128xf32>
      %259 = arith.addf %257, %258 : vector<8x128xf32>
      %260 = arith.mulf %247, %259 : vector<8x128xf32>
      %261 = arith.addf %256, %260 : vector<8x128xf32>
      %262 = math.tanh %261 : vector<8x128xf32>
      %cst_90 = arith.constant 1.000000e+00 : f32
      %263 = vector.broadcast %cst_90 : f32 to vector<8x128xf32>
      %264 = arith.subf %263, %255 : vector<8x128xf32>
      %265 = arith.mulf %264, %262 : vector<8x128xf32>
      %266 = arith.mulf %255, %189 : vector<8x128xf32>
      %267 = arith.addf %265, %266 : vector<8x128xf32>
      %268 = arith.index_cast %199 : i32 to index
      %c0_91 = arith.constant 0 : index
      %c0_92 = arith.constant 0 : index
      %269 = vector.load %arg6[%268, %c0_91, %c0_92] : memref<8x8x128xf32, #tpu.memory_space<vmem>>, vector<1x8x128xf32>
      %270 = vector.shape_cast %269 : vector<1x8x128xf32> to vector<8x128xf32>
      %271 = vector.shape_cast %239 : vector<8x128xf32> to vector<1x8x128xf32>
      tpu.vector_store %arg6[%268, %c0_91, %c0_92], %271 {strides = array<i32>} : memref<8x8x128xf32, #tpu.memory_space<vmem>>, vector<1x8x128xf32>,
      %272 = arith.index_cast %200 : i32 to index
      %c0_93 = arith.constant 0 : index
      %c0_94 = arith.constant 0 : index
      %273 = vector.load %arg7[%272, %c0_93, %c0_94] : memref<8x8x128xf32, #tpu.memory_space<vmem>>, vector<1x8x128xf32>
      %274 = vector.shape_cast %273 : vector<1x8x128xf32> to vector<8x128xf32>
      %275 = vector.shape_cast %267 : vector<8x128xf32> to vector<1x8x128xf32>
      tpu.vector_store %arg7[%272, %c0_93, %c0_94], %275 {strides = array<i32>} : memref<8x8x128xf32, #tpu.memory_space<vmem>>, vector<1x8x128xf32>,
      %c3_i32_95 = arith.constant 3 : i32
      %c4_i32_96 = arith.constant 4 : i32
      %276 = arith.muli %arg11, %c4_i32_96 : i32
      %277 = arith.addi %276, %c3_i32_95 : i32
      %c7_i32_97 = arith.constant 7 : i32
      %278 = arith.subi %c7_i32_97, %277 : i32
      %c8_i32_98 = arith.constant 8 : i32
      %279 = arith.muli %c3_i32_95, %c8_i32_98 : i32
      %280 = tpu.assume_multiple %279, 8 : i32
      %281 = arith.index_cast %280 : i32 to index
      %c0_99 = arith.constant 0 : index
      %282 = vector.load %arg9[%281, %c0_99] : memref<32x384xf32, #tpu.memory_space<vmem>>, vector<8x384xf32>
      %c3_i32_100 = arith.constant 3 : i32
      %283 = arith.subi %c3_i32_100, %c3_i32_95 : i32
      %c8_i32_101 = arith.constant 8 : i32
      %284 = arith.muli %283, %c8_i32_101 : i32
      %285 = tpu.assume_multiple %284, 8 : i32
      %286 = arith.index_cast %285 : i32 to index
      %c0_102 = arith.constant 0 : index
      %287 = vector.load %arg10[%286, %c0_102] : memref<32x384xf32, #tpu.memory_space<vmem>>, vector<8x384xf32>
      %cst_103 = arith.constant dense<0.000000e+00> : vector<8x384xf32>
      %288 = tpu.matmul %239, %5, %cst_103 {dimension_numbers = #tpu.dot_dimension_numbers<[1], [0], [0], [1], [0, 0, 1, 1], [], []>} : vector<8x128xf32>, vector<128x384xf32>, vector<8x384xf32> -> vector<8x384xf32>
      %cst_104 = arith.constant dense<0.000000e+00> : vector<8x384xf32>
      %289 = tpu.matmul %267, %7, %cst_104 {dimension_numbers = #tpu.dot_dimension_numbers<[1], [0], [0], [1], [0, 0, 1, 1], [], []>} : vector<8x128xf32>, vector<128x384xf32>, vector<8x384xf32> -> vector<8x384xf32>
      %290 = vector.extract_strided_slice %282 {offsets = [0, 0], sizes = [8, 128], strides = [1, 1]} : vector<8x384xf32> to vector<8x128xf32>
      %291 = vector.extract_strided_slice %288 {offsets = [0, 0], sizes = [8, 128], strides = [1, 1]} : vector<8x384xf32> to vector<8x128xf32>
      %292 = arith.addf %290, %291 : vector<8x128xf32>
      %293 = arith.negf %292 : vector<8x128xf32>
      %294 = math.exp %293 : vector<8x128xf32>
      %cst_105 = arith.constant 1.000000e+00 : f32
      %295 = vector.broadcast %cst_105 : f32 to vector<8x128xf32>
      %296 = arith.addf %295, %294 : vector<8x128xf32>
      %297 = arith.divf %295, %296 : vector<8x128xf32>
      %298 = vector.extract_strided_slice %282 {offsets = [0, 128], sizes = [8, 128], strides = [1, 1]} : vector<8x384xf32> to vector<8x128xf32>
      %299 = vector.extract_strided_slice %288 {offsets = [0, 128], sizes = [8, 128], strides = [1, 1]} : vector<8x384xf32> to vector<8x128xf32>
      %300 = arith.addf %298, %299 : vector<8x128xf32>
      %301 = arith.negf %300 : vector<8x128xf32>
      %302 = math.exp %301 : vector<8x128xf32>
      %cst_106 = arith.constant 1.000000e+00 : f32
      %303 = vector.broadcast %cst_106 : f32 to vector<8x128xf32>
      %304 = arith.addf %303, %302 : vector<8x128xf32>
      %305 = arith.divf %303, %304 : vector<8x128xf32>
      %306 = vector.extract_strided_slice %282 {offsets = [0, 256], sizes = [8, 128], strides = [1, 1]} : vector<8x384xf32> to vector<8x128xf32>
      %307 = vector.extract_strided_slice %288 {offsets = [0, 256], sizes = [8, 128], strides = [1, 1]} : vector<8x384xf32> to vector<8x128xf32>
      %308 = vector.broadcast %13 : vector<1x128xf32> to vector<8x128xf32>
      %309 = arith.addf %307, %308 : vector<8x128xf32>
      %310 = arith.mulf %297, %309 : vector<8x128xf32>
      %311 = arith.addf %306, %310 : vector<8x128xf32>
      %312 = math.tanh %311 : vector<8x128xf32>
      %cst_107 = arith.constant 1.000000e+00 : f32
      %313 = vector.broadcast %cst_107 : f32 to vector<8x128xf32>
      %314 = arith.subf %313, %305 : vector<8x128xf32>
      %315 = arith.mulf %314, %312 : vector<8x128xf32>
      %316 = arith.mulf %305, %239 : vector<8x128xf32>
      %317 = arith.addf %315, %316 : vector<8x128xf32>
      %318 = vector.extract_strided_slice %287 {offsets = [0, 0], sizes = [8, 128], strides = [1, 1]} : vector<8x384xf32> to vector<8x128xf32>
      %319 = vector.extract_strided_slice %289 {offsets = [0, 0], sizes = [8, 128], strides = [1, 1]} : vector<8x384xf32> to vector<8x128xf32>
      %320 = arith.addf %318, %319 : vector<8x128xf32>
      %321 = arith.negf %320 : vector<8x128xf32>
      %322 = math.exp %321 : vector<8x128xf32>
      %cst_108 = arith.constant 1.000000e+00 : f32
      %323 = vector.broadcast %cst_108 : f32 to vector<8x128xf32>
      %324 = arith.addf %323, %322 : vector<8x128xf32>
      %325 = arith.divf %323, %324 : vector<8x128xf32>
      %326 = vector.extract_strided_slice %287 {offsets = [0, 128], sizes = [8, 128], strides = [1, 1]} : vector<8x384xf32> to vector<8x128xf32>
      %327 = vector.extract_strided_slice %289 {offsets = [0, 128], sizes = [8, 128], strides = [1, 1]} : vector<8x384xf32> to vector<8x128xf32>
      %328 = arith.addf %326, %327 : vector<8x128xf32>
      %329 = arith.negf %328 : vector<8x128xf32>
      %330 = math.exp %329 : vector<8x128xf32>
      %cst_109 = arith.constant 1.000000e+00 : f32
      %331 = vector.broadcast %cst_109 : f32 to vector<8x128xf32>
      %332 = arith.addf %331, %330 : vector<8x128xf32>
      %333 = arith.divf %331, %332 : vector<8x128xf32>
      %334 = vector.extract_strided_slice %287 {offsets = [0, 256], sizes = [8, 128], strides = [1, 1]} : vector<8x384xf32> to vector<8x128xf32>
      %335 = vector.extract_strided_slice %289 {offsets = [0, 256], sizes = [8, 128], strides = [1, 1]} : vector<8x384xf32> to vector<8x128xf32>
      %336 = vector.broadcast %15 : vector<1x128xf32> to vector<8x128xf32>
      %337 = arith.addf %335, %336 : vector<8x128xf32>
      %338 = arith.mulf %325, %337 : vector<8x128xf32>
      %339 = arith.addf %334, %338 : vector<8x128xf32>
      %340 = math.tanh %339 : vector<8x128xf32>
      %cst_110 = arith.constant 1.000000e+00 : f32
      %341 = vector.broadcast %cst_110 : f32 to vector<8x128xf32>
      %342 = arith.subf %341, %333 : vector<8x128xf32>
      %343 = arith.mulf %342, %340 : vector<8x128xf32>
      %344 = arith.mulf %333, %267 : vector<8x128xf32>
      %345 = arith.addf %343, %344 : vector<8x128xf32>
      %346 = arith.index_cast %277 : i32 to index
      %c0_111 = arith.constant 0 : index
      %c0_112 = arith.constant 0 : index
      %347 = vector.load %arg6[%346, %c0_111, %c0_112] : memref<8x8x128xf32, #tpu.memory_space<vmem>>, vector<1x8x128xf32>
      %348 = vector.shape_cast %347 : vector<1x8x128xf32> to vector<8x128xf32>
      %349 = vector.shape_cast %317 : vector<8x128xf32> to vector<1x8x128xf32>
      tpu.vector_store %arg6[%346, %c0_111, %c0_112], %349 {strides = array<i32>} : memref<8x8x128xf32, #tpu.memory_space<vmem>>, vector<1x8x128xf32>,
      %350 = arith.index_cast %278 : i32 to index
      %c0_113 = arith.constant 0 : index
      %c0_114 = arith.constant 0 : index
      %351 = vector.load %arg7[%350, %c0_113, %c0_114] : memref<8x8x128xf32, #tpu.memory_space<vmem>>, vector<1x8x128xf32>
      %352 = vector.shape_cast %351 : vector<1x8x128xf32> to vector<8x128xf32>
      %353 = vector.shape_cast %345 : vector<8x128xf32> to vector<1x8x128xf32>
      tpu.vector_store %arg7[%350, %c0_113, %c0_114], %353 {strides = array<i32>} : memref<8x8x128xf32, #tpu.memory_space<vmem>>, vector<1x8x128xf32>,
      %c4_i32_115 = arith.constant 4 : i32
      scf.yield %317, %345 : vector<8x128xf32>, vector<8x128xf32>
    }
    %c2_i32_22 = arith.constant 2 : i32
    %c0_23 = arith.constant 0 : index
    %c0_24 = arith.constant 0 : index
    %c0_25 = arith.constant 0 : index
    %19 = vector.load %arg8[%c0_23, %c0_24, %c0_25] : memref<2x8x128xf32, #tpu.memory_space<vmem>>, vector<1x8x128xf32>
    %20 = vector.shape_cast %19 : vector<1x8x128xf32> to vector<8x128xf32>
    %21 = vector.shape_cast %18#0 : vector<8x128xf32> to vector<1x8x128xf32>
    tpu.vector_store %arg8[%c0_23, %c0_24, %c0_25], %21 {strides = array<i32>} : memref<2x8x128xf32, #tpu.memory_space<vmem>>, vector<1x8x128xf32>,
    %c1_26 = arith.constant 1 : index
    %c0_27 = arith.constant 0 : index
    %c0_28 = arith.constant 0 : index
    %22 = vector.load %arg8[%c1_26, %c0_27, %c0_28] : memref<2x8x128xf32, #tpu.memory_space<vmem>>, vector<1x8x128xf32>
    %23 = vector.shape_cast %22 : vector<1x8x128xf32> to vector<8x128xf32>
    %24 = vector.shape_cast %18#1 : vector<8x128xf32> to vector<1x8x128xf32>
    tpu.vector_store %arg8[%c1_26, %c0_27, %c0_28], %24 {strides = array<i32>} : memref<2x8x128xf32, #tpu.memory_space<vmem>>, vector<1x8x128xf32>,
    return
  }
  func.func @transform_0(%arg0: i32) -> (i32, i32) {
    %c0_i32 = arith.constant 0 : i32
    %c0_i32_0 = arith.constant 0 : i32
    %c0_i32_1 = arith.constant 0 : i32
    return %c0_i32, %c0_i32_0 : i32, i32
  }
  func.func @transform_1(%arg0: i32) -> (i32, i32, i32) {
    %c0_i32 = arith.constant 0 : i32
    %c0_i32_0 = arith.constant 0 : i32
    %c0_i32_1 = arith.constant 0 : i32
    %c0_i32_2 = arith.constant 0 : i32
    return %c0_i32, %c0_i32_0, %c0_i32_1 : i32, i32, i32
  }
  func.func @transform_2(%arg0: i32) -> (i32, i32, i32) {
    %c0_i32 = arith.constant 0 : i32
    %c0_i32_0 = arith.constant 0 : i32
    %c0_i32_1 = arith.constant 0 : i32
    %c0_i32_2 = arith.constant 0 : i32
    return %c0_i32, %c0_i32_0, %c0_i32_1 : i32, i32, i32
  }
  func.func @transform_3(%arg0: i32) -> (i32, i32, i32) {
    %c0_i32 = arith.constant 0 : i32
    %c0_i32_0 = arith.constant 0 : i32
    %c0_i32_1 = arith.constant 0 : i32
    %c0_i32_2 = arith.constant 0 : i32
    return %c0_i32, %c0_i32_0, %c0_i32_1 : i32, i32, i32
  }
  func.func @transform_4(%arg0: i32) -> (i32, i32, i32) {
    %c0_i32 = arith.constant 0 : i32
    %c0_i32_0 = arith.constant 0 : i32
    %c0_i32_1 = arith.constant 0 : i32
    %c0_i32_2 = arith.constant 0 : i32
    return %c0_i32, %c0_i32_0, %c0_i32_1 : i32, i32, i32
  }
  func.func @transform_5(%arg0: i32) -> (i32, i32, i32) {
    %c0_i32 = arith.constant 0 : i32
    %c0_i32_0 = arith.constant 0 : i32
    %c0_i32_1 = arith.constant 0 : i32
    %c0_i32_2 = arith.constant 0 : i32
    return %c0_i32, %c0_i32_0, %c0_i32_1 : i32, i32, i32
  }
  func.func @transform_6(%arg0: i32) -> (i32, i32, i32) {
    %c0_i32 = arith.constant 0 : i32
    %c0_i32_0 = arith.constant 0 : i32
    %c0_i32_1 = arith.constant 0 : i32
    %c0_i32_2 = arith.constant 0 : i32
    return %c0_i32, %c0_i32_0, %c0_i32_1 : i32, i32, i32
  }
  func.func @transform_7(%arg0: i32) -> (i32, i32, i32) {
    %c0_i32 = arith.constant 0 : i32
    %c0_i32_0 = arith.constant 0 : i32
    %c0_i32_1 = arith.constant 0 : i32
    %c0_i32_2 = arith.constant 0 : i32
    return %c0_i32, %c0_i32_0, %c0_i32_1 : i32, i32, i32
  }
}

</mosaic_0001>

<bundles_post_ra>
// kernel: tpu_custom_call.1
= control target key start
LH: loop header
LB: loop body
LE: loop exit
PB: predicated region body
PF: predicated region fallthrough
CT: control target
= control target key end

     0   :  { %13 = vsyncpa [#allocation5], 0  ;;  %s4924_s0 = inlined_call_operand.hbm [shape: f32[64,128], index: 0, kind: input, shape index: {}]   ;;  %s4925_s1 = inlined_call_operand.hbm [shape: f32[2,128,384], index: 1, kind: input, shape index: {}]   ;;  %s4926_s2 = inlined_call_operand.hbm [shape: f32[2,128,384], index: 2, kind: input, shape index: {}]   ;;  %s4927_s3 = inlined_call_operand.vmem [shape: f32[2,1,384], index: 3, kind: input, shape index: {}]   ;;  %s4928_s4 = inlined_call_operand.vmem [shape: f32[2,1,128], index: 4, kind: input, shape index: {}]   ;;  %s4929_s5 = inlined_call_operand.hbm [shape: f32[8,8,128], index: 5, kind: output, shape index: {0}]   ;;  %s4930_s6 = inlined_call_operand.hbm [shape: f32[8,8,128], index: 6, kind: output, shape index: {1}]   ;;  %s4931_s7 = inlined_call_operand.hbm [shape: f32[2,8,128], index: 7, kind: output, shape index: {2}]  }
   0x1   :  { %14 = vsyncpa [#allocation8], 0 }
   0x2   :  { %15 = vsyncpa [#allocation6], 0 }
   0x3   :  { %16 = vsyncpa [#allocation12], 0  ;;  %s3640_s24 = smov [#allocation7]   ;;  %s3476_s28 = scalar_lea.hbm %s4925_s1, 12288 }
   0x4   :  { %s34_s25 = sshll.u32 %s3640_s24, 4  ;;  %p3477_p0 = scmp.ne.s32.totalorder %s4925_s1, %s3476_s28  ;;  %s35_s25 = int_to_ptr.vmem [resolvable:$true] %s34_s25 }
   0x5   :  { %p3480_p1 = scmp.lt.u32.totalorder %s3476_s28, %s4925_s1 }
   0x7   :  { %p3482_p2 = pnand %p3480_p1, %p3477_p0 }
   0x9   :  { %3485 = shalt.err (!%p3482_p2)
}
   0xa   :  { %s3486_s10 = scalar_lea.vmem %s35_s25, 12288  ;;  %p3491_p4 = scmp.lt.s32.totalorder %s35_s25, %s35_s25 }
   0xb   :  { %p3487_p3 = scmp.ne.s32.totalorder %s35_s25, %s3486_s10  ;;  %p3492_p5 = scmp.lt.s32.totalorder %s3486_s10, %s3486_s10 }
   0xd   :  { %p3493_p6 = por %p3492_p5, %p3491_p4 }
   0xf   :  { %p3494_p7 = pnand %p3493_p6, %p3487_p3 }
  0x11   :  { %3497 = shalt.err (!%p3494_p7)
}
  0x12   :  { %s3641_s11 = smov 384   ;;  %s3642_s12 = smov 24  }
  0x13   :  { %40 = dma.hbm_to_vmem [thread:$0]  %s4925_s1, 12288, %s35_s25, [#allocation8], %s3641_s11, %s3641_s11, %s3642_s12  }
  0x14   :  { %s3643_s15 = smov [#allocation4]   ;;  %s3498_s19 = scalar_lea.hbm %s4924_s0, 1024 }
  0x15   :  { %s22_s16 = sshll.u32 %s3643_s15, 4  ;;  %p3499_p8 = scmp.ne.s32.totalorder %s4924_s0, %s3498_s19  ;;  %s23_s16 = int_to_ptr.vmem [resolvable:$true] %s22_s16 }
  0x16   :  { %p3502_p9 = scmp.lt.u32.totalorder %s3498_s19, %s4924_s0 }
  0x18   :  { %p3504_p10 = pnand %p3502_p9, %p3499_p8 }
  0x1a   :  { %3507 = shalt.err (!%p3504_p10)
}
  0x1b   :  { %s3508_s24 = scalar_lea.vmem %s23_s16, 1024  ;;  %p3513_p12 = scmp.lt.s32.totalorder %s23_s16, %s23_s16 }
  0x1c   :  { %p3509_p11 = scmp.ne.s32.totalorder %s23_s16, %s3508_s24  ;;  %p3514_p13 = scmp.lt.s32.totalorder %s3508_s24, %s3508_s24 }
  0x1e   :  { %p3515_p0 = por %p3514_p13, %p3513_p12 }
  0x20   :  { %p3516_p1 = pnand %p3515_p0, %p3509_p11 }
  0x22   :  { %3519 = shalt.err (!%p3516_p1)
}
  0x23   :  { %s3644_s1 = smov 128   ;;  %s3645_s25 = smov 8  }
  0x24   :  { %28 = dma.hbm_to_vmem [thread:$0]  %s4924_s0, 1024, %s23_s16, [#allocation5], %s3644_s1, %s3644_s1, %s3645_s25  }
  0x25   :  { %s3646_s28 = smov [#allocation9]   ;;  %s3520_s9 = scalar_lea.hbm %s4926_s2, 12288 }
  0x26   :  { %s46_s29 = sshll.u32 %s3646_s28, 4  ;;  %p3521_p2 = scmp.ne.s32.totalorder %s4926_s2, %s3520_s9  ;;  %s47_s29 = int_to_ptr.vmem [resolvable:$true] %s46_s29 }
  0x27   :  { %p3524_p3 = scmp.lt.u32.totalorder %s3520_s9, %s4926_s2 }
  0x29   :  { %p3526_p4 = pnand %p3524_p3, %p3521_p2 }
  0x2b   :  { %3529 = shalt.err (!%p3526_p4)
}
  0x2c   :  { %s3530_s17 = scalar_lea.vmem %s47_s29, 12288  ;;  %p3535_p6 = scmp.lt.s32.totalorder %s47_s29, %s47_s29 }
  0x2d   :  { %p3531_p5 = scmp.ne.s32.totalorder %s47_s29, %s3530_s17  ;;  %p3536_p7 = scmp.lt.s32.totalorder %s3530_s17, %s3530_s17 }
  0x2f   :  { %p3537_p8 = por %p3536_p7, %p3535_p6 }
  0x31   :  { %p3538_p9 = pnand %p3537_p8, %p3531_p5 }
  0x33   :  { %3541 = shalt.err (!%p3538_p9)
}
  0x34   :  { %52 = dma.hbm_to_vmem [thread:$0]  %s4926_s2, 12288, %s47_s29, [#allocation8], %s3641_s11, %s3641_s11, %s3642_s12  }
  0x35   :  { %3620 = dma.done.wait [#allocation5], 1024  }
  0x36   :  { %3621 = vsyncadd [#allocation5], 4294966272 }
  0x37   :  { %3622 = dma.done.wait [#allocation8], 24576  }
  0x38   :  { %3623 = vsyncadd [#allocation8], 4294942720  ;;  %v3738_v0 = vld [vmem:[#allocation7] sm:$0xff]  ;;  %v3740_v1 = vld [vmem:[#allocation7 + $0x8] sm:$0xff]  ;;  %s4146_s23 = smov 0  }
  0x39   :  { %4971 = vst [vmem:[#allocation18_spill] sm:$0xff] %v3738_v0  ;;  %4972 = vst [vmem:[#allocation19_spill] sm:$0xff] %v3740_v1  ;;  %v3742_v2 = vld [vmem:[#allocation7 + $0x10] sm:$0xff]  ;;  %v3744_v3 = vld [vmem:[#allocation7 + $0x18] sm:$0xff] }
  0x3a   :  { %4973 = vst [vmem:[#allocation20_spill] sm:$0xff] %v3742_v2  ;;  %4974 = vst [vmem:[#allocation21_spill] sm:$0xff] %v3744_v3  ;;  %v3746_v4 = vld [vmem:[#allocation7 + $0x20] sm:$0xff]  ;;  %v3748_v5 = vld [vmem:[#allocation7 + $0x28] sm:$0xff] }
  0x3b   :  { %4975 = vst [vmem:[#allocation22_spill] sm:$0xff] %v3746_v4  ;;  %4976 = vst [vmem:[#allocation23_spill] sm:$0xff] %v3748_v5  ;;  %v3750_v6 = vld [vmem:[#allocation7 + $0x30] sm:$0xff]  ;;  %v3752_v7 = vld [vmem:[#allocation7 + $0x38] sm:$0xff] }
  0x3c   :  { %4977 = vst [vmem:[#allocation24_spill] sm:$0xff] %v3750_v6  ;;  %4978 = vst [vmem:[#allocation25_spill] sm:$0xff] %v3752_v7  ;;  %v3754_v8 = vld [vmem:[#allocation7 + $0x40] sm:$0xff]  ;;  %v3756_v9 = vld [vmem:[#allocation7 + $0x48] sm:$0xff] }
  0x3d   :  { %4979 = vst [vmem:[#allocation26_spill] sm:$0xff] %v3754_v8  ;;  %4980 = vst [vmem:[#allocation27_spill] sm:$0xff] %v3756_v9  ;;  %v3758_v10 = vld [vmem:[#allocation7 + $0x50] sm:$0xff]  ;;  %v3760_v11 = vld [vmem:[#allocation7 + $0x58] sm:$0xff] }
  0x3e   :  { %4981 = vst [vmem:[#allocation28_spill] sm:$0xff] %v3758_v10  ;;  %4982 = vst [vmem:[#allocation29_spill] sm:$0xff] %v3760_v11  ;;  %v3762_v12 = vld [vmem:[#allocation7 + $0x60] sm:$0xff]  ;;  %v3764_v13 = vld [vmem:[#allocation7 + $0x68] sm:$0xff] }
  0x3f   :  { %4983 = vst [vmem:[#allocation30_spill] sm:$0xff] %v3762_v12  ;;  %4984 = vst [vmem:[#allocation31_spill] sm:$0xff] %v3764_v13  ;;  %v3766_v14 = vld [vmem:[#allocation7 + $0x70] sm:$0xff]  ;;  %v3768_v15 = vld [vmem:[#allocation7 + $0x78] sm:$0xff] }
  0x40   :  { %4985 = vst [vmem:[#allocation32_spill] sm:$0xff] %v3766_v14  ;;  %4986 = vst [vmem:[#allocation33_spill] sm:$0xff] %v3768_v15  ;;  %v3770_v16 = vld [vmem:[#allocation7 + $0x80] sm:$0xff]  ;;  %v3772_v17 = vld [vmem:[#allocation7 + $0x88] sm:$0xff] }
  0x41   :  { %4987 = vst [vmem:[#allocation34_spill] sm:$0xff] %v3770_v16  ;;  %4988 = vst [vmem:[#allocation35_spill] sm:$0xff] %v3772_v17  ;;  %v3774_v18 = vld [vmem:[#allocation7 + $0x90] sm:$0xff]  ;;  %v3776_v19 = vld [vmem:[#allocation7 + $0x98] sm:$0xff] }
  0x42   :  { %4989 = vst [vmem:[#allocation36_spill] sm:$0xff] %v3774_v18  ;;  %4990 = vst [vmem:[#allocation37_spill] sm:$0xff] %v3776_v19  ;;  %v3778_v20 = vld [vmem:[#allocation7 + $0xa0] sm:$0xff]  ;;  %v3780_v21 = vld [vmem:[#allocation7 + $0xa8] sm:$0xff] }
  0x43   :  { %4991 = vst [vmem:[#allocation38_spill] sm:$0xff] %v3778_v20  ;;  %4992 = vst [vmem:[#allocation39_spill] sm:$0xff] %v3780_v21  ;;  %v3782_v22 = vld [vmem:[#allocation7 + $0xb0] sm:$0xff]  ;;  %v3784_v23 = vld [vmem:[#allocation7 + $0xb8] sm:$0xff] }
  0x44   :  { %4993 = vst [vmem:[#allocation40_spill] sm:$0xff] %v3782_v22  ;;  %4994 = vst [vmem:[#allocation41_spill] sm:$0xff] %v3784_v23  ;;  %v3786_v24 = vld [vmem:[#allocation7 + $0xc0] sm:$0xff]  ;;  %v3788_v25 = vld [vmem:[#allocation7 + $0xc8] sm:$0xff] }
  0x45   :  { %4995 = vst [vmem:[#allocation42_spill] sm:$0xff] %v3786_v24  ;;  %4996 = vst [vmem:[#allocation43_spill] sm:$0xff] %v3788_v25  ;;  %v3790_v26 = vld [vmem:[#allocation7 + $0xd0] sm:$0xff]  ;;  %v3792_v27 = vld [vmem:[#allocation7 + $0xd8] sm:$0xff] }
  0x46   :  { %4997 = vst [vmem:[#allocation44_spill] sm:$0xff] %v3790_v26  ;;  %4998 = vst [vmem:[#allocation45_spill] sm:$0xff] %v3792_v27  ;;  %v3794_v28 = vld [vmem:[#allocation7 + $0xe0] sm:$0xff]  ;;  %v3796_v29 = vld [vmem:[#allocation7 + $0xe8] sm:$0xff] }
  0x47   :  { %4999 = vst [vmem:[#allocation46_spill] sm:$0xff] %v3794_v28  ;;  %5000 = vst [vmem:[#allocation47_spill] sm:$0xff] %v3796_v29  ;;  %v3798_v30 = vld [vmem:[#allocation7 + $0xf0] sm:$0xff]  ;;  %v3800_v31 = vld [vmem:[#allocation7 + $0xf8] sm:$0xff] }
  0x48   :  { %5001 = vst [vmem:[#allocation48_spill] sm:$0xff] %v3798_v30  ;;  %5002 = vst [vmem:[#allocation49_spill] sm:$0xff] %v3800_v31  ;;  %v3802_v32 = vld [vmem:[#allocation7 + $0x100] sm:$0xff]  ;;  %v3804_v33 = vld [vmem:[#allocation7 + $0x108] sm:$0xff] }
  0x49   :  { %5003 = vst [vmem:[#allocation50_spill] sm:$0xff] %v3802_v32  ;;  %5004 = vst [vmem:[#allocation51_spill] sm:$0xff] %v3804_v33  ;;  %v3806_v34 = vld [vmem:[#allocation7 + $0x110] sm:$0xff]  ;;  %v3808_v35 = vld [vmem:[#allocation7 + $0x118] sm:$0xff] }
  0x4a   :  { %5005 = vst [vmem:[#allocation52_spill] sm:$0xff] %v3806_v34  ;;  %5006 = vst [vmem:[#allocation53_spill] sm:$0xff] %v3808_v35  ;;  %v3810_v36 = vld [vmem:[#allocation7 + $0x120] sm:$0xff]  ;;  %v3812_v37 = vld [vmem:[#allocation7 + $0x128] sm:$0xff] }
  0x4b   :  { %5007 = vst [vmem:[#allocation54_spill] sm:$0xff] %v3810_v36  ;;  %5008 = vst [vmem:[#allocation55_spill] sm:$0xff] %v3812_v37  ;;  %v3814_v38 = vld [vmem:[#allocation7 + $0x130] sm:$0xff]  ;;  %v3816_v39 = vld [vmem:[#allocation7 + $0x138] sm:$0xff] }
  0x4c   :  { %5009 = vst [vmem:[#allocation56_spill] sm:$0xff] %v3814_v38  ;;  %5010 = vst [vmem:[#allocation57_spill] sm:$0xff] %v3816_v39  ;;  %v3818_v40 = vld [vmem:[#allocation7 + $0x140] sm:$0xff]  ;;  %v3820_v41 = vld [vmem:[#allocation7 + $0x148] sm:$0xff] }
  0x4d   :  { %5011 = vst [vmem:[#allocation58_spill] sm:$0xff] %v3818_v40  ;;  %5012 = vst [vmem:[#allocation59_spill] sm:$0xff] %v3820_v41  ;;  %v3822_v42 = vld [vmem:[#allocation7 + $0x150] sm:$0xff]  ;;  %v3824_v43 = vld [vmem:[#allocation7 + $0x158] sm:$0xff] }
  0x4e   :  { %5013 = vst [vmem:[#allocation60_spill] sm:$0xff] %v3822_v42  ;;  %5014 = vst [vmem:[#allocation61_spill] sm:$0xff] %v3824_v43  ;;  %v3826_v44 = vld [vmem:[#allocation7 + $0x160] sm:$0xff]  ;;  %v3828_v45 = vld [vmem:[#allocation7 + $0x168] sm:$0xff] }
  0x4f   :  { %5015 = vst [vmem:[#allocation62_spill] sm:$0xff] %v3826_v44  ;;  %5016 = vst [vmem:[#allocation63_spill] sm:$0xff] %v3828_v45  ;;  %v3830_v46 = vld [vmem:[#allocation7 + $0x170] sm:$0xff]  ;;  %v3832_v47 = vld [vmem:[#allocation7 + $0x178] sm:$0xff] }
  0x50   :  { %5017 = vst [vmem:[#allocation64_spill] sm:$0xff] %v3830_v46  ;;  %5018 = vst [vmem:[#allocation65_spill] sm:$0xff] %v3832_v47  ;;  %v3834_v48 = vld [vmem:[#allocation7 + $0x180] sm:$0xff]  ;;  %v3836_v49 = vld [vmem:[#allocation7 + $0x188] sm:$0xff] }
  0x51   :  { %5019 = vst [vmem:[#allocation66_spill] sm:$0xff] %v3834_v48  ;;  %5020 = vst [vmem:[#allocation67_spill] sm:$0xff] %v3836_v49  ;;  %v3838_v50 = vld [vmem:[#allocation7 + $0x190] sm:$0xff]  ;;  %v3840_v51 = vld [vmem:[#allocation7 + $0x198] sm:$0xff] }
  0x52   :  { %5021 = vst [vmem:[#allocation68_spill] sm:$0xff] %v3838_v50  ;;  %5022 = vst [vmem:[#allocation69_spill] sm:$0xff] %v3840_v51  ;;  %v3842_v52 = vld [vmem:[#allocation7 + $0x1a0] sm:$0xff]  ;;  %v3844_v53 = vld [vmem:[#allocation7 + $0x1a8] sm:$0xff] }
  0x53   :  { %5023 = vst [vmem:[#allocation70_spill] sm:$0xff] %v3842_v52  ;;  %5024 = vst [vmem:[#allocation71_spill] sm:$0xff] %v3844_v53  ;;  %v3846_v54 = vld [vmem:[#allocation7 + $0x1b0] sm:$0xff]  ;;  %v3848_v55 = vld [vmem:[#allocation7 + $0x1b8] sm:$0xff] }
  0x54   :  { %5025 = vst [vmem:[#allocation72_spill] sm:$0xff] %v3846_v54  ;;  %5026 = vst [vmem:[#allocation73_spill] sm:$0xff] %v3848_v55  ;;  %v3850_v56 = vld [vmem:[#allocation7 + $0x1c0] sm:$0xff]  ;;  %v3852_v57 = vld [vmem:[#allocation7 + $0x1c8] sm:$0xff] }
  0x55   :  { %5027 = vst [vmem:[#allocation74_spill] sm:$0xff] %v3850_v56  ;;  %5028 = vst [vmem:[#allocation75_spill] sm:$0xff] %v3852_v57  ;;  %v3854_v58 = vld [vmem:[#allocation7 + $0x1d0] sm:$0xff]  ;;  %v3856_v59 = vld [vmem:[#allocation7 + $0x1d8] sm:$0xff] }
  0x56   :  { %5029 = vst [vmem:[#allocation76_spill] sm:$0xff] %v3854_v58  ;;  %5030 = vst [vmem:[#allocation77_spill] sm:$0xff] %v3856_v59  ;;  %v3858_v60 = vld [vmem:[#allocation7 + $0x1e0] sm:$0xff]  ;;  %v3860_v61 = vld [vmem:[#allocation7 + $0x1e8] sm:$0xff] }
  0x57   :  { %5031 = vst [vmem:[#allocation78_spill] sm:$0xff] %v3858_v60  ;;  %5032 = vst [vmem:[#allocation79_spill] sm:$0xff] %v3860_v61  ;;  %v3862_v62 = vld [vmem:[#allocation7 + $0x1f0] sm:$0xff]  ;;  %v3864_v63 = vld [vmem:[#allocation7 + $0x1f8] sm:$0xff] }
  0x58   :  { %5033 = vst [vmem:[#allocation80_spill] sm:$0xff] %v3862_v62  ;;  %5034 = vst [vmem:[#allocation81_spill] sm:$0xff] %v3864_v63  ;;  %v3866_v53 = vld [vmem:[#allocation7 + $0x200] sm:$0xff]  ;;  %v3868_v54 = vld [vmem:[#allocation7 + $0x208] sm:$0xff] }
  0x59   :  { %5035 = vst [vmem:[#allocation82_spill] sm:$0xff] %v3866_v53  ;;  %5036 = vst [vmem:[#allocation83_spill] sm:$0xff] %v3868_v54  ;;  %v3870_v50 = vld [vmem:[#allocation7 + $0x210] sm:$0xff]  ;;  %v3872_v56 = vld [vmem:[#allocation7 + $0x218] sm:$0xff] }
  0x5a   :  { %5037 = vst [vmem:[#allocation84_spill] sm:$0xff] %v3870_v50  ;;  %5038 = vst [vmem:[#allocation85_spill] sm:$0xff] %v3872_v56  ;;  %v3874_v57 = vld [vmem:[#allocation7 + $0x220] sm:$0xff]  ;;  %v3876_v58 = vld [vmem:[#allocation7 + $0x228] sm:$0xff] }
  0x5b   :  { %5039 = vst [vmem:[#allocation86_spill] sm:$0xff] %v3874_v57  ;;  %5040 = vst [vmem:[#allocation87_spill] sm:$0xff] %v3876_v58  ;;  %v3878_v59 = vld [vmem:[#allocation7 + $0x230] sm:$0xff]  ;;  %v3880_v60 = vld [vmem:[#allocation7 + $0x238] sm:$0xff] }
  0x5c   :  { %5041 = vst [vmem:[#allocation88_spill] sm:$0xff] %v3878_v59  ;;  %5042 = vst [vmem:[#allocation89_spill] sm:$0xff] %v3880_v60  ;;  %v3882_v61 = vld [vmem:[#allocation7 + $0x240] sm:$0xff]  ;;  %v3884_v62 = vld [vmem:[#allocation7 + $0x248] sm:$0xff] }
  0x5d   :  { %5043 = vst [vmem:[#allocation90_spill] sm:$0xff] %v3882_v61  ;;  %5044 = vst [vmem:[#allocation91_spill] sm:$0xff] %v3884_v62  ;;  %v3886_v63 = vld [vmem:[#allocation7 + $0x250] sm:$0xff]  ;;  %v3888_v53 = vld [vmem:[#allocation7 + $0x258] sm:$0xff] }
  0x5e   :  { %5045 = vst [vmem:[#allocation92_spill] sm:$0xff] %v3886_v63  ;;  %5046 = vst [vmem:[#allocation93_spill] sm:$0xff] %v3888_v53  ;;  %v3890_v54 = vld [vmem:[#allocation7 + $0x260] sm:$0xff]  ;;  %v3892_v50 = vld [vmem:[#allocation7 + $0x268] sm:$0xff] }
  0x5f   :  { %5047 = vst [vmem:[#allocation94_spill] sm:$0xff] %v3890_v54  ;;  %5048 = vst [vmem:[#allocation95_spill] sm:$0xff] %v3892_v50  ;;  %v3894_v56 = vld [vmem:[#allocation7 + $0x270] sm:$0xff]  ;;  %v3896_v57 = vld [vmem:[#allocation7 + $0x278] sm:$0xff] }
  0x60   :  { %5049 = vst [vmem:[#allocation96_spill] sm:$0xff] %v3894_v56  ;;  %5050 = vst [vmem:[#allocation97_spill] sm:$0xff] %v3896_v57  ;;  %v3898_v58 = vld [vmem:[#allocation7 + $0x280] sm:$0xff]  ;;  %v3900_v59 = vld [vmem:[#allocation7 + $0x288] sm:$0xff] }
  0x61   :  { %5051 = vst [vmem:[#allocation98_spill] sm:$0xff] %v3898_v58  ;;  %5052 = vst [vmem:[#allocation99_spill] sm:$0xff] %v3900_v59  ;;  %v3902_v60 = vld [vmem:[#allocation7 + $0x290] sm:$0xff]  ;;  %v3904_v61 = vld [vmem:[#allocation7 + $0x298] sm:$0xff] }
  0x62   :  { %5053 = vst [vmem:[#allocation100_spill] sm:$0xff] %v3902_v60  ;;  %5054 = vst [vmem:[#allocation101_spill] sm:$0xff] %v3904_v61  ;;  %v3906_v62 = vld [vmem:[#allocation7 + $0x2a0] sm:$0xff]  ;;  %v3908_v63 = vld [vmem:[#allocation7 + $0x2a8] sm:$0xff] }
  0x63   :  { %5055 = vst [vmem:[#allocation102_spill] sm:$0xff] %v3906_v62  ;;  %5056 = vst [vmem:[#allocation103_spill] sm:$0xff] %v3908_v63  ;;  %v3910_v53 = vld [vmem:[#allocation7 + $0x2b0] sm:$0xff]  ;;  %v3912_v54 = vld [vmem:[#allocation7 + $0x2b8] sm:$0xff] }
  0x64   :  { %5057 = vst [vmem:[#allocation104_spill] sm:$0xff] %v3910_v53  ;;  %5058 = vst [vmem:[#allocation105_spill] sm:$0xff] %v3912_v54  ;;  %v3914_v50 = vld [vmem:[#allocation7 + $0x2c0] sm:$0xff]  ;;  %v3916_v56 = vld [vmem:[#allocation7 + $0x2c8] sm:$0xff] }
  0x65   :  { %5059 = vst [vmem:[#allocation106_spill] sm:$0xff] %v3914_v50  ;;  %5060 = vst [vmem:[#allocation107_spill] sm:$0xff] %v3916_v56  ;;  %v3918_v57 = vld [vmem:[#allocation7 + $0x2d0] sm:$0xff]  ;;  %v3920_v58 = vld [vmem:[#allocation7 + $0x2d8] sm:$0xff] }
  0x66   :  { %5061 = vst [vmem:[#allocation108_spill] sm:$0xff] %v3918_v57  ;;  %5062 = vst [vmem:[#allocation109_spill] sm:$0xff] %v3920_v58  ;;  %v3922_v59 = vld [vmem:[#allocation7 + $0x2e0] sm:$0xff]  ;;  %v3924_v60 = vld [vmem:[#allocation7 + $0x2e8] sm:$0xff] }
  0x67   :  { %5063 = vst [vmem:[#allocation110_spill] sm:$0xff] %v3922_v59  ;;  %5064 = vst [vmem:[#allocation111_spill] sm:$0xff] %v3924_v60  ;;  %v3926_v61 = vld [vmem:[#allocation7 + $0x2f0] sm:$0xff]  ;;  %v3928_v62 = vld [vmem:[#allocation7 + $0x2f8] sm:$0xff] }
  0x68   :  { %5065 = vst [vmem:[#allocation112_spill] sm:$0xff] %v3926_v61  ;;  %5066 = vst [vmem:[#allocation113_spill] sm:$0xff] %v3928_v62  ;;  %v3930_v63 = vld [vmem:[#allocation9] sm:$0xff]  ;;  %v3932_v53 = vld [vmem:[#allocation9 + $0x8] sm:$0xff] }
  0x69   :  { %5067 = vst [vmem:[#allocation114_spill] sm:$0xff] %v3930_v63  ;;  %5068 = vst [vmem:[#allocation115_spill] sm:$0xff] %v3932_v53  ;;  %v3934_v54 = vld [vmem:[#allocation9 + $0x10] sm:$0xff]  ;;  %v3936_v50 = vld [vmem:[#allocation9 + $0x18] sm:$0xff] }
  0x6a   :  { %5069 = vst [vmem:[#allocation116_spill] sm:$0xff] %v3934_v54  ;;  %5070 = vst [vmem:[#allocation117_spill] sm:$0xff] %v3936_v50  ;;  %v3938_v56 = vld [vmem:[#allocation9 + $0x20] sm:$0xff]  ;;  %v3940_v57 = vld [vmem:[#allocation9 + $0x28] sm:$0xff] }
  0x6b   :  { %5071 = vst [vmem:[#allocation118_spill] sm:$0xff] %v3938_v56  ;;  %5072 = vst [vmem:[#allocation119_spill] sm:$0xff] %v3940_v57  ;;  %v3942_v58 = vld [vmem:[#allocation9 + $0x30] sm:$0xff]  ;;  %v3944_v59 = vld [vmem:[#allocation9 + $0x38] sm:$0xff] }
  0x6c   :  { %5073 = vst [vmem:[#allocation120_spill] sm:$0xff] %v3942_v58  ;;  %5074 = vst [vmem:[#allocation121_spill] sm:$0xff] %v3944_v59  ;;  %v3946_v60 = vld [vmem:[#allocation9 + $0x40] sm:$0xff]  ;;  %v3948_v61 = vld [vmem:[#allocation9 + $0x48] sm:$0xff] }
  0x6d   :  { %5075 = vst [vmem:[#allocation122_spill] sm:$0xff] %v3946_v60  ;;  %5076 = vst [vmem:[#allocation123_spill] sm:$0xff] %v3948_v61  ;;  %v3950_v62 = vld [vmem:[#allocation9 + $0x50] sm:$0xff]  ;;  %v3952_v63 = vld [vmem:[#allocation9 + $0x58] sm:$0xff] }
  0x6e   :  { %5077 = vst [vmem:[#allocation124_spill] sm:$0xff] %v3950_v62  ;;  %5078 = vst [vmem:[#allocation125_spill] sm:$0xff] %v3952_v63  ;;  %v3954_v53 = vld [vmem:[#allocation9 + $0x60] sm:$0xff]  ;;  %v3956_v54 = vld [vmem:[#allocation9 + $0x68] sm:$0xff] }
  0x6f   :  { %5079 = vst [vmem:[#allocation126_spill] sm:$0xff] %v3954_v53  ;;  %5080 = vst [vmem:[#allocation127_spill] sm:$0xff] %v3956_v54  ;;  %v3958_v50 = vld [vmem:[#allocation9 + $0x70] sm:$0xff]  ;;  %v3960_v56 = vld [vmem:[#allocation9 + $0x78] sm:$0xff] }
  0x70   :  { %5081 = vst [vmem:[#allocation128_spill] sm:$0xff] %v3958_v50  ;;  %5082 = vst [vmem:[#allocation129_spill] sm:$0xff] %v3960_v56  ;;  %v3962_v57 = vld [vmem:[#allocation9 + $0x80] sm:$0xff]  ;;  %v3964_v58 = vld [vmem:[#allocation9 + $0x88] sm:$0xff] }
  0x71   :  { %5083 = vst [vmem:[#allocation130_spill] sm:$0xff] %v3962_v57  ;;  %5084 = vst [vmem:[#allocation131_spill] sm:$0xff] %v3964_v58  ;;  %v3966_v59 = vld [vmem:[#allocation9 + $0x90] sm:$0xff]  ;;  %v3968_v60 = vld [vmem:[#allocation9 + $0x98] sm:$0xff] }
  0x72   :  { %5085 = vst [vmem:[#allocation132_spill] sm:$0xff] %v3966_v59  ;;  %5086 = vst [vmem:[#allocation133_spill] sm:$0xff] %v3968_v60  ;;  %v3970_v61 = vld [vmem:[#allocation9 + $0xa0] sm:$0xff]  ;;  %v3972_v62 = vld [vmem:[#allocation9 + $0xa8] sm:$0xff] }
  0x73   :  { %5087 = vst [vmem:[#allocation134_spill] sm:$0xff] %v3970_v61  ;;  %5088 = vst [vmem:[#allocation135_spill] sm:$0xff] %v3972_v62  ;;  %v3974_v63 = vld [vmem:[#allocation9 + $0xb0] sm:$0xff]  ;;  %v3976_v53 = vld [vmem:[#allocation9 + $0xb8] sm:$0xff] }
  0x74   :  { %5089 = vst [vmem:[#allocation136_spill] sm:$0xff] %v3974_v63  ;;  %5090 = vst [vmem:[#allocation137_spill] sm:$0xff] %v3976_v53  ;;  %v3978_v54 = vld [vmem:[#allocation9 + $0xc0] sm:$0xff]  ;;  %v3980_v50 = vld [vmem:[#allocation9 + $0xc8] sm:$0xff] }
  0x75   :  { %5091 = vst [vmem:[#allocation138_spill] sm:$0xff] %v3978_v54  ;;  %5092 = vst [vmem:[#allocation139_spill] sm:$0xff] %v3980_v50  ;;  %v3982_v56 = vld [vmem:[#allocation9 + $0xd0] sm:$0xff]  ;;  %v3984_v57 = vld [vmem:[#allocation9 + $0xd8] sm:$0xff] }
  0x76   :  { %5093 = vst [vmem:[#allocation140_spill] sm:$0xff] %v3982_v56  ;;  %5094 = vst [vmem:[#allocation141_spill] sm:$0xff] %v3984_v57  ;;  %v3986_v58 = vld [vmem:[#allocation9 + $0xe0] sm:$0xff]  ;;  %v3988_v59 = vld [vmem:[#allocation9 + $0xe8] sm:$0xff] }
  0x77   :  { %5095 = vst [vmem:[#allocation142_spill] sm:$0xff] %v3986_v58  ;;  %5096 = vst [vmem:[#allocation143_spill] sm:$0xff] %v3988_v59  ;;  %v3990_v60 = vld [vmem:[#allocation9 + $0xf0] sm:$0xff]  ;;  %v3992_v61 = vld [vmem:[#allocation9 + $0xf8] sm:$0xff] }
  0x78   :  { %5097 = vst [vmem:[#allocation144_spill] sm:$0xff] %v3990_v60  ;;  %5098 = vst [vmem:[#allocation145_spill] sm:$0xff] %v3992_v61  ;;  %v3994_v62 = vld [vmem:[#allocation9 + $0x100] sm:$0xff]  ;;  %v3996_v63 = vld [vmem:[#allocation9 + $0x108] sm:$0xff] }
  0x79   :  { %5099 = vst [vmem:[#allocation146_spill] sm:$0xff] %v3994_v62  ;;  %5100 = vst [vmem:[#allocation147_spill] sm:$0xff] %v3996_v63  ;;  %v3998_v53 = vld [vmem:[#allocation9 + $0x110] sm:$0xff]  ;;  %v4000_v54 = vld [vmem:[#allocation9 + $0x118] sm:$0xff] }
  0x7a   :  { %5101 = vst [vmem:[#allocation148_spill] sm:$0xff] %v3998_v53  ;;  %5102 = vst [vmem:[#allocation149_spill] sm:$0xff] %v4000_v54  ;;  %v4002_v50 = vld [vmem:[#allocation9 + $0x120] sm:$0xff]  ;;  %v4004_v56 = vld [vmem:[#allocation9 + $0x128] sm:$0xff] }
  0x7b   :  { %5103 = vst [vmem:[#allocation150_spill] sm:$0xff] %v4002_v50  ;;  %5104 = vst [vmem:[#allocation151_spill] sm:$0xff] %v4004_v56  ;;  %v4006_v57 = vld [vmem:[#allocation9 + $0x130] sm:$0xff]  ;;  %v4008_v58 = vld [vmem:[#allocation9 + $0x138] sm:$0xff] }
  0x7c   :  { %5105 = vst [vmem:[#allocation152_spill] sm:$0xff] %v4006_v57  ;;  %5106 = vst [vmem:[#allocation153_spill] sm:$0xff] %v4008_v58  ;;  %v4010_v59 = vld [vmem:[#allocation9 + $0x140] sm:$0xff]  ;;  %v4012_v60 = vld [vmem:[#allocation9 + $0x148] sm:$0xff] }
  0x7d   :  { %5107 = vst [vmem:[#allocation154_spill] sm:$0xff] %v4010_v59  ;;  %5108 = vst [vmem:[#allocation155_spill] sm:$0xff] %v4012_v60  ;;  %v4014_v61 = vld [vmem:[#allocation9 + $0x150] sm:$0xff]  ;;  %v4016_v62 = vld [vmem:[#allocation9 + $0x158] sm:$0xff] }
  0x7e   :  { %5109 = vst [vmem:[#allocation156_spill] sm:$0xff] %v4014_v61  ;;  %5110 = vst [vmem:[#allocation157_spill] sm:$0xff] %v4016_v62  ;;  %v4018_v63 = vld [vmem:[#allocation9 + $0x160] sm:$0xff]  ;;  %v4020_v53 = vld [vmem:[#allocation9 + $0x168] sm:$0xff] }
  0x7f   :  { %5111 = vst [vmem:[#allocation158_spill] sm:$0xff] %v4018_v63  ;;  %5112 = vst [vmem:[#allocation159_spill] sm:$0xff] %v4020_v53  ;;  %v4022_v54 = vld [vmem:[#allocation9 + $0x170] sm:$0xff]  ;;  %v4024_v50 = vld [vmem:[#allocation9 + $0x178] sm:$0xff] }
  0x80   :  { %5113 = vst [vmem:[#allocation160_spill] sm:$0xff] %v4022_v54  ;;  %5114 = vst [vmem:[#allocation161_spill] sm:$0xff] %v4024_v50  ;;  %v4026_v56 = vld [vmem:[#allocation9 + $0x180] sm:$0xff]  ;;  %v4028_v57 = vld [vmem:[#allocation9 + $0x188] sm:$0xff] }
  0x81   :  { %5115 = vst [vmem:[#allocation162_spill] sm:$0xff] %v4026_v56  ;;  %5116 = vst [vmem:[#allocation163_spill] sm:$0xff] %v4028_v57  ;;  %v4030_v58 = vld [vmem:[#allocation9 + $0x190] sm:$0xff]  ;;  %v4032_v59 = vld [vmem:[#allocation9 + $0x198] sm:$0xff] }
  0x82   :  { %5117 = vst [vmem:[#allocation164_spill] sm:$0xff] %v4030_v58  ;;  %5118 = vst [vmem:[#allocation165_spill] sm:$0xff] %v4032_v59  ;;  %v4034_v60 = vld [vmem:[#allocation9 + $0x1a0] sm:$0xff]  ;;  %v4036_v61 = vld [vmem:[#allocation9 + $0x1a8] sm:$0xff] }
  0x83   :  { %5119 = vst [vmem:[#allocation166_spill] sm:$0xff] %v4034_v60  ;;  %5120 = vst [vmem:[#allocation167_spill] sm:$0xff] %v4036_v61  ;;  %v4038_v62 = vld [vmem:[#allocation9 + $0x1b0] sm:$0xff]  ;;  %v4040_v63 = vld [vmem:[#allocation9 + $0x1b8] sm:$0xff] }
  0x84   :  { %5121 = vst [vmem:[#allocation168_spill] sm:$0xff] %v4038_v62  ;;  %5122 = vst [vmem:[#allocation169_spill] sm:$0xff] %v4040_v63  ;;  %v4042_v53 = vld [vmem:[#allocation9 + $0x1c0] sm:$0xff]  ;;  %v4044_v54 = vld [vmem:[#allocation9 + $0x1c8] sm:$0xff] }
  0x85   :  { %5123 = vst [vmem:[#allocation170_spill] sm:$0xff] %v4042_v53  ;;  %5124 = vst [vmem:[#allocation171_spill] sm:$0xff] %v4044_v54  ;;  %v4046_v50 = vld [vmem:[#allocation9 + $0x1d0] sm:$0xff]  ;;  %v4048_v56 = vld [vmem:[#allocation9 + $0x1d8] sm:$0xff] }
  0x86   :  { %5125 = vst [vmem:[#allocation172_spill] sm:$0xff] %v4046_v50  ;;  %5126 = vst [vmem:[#allocation173_spill] sm:$0xff] %v4048_v56  ;;  %v4050_v57 = vld [vmem:[#allocation9 + $0x1e0] sm:$0xff]  ;;  %v4052_v58 = vld [vmem:[#allocation9 + $0x1e8] sm:$0xff] }
  0x87   :  { %5127 = vst [vmem:[#allocation174_spill] sm:$0xff] %v4050_v57  ;;  %5128 = vst [vmem:[#allocation175_spill] sm:$0xff] %v4052_v58  ;;  %v4054_v59 = vld [vmem:[#allocation9 + $0x1f0] sm:$0xff]  ;;  %v4056_v60 = vld [vmem:[#allocation9 + $0x1f8] sm:$0xff] }
  0x88   :  { %5129 = vst [vmem:[#allocation176_spill] sm:$0xff] %v4054_v59  ;;  %5130 = vst [vmem:[#allocation177_spill] sm:$0xff] %v4056_v60  ;;  %v4058_v61 = vld [vmem:[#allocation9 + $0x200] sm:$0xff]  ;;  %v4060_v62 = vld [vmem:[#allocation9 + $0x208] sm:$0xff] }
  0x89   :  { %5131 = vst [vmem:[#allocation178_spill] sm:$0xff] %v4058_v61  ;;  %5132 = vst [vmem:[#allocation179_spill] sm:$0xff] %v4060_v62  ;;  %v4062_v63 = vld [vmem:[#allocation9 + $0x210] sm:$0xff]  ;;  %v4064_v53 = vld [vmem:[#allocation9 + $0x218] sm:$0xff] }
  0x8a   :  { %5133 = vst [vmem:[#allocation180_spill] sm:$0xff] %v4062_v63  ;;  %5134 = vst [vmem:[#allocation181_spill] sm:$0xff] %v4064_v53  ;;  %v4066_v54 = vld [vmem:[#allocation9 + $0x220] sm:$0xff]  ;;  %v4068_v50 = vld [vmem:[#allocation9 + $0x228] sm:$0xff] }
  0x8b   :  { %5135 = vst [vmem:[#allocation182_spill] sm:$0xff] %v4066_v54  ;;  %5136 = vst [vmem:[#allocation183_spill] sm:$0xff] %v4068_v50  ;;  %v4070_v56 = vld [vmem:[#allocation9 + $0x230] sm:$0xff]  ;;  %v4072_v57 = vld [vmem:[#allocation9 + $0x238] sm:$0xff] }
  0x8c   :  { %5137 = vst [vmem:[#allocation184_spill] sm:$0xff] %v4070_v56  ;;  %5138 = vst [vmem:[#allocation185_spill] sm:$0xff] %v4072_v57  ;;  %v4074_v58 = vld [vmem:[#allocation9 + $0x240] sm:$0xff]  ;;  %v4076_v59 = vld [vmem:[#allocation9 + $0x248] sm:$0xff] }
  0x8d   :  { %5139 = vst [vmem:[#allocation186_spill] sm:$0xff] %v4074_v58  ;;  %5140 = vst [vmem:[#allocation187_spill] sm:$0xff] %v4076_v59  ;;  %v4078_v60 = vld [vmem:[#allocation9 + $0x250] sm:$0xff]  ;;  %v4080_v61 = vld [vmem:[#allocation9 + $0x258] sm:$0xff] }
  0x8e   :  { %5141 = vst [vmem:[#allocation188_spill] sm:$0xff] %v4078_v60  ;;  %5142 = vst [vmem:[#allocation189_spill] sm:$0xff] %v4080_v61  ;;  %v4082_v62 = vld [vmem:[#allocation9 + $0x260] sm:$0xff]  ;;  %v4084_v63 = vld [vmem:[#allocation9 + $0x268] sm:$0xff] }
  0x8f   :  { %5143 = vst [vmem:[#allocation190_spill] sm:$0xff] %v4082_v62  ;;  %5144 = vst [vmem:[#allocation191_spill] sm:$0xff] %v4084_v63  ;;  %v4086_v53 = vld [vmem:[#allocation9 + $0x270] sm:$0xff]  ;;  %v4088_v54 = vld [vmem:[#allocation9 + $0x278] sm:$0xff] }
  0x90   :  { %5145 = vst [vmem:[#allocation192_spill] sm:$0xff] %v4086_v53  ;;  %5146 = vst [vmem:[#allocation193_spill] sm:$0xff] %v4088_v54  ;;  %v4090_v50 = vld [vmem:[#allocation9 + $0x280] sm:$0xff]  ;;  %v4092_v56 = vld [vmem:[#allocation9 + $0x288] sm:$0xff] }
  0x91   :  { %5147 = vst [vmem:[#allocation194_spill] sm:$0xff] %v4090_v50  ;;  %5148 = vst [vmem:[#allocation195_spill] sm:$0xff] %v4092_v56  ;;  %v4094_v57 = vld [vmem:[#allocation9 + $0x290] sm:$0xff]  ;;  %v4096_v58 = vld [vmem:[#allocation9 + $0x298] sm:$0xff] }
  0x92   :  { %5149 = vst [vmem:[#allocation196_spill] sm:$0xff] %v4094_v57  ;;  %5150 = vst [vmem:[#allocation197_spill] sm:$0xff] %v4096_v58  ;;  %v4098_v59 = vld [vmem:[#allocation9 + $0x2a0] sm:$0xff]  ;;  %v4100_v60 = vld [vmem:[#allocation9 + $0x2a8] sm:$0xff] }
  0x93   :  { %5151 = vst [vmem:[#allocation198_spill] sm:$0xff] %v4098_v59  ;;  %5152 = vst [vmem:[#allocation199_spill] sm:$0xff] %v4100_v60  ;;  %v4102_v61 = vld [vmem:[#allocation9 + $0x2b0] sm:$0xff]  ;;  %v4104_v62 = vld [vmem:[#allocation9 + $0x2b8] sm:$0xff] }
  0x94   :  { %5153 = vst [vmem:[#allocation200_spill] sm:$0xff] %v4102_v61  ;;  %5154 = vst [vmem:[#allocation201_spill] sm:$0xff] %v4104_v62  ;;  %v4106_v63 = vld [vmem:[#allocation9 + $0x2c0] sm:$0xff]  ;;  %v4108_v53 = vld [vmem:[#allocation9 + $0x2c8] sm:$0xff] }
  0x95   :  { %5155 = vst [vmem:[#allocation202_spill] sm:$0xff] %v4106_v63  ;;  %5156 = vst [vmem:[#allocation203_spill] sm:$0xff] %v4108_v53  ;;  %v4110_v54 = vld [vmem:[#allocation9 + $0x2d0] sm:$0xff]  ;;  %v4112_v50 = vld [vmem:[#allocation9 + $0x2d8] sm:$0xff] }
  0x96   :  { %5157 = vst [vmem:[#allocation204_spill] sm:$0xff] %v4110_v54  ;;  %5158 = vst [vmem:[#allocation205_spill] sm:$0xff] %v4112_v50  ;;  %v4114_v56 = vld [vmem:[#allocation9 + $0x2e0] sm:$0xff]  ;;  %v4116_v57 = vld [vmem:[#allocation9 + $0x2e8] sm:$0xff]  ;;  %v4144_v54 = vmov 0.0  }
  0x97   :  { %5159 = vst [vmem:[#allocation206_spill] sm:$0xff] %v4114_v56  ;;  %5160 = vst [vmem:[#allocation207_spill] sm:$0xff] %v4116_v57  ;;  %v4118_v58 = vld [vmem:[#allocation9 + $0x2f0] sm:$0xff]  ;;  %v4120_v59 = vld [vmem:[#allocation9 + $0x2f8] sm:$0xff] }
  0x98   :  { %5161 = vst [vmem:[#allocation208_spill] sm:$0xff] %v4118_v58  ;;  %5162 = vst [vmem:[#allocation209_spill] sm:$0xff] %v4120_v59  ;;  %v4125_v61 = vld [vmem:[%s4927_s3] sm:$0x7]  ;;  %v4130_v53 = vld [vmem:[%s4927_s3 + $0x3] sm:$0x7] }
  0x99   :  { %5163 = vst [vmem:[#allocation210_spill] sm:$0xff] %v4125_v61  ;;  %5164 = vst [vmem:[#allocation211_spill] sm:$0xff] %v4130_v53  ;;  %v4135_v56 = vld [vmem:[%s4928_s4] ss:$0 sm:$0xff]  ;;  %v4140_v57 = vld [vmem:[%s4928_s4 + $0x1] ss:$0 sm:$0xff] }
  0x9a   :  { %5165 = vst [vmem:[#allocation212_spill] sm:$0xff] %v4135_v56  ;;  %5166 = vst [vmem:[#allocation213_spill] sm:$0xff] %v4140_v57  ;;  %v4142_v59 = vmov 0.0  }
  0x9b LB: > { %5167 = vst [vmem:[#allocation214_spill] sm:$0xff] %v3630_v59  ;;  %v5168_v1 = vld [vmem:[#allocation19_spill] sm:$0xff]  ;;  %v5169_v4 = vld [vmem:[#allocation22_spill] sm:$0xff]  ;;  %v5171_v3 = vld [vmem:[#allocation21_spill] sm:$0xff]  ;;  %s2180_s3 = sshll.u32 %s3638_s23, 5  ;;  %s275_s24 = ssub.s32 1, %s3638_s23  ;;  %s3638_s23 = sphi %s4146_s23, %s271_s23   ;;  %v3634_v54 = vphi %v4144_v54, %v5419_v54   ;;  %v3630_v59 = vphi %v4142_v59, %v5418_v59  }
  0x9c   : > { %v2751_v57 = vpack.c.bf16 %v5169_v4, %v5168_v1  ;;  %v5170_v0 = vld [vmem:[#allocation18_spill] sm:$0xff]  ;;  %v5172_v7 = vld [vmem:[#allocation25_spill] sm:$0xff]  ;;  %v5173_v10 = vld [vmem:[#allocation28_spill] sm:$0xff]  ;;  %s4181_s4 = scalar_lea.vmem [#allocation4], %s2180_s3  ;;  %s2181_s26 = sshll.u32 %s275_s24, 5  ;;  %vm3649_vm0 = vmmov 0  }
  0x9d   : > { %v2753_v56 = vpack.c.bf16 %v5171_v3, %v5170_v0  ;;  %v2755_v53 = vpack.c.bf16 %v5173_v10, %v5172_v7  ;;  %v5174_v6 = vld [vmem:[#allocation24_spill] sm:$0xff]  ;;  %v5175_v9 = vld [vmem:[#allocation27_spill] sm:$0xff]  ;;  %v5179_v16 = vld [vmem:[#allocation34_spill] sm:$0xff]  ;;  %v4937_v3 = vmov 0.0   ;;  %s4252_s27 = scalar_lea.vmem [#allocation4], %s2181_s26  ;;  %s4623_s28 = scalar_lea.vmem [#allocation10], %s2180_s3 }
  0x9e   : > { %2752 = vmatprep.subr.bf16.mxu0 %v2751_v57  ;;  %v2757_v61 = vpack.c.bf16 %v5175_v9, %v5174_v6  ;;  %v5176_v2 = vld [vmem:[#allocation20_spill] sm:$0xff]  ;;  %v5177_v5 = vld [vmem:[#allocation23_spill] sm:$0xff]  ;;  %v5180_v8 = vld [vmem:[#allocation26_spill] sm:$0xff]  ;;  %362 = vmatprep.mubr.f32.mxu0 %v4937_v3  ;;  %s4656_s29 = sshll.u32 %s3638_s23, 2  ;;  %s271_s23 = sadd.s32 1, %s3638_s23  }
  0x9f   : > { %2754 = vmatpush1.bf16.msra.mxu0 %v2753_v56  ;;  %v2783_v59 = vpack.c.bf16 %v5177_v5, %v5176_v2  ;;  %v5178_v13 = vld [vmem:[#allocation31_spill] sm:$0xff]  ;;  %v5181_v11 = vld [vmem:[#allocation29_spill] sm:$0xff]  ;;  %v5182_v12 = vld [vmem:[#allocation30_spill] sm:$0xff]  ;;  %s692_s30 = ssub.s32 7, %s4656_s29  ;;  %s1050_s10 = ssub.s32 6, %s4656_s29 }
  0xa0   : > { %2756 = vmatprep.subr.bf16.mxu0 %v2755_v53  ;;  %v2759_v1 = vpack.c.bf16 %v5179_v16, %v5178_v13  ;;  %v2787_v0 = vpack.c.bf16 %v5181_v11, %v5180_v8  ;;  %v5183_v15 = vld [vmem:[#allocation33_spill] sm:$0xff]  ;;  %v5184_v14 = vld [vmem:[#allocation32_spill] sm:$0xff]  ;;  %v5185_v17 = vld [vmem:[#allocation35_spill] sm:$0xff]  ;;  %s2190_s8 = sshll.u32 %s692_s30, 3  ;;  %s2198_s13 = sshll.u32 %s1050_s10, 3 }
  0xa1   : > { %2784 = vmatprep.subr.bf16.mxu1 %v2783_v59  ;;  %v2761_v56 = vpack.c.bf16 %v5183_v15, %v5182_v12  ;;  %v2791_v57 = vpack.c.bf16 %v5185_v17, %v5184_v14  ;;  %v5186_v19 = vld [vmem:[#allocation37_spill] sm:$0xff]  ;;  %v5187_v22 = vld [vmem:[#allocation40_spill] sm:$0xff]  ;;  %v5189_v21 = vld [vmem:[#allocation39_spill] sm:$0xff]  ;;  %v5290_v15 = vmov 0.0|0.0   ;;  %s1047_s9 = scalar_lea.vmem [#allocation11], %s2190_s8  ;;  %s1393_s14 = scalar_lea.vmem [#allocation11], %s2198_s13 }
  0xa2   : > { %2786 = vmatpush3.bf16.msra.mxu1 %v2783_v59  ;;  %v2763_v53 = vpack.c.bf16 %v5187_v22, %v5186_v19  ;;  %v278_v2 = vld [vmem:[%s4181_s4] sm:$0xff]  ;;  %v5190_v20 = vld [vmem:[#allocation38_spill] sm:$0xff]  ;;  %v5191_v23 = vld [vmem:[#allocation41_spill] sm:$0xff]  ;;  %s1396_s15 = ssub.s32 5, %s4656_s29  ;;  %s1740_s16 = ssub.s32 4, %s4656_s29 }
  0xa3   : > { %2758 = vmatpush1.bf16.msra.mxu0 %v2757_v61  ;;  %2788 = vmatprep.subr.bf16.mxu1 %v2787_v0  ;;  %v5188_v18 = vld [vmem:[#allocation36_spill] sm:$0xff]  ;;  %v2795_v61 = vpack.c.bf16 %v5191_v23, %v5190_v20  ;;  %v5192_v25 = vld [vmem:[#allocation43_spill] sm:$0xff]  ;;  %v5193_v28 = vld [vmem:[#allocation46_spill] sm:$0xff]  ;;  %s2206_s17 = sshll.u32 %s1396_s15, 3  ;;  %s2214_s2 = sshll.u32 %s1740_s16, 3 }
  0xa4   : > { %2760 = vmatprep.subr.bf16.mxu0 %v2759_v1  ;;  %2427 = vmatprep.mubr.f32.mxu1 %v278_v2  ;;  %v2765_v59 = vpack.c.bf16 %v5189_v21, %v5188_v18  ;;  %v2767_v1 = vpack.c.bf16 %v5193_v28, %v5192_v25  ;;  %v5194_v24 = vld [vmem:[#allocation42_spill] sm:$0xff]  ;;  %v5195_v27 = vld [vmem:[#allocation45_spill] sm:$0xff]  ;;  %v5196_v26 = vld [vmem:[#allocation44_spill] sm:$0xff]  ;;  %s1737_s0 = scalar_lea.vmem [#allocation11], %s2206_s17  ;;  %s2081_s11 = scalar_lea.vmem [#allocation11], %s2214_s2 }
  0xa5   : > { %v2769_v3 = vpack.c.bf16 %v5195_v27, %v5194_v24  ;;  %v5197_v29 = vld [vmem:[#allocation47_spill] sm:$0xff]  ;;  %v5198_v31 = vld [vmem:[#allocation49_spill] sm:$0xff]  ;;  %v5199_v34 = vld [vmem:[#allocation52_spill] sm:$0xff]  ;;  %p268_p10 = scmp.ge.s32.totalorder %s271_s23, 2  }
  0xa6   : > { %2790 = vmatpush3.bf16.msra.mxu1 %v2787_v0  ;;  %v2799_v0 = vpack.c.bf16 %v5197_v29, %v5196_v26  ;;  %v5200_v30 = vld [vmem:[#allocation48_spill] sm:$0xff]  ;;  %v5201_v33 = vld [vmem:[#allocation51_spill] sm:$0xff]  ;;  %v5202_v32 = vld [vmem:[#allocation50_spill] sm:$0xff]  ;;  %s3650_s12 = smov (%p268_p10), [#allocation11]   ;;  %s3651_s19 = smov (%p268_p10), [#allocation10]  }
  0xa7   : > { %2762 = vmatpush1.bf16.msra.mxu0 %v2761_v56  ;;  %2792 = vmatprep.subr.bf16.mxu1 %v2791_v57  ;;  %v2771_v56 = vpack.c.bf16 %v5199_v34, %v5198_v31  ;;  %v5203_v35 = vld [vmem:[#allocation53_spill] sm:$0xff]  ;;  %v5204_v37 = vld [vmem:[#allocation55_spill] sm:$0xff]  ;;  %v5205_v40 = vld [vmem:[#allocation58_spill] sm:$0xff]  ;;  %s2103_s18 = sshll.u32 (%p268_p10), %s3650_s12, 4  ;;  %s2091_s20 = sshll.u32 (%p268_p10), %s3651_s19, 4  ;;  %s2104_s18 = int_to_ptr.vmem [resolvable:$true] %s2103_s18  ;;  %s4872_s20 = int_to_ptr.vmem [resolvable:$true] %s2091_s20 }
  0xa8   : > { %2764 = vmatprep.subr.bf16.mxu0 %v2763_v53  ;;  %v2773_v53 = vpack.c.bf16 %v5201_v33, %v5200_v30  ;;  %v5206_v36 = vld [vmem:[#allocation54_spill] sm:$0xff]  ;;  %v5207_v39 = vld [vmem:[#allocation57_spill] sm:$0xff]  ;;  %v5208_v38 = vld [vmem:[#allocation56_spill] sm:$0xff]  ;;  %s3542_s21 = scalar_lea.vmem (%p268_p10), %s2104_s18, 1024  ;;  %p3547_p12 = scmp.lt.s32.totalorder (%p268_p10), %s2104_s18, %s2104_s18 }
  0xa9   : > { %v5209_v41 = vld [vmem:[#allocation59_spill] sm:$0xff]  ;;  %v5210_v43 = vld [vmem:[#allocation61_spill] sm:$0xff]  ;;  %v5211_v46 = vld [vmem:[#allocation64_spill] sm:$0xff]  ;;  %p3543_p11 = scmp.ne.s32.totalorder (%p268_p10), %s2104_s18, %s3542_s21  ;;  %p3548_p13 = scmp.lt.s32.totalorder (%p268_p10), %s3542_s21, %s3542_s21 }
  0xaa   : > { %2794 = vmatpush3.bf16.msra.mxu1 %v2791_v57  ;;  %v2803_v57 = vpack.c.bf16 %v5203_v35, %v5202_v32  ;;  %v5212_v42 = vld [vmem:[#allocation60_spill] sm:$0xff]  ;;  %v5213_v45 = vld [vmem:[#allocation63_spill] sm:$0xff]  ;;  %v5214_v44 = vld [vmem:[#allocation62_spill] sm:$0xff] }
  0xab   : > { %2766 = vmatpush1.bf16.msra.mxu0 %v2765_v59  ;;  %2796 = vmatprep.subr.bf16.mxu1 %v2795_v61  ;;  %v2775_v59 = vpack.c.bf16 %v5205_v40, %v5204_v37  ;;  %v5215_v47 = vld [vmem:[#allocation65_spill] sm:$0xff]  ;;  %v5216_v49 = vld [vmem:[#allocation67_spill] sm:$0xff]  ;;  %v5217_v52 = vld [vmem:[#allocation70_spill] sm:$0xff]  ;;  %p3549_p0 = por (%p268_p10), %p3548_p13, %p3547_p12 }
  0xac   : > { %2768 = vmatprep.subr.bf16.mxu0 %v2767_v1  ;;  %v2777_v1 = vpack.c.bf16 %v5207_v39, %v5206_v36  ;;  %v5218_v48 = vld [vmem:[#allocation66_spill] sm:$0xff]  ;;  %v5219_v51 = vld [vmem:[#allocation69_spill] sm:$0xff]  ;;  %v5222_v4 = vld [vmem:[#allocation68_spill] sm:$0xff] }
  0xad   : > { %v5220_v55 = vld [vmem:[#allocation73_spill] sm:$0xff]  ;;  %v5223_v5 = vld [vmem:[#allocation71_spill] sm:$0xff]  ;;  %v5257_v13 = vld [vmem:[#allocation104_spill] sm:$0xff]  ;;  %p3550_p1 = pnand (%p268_p10), %p3549_p0, %p3543_p11 }
  0xae   : > { %2798 = vmatpush3.bf16.msra.mxu1 %v2795_v61  ;;  %v2779_v61 = vpack.c.bf16 %v5211_v46, %v5210_v43  ;;  %v2847_v6 = vpack.c.bf16 %v5223_v5, %v5222_v4  ;;  %v5225_v7 = vld [vmem:[#allocation75_spill] sm:$0xff]  ;;  %v279_v8 = vld [vmem:[%s4181_s4 + $0x8] sm:$0xff]  ;;  %v5308_v21 = vld [vmem:[#allocation146_spill] sm:$0xff] }
  0xaf   : > { %2770 = vmatpush1.bf16.msra.mxu0 %v2769_v3  ;;  %2800 = vmatprep.subr.bf16.mxu1 %v2799_v0  ;;  %v2807_v3 = vpack.c.bf16 %v5209_v41, %v5208_v38  ;;  %v5227_v9 = vld [vmem:[#allocation79_spill] sm:$0xff]  ;;  %v5230_v11 = vld [vmem:[#allocation77_spill] sm:$0xff]  ;;  %v5315_v24 = vld [vmem:[#allocation160_spill] sm:$0xff] }
  0xb0   : > { %2772 = vmatprep.subr.bf16.mxu0 %v2771_v56  ;;  %v2781_v56 = vpack.c.bf16 %v5213_v45, %v5212_v42  ;;  %v5232_v4 = vld [vmem:[#allocation81_spill] sm:$0xff]  ;;  %v5318_v25 = vld [vmem:[#allocation155_spill] sm:$0xff]  ;;  %v5324_v27 = vld [vmem:[#allocation166_spill] sm:$0xff] }
  0xb1   : > { %v5259_v14 = vld [vmem:[#allocation109_spill] sm:$0xff]  ;;  %v5321_v26 = vld [vmem:[#allocation159_spill] sm:$0xff]  ;;  %v5332_v30 = vld [vmem:[#allocation172_spill] sm:$0xff] }
  0xb2   : > { %2802 = vmatpush3.bf16.msra.mxu1 %v2799_v0  ;;  %v2811_v0 = vpack.c.bf16 %v5215_v47, %v5214_v44  ;;  %v5309_v22 = vld [vmem:[#allocation149_spill] sm:$0xff]  ;;  %v5347_v37 = vld [vmem:[#allocation180_spill] sm:$0xff]  ;;  %v5348_v38 = vld [vmem:[#allocation183_spill] sm:$0xff] }
  0xb3   : > { %2774 = vmatpush1.bf16.msra.mxu0 %v2773_v53  ;;  %2804 = vmatprep.subr.bf16.mxu1 %v2803_v57  ;;  %v2815_v53 = vpack.c.bf16 %v5217_v52, %v5216_v49  ;;  %v5312_v23 = vld [vmem:[#allocation153_spill] sm:$0xff]  ;;  %v5350_v39 = vld [vmem:[#allocation190_spill] sm:$0xff]  ;;  %v5356_v42 = vld [vmem:[#allocation196_spill] sm:$0xff] }
  0xb4   : > { %2776 = vmatprep.subr.bf16.mxu0 %v2775_v59  ;;  %v2817_v59 = vpack.c.bf16 %v5219_v51, %v5218_v48  ;;  %v5327_v28 = vld [vmem:[#allocation161_spill] sm:$0xff]  ;;  %v5358_v43 = vld [vmem:[#allocation191_spill] sm:$0xff]  ;;  %v5362_v63 = vld [vmem:[#allocation202_spill] sm:$0xff] }
  0xb5   : > { %v5330_v29 = vld [vmem:[#allocation165_spill] sm:$0xff]  ;;  %v5360_v44 = vld [vmem:[#allocation195_spill] sm:$0xff]  ;;  %v5368_v58 = vld [vmem:[#allocation208_spill] sm:$0xff] }
  0xb6   : > { %2806 = vmatpush3.bf16.msra.mxu1 %v2803_v57  ;;  %v5221_v57 = vld [vmem:[#allocation76_spill] sm:$0xff]  ;;  %v5352_v40 = vld [vmem:[#allocation185_spill] sm:$0xff]  ;;  %v5361_v60 = vld [vmem:[#allocation199_spill] sm:$0xff] }
  0xb7   : > { %2778 = vmatpush1.bf16.msra.mxu0 %v2777_v1  ;;  %2808 = vmatprep.subr.bf16.mxu1 %v2807_v3  ;;  %v2819_v1 = vpack.c.bf16 %v5221_v57, %v5220_v55  ;;  %v5229_v57 = vld [vmem:[#allocation74_spill] sm:$0xff]  ;;  %v5354_v41 = vld [vmem:[#allocation189_spill] sm:$0xff]  ;;  %v5369_v45 = vld [vmem:[#allocation200_spill] sm:$0xff] }
  0xb8   : > { %2780 = vmatprep.subr.bf16.mxu0 %v2779_v61  ;;  %v5224_v61 = vld [vmem:[#allocation72_spill] sm:$0xff]  ;;  %v2851_v12 = vpack.c.bf16 %v5230_v11, %v5229_v57  ;;  %v5240_v57 = vld [vmem:[#allocation94_spill] sm:$0xff]  ;;  %v5366_v62 = vld [vmem:[#allocation201_spill] sm:$0xff] }
  0xb9   : > { %v5367_v50 = vld [vmem:[#allocation205_spill] sm:$0xff]  ;;  %v5370_v46 = vld [vmem:[#allocation203_spill] sm:$0xff]  ;;  %v5373_v48 = vld [vmem:[#allocation206_spill] sm:$0xff] }
  0xba   : > { %2810 = vmatpush3.bf16.msra.mxu1 %v2807_v3  ;;  %v2821_v3 = vpack.c.bf16 %v5225_v7, %v5224_v61  ;;  %v280_v7 = vld [vmem:[%s4181_s4 + $0x10] sm:$0xff]  ;;  %v5236_v61 = vld [vmem:[#allocation83_spill] sm:$0xff]  ;;  %v5374_v49 = vld [vmem:[#allocation209_spill] sm:$0xff] }
  0xbb   : > { %2782 = vmatpush1.bf16.msra.mxu0 %v2781_v56  ;;  %2812 = vmatprep.subr.bf16.mxu1 %v2811_v0  ;;  %v5226_v56 = vmov 0.0   ;;  %v5372_v47 = vld [vmem:[#allocation207_spill] sm:$0xff] }
  0xbc   : > { %2816 = vmatprep.subr.bf16.mxu0 %v2815_v53  ;;  %v5228_v53 = vld [vmem:[#allocation82_spill] sm:$0xff] }
  0xbd   : > { %v2823_v10 = vpack.c.bf16 %v5228_v53, %v5227_v9  ;;  %v281_v53 = vld [vmem:[%s4181_s4 + $0x18] sm:$0xff] }
  0xbe   : > { %363 = vmatmul.mubr.f32.vlgmr.msra.gmra.mrb[0].mxu0 %v278_v2  ;;  %2814 = vmatpush3.bf16.msra.mxu1 %v2811_v0  ;;  %v5231_v2 = vld [vmem:[#allocation78_spill] sm:$0xff]  ;;  %v5233_v0 = vld [vmem:[#allocation85_spill] sm:$0xff] }
  0xbf   : > { %2818 = vmatpush1.bf16.msra.mxu0 %v2817_v59  ;;  %368 = vmatprep.mubr.f32.mxu0 %v5226_v56  ;;  %v2825_v5 = vpack.c.bf16 %v5232_v4, %v5231_v2  ;;  %v5234_v59 = vld [vmem:[#allocation88_spill] sm:$0xff]  ;;  %v5241_v4 = vld [vmem:[#allocation86_spill] sm:$0xff] }
  0xc0   : > { %2820 = vmatprep.subr.bf16.mxu0 %v2819_v1  ;;  %2848 = vmatprep.subr.bf16.mxu1 %v2847_v6  ;;  %v2827_v9 = vpack.c.bf16 %v5234_v59, %v5233_v0  ;;  %v5235_v1 = vld [vmem:[#allocation80_spill] sm:$0xff]  ;;  %v5242_v0 = vld [vmem:[#allocation89_spill] sm:$0xff] }
  0xc1   : > { %2428 = vmatmul.mubr.f32.vlgmr.msra.gmra.mrb[0].mxu1 %v279_v8  ;;  %v2855_v11 = vpack.c.bf16 %v5236_v61, %v5235_v1  ;;  %v2859_v59 = vpack.c.bf16 %v5242_v0, %v5241_v4  ;;  %v5245_v1 = vld [vmem:[#allocation92_spill] sm:$0xff]  ;;  %v5246_v61 = vld [vmem:[#allocation95_spill] sm:$0xff]  ;;  %v5251_v4 = vld [vmem:[#allocation98_spill] sm:$0xff] }
  0xc2   : > { %369 = vmatmul.mubr.f32.gmra.mrb[2].mxu0 %v279_v8  ;;  %2850 = vmatpush3.bf16.msra.mxu1 %v2847_v6  ;;  %v5237_v6 = vld [vmem:[#allocation84_spill] sm:$0xff]  ;;  %v5238_v8 = vld [vmem:[#allocation87_spill] sm:$0xff]  ;;  %v5252_v0 = vld [vmem:[#allocation101_spill] sm:$0xff] }
  0xc3   : > { %2822 = vmatpush1.bf16.msra.mxu0 %v2821_v3  ;;  %374 = vmatprep.mubr.f32.mxu0 %v5226_v56  ;;  %v2829_v3 = vpack.c.bf16 %v5238_v8, %v5237_v6  ;;  %v2863_v6 = vpack.c.bf16 %v5246_v61, %v5245_v1  ;;  %v5248_v8 = vld [vmem:[#allocation100_spill] sm:$0xff]  ;;  %v5255_v61 = vld [vmem:[#allocation102_spill] sm:$0xff] }
  0xc4   : > { %2824 = vmatprep.subr.bf16.mxu0 %v2823_v10  ;;  %2852 = vmatprep.subr.bf16.mxu1 %v2851_v12  ;;  %v5239_v10 = vld [vmem:[#allocation91_spill] sm:$0xff] }
  0xc5   : > { %2430 = vmatprep.mubr.f32.mxu1 %v280_v7  ;;  %v2831_v2 = vpack.c.bf16 %v5240_v57, %v5239_v10  ;;  %v485_v57 = vld [vmem:[%s4252_s27] sm:$0xff] }
  0xc6   : > { %375 = vmatmul.mubr.f32.gmra.mrb[4].mxu0 %v280_v7  ;;  %2854 = vmatpush3.bf16.msra.mxu1 %v2851_v12  ;;  %v5243_v12 = vld [vmem:[#allocation90_spill] sm:$0xff] }
  0xc7   : > { %2826 = vmatpush1.bf16.msra.mxu0 %v2825_v5  ;;  %380 = vmatprep.mubr.f32.mxu0 %v5226_v56  ;;  %v5244_v5 = vld [vmem:[#allocation93_spill] sm:$0xff] }
  0xc8   : > { %2828 = vmatprep.subr.bf16.mxu0 %v2827_v9  ;;  %2856 = vmatprep.subr.bf16.mxu1 %v2855_v11  ;;  %v2833_v7 = vpack.c.bf16 %v5244_v5, %v5243_v12  ;;  %v5247_v9 = vld [vmem:[#allocation97_spill] sm:$0xff]  ;;  %v2867_v12 = vpack.c.bf16 %v5252_v0, %v5251_v4  ;;  %v5254_v5 = vld [vmem:[#allocation106_spill] sm:$0xff]  ;;  %v5261_v4 = vld [vmem:[#allocation108_spill] sm:$0xff] }
  0xc9   : > { %2431 = vmatmul.mubr.f32.gmra.mrb[2].mxu1 %v281_v53  ;;  %v2835_v10 = vpack.c.bf16 %v5248_v8, %v5247_v9  ;;  %v5256_v9 = vld [vmem:[#allocation105_spill] sm:$0xff] }
  0xca   : > { %381 = vmatmul.mubr.f32.gmra.mrb[6].mxu0 %v281_v53  ;;  %2858 = vmatpush3.bf16.msra.mxu1 %v2855_v11  ;;  %v5249_v11 = vld [vmem:[#allocation96_spill] sm:$0xff]  ;;  %v2841_v8 = vpack.c.bf16 %v5256_v9, %v5255_v61  ;;  %v5266_v61 = vld [vmem:[#allocation118_spill] sm:$0xff] }
  0xcb   : > { %2830 = vmatpush1.bf16.msra.mxu0 %v2829_v3  ;;  %569 = vmatprep.mubr.f32.mxu0 %v5226_v56  ;;  %v5250_v3 = vld [vmem:[#allocation99_spill] sm:$0xff] }
  0xcc   : > { %2832 = vmatprep.subr.bf16.mxu0 %v2831_v2  ;;  %2860 = vmatprep.subr.bf16.mxu1 %v2859_v59  ;;  %v2837_v53 = vpack.c.bf16 %v5250_v3, %v5249_v11  ;;  %v5253_v2 = vld [vmem:[#allocation103_spill] sm:$0xff]  ;;  %v5260_v11 = vld [vmem:[#allocation112_spill] sm:$0xff] }
  0xcd   : > { %2465 = vmatprep.mubr.f32.mxu1 %v485_v57  ;;  %v2839_v1 = vpack.c.bf16 %v5254_v5, %v5253_v2  ;;  %v2843_v3 = vpack.c.bf16 %v5260_v11, %v5259_v14  ;;  %v5263_v2 = vld [vmem:[#allocation110_spill] sm:$0xff]  ;;  %v5265_v5 = vld [vmem:[#allocation115_spill] sm:$0xff]  ;;  %v5271_v11 = vld [vmem:[#allocation116_spill] sm:$0xff] }
  0xce   : > { %2862 = vmatpush3.bf16.msra.mxu1 %v2859_v59  ;;  %v5258_v59 = vld [vmem:[#allocation107_spill] sm:$0xff]  ;;  %v4273_v9 = vpack.c.bf16 %v5266_v61, %v5265_v5  ;;  %v5276_v5 = vld [vmem:[#allocation130_spill] sm:$0xff] }
  0xcf   : > { %2834 = vmatpush1.bf16.msra.mxu0 %v2833_v7  ;;  %2864 = vmatprep.subr.bf16.mxu1 %v2863_v6  ;;  %v2871_v7 = vpack.c.bf16 %v5258_v59, %v5257_v13  ;;  %v5267_v13 = vld [vmem:[#allocation114_spill] sm:$0xff] }
  0xd0   : > { %2836 = vmatprep.subr.bf16.mxu0 %v2835_v10  ;;  %v5262_v10 = vld [vmem:[#allocation111_spill] sm:$0xff]  ;;  %v5277_v61 = vld [vmem:[#allocation122_spill] sm:$0xff] }
  0xd1   : > { %v2845_v0 = vpack.c.bf16 %v5262_v10, %v5261_v4  ;;  %v5274_v10 = vld [vmem:[#allocation123_spill] sm:$0xff] }
  0xd2   : > { %2866 = vmatpush3.bf16.msra.mxu1 %v2863_v6  ;;  %v5264_v6 = vld [vmem:[#allocation113_spill] sm:$0xff] }
  0xd3   : > { %2838 = vmatpush1.bf16.msra.mxu0 %v2837_v53  ;;  %2868 = vmatprep.subr.bf16.mxu1 %v2867_v12  ;;  %v2875_v53 = vpack.c.bf16 %v5264_v6, %v5263_v2  ;;  %v486_v2 = vld [vmem:[%s4252_s27 + $0x8] sm:$0xff]  ;;  %v5275_v6 = vld [vmem:[#allocation127_spill] sm:$0xff] }
  0xd4   : > { %2840 = vmatprep.subr.bf16.mxu0 %v2839_v1  ;;  %v5268_v1 = vld [vmem:[#allocation117_spill] sm:$0xff] }
  0xd5   : > { %v4277_v14 = vpack.c.bf16 %v5268_v1, %v5267_v13  ;;  %v5278_v13 = vld [vmem:[#allocation125_spill] sm:$0xff] }
  0xd6   : > { %2870 = vmatpush3.bf16.msra.mxu1 %v2867_v12  ;;  %v5269_v12 = vld [vmem:[#allocation121_spill] sm:$0xff]  ;;  %v4304_v1 = vpack.c.bf16 %v5278_v13, %v5277_v61  ;;  %v5285_v13 = vld [vmem:[#allocation132_spill] sm:$0xff] }
  0xd7   : > { %2842 = vmatpush1.bf16.msra.mxu0 %v2841_v8  ;;  %2872 = vmatprep.subr.bf16.mxu1 %v2871_v7  ;;  %v5270_v8 = vld [vmem:[#allocation124_spill] sm:$0xff] }
  0xd8   : > { %2844 = vmatprep.subr.bf16.mxu0 %v2843_v3  ;;  %v4282_v59 = vpack.c.bf16 %v5270_v8, %v5269_v12  ;;  %v5272_v3 = vld [vmem:[#allocation119_spill] sm:$0xff]  ;;  %v5279_v12 = vld [vmem:[#allocation126_spill] sm:$0xff]  ;;  %v5280_v8 = vld [vmem:[#allocation129_spill] sm:$0xff] }
  0xd9   : > { %v4286_v4 = vpack.c.bf16 %v5272_v3, %v5271_v11  ;;  %v4309_v11 = vpack.c.bf16 %v5280_v8, %v5279_v12  ;;  %v487_v3 = vld [vmem:[%s4252_s27 + $0x10] sm:$0xff]  ;;  %v5286_v12 = vld [vmem:[#allocation135_spill] sm:$0xff] }
  0xda   : > { %2874 = vmatpush3.bf16.msra.mxu1 %v2871_v7  ;;  %v5273_v7 = vld [vmem:[#allocation120_spill] sm:$0xff]  ;;  %v4327_v8 = vpack.c.bf16 %v5286_v12, %v5285_v13  ;;  %v5293_v13 = vld [vmem:[#allocation138_spill] sm:$0xff]  ;;  %v5294_v12 = vld [vmem:[#allocation141_spill] sm:$0xff] }
  0xdb   : > { %2846 = vmatpush1.bf16.msra.mxu0 %v2845_v0  ;;  %2876 = vmatprep.subr.bf16.mxu1 %v2875_v53  ;;  %v4291_v0 = vpack.c.bf16 %v5274_v10, %v5273_v7  ;;  %v5281_v7 = vld [vmem:[#allocation133_spill] sm:$0xff]  ;;  %v5282_v10 = vld [vmem:[#allocation136_spill] sm:$0xff]  ;;  %v4345_v17 = vpack.c.bf16 %v5294_v12, %v5293_v13  ;;  %v5303_v12 = vld [vmem:[#allocation147_spill] sm:$0xff] }
  0xdc   : > { %2880 = vmatprep.subr.bf16.mxu0 %v4273_v9  ;;  %v5302_v13 = vld [vmem:[#allocation144_spill] sm:$0xff] }
  0xdd   : > { %5295 = vst [vmem:[#allocation216_spill] sm:$0xff] %v4345_v17  ;;  %v4364_v19 = vpack.c.bf16 %v5303_v12, %v5302_v13  ;;  %v5314_v12 = vld [vmem:[#allocation157_spill] sm:$0xff] }
  0xde   : > { %570 = vmatmul.mubr.f32.vlgmr.msra.gmra.mrb[8].mxu0 %v485_v57  ;;  %2878 = vmatpush3.bf16.msra.mxu1 %v2875_v53  ;;  %v4298_v57 = vpack.c.bf16 %v5276_v5, %v5275_v6  ;;  %v4939_v53 = vmov 0.0|0.0   ;;  %v5283_v6 = vld [vmem:[#allocation128_spill] sm:$0xff]  ;;  %v5284_v5 = vld [vmem:[#allocation131_spill] sm:$0xff] }
  0xdf   : > { %2882 = vmatpush1.bf16.msra.mxu0 %v4277_v14  ;;  %575 = vmatprep.mubr.f32.mxu0 %v5226_v56  ;;  %v4322_v61 = vpack.c.bf16 %v5284_v5, %v5283_v6  ;;  %v5291_v6 = vld [vmem:[#allocation134_spill] sm:$0xff]  ;;  %v5292_v5 = vld [vmem:[#allocation137_spill] sm:$0xff]  ;;  %5304 = vst [vmem:[#allocation219_spill] sm:$0xff] %v4364_v19 }
  0xe0   : > { %2884 = vmatprep.subr.bf16.mxu0 %v4282_v59  ;;  %2911 = vmatprep.subr.bf16.mxu1 %v4939_v53  ;;  %v4340_v16 = vpack.c.bf16 %v5292_v5, %v5291_v6  ;;  %v5300_v6 = vld [vmem:[#allocation143_spill] sm:$0xff] }
  0xe1   : > { %2466 = vmatmul.mubr.f32.vlgmr.msra.gmra.mrb[4].mxu1 %v486_v2 }
  0xe2   : > { %576 = vmatmul.mubr.f32.gmra.mrb[10].mxu0 %v486_v2  ;;  %2913 = vmatpush3.bf16.msra.mxu1 %v4286_v4  ;;  %v4316_v2 = vpack.c.bf16 %v5282_v10, %v5281_v7  ;;  %v488_v7 = vld [vmem:[%s4252_s27 + $0x18] sm:$0xff] }
  0xe3   : > { %2886 = vmatpush1.bf16.msra.mxu0 %v4291_v0  ;;  %581 = vmatprep.mubr.f32.mxu0 %v5226_v56  ;;  %v5287_v10 = vld [vmem:[#allocation139_spill] sm:$0xff] }
  0xe4   : > { %2888 = vmatprep.subr.bf16.mxu0 %v4298_v57  ;;  %2914 = vmatprep.subr.bf16.mxu1 %v4939_v53  ;;  %v5288_v53 = vld [vmem:[#allocation142_spill] sm:$0xff] }
  0xe5   : > { %2468 = vmatprep.mubr.f32.mxu1 %v487_v3 }
  0xe6   : > { %582 = vmatmul.mubr.f32.gmra.mrb[12].mxu0 %v487_v3  ;;  %2916 = vmatpush3.bf16.msra.mxu1 %v4304_v1  ;;  %v4334_v3 = vpack.c.bf16 %v5288_v53, %v5287_v10  ;;  %v5296_v53 = vld [vmem:[#allocation145_spill] sm:$0xff]  ;;  %v5297_v10 = vld [vmem:[#allocation148_spill] sm:$0xff] }
  0xe7   : > { %2890 = vmatpush1.bf16.msra.mxu0 %v4309_v11  ;;  %587 = vmatprep.mubr.f32.mxu0 %v5226_v56  ;;  %v4351_v18 = vpack.c.bf16 %v5297_v10, %v5296_v53  ;;  %v5305_v53 = vld [vmem:[#allocation151_spill] sm:$0xff]  ;;  %v5306_v10 = vld [vmem:[#allocation154_spill] sm:$0xff] }
  0xe8   : > { %2892 = vmatprep.subr.bf16.mxu0 %v4316_v2  ;;  %5289 = vst [vmem:[#allocation215_spill] sm:$0xff] %v4334_v3  ;;  %2917 = vmatprep.subr.bf16.mxu1 %v5290_v15  ;;  %v4370_v20 = vpack.c.bf16 %v5306_v10, %v5305_v53  ;;  %v4386_v53 = vpack.c.bf16 %v5315_v24, %v5314_v12  ;;  %v5317_v10 = vld [vmem:[#allocation152_spill] sm:$0xff]  ;;  %v5326_v12 = vld [vmem:[#allocation158_spill] sm:$0xff] }
  0xe9   : > { %2469 = vmatmul.mubr.f32.gmra.mrb[6].mxu1 %v488_v7  ;;  %5298 = vst [vmem:[#allocation217_spill] sm:$0xff] %v4351_v18 }
  0xea   : > { %588 = vmatmul.mubr.f32.gmra.mrb[14].mxu0 %v488_v7  ;;  %2919 = vmatpush3.bf16.msra.mxu1 %v4322_v61  ;;  %v5299_v7 = vld [vmem:[#allocation140_spill] sm:$0xff]  ;;  %5307 = vst [vmem:[#allocation220_spill] sm:$0xff] %v4370_v20  ;;  %5316 = vst [vmem:[#allocation223_spill] sm:$0xff] %v4386_v53 }
  0xeb   : > { %2894 = vmatpush1.bf16.msra.mxu0 %v4327_v8  ;;  %769 = vmatprep.mubr.f32.mxu0 %v5226_v56  ;;  %v4359_v5 = vpack.c.bf16 %v5300_v6, %v5299_v7  ;;  %v4375_v7 = vpack.c.bf16 %v5309_v22, %v5308_v21  ;;  %v5311_v6 = vld [vmem:[#allocation150_spill] sm:$0xff]  ;;  %v4391_v21 = vpack.c.bf16 %v5318_v25, %v5317_v10  ;;  %v5320_v22 = vld [vmem:[#allocation156_spill] sm:$0xff] }
  0xec   : > { %2896 = vmatprep.subr.bf16.mxu0 %v4334_v3  ;;  %2920 = vmatprep.subr.bf16.mxu1 %v5290_v15  ;;  %v4380_v13 = vpack.c.bf16 %v5312_v23, %v5311_v6  ;;  %v4396_v23 = vpack.c.bf16 %v5321_v26, %v5320_v22  ;;  %v5323_v6 = vld [vmem:[#allocation163_spill] sm:$0xff]  ;;  %v4407_v25 = vpack.c.bf16 %v5327_v28, %v5326_v12  ;;  %v5329_v10 = vld [vmem:[#allocation162_spill] sm:$0xff]  ;;  %v5331_v22 = vld [vmem:[#allocation169_spill] sm:$0xff] }
  0xed   : > { %2503 = vmatprep.mubr.msk.f32.mxu1 %vm3649_vm0, %v5226_v56  ;;  %5301 = vst [vmem:[#allocation218_spill] sm:$0xff] %v4359_v5  ;;  %5310 = vst [vmem:[#allocation221_spill] sm:$0xff] %v4375_v7  ;;  %v4402_v24 = vpack.c.bf16 %v5324_v27, %v5323_v6  ;;  %v4412_v26 = vpack.c.bf16 %v5330_v29, %v5329_v10  ;;  %v4418_v27 = vpack.c.bf16 %v5332_v30, %v5331_v22  ;;  %v5333_v28 = vld [vmem:[#allocation164_spill] sm:$0xff]  ;;  %v5334_v6 = vld [vmem:[#allocation167_spill] sm:$0xff] }
  0xee   : > { %2922 = vmatpush3.bf16.msra.mxu1 %v4340_v16  ;;  %5313 = vst [vmem:[#allocation222_spill] sm:$0xff] %v4380_v13  ;;  %5319 = vst [vmem:[#allocation224_spill] sm:$0xff] %v4391_v21  ;;  %v4424_v12 = vpack.c.bf16 %v5334_v6, %v5333_v28  ;;  %v5335_v29 = vld [vmem:[#allocation168_spill] sm:$0xff]  ;;  %v5336_v10 = vld [vmem:[#allocation171_spill] sm:$0xff] }
  0xef   : > { %2898 = vmatpush1.bf16.msra.mxu0 %v4345_v17  ;;  %2923 = vmatprep.subr.bf16.mxu1 %v5290_v15  ;;  %5322 = vst [vmem:[#allocation225_spill] sm:$0xff] %v4396_v23  ;;  %5325 = vst [vmem:[#allocation226_spill] sm:$0xff] %v4402_v24  ;;  %v4429_v31 = vpack.c.bf16 %v5336_v10, %v5335_v29  ;;  %v5337_v30 = vld [vmem:[#allocation175_spill] sm:$0xff]  ;;  %v5338_v22 = vld [vmem:[#allocation178_spill] sm:$0xff] }
  0xf0   : > { %2900 = vmatprep.subr.bf16.mxu0 %v4351_v18  ;;  %5328 = vst [vmem:[#allocation227_spill] sm:$0xff] %v4407_v25  ;;  %v4435_v32 = vpack.c.bf16 %v5338_v22, %v5337_v30  ;;  %v5339_v28 = vld [vmem:[#allocation170_spill] sm:$0xff]  ;;  %v5340_v6 = vld [vmem:[#allocation173_spill] sm:$0xff]  ;;  %v5344_v22 = vld [vmem:[#allocation184_spill] sm:$0xff] }
  0xf1   : > { %v4442_v33 = vpack.c.bf16 %v5340_v6, %v5339_v28  ;;  %v5341_v29 = vld [vmem:[#allocation174_spill] sm:$0xff]  ;;  %v5342_v10 = vld [vmem:[#allocation177_spill] sm:$0xff]  ;;  %v5345_v28 = vld [vmem:[#allocation176_spill] sm:$0xff] }
  0xf2   : > { %2925 = vmatpush3.bf16.msra.mxu1 %v4359_v5  ;;  %v4449_v34 = vpack.c.bf16 %v5342_v10, %v5341_v29  ;;  %v5343_v30 = vld [vmem:[#allocation181_spill] sm:$0xff]  ;;  %v5346_v6 = vld [vmem:[#allocation179_spill] sm:$0xff]  ;;  %v4465_v29 = vpack.c.bf16 %v5348_v38, %v5347_v37 }
  0xf3   : > { %2902 = vmatpush1.bf16.msra.mxu0 %v4364_v19  ;;  %2926 = vmatprep.subr.bf16.mxu1 %v5290_v15  ;;  %v4455_v35 = vpack.c.bf16 %v5344_v22, %v5343_v30  ;;  %v4460_v36 = vpack.c.bf16 %v5346_v6, %v5345_v28  ;;  %v5349_v10 = vld [vmem:[#allocation187_spill] sm:$0xff]  ;;  %v5351_v22 = vld [vmem:[#allocation182_spill] sm:$0xff]  ;;  %v5355_v38 = vld [vmem:[#allocation193_spill] sm:$0xff] }
  0xf4   : > { %2904 = vmatprep.subr.bf16.mxu0 %v4370_v20  ;;  %v4471_v30 = vpack.c.bf16 %v5350_v39, %v5349_v10  ;;  %v4476_v28 = vpack.c.bf16 %v5352_v40, %v5351_v22  ;;  %v5353_v6 = vld [vmem:[#allocation186_spill] sm:$0xff]  ;;  %v4487_v39 = vpack.c.bf16 %v5356_v42, %v5355_v38  ;;  %v5357_v10 = vld [vmem:[#allocation188_spill] sm:$0xff]  ;;  %v4503_v42 = vpack.c.bf16 %v5362_v63, %v5361_v60  ;;  %v5364_v38 = vld [vmem:[#allocation197_spill] sm:$0xff] }
  0xf5   : > { %v4481_v37 = vpack.c.bf16 %v5354_v41, %v5353_v6  ;;  %v4492_v40 = vpack.c.bf16 %v5358_v43, %v5357_v10  ;;  %v5359_v22 = vld [vmem:[#allocation192_spill] sm:$0xff]  ;;  %v5363_v6 = vld [vmem:[#allocation194_spill] sm:$0xff] }
  0xf6   : > { %2928 = vmatpush3.bf16.msra.mxu1 %v4375_v7  ;;  %v4497_v41 = vpack.c.bf16 %v5360_v44, %v5359_v22  ;;  %v4508_v43 = vpack.c.bf16 %v5364_v38, %v5363_v6  ;;  %v5365_v10 = vld [vmem:[#allocation198_spill] sm:$0xff]  ;;  %v4519_v22 = vpack.c.bf16 %v5368_v58, %v5367_v50  ;;  %v4524_v6 = vpack.c.bf16 %v5370_v46, %v5369_v45  ;;  %v5371_v38 = vld [vmem:[#allocation204_spill] sm:$0xff] }
  0xf7   : > { %2906 = vmatpush1.bf16.msra.mxu0 %v4380_v13  ;;  %2929 = vmatprep.subr.bf16.mxu1 %v5290_v15  ;;  %v4513_v44 = vpack.c.bf16 %v5366_v62, %v5365_v10  ;;  %v4529_v10 = vpack.c.bf16 %v5372_v47, %v5371_v38  ;;  %v4536_v50 = vpack.c.bf16 %v5374_v49, %v5373_v48  ;;  %v5375_v45 = vld [vmem:[#allocation214_spill] sm:$0xff]  ;;  %v283_v46 = vlaneseq }
  0xf8   : > { %2908 = vmatprep.subr.bf16.mxu0 %v4386_v53  ;;  %v5376_v49 = vld [vmem:[#allocation210_spill] sm:$0xff] }
  0xf9   : > { %v284_v47 = vshrl.u32 %v283_v46, 7 }
  0xfa   : > { %2931 = vmatpush3.bf16.msra.mxu1 %v4391_v21 }
  0xfb   : > { %2910 = vmatpush1.bf16.msra.mxu0 %v4396_v23  ;;  %2932 = vmatprep.subr.bf16.mxu1 %v5290_v15  ;;  %v293_v48 = vsub.s32 2, %v284_v47 }
  0xfc   : > { %2936 = vmatprep.subr.bf16.mxu0 %v4402_v24 }
  0xfd   : > { %v294_v38 = vrot.slane %v5376_v49, %v293_v48 }
  0xfe   : > { %770 = vmatmul.mubr.f32.vlgmr.msra.gmra.mrb[0].mxu0 %v3634_v54  ;;  %2934 = vmatpush3.bf16.msra.mxu1 %v4407_v25 }
  0xff   : > { %2938 = vmatpush1.bf16.msra.mxu0 %v4412_v26  ;;  %2967 = vmatprep.subr.bf16.mxu1 %v5290_v15 }
 0x100   : > { %2940 = vmatprep.subr.bf16.mxu0 %v4418_v27  ;;  %910 = vmatprep.mubr.f32.mxu0 %v5226_v56 }
 0x101   : > { %2504 = vmatmul.mubr.f32.vlgmr.msra.gmra.mrb[8].mxu1 %v3634_v54 }
 0x102   : > { %2969 = vmatpush3.bf16.msra.mxu1 %v4424_v12  ;;  %2538 = vmatprep.mubr.msk.f32.mxu1 %vm3649_vm0, %v5226_v56 }
 0x103   : > { %2942 = vmatpush1.bf16.msra.mxu0 %v4429_v31  ;;  %2970 = vmatprep.subr.bf16.mxu1 %v5290_v15 }
 0x104   : > { %2944 = vmatprep.subr.bf16.mxu0 %v4435_v32 }
 0x106   : > { %2972 = vmatpush3.bf16.msra.mxu1 %v4442_v33 }
 0x107   : > { %2946 = vmatpush1.bf16.msra.mxu0 %v4449_v34  ;;  %2973 = vmatprep.subr.bf16.mxu1 %v5290_v15 }
 0x108   : > { %2948 = vmatprep.subr.bf16.mxu0 %v4455_v35 }
 0x10a   : > { %2975 = vmatpush3.bf16.msra.mxu1 %v4460_v36 }
 0x10b   : > { %2950 = vmatpush1.bf16.msra.mxu0 %v4465_v29  ;;  %2976 = vmatprep.subr.bf16.mxu1 %v5290_v15 }
 0x10c   : > { %2952 = vmatprep.subr.bf16.mxu0 %v4471_v30 }
 0x10e   : > { %2978 = vmatpush3.bf16.msra.mxu1 %v4476_v28 }
 0x10f   : > { %2954 = vmatpush1.bf16.msra.mxu0 %v4481_v37  ;;  %2979 = vmatprep.subr.bf16.mxu1 %v5290_v15 }
 0x110   : > { %2956 = vmatprep.subr.bf16.mxu0 %v4487_v39 }
 0x112   : > { %2981 = vmatpush3.bf16.msra.mxu1 %v4492_v40 }
 0x113   : > { %2958 = vmatpush1.bf16.msra.mxu0 %v4497_v41  ;;  %2982 = vmatprep.subr.bf16.mxu1 %v5290_v15 }
 0x114   : > { %2960 = vmatprep.subr.bf16.mxu0 %v4503_v42 }
 0x116   : > { %2984 = vmatpush3.bf16.msra.mxu1 %v4508_v43 }
 0x117   : > { %2962 = vmatpush1.bf16.msra.mxu0 %v4513_v44  ;;  %2985 = vmatprep.subr.bf16.mxu1 %v5290_v15 }
 0x118   : > { %2964 = vmatprep.subr.bf16.mxu0 %v4519_v22 }
 0x11a   : > { %2987 = vmatpush3.bf16.msra.mxu1 %v4524_v6 }
 0x11b   : > { %2966 = vmatpush1.bf16.msra.mxu0 %v4529_v10  ;;  %2988 = vmatprep.subr.bf16.mxu1 %v5290_v15 }
 0x11c   : > { %2992 = vmatprep.subr.bf16.mxu0 %v4273_v9 }
 0x11e   : > { %911 = vmatmul.mubr.f32.vlgmr.msra.gmra.mrb[14].mxu0 %v5375_v45  ;;  %2990 = vmatpush3.bf16.msra.mxu1 %v4536_v50 }
 0x11f   : > { %3023 = vmatprep.subr.bf16.mxu1 %v5290_v15  ;;  %2994 = vmatpush1.bf16.msra.mxu0 %v4277_v14 }
 0x120   : > { %2996 = vmatprep.subr.bf16.mxu0 %v4282_v59  ;;  %1127 = vmatprep.mubr.f32.mxu0 %v5226_v56 }
 0x121   : > { %2539 = vmatmul.mubr.f32.vlgmr.msra.gmra.mrb[10].mxu1 %v5375_v45 }
 0x122   : > { %3025 = vmatpush3.bf16.msra.mxu1 %v4286_v4  ;;  %2573 = vmatprep.mubr.msk.f32.mxu1 %vm3649_vm0, %v5226_v56 }
 0x123   : > { %3026 = vmatprep.subr.bf16.mxu1 %v5290_v15  ;;  %2998 = vmatpush1.bf16.msra.mxu0 %v4291_v0 }
 0x124   : > { %3000 = vmatprep.subr.bf16.mxu0 %v4298_v57 }
 0x126   : > { %3028 = vmatpush3.bf16.msra.mxu1 %v4304_v1 }
 0x127   : > { %3029 = vmatprep.subr.bf16.mxu1 %v5290_v15  ;;  %3002 = vmatpush1.bf16.msra.mxu0 %v4309_v11 }
 0x128   : > { %3004 = vmatprep.subr.bf16.mxu0 %v4316_v2 }
 0x12a   : > { %3031 = vmatpush3.bf16.msra.mxu1 %v4322_v61 }
 0x12b   : > { %3032 = vmatprep.subr.bf16.mxu1 %v5290_v15  ;;  %3006 = vmatpush1.bf16.msra.mxu0 %v4327_v8 }
 0x12c   : > { %3008 = vmatprep.subr.bf16.mxu0 %v4334_v3 }
 0x12e   : > { %3034 = vmatpush3.bf16.msra.mxu1 %v4340_v16 }
 0x12f   : > { %3035 = vmatprep.subr.bf16.mxu1 %v5290_v15  ;;  %3010 = vmatpush1.bf16.msra.mxu0 %v4345_v17 }
 0x130   : > { %3012 = vmatprep.subr.bf16.mxu0 %v4351_v18 }
 0x132   : > { %3037 = vmatpush3.bf16.msra.mxu1 %v4359_v5  ;;  %v5385_v5 = vld [vmem:[#allocation212_spill] sm:$0xff] }
 0x133   : > { %3038 = vmatprep.subr.bf16.mxu1 %v5290_v15  ;;  %3014 = vmatpush1.bf16.msra.mxu0 %v4364_v19 }
 0x134   : > { %3016 = vmatprep.subr.bf16.mxu0 %v4370_v20 }
 0x136   : > { %3040 = vmatpush3.bf16.msra.mxu1 %v4375_v7 }
 0x137   : > { %3041 = vmatprep.subr.bf16.mxu1 %v5290_v15  ;;  %3018 = vmatpush1.bf16.msra.mxu0 %v4380_v13 }
 0x138   : > { %3020 = vmatprep.subr.bf16.mxu0 %v4386_v53 }
 0x13a   : > { %3043 = vmatpush3.bf16.msra.mxu1 %v4391_v21 }
 0x13b   : > { %3044 = vmatprep.subr.bf16.mxu1 %v5290_v15  ;;  %3022 = vmatpush1.bf16.msra.mxu0 %v4396_v23 }
 0x13c   : > { %3048 = vmatprep.subr.bf16.mxu0 %v4402_v24  ;;  %v5380_v24 = vld [vmem:[#allocation211_spill] sm:$0xff] }
 0x13d   : > { %v4588_v23 = vrot.slane %v5380_v24, %v293_v48 }
 0x13e   : > { %3046 = vmatpush3.bf16.msra.mxu1 %v4407_v25 }
 0x13f   : > { %3079 = vmatprep.subr.bf16.mxu1 %v5290_v15 }
 0x194   : > { %v2429_v51 = vpop.f32.mrb[0].mxu1 }
 0x195   : > { %v4581_v52 = vadd.f32 %v2429_v51, %v294_v38  ;;  %v453_v55 = vpop.f32.mrb[1].mxu1 }
 0x196   : > { %v454_v3 = vadd.f32 %v453_v55, %v294_v38 }
 0x197   : > { %5377 = vst [vmem:[#allocation214_spill] sm:$0xff] %v4581_v52 }
 0x19c   : > { %v2432_v58 = vpop.f32.mrb[2].mxu1 }
 0x19d   : > { %v4583_v60 = vadd.f32 %v2432_v58, %v294_v38  ;;  %v463_v62 = vpop.f32.mrb[3].mxu1 }
 0x19e   : > { %v4585_v63 = vadd.f32 %v463_v62, %v294_v38  ;;  %v289_v62 = vsub.s32 1, %v284_v47 }
 0x19f   : > { %5378 = vst [vmem:[#allocation228_spill] sm:$0xff] %v4583_v60  ;;  %v285_v60 = vsub.s32 0, %v284_v47 }
 0x1a0   : > { %5379 = vst [vmem:[#allocation229_spill] sm:$0xff] %v4585_v63  ;;  %v4605_v13 = vrot.slane %v5376_v49, %v289_v62 }
 0x1a1   : > { %v4602_v63 = vrot.slane %v5376_v49, %v285_v60 }
 0x1a3   : > { %5384 = vst [vmem:[#allocation233_spill] sm:$0xff] %v4602_v63 }
 0x1b4   : > { %v2467_v25 = vpop.f32.mrb[4].mxu1 }
 0x1b5   : > { %v4591_v53 = vadd.f32 %v2467_v25, %v4588_v23  ;;  %v660_v46 = vpop.f32.mrb[5].mxu1 }
 0x1b6   : > { %v4594_v21 = vadd.f32 %v660_v46, %v4588_v23 }
 0x1b7   : > { %5381 = vst [vmem:[#allocation230_spill] sm:$0xff] %v4591_v53 }
 0x1b8   : > { %5382 = vst [vmem:[#allocation231_spill] sm:$0xff] %v4594_v21 }
 0x1bc   : > { %v4596_v51 = vpop.f32.mrb[6].mxu1 }
 0x1bd   : > { %v670_v52 = vpop.f32.mrb[7].mxu1 }
 0x1be   : > { %v4599_v58 = vadd.f32 %v670_v52, %v4588_v23 }
 0x1c0   : > { %5383 = vst [vmem:[#allocation232_spill] sm:$0xff] %v4599_v58 }
 0x1d1   : > { %v771_v48 = vpop.f32.mrb[0].mxu0 }
 0x1d2   : > { %v3327_v25 = vadd.f32 %v771_v48, %v4602_v63  ;;  %v773_v53 = vpop.f32.mrb[1].mxu0 }
 0x1d3   : > { %v3328_v20 = vadd.f32 %v773_v53, %v4605_v13 }
 0x1d4   : > { %v2183_v46 = vmul.f32 -1.442695, %v3327_v25  ;;  %v842_v21 = vpop.f32.mrb[8].mxu1  ;;  %v4611_v25 = vrot.slane %v5380_v24, %v285_v60 }
 0x1d5   : > { %v2505_v7 = vpop.f32.mrb[9].mxu1  ;;  %v2184_v52 = vmul.f32 -1.442695, %v3328_v20  ;;  %v1007_v17 = vadd.f32 %v5385_v5, %v842_v21 }
 0x1d6   : > { %3396 = vpow2.f32 %v2183_v46  ;;  %v4614_v7 = vrot.slane %v5380_v24, %v289_v62 }
 0x1d7   : > { %3398 = vpow2.f32 %v2184_v52 }
 0x1e0   : > { %v3397_v58 = vpop.eup %3396 }
 0x1e1   : > { %v991_v47 = vadd.f32 1.0, %v3397_v58  ;;  %v3399_v19 = vpop.eup %3398 }
 0x1e2   : > { %v998_v18 = vadd.f32 1.0, %v3399_v19 }
 0x1e3   : > { %3400 = vrcp.f32 %v991_v47 }
 0x1e4   : > { %3402 = vrcp.f32 %v998_v18 }
 0x1ed   : > { %v3401_v49 = vpop.eup %3400 }
 0x1ee   : > { %v1008_v48 = vmul.f32 %v3401_v49, %v1007_v17  ;;  %v3403_v17 = vpop.eup %3402 }
 0x1ef   : > { %v1011_v60 = vsub.f32 1.0, %v3403_v17  ;;  %v1013_v38 = vmul.f32 %v3634_v54, %v3403_v17 }
 0x1f0   : > { %v1009_v63 = vadd.f32 %v1008_v48, %v454_v3  ;;  %v5386_v48 = vld [vmem:[#allocation213_spill] sm:$0xff] }
 0x1f1   : > { %v912_v53 = vpop.f32.mrb[14].mxu0 }
 0x1f2   : > { %3404 = vtanh.f32 %v1009_v63  ;;  %v3341_v20 = vadd.f32 %v912_v53, %v4611_v25  ;;  %v914_v58 = vpop.f32.mrb[15].mxu0 }
 0x1f3   : > { %v3342_v21 = vadd.f32 %v914_v58, %v4614_v7  ;;  %v676_v58 = vadd.f32 %v4596_v51, %v4588_v23 }
 0x1f4   : > { %v2186_v19 = vmul.f32 -1.442695, %v3341_v20  ;;  %v983_v46 = vpop.f32.mrb[10].mxu1 }
 0x1f5   : > { %v2540_v55 = vpop.f32.mrb[11].mxu1  ;;  %v2187_v18 = vmul.f32 -1.442695, %v3342_v21  ;;  %v1035_v53 = vadd.f32 %v5386_v48, %v983_v46 }
 0x1f6   : > { %3406 = vpow2.f32 %v2186_v19 }
 0x1f7   : > { %3408 = vpow2.f32 %v2187_v18 }
 0x1fc   : > { %v3405_v49 = vpop.eup %3404 }
 0x1fd   : > { %v1012_v3 = vmul.f32 %v3405_v49, %v1011_v60  ;;  %v5388_v60 = vld [vmem:[#allocation216_spill] sm:$0xff]  ;;  %v5389_v49 = vld [vmem:[#allocation218_spill] sm:$0xff] }
 0x1ff   : > { %v4619_v62 = vadd.f32 %v1013_v38, %v1012_v3  ;;  %v5390_v3 = vld [vmem:[#allocation217_spill] sm:$0xff]  ;;  %v5391_v38 = vld [vmem:[#allocation219_spill] sm:$0xff] }
 0x200   : > { %v3407_v63 = vpop.eup %3406 }
 0x201   : > { %v1019_v52 = vadd.f32 1.0, %v3407_v63  ;;  %1045 = vst [vmem:[%s4623_s28] sm:$0xff] %v4619_v62  ;;  %1128 = vmatmul.mubr.f32.vlgmr.msra.gmra.mrb[2].mxu0 %v4619_v62  ;;  %2574 = vmatmul.mubr.f32.vlgmr.msra.gmra.mrb[12].mxu1 %v4619_v62  ;;  %v3409_v54 = vpop.eup %3408  ;;  %v5392_v63 = vld [vmem:[#allocation221_spill] sm:$0xff] }
 0x202   : > { %3050 = vmatpush1.bf16.msra.mxu0 %v4412_v26  ;;  %3081 = vmatpush3.bf16.msra.mxu1 %v4424_v12  ;;  %v1026_v47 = vadd.f32 1.0, %v3409_v54  ;;  %v5394_v54 = vld [vmem:[#allocation222_spill] sm:$0xff] }
 0x203   : > { %3410 = vrcp.f32 %v1019_v52  ;;  %3052 = vmatprep.subr.bf16.mxu0 %v4418_v27  ;;  %3082 = vmatprep.subr.bf16.mxu1 %v5290_v15  ;;  %v5393_v52 = vld [vmem:[#allocation220_spill] sm:$0xff] }
 0x204   : > { %1268 = vmatprep.mubr.f32.mxu0 %v5226_v56  ;;  %2608 = vmatprep.mubr.msk.f32.mxu1 %vm3649_vm0, %v5226_v56  ;;  %3412 = vrcp.f32 %v1026_v47  ;;  %v5395_v47 = vld [vmem:[#allocation224_spill] sm:$0xff] }
 0x206   : > { %3054 = vmatpush1.bf16.msra.mxu0 %v4429_v31  ;;  %3084 = vmatpush3.bf16.msra.mxu1 %v4442_v33 }
 0x207   : > { %3056 = vmatprep.subr.bf16.mxu0 %v4435_v32  ;;  %3085 = vmatprep.subr.bf16.mxu1 %v5290_v15 }
 0x20a   : > { %3058 = vmatpush1.bf16.msra.mxu0 %v4449_v34  ;;  %3087 = vmatpush3.bf16.msra.mxu1 %v4460_v36 }
 0x20b   : > { %3060 = vmatprep.subr.bf16.mxu0 %v4455_v35  ;;  %3088 = vmatprep.subr.bf16.mxu1 %v5290_v15 }
 0x20d   : > { %v3411_v20 = vpop.eup %3410 }
 0x20e   : > { %v1036_v19 = vmul.f32 %v3411_v20, %v1035_v53  ;;  %3062 = vmatpush1.bf16.msra.mxu0 %v4465_v29  ;;  %3090 = vmatpush3.bf16.msra.mxu1 %v4476_v28  ;;  %v3413_v23 = vpop.eup %3412  ;;  %v5396_v53 = vld [vmem:[#allocation223_spill] sm:$0xff]  ;;  %v5397_v20 = vld [vmem:[#allocation225_spill] sm:$0xff] }
 0x20f   : > { %3064 = vmatprep.subr.bf16.mxu0 %v4471_v30  ;;  %3091 = vmatprep.subr.bf16.mxu1 %v5290_v15  ;;  %v1039_v51 = vsub.f32 1.0, %v3413_v23  ;;  %v1041_v17 = vmul.f32 %v5375_v45, %v3413_v23  ;;  %v5387_v45 = vld [vmem:[#allocation215_spill] sm:$0xff] }
 0x210   : > { %v1037_v46 = vadd.f32 %v1036_v19, %v676_v58  ;;  %v5398_v58 = vld [vmem:[#allocation227_spill] sm:$0xff]  ;;  %v5399_v19 = vld [vmem:[#allocation226_spill] sm:$0xff] }
 0x212   : > { %3414 = vtanh.f32 %v1037_v46  ;;  %3066 = vmatpush1.bf16.msra.mxu0 %v4481_v37  ;;  %3093 = vmatpush3.bf16.msra.mxu1 %v4492_v40 }
 0x213   : > { %3068 = vmatprep.subr.bf16.mxu0 %v4487_v39  ;;  %3094 = vmatprep.subr.bf16.mxu1 %v5290_v15 }
 0x216   : > { %3070 = vmatpush1.bf16.msra.mxu0 %v4497_v41  ;;  %3096 = vmatpush3.bf16.msra.mxu1 %v4508_v43 }
 0x217   : > { %3072 = vmatprep.subr.bf16.mxu0 %v4503_v42  ;;  %3097 = vmatprep.subr.bf16.mxu1 %v5290_v15 }
 0x21a   : > { %3074 = vmatpush1.bf16.msra.mxu0 %v4513_v44  ;;  %3099 = vmatpush3.bf16.msra.mxu1 %v4524_v6 }
 0x21b   : > { %3076 = vmatprep.subr.bf16.mxu0 %v4519_v22  ;;  %3100 = vmatprep.subr.bf16.mxu1 %v5290_v15 }
 0x21c   : > { %v3415_v21 = vpop.eup %3414 }
 0x21d   : > { %v1040_v55 = vmul.f32 %v3415_v21, %v1039_v51  ;;  %v5400_v51 = vld [vmem:[#allocation233_spill] sm:$0xff] }
 0x21e   : > { %3078 = vmatpush1.bf16.msra.mxu0 %v4529_v10  ;;  %3102 = vmatpush3.bf16.msra.mxu1 %v4536_v50 }
 0x21f   : > { %v4670_v18 = vadd.f32 %v1041_v17, %v1040_v55  ;;  %3104 = vmatprep.subr.bf16.mxu0 %v4273_v9  ;;  %3135 = vmatprep.subr.bf16.mxu1 %v5290_v15 }
 0x221   : > { %1048 = vst [vmem:[%s1047_s9] sm:$0xff] %v4670_v18  ;;  %1269 = vmatmul.mubr.f32.vlgmr.msra.gmra.mrb[12].mxu0 %v4670_v18  ;;  %2609 = vmatmul.mubr.f32.vlgmr.msra.gmra.mrb[14].mxu1 %v4670_v18 }
 0x222   : > { %3106 = vmatpush1.bf16.msra.mxu0 %v4277_v14  ;;  %3137 = vmatpush3.bf16.msra.mxu1 %v4286_v4 }
 0x223   : > { %3108 = vmatprep.subr.bf16.mxu0 %v4282_v59  ;;  %3138 = vmatprep.subr.bf16.mxu1 %v5290_v15 }
 0x224   : > { %1471 = vmatprep.mubr.f32.mxu0 %v5226_v56  ;;  %2643 = vmatprep.mubr.msk.f32.mxu1 %vm3649_vm0, %v5226_v56 }
 0x226   : > { %3110 = vmatpush1.bf16.msra.mxu0 %v4291_v0  ;;  %3140 = vmatpush3.bf16.msra.mxu1 %v4304_v1 }
 0x227   : > { %3112 = vmatprep.subr.bf16.mxu0 %v4298_v57  ;;  %3141 = vmatprep.subr.bf16.mxu1 %v5290_v15 }
 0x22a   : > { %3114 = vmatpush1.bf16.msra.mxu0 %v4309_v11  ;;  %3143 = vmatpush3.bf16.msra.mxu1 %v4322_v61 }
 0x22b   : > { %3116 = vmatprep.subr.bf16.mxu0 %v4316_v2  ;;  %3144 = vmatprep.subr.bf16.mxu1 %v5290_v15 }
 0x22e   : > { %3118 = vmatpush1.bf16.msra.mxu0 %v4327_v8  ;;  %3146 = vmatpush3.bf16.msra.mxu1 %v4340_v16 }
 0x22f   : > { %3120 = vmatprep.subr.bf16.mxu0 %v5387_v45  ;;  %3147 = vmatprep.subr.bf16.mxu1 %v5290_v15 }
 0x232   : > { %3122 = vmatpush1.bf16.msra.mxu0 %v5388_v60  ;;  %3149 = vmatpush3.bf16.msra.mxu1 %v5389_v49 }
 0x233   : > { %3124 = vmatprep.subr.bf16.mxu0 %v5390_v3  ;;  %3150 = vmatprep.subr.bf16.mxu1 %v5290_v15  ;;  %v5401_v3 = vld [vmem:[#allocation214_spill] sm:$0xff] }
 0x236   : > { %3126 = vmatpush1.bf16.msra.mxu0 %v5391_v38  ;;  %3152 = vmatpush3.bf16.msra.mxu1 %v5392_v63 }
 0x237   : > { %3128 = vmatprep.subr.bf16.mxu0 %v5393_v52  ;;  %3153 = vmatprep.subr.bf16.mxu1 %v5290_v15 }
 0x23a   : > { %3130 = vmatpush1.bf16.msra.mxu0 %v5394_v54  ;;  %3155 = vmatpush3.bf16.msra.mxu1 %v5395_v47 }
 0x23b   : > { %3132 = vmatprep.subr.bf16.mxu0 %v5396_v53  ;;  %3156 = vmatprep.subr.bf16.mxu1 %v5290_v15 }
 0x23e   : > { %3134 = vmatpush1.bf16.msra.mxu0 %v5397_v20  ;;  %3158 = vmatpush3.bf16.msra.mxu1 %v5398_v58 }
 0x23f   : > { %3160 = vmatprep.subr.bf16.mxu0 %v5399_v19  ;;  %3191 = vmatprep.subr.bf16.mxu1 %v5290_v15 }
 0x2d4   : > { %v1129_v46 = vpop.f32.mrb[2].mxu0  ;;  %v1200_v23 = vpop.f32.mrb[12].mxu1 }
 0x2d5   : > { %v3329_v21 = vadd.f32 %v1129_v46, %v5400_v51  ;;  %v1131_v55 = vpop.f32.mrb[3].mxu0  ;;  %v2575_v17 = vpop.f32.mrb[13].mxu1  ;;  %v1359_v19 = vadd.f32 %v5385_v5, %v1200_v23 }
 0x2d6   : > { %v3330_v47 = vadd.f32 %v1131_v55, %v4605_v13 }
 0x2d7   : > { %v2191_v24 = vmul.f32 -1.442695, %v3329_v21 }
 0x2d8   : > { %v2192_v53 = vmul.f32 -1.442695, %v3330_v47 }
 0x2d9   : > { %3416 = vpow2.f32 %v2191_v24 }
 0x2da   : > { %3418 = vpow2.f32 %v2192_v53 }
 0x2e3   : > { %v3417_v54 = vpop.eup %3416 }
 0x2e4   : > { %v1349_v20 = vadd.f32 1.0, %v3417_v54  ;;  %v3419_v58 = vpop.eup %3418 }
 0x2e5   : > { %v1356_v52 = vadd.f32 1.0, %v3419_v58 }
 0x2e6   : > { %3420 = vrcp.f32 %v1349_v20 }
 0x2e7   : > { %3422 = vrcp.f32 %v1356_v52 }
 0x2f0   : > { %v3421_v63 = vpop.eup %3420 }
 0x2f1   : > { %v1360_v38 = vmul.f32 %v3421_v63, %v1359_v19  ;;  %v3423_v20 = vpop.eup %3422 }
 0x2f2   : > { %v1363_v23 = vsub.f32 1.0, %v3423_v20 }
 0x2f3   : > { %v1361_v46 = vadd.f32 %v1360_v38, %v5401_v3  ;;  %v1365_v3 = vmul.f32 %v3423_v20, %v4619_v62 }
 0x2f4   : > { %v1270_v51 = vpop.f32.mrb[12].mxu0  ;;  %v1341_v17 = vpop.f32.mrb[14].mxu1 }
 0x2f5   : > { %3424 = vtanh.f32 %v1361_v46  ;;  %v3339_v21 = vadd.f32 %v1270_v51, %v4611_v25  ;;  %v1272_v24 = vpop.f32.mrb[13].mxu0  ;;  %v2610_v47 = vpop.f32.mrb[15].mxu1  ;;  %v1381_v46 = vadd.f32 %v5386_v48, %v1341_v17 }
 0x2f6   : > { %v3340_v54 = vadd.f32 %v1272_v24, %v4614_v7  ;;  %v5402_v47 = vld [vmem:[#allocation232_spill] sm:$0xff] }
 0x2f7   : > { %v2193_v53 = vmul.f32 -1.442695, %v3339_v21 }
 0x2f8   : > { %v2194_v58 = vmul.f32 -1.442695, %v3340_v54 }
 0x2f9   : > { %3426 = vpow2.f32 %v2193_v53 }
 0x2fa   : > { %3428 = vpow2.f32 %v2194_v58 }
 0x2ff   : > { %v3425_v55 = vpop.eup %3424 }
 0x300   : > { %v1364_v63 = vmul.f32 %v3425_v55, %v1363_v23 }
 0x302   : > { %v4719_v38 = vadd.f32 %v1365_v3, %v1364_v63 }
 0x303   : > { %v3427_v52 = vpop.eup %3426 }
 0x304   : > { %v1371_v19 = vadd.f32 1.0, %v3427_v52  ;;  %2197 = vst [vmem:[%s4623_s28 + $0x8] sm:$0xff] %v4719_v38  ;;  %1472 = vmatmul.mubr.f32.vlgmr.msra.gmra.mrb[4].mxu0 %v4719_v38  ;;  %2644 = vmatmul.mubr.f32.vlgmr.msra.gmra.mrb[16].mxu1 %v4719_v38  ;;  %v3429_v62 = vpop.eup %3428 }
 0x305   : > { %3162 = vmatpush1.bf16.msra.mxu0 %v4412_v26  ;;  %3193 = vmatpush3.bf16.msra.mxu1 %v4424_v12  ;;  %v1378_v51 = vadd.f32 1.0, %v3429_v62 }
 0x306   : > { %3430 = vrcp.f32 %v1371_v19  ;;  %3164 = vmatprep.subr.bf16.mxu0 %v4418_v27  ;;  %3194 = vmatprep.subr.bf16.mxu1 %v5290_v15 }
 0x307   : > { %1612 = vmatprep.mubr.f32.mxu0 %v5226_v56  ;;  %2678 = vmatprep.mubr.msk.f32.mxu1 %vm3649_vm0, %v5226_v56  ;;  %3432 = vrcp.f32 %v1378_v51 }
 0x309   : > { %3166 = vmatpush1.bf16.msra.mxu0 %v4429_v31  ;;  %3196 = vmatpush3.bf16.msra.mxu1 %v4442_v33 }
 0x30a   : > { %3168 = vmatprep.subr.bf16.mxu0 %v4435_v32  ;;  %3197 = vmatprep.subr.bf16.mxu1 %v5290_v15 }
 0x30d   : > { %3170 = vmatpush1.bf16.msra.mxu0 %v4449_v34  ;;  %3199 = vmatpush3.bf16.msra.mxu1 %v4460_v36 }
 0x30e   : > { %3172 = vmatprep.subr.bf16.mxu0 %v4455_v35  ;;  %3200 = vmatprep.subr.bf16.mxu1 %v5290_v15 }
 0x310   : > { %v3431_v21 = vpop.eup %3430 }
 0x311   : > { %v1382_v24 = vmul.f32 %v3431_v21, %v1381_v46  ;;  %3174 = vmatpush1.bf16.msra.mxu0 %v4465_v29  ;;  %3202 = vmatpush3.bf16.msra.mxu1 %v4476_v28  ;;  %v3433_v17 = vpop.eup %3432 }
 0x312   : > { %3176 = vmatprep.subr.bf16.mxu0 %v4471_v30  ;;  %3203 = vmatprep.subr.bf16.mxu1 %v5290_v15  ;;  %v1385_v54 = vsub.f32 1.0, %v3433_v17  ;;  %v1387_v23 = vmul.f32 %v3433_v17, %v4670_v18  ;;  %v5413_v18 = vld [vmem:[#allocation233_spill] sm:$0xff] }
 0x313   : > { %v1383_v53 = vadd.f32 %v1382_v24, %v5402_v47 }
 0x315   : > { %3434 = vtanh.f32 %v1383_v53  ;;  %3178 = vmatpush1.bf16.msra.mxu0 %v4481_v37  ;;  %3205 = vmatpush3.bf16.msra.mxu1 %v4492_v40  ;;  %v5414_v53 = vld [vmem:[#allocation229_spill] sm:$0xff] }
 0x316   : > { %3180 = vmatprep.subr.bf16.mxu0 %v4487_v39  ;;  %3206 = vmatprep.subr.bf16.mxu1 %v5290_v15 }
 0x319   : > { %3182 = vmatpush1.bf16.msra.mxu0 %v4497_v41  ;;  %3208 = vmatpush3.bf16.msra.mxu1 %v4508_v43 }
 0x31a   : > { %3184 = vmatprep.subr.bf16.mxu0 %v4503_v42  ;;  %3209 = vmatprep.subr.bf16.mxu1 %v5290_v15 }
 0x31d   : > { %3186 = vmatpush1.bf16.msra.mxu0 %v4513_v44  ;;  %3211 = vmatpush3.bf16.msra.mxu1 %v4524_v6 }
 0x31e   : > { %3188 = vmatprep.subr.bf16.mxu0 %v4519_v22  ;;  %3212 = vmatprep.subr.bf16.mxu1 %v5290_v15 }
 0x31f   : > { %v3435_v20 = vpop.eup %3434 }
 0x320   : > { %v1386_v58 = vmul.f32 %v3435_v20, %v1385_v54 }
 0x321   : > { %3190 = vmatpush1.bf16.msra.mxu0 %v4529_v10  ;;  %3214 = vmatpush3.bf16.msra.mxu1 %v4536_v50 }
 0x322   : > { %v4762_v55 = vadd.f32 %v1387_v23, %v1386_v58  ;;  %3216 = vmatprep.subr.bf16.mxu0 %v4273_v9  ;;  %3247 = vmatprep.subr.bf16.mxu1 %v5290_v15  ;;  %v5403_v9 = vld [vmem:[#allocation217_spill] sm:$0xff] }
 0x324   : > { %1394 = vst [vmem:[%s1393_s14] sm:$0xff] %v4762_v55  ;;  %1613 = vmatmul.mubr.f32.vlgmr.msra.gmra.mrb[10].mxu0 %v4762_v55  ;;  %2679 = vmatmul.mubr.f32.vlgmr.msra.gmra.mrb[18].mxu1 %v4762_v55 }
 0x325   : > { %3218 = vmatpush1.bf16.msra.mxu0 %v4277_v14  ;;  %3249 = vmatpush3.bf16.msra.mxu1 %v4286_v4  ;;  %v5404_v14 = vld [vmem:[#allocation219_spill] sm:$0xff]  ;;  %v5406_v4 = vld [vmem:[#allocation220_spill] sm:$0xff] }
 0x326   : > { %3220 = vmatprep.subr.bf16.mxu0 %v4282_v59  ;;  %3250 = vmatprep.subr.bf16.mxu1 %v5290_v15  ;;  %v5405_v59 = vld [vmem:[#allocation221_spill] sm:$0xff] }
 0x327   : > { %1815 = vmatprep.mubr.f32.mxu0 %v5226_v56  ;;  %2713 = vmatprep.mubr.msk.f32.mxu1 %vm3649_vm0, %v5226_v56 }
 0x329   : > { %3222 = vmatpush1.bf16.msra.mxu0 %v4291_v0  ;;  %3252 = vmatpush3.bf16.msra.mxu1 %v4304_v1  ;;  %v5408_v0 = vld [vmem:[#allocation224_spill] sm:$0xff]  ;;  %v5410_v1 = vld [vmem:[#allocation225_spill] sm:$0xff] }
 0x32a   : > { %3224 = vmatprep.subr.bf16.mxu0 %v4298_v57  ;;  %3253 = vmatprep.subr.bf16.mxu1 %v5290_v15  ;;  %v5409_v57 = vld [vmem:[#allocation223_spill] sm:$0xff] }
 0x32d   : > { %3226 = vmatpush1.bf16.msra.mxu0 %v4309_v11  ;;  %3255 = vmatpush3.bf16.msra.mxu1 %v4322_v61  ;;  %v5411_v11 = vld [vmem:[#allocation227_spill] sm:$0xff] }
 0x32e   : > { %3228 = vmatprep.subr.bf16.mxu0 %v4316_v2  ;;  %3256 = vmatprep.subr.bf16.mxu1 %v5290_v15  ;;  %v5412_v2 = vld [vmem:[#allocation226_spill] sm:$0xff] }
 0x331   : > { %3230 = vmatpush1.bf16.msra.mxu0 %v4327_v8  ;;  %3258 = vmatpush3.bf16.msra.mxu1 %v4340_v16  ;;  %v5407_v16 = vld [vmem:[#allocation222_spill] sm:$0xff] }
 0x332   : > { %3232 = vmatprep.subr.bf16.mxu0 %v5387_v45  ;;  %3259 = vmatprep.subr.bf16.mxu1 %v5290_v15 }
 0x335   : > { %3234 = vmatpush1.bf16.msra.mxu0 %v5388_v60  ;;  %3261 = vmatpush3.bf16.msra.mxu1 %v5389_v49 }
 0x336   : > { %3236 = vmatprep.subr.bf16.mxu0 %v5403_v9  ;;  %3262 = vmatprep.subr.bf16.mxu1 %v5290_v15 }
 0x339   : > { %3238 = vmatpush1.bf16.msra.mxu0 %v5404_v14  ;;  %3264 = vmatpush3.bf16.msra.mxu1 %v5405_v59 }
 0x33a   : > { %3240 = vmatprep.subr.bf16.mxu0 %v5406_v4  ;;  %3265 = vmatprep.subr.bf16.mxu1 %v5290_v15 }
 0x33d   : > { %3242 = vmatpush1.bf16.msra.mxu0 %v5407_v16  ;;  %3267 = vmatpush3.bf16.msra.mxu1 %v5408_v0 }
 0x33e   : > { %3244 = vmatprep.subr.bf16.mxu0 %v5409_v57  ;;  %3268 = vmatprep.subr.bf16.mxu1 %v5290_v15 }
 0x341   : > { %3246 = vmatpush1.bf16.msra.mxu0 %v5410_v1  ;;  %3270 = vmatpush3.bf16.msra.mxu1 %v5411_v11 }
 0x342   : > { %3272 = vmatprep.subr.bf16.mxu0 %v5412_v2  ;;  %3303 = vmatprep.subr.bf16.mxu1 %v5290_v15 }
 0x3d7   : > { %v1473_v61 = vpop.f32.mrb[4].mxu0  ;;  %v1544_v8 = vpop.f32.mrb[16].mxu1 }
 0x3d8   : > { %v3331_v45 = vadd.f32 %v1473_v61, %v5413_v18  ;;  %v1475_v60 = vpop.f32.mrb[5].mxu0  ;;  %v2645_v49 = vpop.f32.mrb[17].mxu1  ;;  %v1703_v21 = vadd.f32 %v5385_v5, %v1544_v8 }
 0x3d9   : > { %v3332_v3 = vadd.f32 %v1475_v60, %v4605_v13  ;;  %v5416_v60 = vld [vmem:[#allocation228_spill] sm:$0xff] }
 0x3da   : > { %v2199_v63 = vmul.f32 -1.442695, %v3331_v45 }
 0x3db   : > { %v2200_v52 = vmul.f32 -1.442695, %v3332_v3 }
 0x3dc   : > { %3436 = vpow2.f32 %v2199_v63 }
 0x3dd   : > { %3438 = vpow2.f32 %v2200_v52 }
 0x3e6   : > { %v3437_v19 = vpop.eup %3436 }
 0x3e7   : > { %v1693_v62 = vadd.f32 1.0, %v3437_v19  ;;  %v3439_v51 = vpop.eup %3438 }
 0x3e8   : > { %v1700_v46 = vadd.f32 1.0, %v3439_v51 }
 0x3e9   : > { %3440 = vrcp.f32 %v1693_v62 }
 0x3ea   : > { %3442 = vrcp.f32 %v1700_v46 }
 0x3f3   : > { %v3441_v24 = vpop.eup %3440 }
 0x3f4   : > { %v1704_v47 = vmul.f32 %v3441_v24, %v1703_v21  ;;  %v3443_v4 = vpop.eup %3442 }
 0x3f5   : > { %v1707_v0 = vsub.f32 1.0, %v3443_v4  ;;  %v1709_v11 = vmul.f32 %v3443_v4, %v4719_v38 }
 0x3f6   : > { %v1705_v17 = vadd.f32 %v1704_v47, %v5414_v53 }
 0x3f7   : > { %v1614_v54 = vpop.f32.mrb[10].mxu0  ;;  %v1685_v20 = vpop.f32.mrb[18].mxu1 }
 0x3f8   : > { %3444 = vtanh.f32 %v1705_v17  ;;  %v3337_v58 = vadd.f32 %v1614_v54, %v4611_v25  ;;  %v1616_v23 = vpop.f32.mrb[11].mxu0  ;;  %v2680_v9 = vpop.f32.mrb[19].mxu1 }
 0x3f9   : > { %v3338_v59 = vadd.f32 %v1616_v23, %v4614_v7 }
 0x3fa   : > { %v2201_v14 = vmul.f32 -1.442695, %v3337_v58 }
 0x3fb   : > { %v2202_v16 = vmul.f32 -1.442695, %v3338_v59 }
 0x3fc   : > { %3446 = vpow2.f32 %v2201_v14  ;;  %v5417_v14 = vld [vmem:[#allocation231_spill] sm:$0xff] }
 0x3fd   : > { %3448 = vpow2.f32 %v2202_v16 }
 0x402   : > { %v3445_v57 = vpop.eup %3444 }
 0x403   : > { %v1708_v1 = vmul.f32 %v3445_v57, %v1707_v0 }
 0x405   : > { %v4811_v2 = vadd.f32 %v1709_v11, %v1708_v1 }
 0x406   : > { %v3447_v61 = vpop.eup %3446 }
 0x407   : > { %v1715_v8 = vadd.f32 1.0, %v3447_v61  ;;  %2205 = vst [vmem:[%s4623_s28 + $0x10] sm:$0xff] %v4811_v2  ;;  %1816 = vmatmul.mubr.f32.vlgmr.msra.gmra.mrb[6].mxu0 %v4811_v2  ;;  %2714 = vmatmul.mubr.f32.vlgmr.msra.gmra.mrb[20].mxu1 %v4811_v2  ;;  %v3449_v38 = vpop.eup %3448 }
 0x408   : > { %3274 = vmatpush1.bf16.msra.mxu0 %v4412_v26  ;;  %3305 = vmatpush3.bf16.msra.mxu1 %v4424_v12  ;;  %v1722_v26 = vadd.f32 1.0, %v3449_v38 }
 0x409   : > { %3450 = vrcp.f32 %v1715_v8  ;;  %3276 = vmatprep.subr.bf16.mxu0 %v4418_v27  ;;  %3306 = vmatprep.subr.bf16.mxu1 %v5290_v15 }
 0x40a   : > { %1956 = vmatprep.mubr.f32.mxu0 %v5226_v56  ;;  %2748 = vmatprep.mubr.msk.f32.mxu1 %vm3649_vm0, %v5226_v56  ;;  %v1725_v56 = vadd.f32 %v5386_v48, %v1685_v20  ;;  %3452 = vrcp.f32 %v1722_v26 }
 0x40c   : > { %3278 = vmatpush1.bf16.msra.mxu0 %v4429_v31  ;;  %3308 = vmatpush3.bf16.msra.mxu1 %v4442_v33 }
 0x40d   : > { %3280 = vmatprep.subr.bf16.mxu0 %v4435_v32  ;;  %3309 = vmatprep.subr.bf16.mxu1 %v5290_v15  ;;  %v5415_v32 = vld [vmem:[#allocation230_spill] sm:$0xff] }
 0x410   : > { %3282 = vmatpush1.bf16.msra.mxu0 %v4449_v34  ;;  %3311 = vmatpush3.bf16.msra.mxu1 %v4460_v36 }
 0x411   : > { %3284 = vmatprep.subr.bf16.mxu0 %v4455_v35  ;;  %3312 = vmatprep.subr.bf16.mxu1 %v5290_v15 }
 0x413   : > { %v3451_v27 = vpop.eup %3450 }
 0x414   : > { %v1726_v31 = vmul.f32 %v3451_v27, %v1725_v56  ;;  %3286 = vmatpush1.bf16.msra.mxu0 %v4465_v29  ;;  %3314 = vmatpush3.bf16.msra.mxu1 %v4476_v28  ;;  %v3453_v34 = vpop.eup %3452 }
 0x415   : > { %3288 = vmatprep.subr.bf16.mxu0 %v4471_v30  ;;  %3315 = vmatprep.subr.bf16.mxu1 %v5290_v15  ;;  %v1729_v35 = vsub.f32 1.0, %v3453_v34  ;;  %v1731_v29 = vmul.f32 %v3453_v34, %v4762_v55 }
 0x416   : > { %v1727_v33 = vadd.f32 %v1726_v31, %v5415_v32 }
 0x418   : > { %3454 = vtanh.f32 %v1727_v33  ;;  %3290 = vmatpush1.bf16.msra.mxu0 %v4481_v37  ;;  %3317 = vmatpush3.bf16.msra.mxu1 %v4492_v40 }
 0x419   : > { %3292 = vmatprep.subr.bf16.mxu0 %v4487_v39  ;;  %3318 = vmatprep.subr.bf16.mxu1 %v5290_v15 }
 0x41c   : > { %3294 = vmatpush1.bf16.msra.mxu0 %v4497_v41  ;;  %3320 = vmatpush3.bf16.msra.mxu1 %v4508_v43 }
 0x41d   : > { %3296 = vmatprep.subr.bf16.mxu0 %v4503_v42  ;;  %3321 = vmatprep.subr.bf16.mxu1 %v5290_v15 }
 0x420   : > { %3298 = vmatpush1.bf16.msra.mxu0 %v4513_v44  ;;  %3323 = vmatpush3.bf16.msra.mxu1 %v4524_v6 }
 0x421   : > { %3300 = vmatprep.subr.bf16.mxu0 %v4519_v22  ;;  %3324 = vmatprep.subr.bf16.mxu1 %v5290_v15 }
 0x422   : > { %v3455_v36 = vpop.eup %3454 }
 0x423   : > { %v1730_v12 = vmul.f32 %v3455_v36, %v1729_v35 }
 0x424   : > { %3302 = vmatpush1.bf16.msra.mxu0 %v4529_v10  ;;  %3326 = vmatpush3.bf16.msra.mxu1 %v4536_v50 }
 0x425   : > { %v1732_v30 = vadd.f32 %v1731_v29, %v1730_v12 }
 0x427   : > { %1738 = vst [vmem:[%s1737_s0] sm:$0xff] %v1732_v30  ;;  %1957 = vmatmul.mubr.f32.vlgmr.msra.gmra.mrb[8].mxu0 %v1732_v30  ;;  %2749 = vmatmul.mubr.f32.vlgmr.msra.gmra.mrb[22].mxu1 %v1732_v30 }
 0x4da   : > { %v1817_v28 = vpop.f32.mrb[6].mxu0  ;;  %v1888_v37 = vpop.f32.mrb[20].mxu1 }
 0x4db   : > { %v3333_v39 = vadd.f32 %v1817_v28, %v5413_v18  ;;  %v1819_v40 = vpop.f32.mrb[7].mxu0  ;;  %v2715_v15 = vpop.f32.mrb[21].mxu1  ;;  %v2047_v10 = vadd.f32 %v5385_v5, %v1888_v37 }
 0x4dc   : > { %v3334_v42 = vadd.f32 %v1819_v40, %v4605_v13 }
 0x4dd   : > { %v2207_v41 = vmul.f32 -1.442695, %v3333_v39 }
 0x4de   : > { %v2208_v43 = vmul.f32 -1.442695, %v3334_v42 }
 0x4df   : > { %3456 = vpow2.f32 %v2207_v41 }
 0x4e0   : > { %3458 = vpow2.f32 %v2208_v43 }
 0x4e9   : > { %v3457_v44 = vpop.eup %3456 }
 0x4ea   : > { %v2037_v22 = vadd.f32 1.0, %v3457_v44  ;;  %v3459_v50 = vpop.eup %3458 }
 0x4eb   : > { %v2044_v6 = vadd.f32 1.0, %v3459_v50 }
 0x4ec   : > { %3460 = vrcp.f32 %v2037_v22 }
 0x4ed   : > { %3462 = vrcp.f32 %v2044_v6 }
 0x4f6   : > { %v3461_v55 = vpop.eup %3460 }
 0x4f7   : > { %v2048_v45 = vmul.f32 %v3461_v55, %v2047_v10  ;;  %v3463_v51 = vpop.eup %3462 }
 0x4f8   : > { %v2051_v21 = vsub.f32 1.0, %v3463_v51  ;;  %v2053_v53 = vmul.f32 %v3463_v51, %v4811_v2 }
 0x4f9   : > { %v2049_v18 = vadd.f32 %v2048_v45, %v5416_v60 }
 0x4fa   : > { %v1958_v49 = vpop.f32.mrb[8].mxu0  ;;  %v2029_v63 = vpop.f32.mrb[22].mxu1 }
 0x4fb   : > { %3464 = vtanh.f32 %v2049_v18  ;;  %v3335_v13 = vadd.f32 %v1958_v49, %v4611_v25  ;;  %v1960_v3 = vpop.f32.mrb[9].mxu0  ;;  %v2750_v52 = vpop.f32.mrb[23].mxu1  ;;  %v2069_v23 = vadd.f32 %v5386_v48, %v2029_v63 }
 0x4fc   : > { %v3336_v62 = vadd.f32 %v1960_v3, %v4614_v7 }
 0x4fd   : > { %v2209_v19 = vmul.f32 -1.442695, %v3335_v13 }
 0x4fe   : > { %v2210_v46 = vmul.f32 -1.442695, %v3336_v62 }
 0x4ff   : > { %3466 = vpow2.f32 %v2209_v19 }
 0x500   : > { %3468 = vpow2.f32 %v2210_v46 }
 0x505   : > { %v3465_v24 = vpop.eup %3464 }
 0x506   : > { %v2052_v47 = vmul.f32 %v3465_v24, %v2051_v21 }
 0x508   : > { %v2054_v17 = vadd.f32 %v2053_v53, %v2052_v47  }
 0x509   : > { %v3467_v54 = vpop.eup %3466 }
 0x50a   : > { %2213 = vst [vmem:[%s4623_s28 + $0x18] sm:$0xff] %v2054_v17  ;;  %v2059_v20 = vadd.f32 1.0, %v3467_v54  ;;  %v3469_v25 = vpop.eup %3468  ;;  %v5419_v54 = vmov %v2054_v17  ;;  %2083 = vst [vmem:[#allocation13] sm:$0xff] (%p268_p10), %v2054_v17 }
 0x50b   : > { %v2066_v58 = vadd.f32 1.0, %v3469_v25 }
 0x50c   : > { %3470 = vrcp.f32 %v2059_v20 }
 0x50d   : > { %3472 = vrcp.f32 %v2066_v58 }
 0x516   : > { %v3471_v7 = vpop.eup %3470 }
 0x517   : > { %v2070_v9 = vmul.f32 %v3471_v7, %v2069_v23  ;;  %v3473_v4 = vpop.eup %3472 }
 0x518   : > { %v2073_v16 = vsub.f32 1.0, %v3473_v4  ;;  %v2075_v1 = vmul.f32 %v3473_v4, %v1732_v30 }
 0x519   : > { %v2071_v59 = vadd.f32 %v2070_v9, %v5417_v14 }
 0x51b   : > { %3474 = vtanh.f32 %v2071_v59 }
 0x524   :  { %270 = sbr.rel (!%p268_p10) target bundleno = 155 (0x9b), region = 98 }
 0x525   : > { %v3475_v0 = vpop.eup %3474 }
 0x526   : > { %v2074_v57 = vmul.f32 %v3475_v0, %v2073_v16 }
 0x528   : > { %v2076_v11 = vadd.f32 %v2075_v1, %v2074_v57  }
 0x52a   : > { %2082 = vst [vmem:[%s2081_s11] sm:$0xff] %v2076_v11  ;;  %v5418_v59 = vmov %v2076_v11  ;;  %2085 = vst [vmem:[#allocation13 + $0x8] sm:$0xff] (%p268_p10), %v2076_v11 }
 0x52b   :  { %3553 = shalt.err (!%p3550_p1)
}
 0x52c   :  { %s3554_s23 = scalar_lea.hbm %s4930_s6, 1024 }
 0x52d   :  { %p3555_p2 = scmp.ne.s32.totalorder %s4930_s6, %s3554_s23  ;;  %p3558_p3 = scmp.lt.u32.totalorder %s3554_s23, %s4930_s6 }
 0x52f   :  { %p3560_p4 = pnand %p3558_p3, %p3555_p2 }
 0x531   :  { %3563 = shalt.err (!%p3560_p4)
}
 0x532   :  { %2109 = dma.vmem_to_hbm [thread:$0]  %s2104_s18, 1024, %s4930_s6, [#allocation12], %s3644_s1, %s3644_s1, %s3645_s25  }
 0x533   :  { %s3564_s30 = scalar_lea.vmem %s4872_s20, 1024  ;;  %p3569_p6 = scmp.lt.s32.totalorder %s4872_s20, %s4872_s20 }
 0x534   :  { %p3565_p5 = scmp.ne.s32.totalorder %s4872_s20, %s3564_s30  ;;  %p3570_p7 = scmp.lt.s32.totalorder %s3564_s30, %s3564_s30 }
 0x536   :  { %p3571_p8 = por %p3570_p7, %p3569_p6 }
 0x538   :  { %p3572_p9 = pnand %p3571_p8, %p3565_p5 }
 0x53a   :  { %3575 = shalt.err (!%p3572_p9)
}
 0x53b   :  { %s3576_s10 = scalar_lea.hbm %s4929_s5, 1024 }
 0x53c   :  { %p3577_p10 = scmp.ne.s32.totalorder %s4929_s5, %s3576_s10  ;;  %p3580_p11 = scmp.lt.u32.totalorder %s3576_s10, %s4929_s5 }
 0x53e   :  { %p3582_p12 = pnand %p3580_p11, %p3577_p10 }
 0x540   :  { %3585 = shalt.err (!%p3582_p12)
}
 0x541   :  { %2097 = dma.vmem_to_hbm [thread:$0]  %s4872_s20, 1024, %s4929_s5, [#allocation6], %s3644_s1, %s3644_s1, %s3645_s25  }
 0x542   :  { %s3652_s16 = smov [#allocation13]  }
 0x543   :  { %s2115_s2 = sshll.u32 %s3652_s16, 4  ;;  %s2116_s2 = int_to_ptr.vmem [resolvable:$true] %s2115_s2 }
 0x544   :  { %s3586_s11 = scalar_lea.vmem %s2116_s2, 256  ;;  %p3591_p0 = scmp.lt.s32.totalorder %s2116_s2, %s2116_s2 }
 0x545   :  { %p3587_p13 = scmp.ne.s32.totalorder %s2116_s2, %s3586_s11  ;;  %p3592_p1 = scmp.lt.s32.totalorder %s3586_s11, %s3586_s11 }
 0x547   :  { %p3593_p2 = por %p3592_p1, %p3591_p0 }
 0x549   :  { %p3594_p3 = pnand %p3593_p2, %p3587_p13 }
 0x54b   :  { %3597 = shalt.err (!%p3594_p3)
}
 0x54c   :  { %s3598_s19 = scalar_lea.hbm %s4931_s7, 256 }
 0x54d   :  { %p3599_p4 = scmp.ne.s32.totalorder %s4931_s7, %s3598_s19  ;;  %p3602_p5 = scmp.lt.u32.totalorder %s3598_s19, %s4931_s7 }
 0x54f   :  { %p3604_p6 = pnand %p3602_p5, %p3599_p4 }
 0x551   :  { %3607 = shalt.err (!%p3604_p6)
}
 0x552   :  { %2121 = dma.vmem_to_hbm [thread:$0]  %s2116_s2, 256, %s4931_s7, [#allocation12], %s3644_s1, %s3644_s1, %s3645_s25  }
 0x553   :  { %3624 = dma.done.wait [#allocation6], 1024  }
 0x554   :  { %3625 = vsyncadd [#allocation6], 4294966272 }
 0x555   :  { %3626 = dma.done.wait [#allocation12], 1280  }
 0x556   :  { %3627 = vsyncadd [#allocation12], 4294966016 }
 0x557   :  { %2131 = vsyncpa [#allocation5], 1 }
 0x558   :  { %2132 = vsyncpa [#allocation8], 1 }
 0x559   :  { %2133 = vsyncpa [#allocation6], 1 }
 0x55a   :  { %2134 = vsyncpa [#allocation12], 1 }

// kernel: tpu_custom_call.1
= control target key start
LH: loop header
LB: loop body
LE: loop exit
PB: predicated region body
PF: predicated region fallthrough
CT: control target
= control target key end

     0   :  { %13 = vsyncpa [#allocation5], 0  ;;  %s4924_s0 = inlined_call_operand.hbm [shape: f32[64,128], index: 0, kind: input, shape index: {}]   ;;  %s4925_s1 = inlined_call_operand.hbm [shape: f32[2,128,384], index: 1, kind: input, shape index: {}]   ;;  %s4926_s2 = inlined_call_operand.hbm [shape: f32[2,128,384], index: 2, kind: input, shape index: {}]   ;;  %s4927_s3 = inlined_call_operand.vmem [shape: f32[2,1,384], index: 3, kind: input, shape index: {}]   ;;  %s4928_s4 = inlined_call_operand.vmem [shape: f32[2,1,128], index: 4, kind: input, shape index: {}]   ;;  %s4929_s5 = inlined_call_operand.hbm [shape: f32[8,8,128], index: 5, kind: output, shape index: {0}]   ;;  %s4930_s6 = inlined_call_operand.hbm [shape: f32[8,8,128], index: 6, kind: output, shape index: {1}]   ;;  %s4931_s7 = inlined_call_operand.hbm [shape: f32[2,8,128], index: 7, kind: output, shape index: {2}]  }
   0x1   :  { %14 = vsyncpa [#allocation8], 0 }
   0x2   :  { %15 = vsyncpa [#allocation6], 0 }
   0x3   :  { %16 = vsyncpa [#allocation12], 0  ;;  %s3640_s24 = smov [#allocation7]   ;;  %s3476_s28 = scalar_lea.hbm %s4925_s1, 12288 }
   0x4   :  { %s34_s25 = sshll.u32 %s3640_s24, 4  ;;  %p3477_p0 = scmp.ne.s32.totalorder %s4925_s1, %s3476_s28  ;;  %s35_s25 = int_to_ptr.vmem [resolvable:$true] %s34_s25 }
   0x5   :  { %p3480_p1 = scmp.lt.u32.totalorder %s3476_s28, %s4925_s1 }
   0x7   :  { %p3482_p2 = pnand %p3480_p1, %p3477_p0 }
   0x9   :  { %3485 = shalt.err (!%p3482_p2)
}
   0xa   :  { %s3486_s10 = scalar_lea.vmem %s35_s25, 12288  ;;  %p3491_p4 = scmp.lt.s32.totalorder %s35_s25, %s35_s25 }
   0xb   :  { %p3487_p3 = scmp.ne.s32.totalorder %s35_s25, %s3486_s10  ;;  %p3492_p5 = scmp.lt.s32.totalorder %s3486_s10, %s3486_s10 }
   0xd   :  { %p3493_p6 = por %p3492_p5, %p3491_p4 }
   0xf   :  { %p3494_p7 = pnand %p3493_p6, %p3487_p3 }
  0x11   :  { %3497 = shalt.err (!%p3494_p7)
}
  0x12   :  { %s3641_s11 = smov 384   ;;  %s3642_s12 = smov 24  }
  0x13   :  { %40 = dma.hbm_to_vmem [thread:$0]  %s4925_s1, 12288, %s35_s25, [#allocation8], %s3641_s11, %s3641_s11, %s3642_s12  }
  0x14   :  { %s3643_s15 = smov [#allocation4]   ;;  %s3498_s19 = scalar_lea.hbm %s4924_s0, 1024 }
  0x15   :  { %s22_s16 = sshll.u32 %s3643_s15, 4  ;;  %p3499_p8 = scmp.ne.s32.totalorder %s4924_s0, %s3498_s19  ;;  %s23_s16 = int_to_ptr.vmem [resolvable:$true] %s22_s16 }
  0x16   :  { %p3502_p9 = scmp.lt.u32.totalorder %s3498_s19, %s4924_s0 }
  0x18   :  { %p3504_p10 = pnand %p3502_p9, %p3499_p8 }
  0x1a   :  { %3507 = shalt.err (!%p3504_p10)
}
  0x1b   :  { %s3508_s24 = scalar_lea.vmem %s23_s16, 1024  ;;  %p3513_p12 = scmp.lt.s32.totalorder %s23_s16, %s23_s16 }
  0x1c   :  { %p3509_p11 = scmp.ne.s32.totalorder %s23_s16, %s3508_s24  ;;  %p3514_p13 = scmp.lt.s32.totalorder %s3508_s24, %s3508_s24 }
  0x1e   :  { %p3515_p0 = por %p3514_p13, %p3513_p12 }
  0x20   :  { %p3516_p1 = pnand %p3515_p0, %p3509_p11 }
  0x22   :  { %3519 = shalt.err (!%p3516_p1)
}
  0x23   :  { %s3644_s1 = smov 128   ;;  %s3645_s25 = smov 8  }
  0x24   :  { %28 = dma.hbm_to_vmem [thread:$0]  %s4924_s0, 1024, %s23_s16, [#allocation5], %s3644_s1, %s3644_s1, %s3645_s25  }
  0x25   :  { %s3646_s28 = smov [#allocation9]   ;;  %s3520_s9 = scalar_lea.hbm %s4926_s2, 12288 }
  0x26   :  { %s46_s29 = sshll.u32 %s3646_s28, 4  ;;  %p3521_p2 = scmp.ne.s32.totalorder %s4926_s2, %s3520_s9  ;;  %s47_s29 = int_to_ptr.vmem [resolvable:$true] %s46_s29 }
  0x27   :  { %p3524_p3 = scmp.lt.u32.totalorder %s3520_s9, %s4926_s2 }
  0x29   :  { %p3526_p4 = pnand %p3524_p3, %p3521_p2 }
  0x2b   :  { %3529 = shalt.err (!%p3526_p4)
}
  0x2c   :  { %s3530_s17 = scalar_lea.vmem %s47_s29, 12288  ;;  %p3535_p6 = scmp.lt.s32.totalorder %s47_s29, %s47_s29 }
  0x2d   :  { %p3531_p5 = scmp.ne.s32.totalorder %s47_s29, %s3530_s17  ;;  %p3536_p7 = scmp.lt.s32.totalorder %s3530_s17, %s3530_s17 }
  0x2f   :  { %p3537_p8 = por %p3536_p7, %p3535_p6 }
  0x31   :  { %p3538_p9 = pnand %p3537_p8, %p3531_p5 }
  0x33   :  { %3541 = shalt.err (!%p3538_p9)
}
  0x34   :  { %52 = dma.hbm_to_vmem [thread:$0]  %s4926_s2, 12288, %s47_s29, [#allocation8], %s3641_s11, %s3641_s11, %s3642_s12  }
  0x35   :  { %3620 = dma.done.wait [#allocation5], 1024  }
  0x36   :  { %3621 = vsyncadd [#allocation5], 4294966272 }
  0x37   :  { %3622 = dma.done.wait [#allocation8], 24576  }
  0x38   :  { %3623 = vsyncadd [#allocation8], 4294942720  ;;  %v3738_v0 = vld [vmem:[#allocation7] sm:$0xff]  ;;  %v3740_v1 = vld [vmem:[#allocation7 + $0x8] sm:$0xff]  ;;  %s4146_s23 = smov 0  }
  0x39   :  { %4971 = vst [vmem:[#allocation18_spill] sm:$0xff] %v3738_v0  ;;  %4972 = vst [vmem:[#allocation19_spill] sm:$0xff] %v3740_v1  ;;  %v3742_v2 = vld [vmem:[#allocation7 + $0x10] sm:$0xff]  ;;  %v3744_v3 = vld [vmem:[#allocation7 + $0x18] sm:$0xff] }
  0x3a   :  { %4973 = vst [vmem:[#allocation20_spill] sm:$0xff] %v3742_v2  ;;  %4974 = vst [vmem:[#allocation21_spill] sm:$0xff] %v3744_v3  ;;  %v3746_v4 = vld [vmem:[#allocation7 + $0x20] sm:$0xff]  ;;  %v3748_v5 = vld [vmem:[#allocation7 + $0x28] sm:$0xff] }
  0x3b   :  { %4975 = vst [vmem:[#allocation22_spill] sm:$0xff] %v3746_v4  ;;  %4976 = vst [vmem:[#allocation23_spill] sm:$0xff] %v3748_v5  ;;  %v3750_v6 = vld [vmem:[#allocation7 + $0x30] sm:$0xff]  ;;  %v3752_v7 = vld [vmem:[#allocation7 + $0x38] sm:$0xff] }
  0x3c   :  { %4977 = vst [vmem:[#allocation24_spill] sm:$0xff] %v3750_v6  ;;  %4978 = vst [vmem:[#allocation25_spill] sm:$0xff] %v3752_v7  ;;  %v3754_v8 = vld [vmem:[#allocation7 + $0x40] sm:$0xff]  ;;  %v3756_v9 = vld [vmem:[#allocation7 + $0x48] sm:$0xff] }
  0x3d   :  { %4979 = vst [vmem:[#allocation26_spill] sm:$0xff] %v3754_v8  ;;  %4980 = vst [vmem:[#allocation27_spill] sm:$0xff] %v3756_v9  ;;  %v3758_v10 = vld [vmem:[#allocation7 + $0x50] sm:$0xff]  ;;  %v3760_v11 = vld [vmem:[#allocation7 + $0x58] sm:$0xff] }
  0x3e   :  { %4981 = vst [vmem:[#allocation28_spill] sm:$0xff] %v3758_v10  ;;  %4982 = vst [vmem:[#allocation29_spill] sm:$0xff] %v3760_v11  ;;  %v3762_v12 = vld [vmem:[#allocation7 + $0x60] sm:$0xff]  ;;  %v3764_v13 = vld [vmem:[#allocation7 + $0x68] sm:$0xff] }
  0x3f   :  { %4983 = vst [vmem:[#allocation30_spill] sm:$0xff] %v3762_v12  ;;  %4984 = vst [vmem:[#allocation31_spill] sm:$0xff] %v3764_v13  ;;  %v3766_v14 = vld [vmem:[#allocation7 + $0x70] sm:$0xff]  ;;  %v3768_v15 = vld [vmem:[#allocation7 + $0x78] sm:$0xff] }
  0x40   :  { %4985 = vst [vmem:[#allocation32_spill] sm:$0xff] %v3766_v14  ;;  %4986 = vst [vmem:[#allocation33_spill] sm:$0xff] %v3768_v15  ;;  %v3770_v16 = vld [vmem:[#allocation7 + $0x80] sm:$0xff]  ;;  %v3772_v17 = vld [vmem:[#allocation7 + $0x88] sm:$0xff] }
  0x41   :  { %4987 = vst [vmem:[#allocation34_spill] sm:$0xff] %v3770_v16  ;;  %4988 = vst [vmem:[#allocation35_spill] sm:$0xff] %v3772_v17  ;;  %v3774_v18 = vld [vmem:[#allocation7 + $0x90] sm:$0xff]  ;;  %v3776_v19 = vld [vmem:[#allocation7 + $0x98] sm:$0xff] }
  0x42   :  { %4989 = vst [vmem:[#allocation36_spill] sm:$0xff] %v3774_v18  ;;  %4990 = vst [vmem:[#allocation37_spill] sm:$0xff] %v3776_v19  ;;  %v3778_v20 = vld [vmem:[#allocation7 + $0xa0] sm:$0xff]  ;;  %v3780_v21 = vld [vmem:[#allocation7 + $0xa8] sm:$0xff] }
  0x43   :  { %4991 = vst [vmem:[#allocation38_spill] sm:$0xff] %v3778_v20  ;;  %4992 = vst [vmem:[#allocation39_spill] sm:$0xff] %v3780_v21  ;;  %v3782_v22 = vld [vmem:[#allocation7 + $0xb0] sm:$0xff]  ;;  %v3784_v23 = vld [vmem:[#allocation7 + $0xb8] sm:$0xff] }
  0x44   :  { %4993 = vst [vmem:[#allocation40_spill] sm:$0xff] %v3782_v22  ;;  %4994 = vst [vmem:[#allocation41_spill] sm:$0xff] %v3784_v23  ;;  %v3786_v24 = vld [vmem:[#allocation7 + $0xc0] sm:$0xff]  ;;  %v3788_v25 = vld [vmem:[#allocation7 + $0xc8] sm:$0xff] }
  0x45   :  { %4995 = vst [vmem:[#allocation42_spill] sm:$0xff] %v3786_v24  ;;  %4996 = vst [vmem:[#allocation43_spill] sm:$0xff] %v3788_v25  ;;  %v3790_v26 = vld [vmem:[#allocation7 + $0xd0] sm:$0xff]  ;;  %v3792_v27 = vld [vmem:[#allocation7 + $0xd8] sm:$0xff] }
  0x46   :  { %4997 = vst [vmem:[#allocation44_spill] sm:$0xff] %v3790_v26  ;;  %4998 = vst [vmem:[#allocation45_spill] sm:$0xff] %v3792_v27  ;;  %v3794_v28 = vld [vmem:[#allocation7 + $0xe0] sm:$0xff]  ;;  %v3796_v29 = vld [vmem:[#allocation7 + $0xe8] sm:$0xff] }
  0x47   :  { %4999 = vst [vmem:[#allocation46_spill] sm:$0xff] %v3794_v28  ;;  %5000 = vst [vmem:[#allocation47_spill] sm:$0xff] %v3796_v29  ;;  %v3798_v30 = vld [vmem:[#allocation7 + $0xf0] sm:$0xff]  ;;  %v3800_v31 = vld [vmem:[#allocation7 + $0xf8] sm:$0xff] }
  0x48   :  { %5001 = vst [vmem:[#allocation48_spill] sm:$0xff] %v3798_v30  ;;  %5002 = vst [vmem:[#allocation49_spill] sm:$0xff] %v3800_v31  ;;  %v3802_v32 = vld [vmem:[#allocation7 + $0x100] sm:$0xff]  ;;  %v3804_v33 = vld [vmem:[#allocation7 + $0x108] sm:$0xff] }
  0x49   :  { %5003 = vst [vmem:[#allocation50_spill] sm:$0xff] %v3802_v32  ;;  %5004 = vst [vmem:[#allocation51_spill] sm:$0xff] %v3804_v33  ;;  %v3806_v34 = vld [vmem:[#allocation7 + $0x110] sm:$0xff]  ;;  %v3808_v35 = vld [vmem:[#allocation7 + $0x118] sm:$0xff] }
  0x4a   :  { %5005 = vst [vmem:[#allocation52_spill] sm:$0xff] %v3806_v34  ;;  %5006 = vst [vmem:[#allocation53_spill] sm:$0xff] %v3808_v35  ;;  %v3810_v36 = vld [vmem:[#allocation7 + $0x120] sm:$0xff]  ;;  %v3812_v37 = vld [vmem:[#allocation7 + $0x128] sm:$0xff] }
  0x4b   :  { %5007 = vst [vmem:[#allocation54_spill] sm:$0xff] %v3810_v36  ;;  %5008 = vst [vmem:[#allocation55_spill] sm:$0xff] %v3812_v37  ;;  %v3814_v38 = vld [vmem:[#allocation7 + $0x130] sm:$0xff]  ;;  %v3816_v39 = vld [vmem:[#allocation7 + $0x138] sm:$0xff] }
  0x4c   :  { %5009 = vst [vmem:[#allocation56_spill] sm:$0xff] %v3814_v38  ;;  %5010 = vst [vmem:[#allocation57_spill] sm:$0xff] %v3816_v39  ;;  %v3818_v40 = vld [vmem:[#allocation7 + $0x140] sm:$0xff]  ;;  %v3820_v41 = vld [vmem:[#allocation7 + $0x148] sm:$0xff] }
  0x4d   :  { %5011 = vst [vmem:[#allocation58_spill] sm:$0xff] %v3818_v40  ;;  %5012 = vst [vmem:[#allocation59_spill] sm:$0xff] %v3820_v41  ;;  %v3822_v42 = vld [vmem:[#allocation7 + $0x150] sm:$0xff]  ;;  %v3824_v43 = vld [vmem:[#allocation7 + $0x158] sm:$0xff] }
  0x4e   :  { %5013 = vst [vmem:[#allocation60_spill] sm:$0xff] %v3822_v42  ;;  %5014 = vst [vmem:[#allocation61_spill] sm:$0xff] %v3824_v43  ;;  %v3826_v44 = vld [vmem:[#allocation7 + $0x160] sm:$0xff]  ;;  %v3828_v45 = vld [vmem:[#allocation7 + $0x168] sm:$0xff] }
  0x4f   :  { %5015 = vst [vmem:[#allocation62_spill] sm:$0xff] %v3826_v44  ;;  %5016 = vst [vmem:[#allocation63_spill] sm:$0xff] %v3828_v45  ;;  %v3830_v46 = vld [vmem:[#allocation7 + $0x170] sm:$0xff]  ;;  %v3832_v47 = vld [vmem:[#allocation7 + $0x178] sm:$0xff] }
  0x50   :  { %5017 = vst [vmem:[#allocation64_spill] sm:$0xff] %v3830_v46  ;;  %5018 = vst [vmem:[#allocation65_spill] sm:$0xff] %v3832_v47  ;;  %v3834_v48 = vld [vmem:[#allocation7 + $0x180] sm:$0xff]  ;;  %v3836_v49 = vld [vmem:[#allocation7 + $0x188] sm:$0xff] }
  0x51   :  { %5019 = vst [vmem:[#allocation66_spill] sm:$0xff] %v3834_v48  ;;  %5020 = vst [vmem:[#allocation67_spill] sm:$0xff] %v3836_v49  ;;  %v3838_v50 = vld [vmem:[#allocation7 + $0x190] sm:$0xff]  ;;  %v3840_v51 = vld [vmem:[#allocation7 + $0x198] sm:$0xff] }
  0x52   :  { %5021 = vst [vmem:[#allocation68_spill] sm:$0xff] %v3838_v50  ;;  %5022 = vst [vmem:[#allocation69_spill] sm:$0xff] %v3840_v51  ;;  %v3842_v52 = vld [vmem:[#allocation7 + $0x1a0] sm:$0xff]  ;;  %v3844_v53 = vld [vmem:[#allocation7 + $0x1a8] sm:$0xff] }
  0x53   :  { %5023 = vst [vmem:[#allocation70_spill] sm:$0xff] %v3842_v52  ;;  %5024 = vst [vmem:[#allocation71_spill] sm:$0xff] %v3844_v53  ;;  %v3846_v54 = vld [vmem:[#allocation7 + $0x1b0] sm:$0xff]  ;;  %v3848_v55 = vld [vmem:[#allocation7 + $0x1b8] sm:$0xff] }
  0x54   :  { %5025 = vst [vmem:[#allocation72_spill] sm:$0xff] %v3846_v54  ;;  %5026 = vst [vmem:[#allocation73_spill] sm:$0xff] %v3848_v55  ;;  %v3850_v56 = vld [vmem:[#allocation7 + $0x1c0] sm:$0xff]  ;;  %v3852_v57 = vld [vmem:[#allocation7 + $0x1c8] sm:$0xff] }
  0x55   :  { %5027 = vst [vmem:[#allocation74_spill] sm:$0xff] %v3850_v56  ;;  %5028 = vst [vmem:[#allocation75_spill] sm:$0xff] %v3852_v57  ;;  %v3854_v58 = vld [vmem:[#allocation7 + $0x1d0] sm:$0xff]  ;;  %v3856_v59 = vld [vmem:[#allocation7 + $0x1d8] sm:$0xff] }
  0x56   :  { %5029 = vst [vmem:[#allocation76_spill] sm:$0xff] %v3854_v58  ;;  %5030 = vst [vmem:[#allocation77_spill] sm:$0xff] %v3856_v59  ;;  %v3858_v60 = vld [vmem:[#allocation7 + $0x1e0] sm:$0xff]  ;;  %v3860_v61 = vld [vmem:[#allocation7 + $0x1e8] sm:$0xff] }
  0x57   :  { %5031 = vst [vmem:[#allocation78_spill] sm:$0xff] %v3858_v60  ;;  %5032 = vst [vmem:[#allocation79_spill] sm:$0xff] %v3860_v61  ;;  %v3862_v62 = vld [vmem:[#allocation7 + $0x1f0] sm:$0xff]  ;;  %v3864_v63 = vld [vmem:[#allocation7 + $0x1f8] sm:$0xff] }
  0x58   :  { %5033 = vst [vmem:[#allocation80_spill] sm:$0xff] %v3862_v62  ;;  %5034 = vst [vmem:[#allocation81_spill] sm:$0xff] %v3864_v63  ;;  %v3866_v53 = vld [vmem:[#allocation7 + $0x200] sm:$0xff]  ;;  %v3868_v54 = vld [vmem:[#allocation7 + $0x208] sm:$0xff] }
  0x59   :  { %5035 = vst [vmem:[#allocation82_spill] sm:$0xff] %v3866_v53  ;;  %5036 = vst [vmem:[#allocation83_spill] sm:$0xff] %v3868_v54  ;;  %v3870_v50 = vld [vmem:[#allocation7 + $0x210] sm:$0xff]  ;;  %v3872_v56 = vld [vmem:[#allocation7 + $0x218] sm:$0xff] }
  0x5a   :  { %5037 = vst [vmem:[#allocation84_spill] sm:$0xff] %v3870_v50  ;;  %5038 = vst [vmem:[#allocation85_spill] sm:$0xff] %v3872_v56  ;;  %v3874_v57 = vld [vmem:[#allocation7 + $0x220] sm:$0xff]  ;;  %v3876_v58 = vld [vmem:[#allocation7 + $0x228] sm:$0xff] }
  0x5b   :  { %5039 = vst [vmem:[#allocation86_spill] sm:$0xff] %v3874_v57  ;;  %5040 = vst [vmem:[#allocation87_spill] sm:$0xff] %v3876_v58  ;;  %v3878_v59 = vld [vmem:[#allocation7 + $0x230] sm:$0xff]  ;;  %v3880_v60 = vld [vmem:[#allocation7 + $0x238] sm:$0xff] }
  0x5c   :  { %5041 = vst [vmem:[#allocation88_spill] sm:$0xff] %v3878_v59  ;;  %5042 = vst [vmem:[#allocation89_spill] sm:$0xff] %v3880_v60  ;;  %v3882_v61 = vld [vmem:[#allocation7 + $0x240] sm:$0xff]  ;;  %v3884_v62 = vld [vmem:[#allocation7 + $0x248] sm:$0xff] }
  0x5d   :  { %5043 = vst [vmem:[#allocation90_spill] sm:$0xff] %v3882_v61  ;;  %5044 = vst [vmem:[#allocation91_spill] sm:$0xff] %v3884_v62  ;;  %v3886_v63 = vld [vmem:[#allocation7 + $0x250] sm:$0xff]  ;;  %v3888_v53 = vld [vmem:[#allocation7 + $0x258] sm:$0xff] }
  0x5e   :  { %5045 = vst [vmem:[#allocation92_spill] sm:$0xff] %v3886_v63  ;;  %5046 = vst [vmem:[#allocation93_spill] sm:$0xff] %v3888_v53  ;;  %v3890_v54 = vld [vmem:[#allocation7 + $0x260] sm:$0xff]  ;;  %v3892_v50 = vld [vmem:[#allocation7 + $0x268] sm:$0xff] }
  0x5f   :  { %5047 = vst [vmem:[#allocation94_spill] sm:$0xff] %v3890_v54  ;;  %5048 = vst [vmem:[#allocation95_spill] sm:$0xff] %v3892_v50  ;;  %v3894_v56 = vld [vmem:[#allocation7 + $0x270] sm:$0xff]  ;;  %v3896_v57 = vld [vmem:[#allocation7 + $0x278] sm:$0xff] }
  0x60   :  { %5049 = vst [vmem:[#allocation96_spill] sm:$0xff] %v3894_v56  ;;  %5050 = vst [vmem:[#allocation97_spill] sm:$0xff] %v3896_v57  ;;  %v3898_v58 = vld [vmem:[#allocation7 + $0x280] sm:$0xff]  ;;  %v3900_v59 = vld [vmem:[#allocation7 + $0x288] sm:$0xff] }
  0x61   :  { %5051 = vst [vmem:[#allocation98_spill] sm:$0xff] %v3898_v58  ;;  %5052 = vst [vmem:[#allocation99_spill] sm:$0xff] %v3900_v59  ;;  %v3902_v60 = vld [vmem:[#allocation7 + $0x290] sm:$0xff]  ;;  %v3904_v61 = vld [vmem:[#allocation7 + $0x298] sm:$0xff] }
  0x62   :  { %5053 = vst [vmem:[#allocation100_spill] sm:$0xff] %v3902_v60  ;;  %5054 = vst [vmem:[#allocation101_spill] sm:$0xff] %v3904_v61  ;;  %v3906_v62 = vld [vmem:[#allocation7 + $0x2a0] sm:$0xff]  ;;  %v3908_v63 = vld [vmem:[#allocation7 + $0x2a8] sm:$0xff] }
  0x63   :  { %5055 = vst [vmem:[#allocation102_spill] sm:$0xff] %v3906_v62  ;;  %5056 = vst [vmem:[#allocation103_spill] sm:$0xff] %v3908_v63  ;;  %v3910_v53 = vld [vmem:[#allocation7 + $0x2b0] sm:$0xff]  ;;  %v3912_v54 = vld [vmem:[#allocation7 + $0x2b8] sm:$0xff] }
  0x64   :  { %5057 = vst [vmem:[#allocation104_spill] sm:$0xff] %v3910_v53  ;;  %5058 = vst [vmem:[#allocation105_spill] sm:$0xff] %v3912_v54  ;;  %v3914_v50 = vld [vmem:[#allocation7 + $0x2c0] sm:$0xff]  ;;  %v3916_v56 = vld [vmem:[#allocation7 + $0x2c8] sm:$0xff] }
  0x65   :  { %5059 = vst [vmem:[#allocation106_spill] sm:$0xff] %v3914_v50  ;;  %5060 = vst [vmem:[#allocation107_spill] sm:$0xff] %v3916_v56  ;;  %v3918_v57 = vld [vmem:[#allocation7 + $0x2d0] sm:$0xff]  ;;  %v3920_v58 = vld [vmem:[#allocation7 + $0x2d8] sm:$0xff] }
  0x66   :  { %5061 = vst [vmem:[#allocation108_spill] sm:$0xff] %v3918_v57  ;;  %5062 = vst [vmem:[#allocation109_spill] sm:$0xff] %v3920_v58  ;;  %v3922_v59 = vld [vmem:[#allocation7 + $0x2e0] sm:$0xff]  ;;  %v3924_v60 = vld [vmem:[#allocation7 + $0x2e8] sm:$0xff] }
  0x67   :  { %5063 = vst [vmem:[#allocation110_spill] sm:$0xff] %v3922_v59  ;;  %5064 = vst [vmem:[#allocation111_spill] sm:$0xff] %v3924_v60  ;;  %v3926_v61 = vld [vmem:[#allocation7 + $0x2f0] sm:$0xff]  ;;  %v3928_v62 = vld [vmem:[#allocation7 + $0x2f8] sm:$0xff] }
  0x68   :  { %5065 = vst [vmem:[#allocation112_spill] sm:$0xff] %v3926_v61  ;;  %5066 = vst [vmem:[#allocation113_spill] sm:$0xff] %v3928_v62  ;;  %v3930_v63 = vld [vmem:[#allocation9] sm:$0xff]  ;;  %v3932_v53 = vld [vmem:[#allocation9 + $0x8] sm:$0xff] }
  0x69   :  { %5067 = vst [vmem:[#allocation114_spill] sm:$0xff] %v3930_v63  ;;  %5068 = vst [vmem:[#allocation115_spill] sm:$0xff] %v3932_v53  ;;  %v3934_v54 = vld [vmem:[#allocation9 + $0x10] sm:$0xff]  ;;  %v3936_v50 = vld [vmem:[#allocation9 + $0x18] sm:$0xff] }
  0x6a   :  { %5069 = vst [vmem:[#allocation116_spill] sm:$0xff] %v3934_v54  ;;  %5070 = vst [vmem:[#allocation117_spill] sm:$0xff] %v3936_v50  ;;  %v3938_v56 = vld [vmem:[#allocation9 + $0x20] sm:$0xff]  ;;  %v3940_v57 = vld [vmem:[#allocation9 + $0x28] sm:$0xff] }
  0x6b   :  { %5071 = vst [vmem:[#allocation118_spill] sm:$0xff] %v3938_v56  ;;  %5072 = vst [vmem:[#allocation119_spill] sm:$0xff] %v3940_v57  ;;  %v3942_v58 = vld [vmem:[#allocation9 + $0x30] sm:$0xff]  ;;  %v3944_v59 = vld [vmem:[#allocation9 + $0x38] sm:$0xff] }
  0x6c   :  { %5073 = vst [vmem:[#allocation120_spill] sm:$0xff] %v3942_v58  ;;  %5074 = vst [vmem:[#allocation121_spill] sm:$0xff] %v3944_v59  ;;  %v3946_v60 = vld [vmem:[#allocation9 + $0x40] sm:$0xff]  ;;  %v3948_v61 = vld [vmem:[#allocation9 + $0x48] sm:$0xff] }
  0x6d   :  { %5075 = vst [vmem:[#allocation122_spill] sm:$0xff] %v3946_v60  ;;  %5076 = vst [vmem:[#allocation123_spill] sm:$0xff] %v3948_v61  ;;  %v3950_v62 = vld [vmem:[#allocation9 + $0x50] sm:$0xff]  ;;  %v3952_v63 = vld [vmem:[#allocation9 + $0x58] sm:$0xff] }
  0x6e   :  { %5077 = vst [vmem:[#allocation124_spill] sm:$0xff] %v3950_v62  ;;  %5078 = vst [vmem:[#allocation125_spill] sm:$0xff] %v3952_v63  ;;  %v3954_v53 = vld [vmem:[#allocation9 + $0x60] sm:$0xff]  ;;  %v3956_v54 = vld [vmem:[#allocation9 + $0x68] sm:$0xff] }
  0x6f   :  { %5079 = vst [vmem:[#allocation126_spill] sm:$0xff] %v3954_v53  ;;  %5080 = vst [vmem:[#allocation127_spill] sm:$0xff] %v3956_v54  ;;  %v3958_v50 = vld [vmem:[#allocation9 + $0x70] sm:$0xff]  ;;  %v3960_v56 = vld [vmem:[#allocation9 + $0x78] sm:$0xff] }
  0x70   :  { %5081 = vst [vmem:[#allocation128_spill] sm:$0xff] %v3958_v50  ;;  %5082 = vst [vmem:[#allocation129_spill] sm:$0xff] %v3960_v56  ;;  %v3962_v57 = vld [vmem:[#allocation9 + $0x80] sm:$0xff]  ;;  %v3964_v58 = vld [vmem:[#allocation9 + $0x88] sm:$0xff] }
  0x71   :  { %5083 = vst [vmem:[#allocation130_spill] sm:$0xff] %v3962_v57  ;;  %5084 = vst [vmem:[#allocation131_spill] sm:$0xff] %v3964_v58  ;;  %v3966_v59 = vld [vmem:[#allocation9 + $0x90] sm:$0xff]  ;;  %v3968_v60 = vld [vmem:[#allocation9 + $0x98] sm:$0xff] }
  0x72   :  { %5085 = vst [vmem:[#allocation132_spill] sm:$0xff] %v3966_v59  ;;  %5086 = vst [vmem:[#allocation133_spill] sm:$0xff] %v3968_v60  ;;  %v3970_v61 = vld [vmem:[#allocation9 + $0xa0] sm:$0xff]  ;;  %v3972_v62 = vld [vmem:[#allocation9 + $0xa8] sm:$0xff] }
  0x73   :  { %5087 = vst [vmem:[#allocation134_spill] sm:$0xff] %v3970_v61  ;;  %5088 = vst [vmem:[#allocation135_spill] sm:$0xff] %v3972_v62  ;;  %v3974_v63 = vld [vmem:[#allocation9 + $0xb0] sm:$0xff]  ;;  %v3976_v53 = vld [vmem:[#allocation9 + $0xb8] sm:$0xff] }
  0x74   :  { %5089 = vst [vmem:[#allocation136_spill] sm:$0xff] %v3974_v63  ;;  %5090 = vst [vmem:[#allocation137_spill] sm:$0xff] %v3976_v53  ;;  %v3978_v54 = vld [vmem:[#allocation9 + $0xc0] sm:$0xff]  ;;  %v3980_v50 = vld [vmem:[#allocation9 + $0xc8] sm:$0xff] }
  0x75   :  { %5091 = vst [vmem:[#allocation138_spill] sm:$0xff] %v3978_v54  ;;  %5092 = vst [vmem:[#allocation139_spill] sm:$0xff] %v3980_v50  ;;  %v3982_v56 = vld [vmem:[#allocation9 + $0xd0] sm:$0xff]  ;;  %v3984_v57 = vld [vmem:[#allocation9 + $0xd8] sm:$0xff] }
  0x76   :  { %5093 = vst [vmem:[#allocation140_spill] sm:$0xff] %v3982_v56  ;;  %5094 = vst [vmem:[#allocation141_spill] sm:$0xff] %v3984_v57  ;;  %v3986_v58 = vld [vmem:[#allocation9 + $0xe0] sm:$0xff]  ;;  %v3988_v59 = vld [vmem:[#allocation9 + $0xe8] sm:$0xff] }
  0x77   :  { %5095 = vst [vmem:[#allocation142_spill] sm:$0xff] %v3986_v58  ;;  %5096 = vst [vmem:[#allocation143_spill] sm:$0xff] %v3988_v59  ;;  %v3990_v60 = vld [vmem:[#allocation9 + $0xf0] sm:$0xff]  ;;  %v3992_v61 = vld [vmem:[#allocation9 + $0xf8] sm:$0xff] }
  0x78   :  { %5097 = vst [vmem:[#allocation144_spill] sm:$0xff] %v3990_v60  ;;  %5098 = vst [vmem:[#allocation145_spill] sm:$0xff] %v3992_v61  ;;  %v3994_v62 = vld [vmem:[#allocation9 + $0x100] sm:$0xff]  ;;  %v3996_v63 = vld [vmem:[#allocation9 + $0x108] sm:$0xff] }
  0x79   :  { %5099 = vst [vmem:[#allocation146_spill] sm:$0xff] %v3994_v62  ;;  %5100 = vst [vmem:[#allocation147_spill] sm:$0xff] %v3996_v63  ;;  %v3998_v53 = vld [vmem:[#allocation9 + $0x110] sm:$0xff]  ;;  %v4000_v54 = vld [vmem:[#allocation9 + $0x118] sm:$0xff] }
  0x7a   :  { %5101 = vst [vmem:[#allocation148_spill] sm:$0xff] %v3998_v53  ;;  %5102 = vst [vmem:[#allocation149_spill] sm:$0xff] %v4000_v54  ;;  %v4002_v50 = vld [vmem:[#allocation9 + $0x120] sm:$0xff]  ;;  %v4004_v56 = vld [vmem:[#allocation9 + $0x128] sm:$0xff] }
  0x7b   :  { %5103 = vst [vmem:[#allocation150_spill] sm:$0xff] %v4002_v50  ;;  %5104 = vst [vmem:[#allocation151_spill] sm:$0xff] %v4004_v56  ;;  %v4006_v57 = vld [vmem:[#allocation9 + $0x130] sm:$0xff]  ;;  %v4008_v58 = vld [vmem:[#allocation9 + $0x138] sm:$0xff] }
  0x7c   :  { %5105 = vst [vmem:[#allocation152_spill] sm:$0xff] %v4006_v57  ;;  %5106 = vst [vmem:[#allocation153_spill] sm:$0xff] %v4008_v58  ;;  %v4010_v59 = vld [vmem:[#allocation9 + $0x140] sm:$0xff]  ;;  %v4012_v60 = vld [vmem:[#allocation9 + $0x148] sm:$0xff] }
  0x7d   :  { %5107 = vst [vmem:[#allocation154_spill] sm:$0xff] %v4010_v59  ;;  %5108 = vst [vmem:[#allocation155_spill] sm:$0xff] %v4012_v60  ;;  %v4014_v61 = vld [vmem:[#allocation9 + $0x150] sm:$0xff]  ;;  %v4016_v62 = vld [vmem:[#allocation9 + $0x158] sm:$0xff] }
  0x7e   :  { %5109 = vst [vmem:[#allocation156_spill] sm:$0xff] %v4014_v61  ;;  %5110 = vst [vmem:[#allocation157_spill] sm:$0xff] %v4016_v62  ;;  %v4018_v63 = vld [vmem:[#allocation9 + $0x160] sm:$0xff]  ;;  %v4020_v53 = vld [vmem:[#allocation9 + $0x168] sm:$0xff] }
  0x7f   :  { %5111 = vst [vmem:[#allocation158_spill] sm:$0xff] %v4018_v63  ;;  %5112 = vst [vmem:[#allocation159_spill] sm:$0xff] %v4020_v53  ;;  %v4022_v54 = vld [vmem:[#allocation9 + $0x170] sm:$0xff]  ;;  %v4024_v50 = vld [vmem:[#allocation9 + $0x178] sm:$0xff] }
  0x80   :  { %5113 = vst [vmem:[#allocation160_spill] sm:$0xff] %v4022_v54  ;;  %5114 = vst [vmem:[#allocation161_spill] sm:$0xff] %v4024_v50  ;;  %v4026_v56 = vld [vmem:[#allocation9 + $0x180] sm:$0xff]  ;;  %v4028_v57 = vld [vmem:[#allocation9 + $0x188] sm:$0xff] }
  0x81   :  { %5115 = vst [vmem:[#allocation162_spill] sm:$0xff] %v4026_v56  ;;  %5116 = vst [vmem:[#allocation163_spill] sm:$0xff] %v4028_v57  ;;  %v4030_v58 = vld [vmem:[#allocation9 + $0x190] sm:$0xff]  ;;  %v4032_v59 = vld [vmem:[#allocation9 + $0x198] sm:$0xff] }
  0x82   :  { %5117 = vst [vmem:[#allocation164_spill] sm:$0xff] %v4030_v58  ;;  %5118 = vst [vmem:[#allocation165_spill] sm:$0xff] %v4032_v59  ;;  %v4034_v60 = vld [vmem:[#allocation9 + $0x1a0] sm:$0xff]  ;;  %v4036_v61 = vld [vmem:[#allocation9 + $0x1a8] sm:$0xff] }
  0x83   :  { %5119 = vst [vmem:[#allocation166_spill] sm:$0xff] %v4034_v60  ;;  %5120 = vst [vmem:[#allocation167_spill] sm:$0xff] %v4036_v61  ;;  %v4038_v62 = vld [vmem:[#allocation9 + $0x1b0] sm:$0xff]  ;;  %v4040_v63 = vld [vmem:[#allocation9 + $0x1b8] sm:$0xff] }
  0x84   :  { %5121 = vst [vmem:[#allocation168_spill] sm:$0xff] %v4038_v62  ;;  %5122 = vst [vmem:[#allocation169_spill] sm:$0xff] %v4040_v63  ;;  %v4042_v53 = vld [vmem:[#allocation9 + $0x1c0] sm:$0xff]  ;;  %v4044_v54 = vld [vmem:[#allocation9 + $0x1c8] sm:$0xff] }
  0x85   :  { %5123 = vst [vmem:[#allocation170_spill] sm:$0xff] %v4042_v53  ;;  %5124 = vst [vmem:[#allocation171_spill] sm:$0xff] %v4044_v54  ;;  %v4046_v50 = vld [vmem:[#allocation9 + $0x1d0] sm:$0xff]  ;;  %v4048_v56 = vld [vmem:[#allocation9 + $0x1d8] sm:$0xff] }
  0x86   :  { %5125 = vst [vmem:[#allocation172_spill] sm:$0xff] %v4046_v50  ;;  %5126 = vst [vmem:[#allocation173_spill] sm:$0xff] %v4048_v56  ;;  %v4050_v57 = vld [vmem:[#allocation9 + $0x1e0] sm:$0xff]  ;;  %v4052_v58 = vld [vmem:[#allocation9 + $0x1e8] sm:$0xff] }
  0x87   :  { %5127 = vst [vmem:[#allocation174_spill] sm:$0xff] %v4050_v57  ;;  %5128 = vst [vmem:[#allocation175_spill] sm:$0xff] %v4052_v58  ;;  %v4054_v59 = vld [vmem:[#allocation9 + $0x1f0] sm:$0xff]  ;;  %v4056_v60 = vld [vmem:[#allocation9 + $0x1f8] sm:$0xff] }
  0x88   :  { %5129 = vst [vmem:[#allocation176_spill] sm:$0xff] %v4054_v59  ;;  %5130 = vst [vmem:[#allocation177_spill] sm:$0xff] %v4056_v60  ;;  %v4058_v61 = vld [vmem:[#allocation9 + $0x200] sm:$0xff]  ;;  %v4060_v62 = vld [vmem:[#allocation9 + $0x208] sm:$0xff] }
  0x89   :  { %5131 = vst [vmem:[#allocation178_spill] sm:$0xff] %v4058_v61  ;;  %5132 = vst [vmem:[#allocation179_spill] sm:$0xff] %v4060_v62  ;;  %v4062_v63 = vld [vmem:[#allocation9 + $0x210] sm:$0xff]  ;;  %v4064_v53 = vld [vmem:[#allocation9 + $0x218] sm:$0xff] }
  0x8a   :  { %5133 = vst [vmem:[#allocation180_spill] sm:$0xff] %v4062_v63  ;;  %5134 = vst [vmem:[#allocation181_spill] sm:$0xff] %v4064_v53  ;;  %v4066_v54 = vld [vmem:[#allocation9 + $0x220] sm:$0xff]  ;;  %v4068_v50 = vld [vmem:[#allocation9 + $0x228] sm:$0xff] }
  0x8b   :  { %5135 = vst [vmem:[#allocation182_spill] sm:$0xff] %v4066_v54  ;;  %5136 = vst [vmem:[#allocation183_spill] sm:$0xff] %v4068_v50  ;;  %v4070_v56 = vld [vmem:[#allocation9 + $0x230] sm:$0xff]  ;;  %v4072_v57 = vld [vmem:[#allocation9 + $0x238] sm:$0xff] }
  0x8c   :  { %5137 = vst [vmem:[#allocation184_spill] sm:$0xff] %v4070_v56  ;;  %5138 = vst [vmem:[#allocation185_spill] sm:$0xff] %v4072_v57  ;;  %v4074_v58 = vld [vmem:[#allocation9 + $0x240] sm:$0xff]  ;;  %v4076_v59 = vld [vmem:[#allocation9 + $0x248] sm:$0xff] }
  0x8d   :  { %5139 = vst [vmem:[#allocation186_spill] sm:$0xff] %v4074_v58  ;;  %5140 = vst [vmem:[#allocation187_spill] sm:$0xff] %v4076_v59  ;;  %v4078_v60 = vld [vmem:[#allocation9 + $0x250] sm:$0xff]  ;;  %v4080_v61 = vld [vmem:[#allocation9 + $0x258] sm:$0xff] }
  0x8e   :  { %5141 = vst [vmem:[#allocation188_spill] sm:$0xff] %v4078_v60  ;;  %5142 = vst [vmem:[#allocation189_spill] sm:$0xff] %v4080_v61  ;;  %v4082_v62 = vld [vmem:[#allocation9 + $0x260] sm:$0xff]  ;;  %v4084_v63 = vld [vmem:[#allocation9 + $0x268] sm:$0xff] }
  0x8f   :  { %5143 = vst [vmem:[#allocation190_spill] sm:$0xff] %v4082_v62  ;;  %5144 = vst [vmem:[#allocation191_spill] sm:$0xff] %v4084_v63  ;;  %v4086_v53 = vld [vmem:[#allocation9 + $0x270] sm:$0xff]  ;;  %v4088_v54 = vld [vmem:[#allocation9 + $0x278] sm:$0xff] }
  0x90   :  { %5145 = vst [vmem:[#allocation192_spill] sm:$0xff] %v4086_v53  ;;  %5146 = vst [vmem:[#allocation193_spill] sm:$0xff] %v4088_v54  ;;  %v4090_v50 = vld [vmem:[#allocation9 + $0x280] sm:$0xff]  ;;  %v4092_v56 = vld [vmem:[#allocation9 + $0x288] sm:$0xff] }
  0x91   :  { %5147 = vst [vmem:[#allocation194_spill] sm:$0xff] %v4090_v50  ;;  %5148 = vst [vmem:[#allocation195_spill] sm:$0xff] %v4092_v56  ;;  %v4094_v57 = vld [vmem:[#allocation9 + $0x290] sm:$0xff]  ;;  %v4096_v58 = vld [vmem:[#allocation9 + $0x298] sm:$0xff] }
  0x92   :  { %5149 = vst [vmem:[#allocation196_spill] sm:$0xff] %v4094_v57  ;;  %5150 = vst [vmem:[#allocation197_spill] sm:$0xff] %v4096_v58  ;;  %v4098_v59 = vld [vmem:[#allocation9 + $0x2a0] sm:$0xff]  ;;  %v4100_v60 = vld [vmem:[#allocation9 + $0x2a8] sm:$0xff] }
  0x93   :  { %5151 = vst [vmem:[#allocation198_spill] sm:$0xff] %v4098_v59  ;;  %5152 = vst [vmem:[#allocation199_spill] sm:$0xff] %v4100_v60  ;;  %v4102_v61 = vld [vmem:[#allocation9 + $0x2b0] sm:$0xff]  ;;  %v4104_v62 = vld [vmem:[#allocation9 + $0x2b8] sm:$0xff] }
  0x94   :  { %5153 = vst [vmem:[#allocation200_spill] sm:$0xff] %v4102_v61  ;;  %5154 = vst [vmem:[#allocation201_spill] sm:$0xff] %v4104_v62  ;;  %v4106_v63 = vld [vmem:[#allocation9 + $0x2c0] sm:$0xff]  ;;  %v4108_v53 = vld [vmem:[#allocation9 + $0x2c8] sm:$0xff] }
  0x95   :  { %5155 = vst [vmem:[#allocation202_spill] sm:$0xff] %v4106_v63  ;;  %5156 = vst [vmem:[#allocation203_spill] sm:$0xff] %v4108_v53  ;;  %v4110_v54 = vld [vmem:[#allocation9 + $0x2d0] sm:$0xff]  ;;  %v4112_v50 = vld [vmem:[#allocation9 + $0x2d8] sm:$0xff] }
  0x96   :  { %5157 = vst [vmem:[#allocation204_spill] sm:$0xff] %v4110_v54  ;;  %5158 = vst [vmem:[#allocation205_spill] sm:$0xff] %v4112_v50  ;;  %v4114_v56 = vld [vmem:[#allocation9 + $0x2e0] sm:$0xff]  ;;  %v4116_v57 = vld [vmem:[#allocation9 + $0x2e8] sm:$0xff]  ;;  %v4144_v54 = vmov 0.0  }
  0x97   :  { %5159 = vst [vmem:[#allocation206_spill] sm:$0xff] %v4114_v56  ;;  %5160 = vst [vmem:[#allocation207_spill] sm:$0xff] %v4116_v57  ;;  %v4118_v58 = vld [vmem:[#allocation9 + $0x2f0] sm:$0xff]  ;;  %v4120_v59 = vld [vmem:[#allocation9 + $0x2f8] sm:$0xff] }
  0x98   :  { %5161 = vst [vmem:[#allocation208_spill] sm:$0xff] %v4118_v58  ;;  %5162 = vst [vmem:[#allocation209_spill] sm:$0xff] %v4120_v59  ;;  %v4125_v61 = vld [vmem:[%s4927_s3] sm:$0x7]  ;;  %v4130_v53 = vld [vmem:[%s4927_s3 + $0x3] sm:$0x7] }
  0x99   :  { %5163 = vst [vmem:[#allocation210_spill] sm:$0xff] %v4125_v61  ;;  %5164 = vst [vmem:[#allocation211_spill] sm:$0xff] %v4130_v53  ;;  %v4135_v56 = vld [vmem:[%s4928_s4] ss:$0 sm:$0xff]  ;;  %v4140_v57 = vld [vmem:[%s4928_s4 + $0x1] ss:$0 sm:$0xff] }
  0x9a   :  { %5165 = vst [vmem:[#allocation212_spill] sm:$0xff] %v4135_v56  ;;  %5166 = vst [vmem:[#allocation213_spill] sm:$0xff] %v4140_v57  ;;  %v4142_v59 = vmov 0.0  }
  0x9b LB: > { %5167 = vst [vmem:[#allocation214_spill] sm:$0xff] %v3630_v59  ;;  %v5168_v1 = vld [vmem:[#allocation19_spill] sm:$0xff]  ;;  %v5169_v4 = vld [vmem:[#allocation22_spill] sm:$0xff]  ;;  %v5171_v3 = vld [vmem:[#allocation21_spill] sm:$0xff]  ;;  %s2180_s3 = sshll.u32 %s3638_s23, 5  ;;  %s275_s24 = ssub.s32 1, %s3638_s23  ;;  %s3638_s23 = sphi %s4146_s23, %s271_s23   ;;  %v3634_v54 = vphi %v4144_v54, %v5419_v54   ;;  %v3630_v59 = vphi %v4142_v59, %v5418_v59  }
  0x9c   : > { %v2751_v57 = vpack.c.bf16 %v5169_v4, %v5168_v1  ;;  %v5170_v0 = vld [vmem:[#allocation18_spill] sm:$0xff]  ;;  %v5172_v7 = vld [vmem:[#allocation25_spill] sm:$0xff]  ;;  %v5173_v10 = vld [vmem:[#allocation28_spill] sm:$0xff]  ;;  %s4181_s4 = scalar_lea.vmem [#allocation4], %s2180_s3  ;;  %s2181_s26 = sshll.u32 %s275_s24, 5  ;;  %vm3649_vm0 = vmmov 0  }
  0x9d   : > { %v2753_v56 = vpack.c.bf16 %v5171_v3, %v5170_v0  ;;  %v2755_v53 = vpack.c.bf16 %v5173_v10, %v5172_v7  ;;  %v5174_v6 = vld [vmem:[#allocation24_spill] sm:$0xff]  ;;  %v5175_v9 = vld [vmem:[#allocation27_spill] sm:$0xff]  ;;  %v5179_v16 = vld [vmem:[#allocation34_spill] sm:$0xff]  ;;  %v4937_v3 = vmov 0.0   ;;  %s4252_s27 = scalar_lea.vmem [#allocation4], %s2181_s26  ;;  %s4623_s28 = scalar_lea.vmem [#allocation10], %s2180_s3 }
  0x9e   : > { %2752 = vmatprep.subr.bf16.mxu0 %v2751_v57  ;;  %v2757_v61 = vpack.c.bf16 %v5175_v9, %v5174_v6  ;;  %v5176_v2 = vld [vmem:[#allocation20_spill] sm:$0xff]  ;;  %v5177_v5 = vld [vmem:[#allocation23_spill] sm:$0xff]  ;;  %v5180_v8 = vld [vmem:[#allocation26_spill] sm:$0xff]  ;;  %362 = vmatprep.mubr.f32.mxu0 %v4937_v3  ;;  %s4656_s29 = sshll.u32 %s3638_s23, 2  ;;  %s271_s23 = sadd.s32 1, %s3638_s23  }
  0x9f   : > { %2754 = vmatpush1.bf16.msra.mxu0 %v2753_v56  ;;  %v2783_v59 = vpack.c.bf16 %v5177_v5, %v5176_v2  ;;  %v5178_v13 = vld [vmem:[#allocation31_spill] sm:$0xff]  ;;  %v5181_v11 = vld [vmem:[#allocation29_spill] sm:$0xff]  ;;  %v5182_v12 = vld [vmem:[#allocation30_spill] sm:$0xff]  ;;  %s692_s30 = ssub.s32 7, %s4656_s29  ;;  %s1050_s10 = ssub.s32 6, %s4656_s29 }
  0xa0   : > { %2756 = vmatprep.subr.bf16.mxu0 %v2755_v53  ;;  %v2759_v1 = vpack.c.bf16 %v5179_v16, %v5178_v13  ;;  %v2787_v0 = vpack.c.bf16 %v5181_v11, %v5180_v8  ;;  %v5183_v15 = vld [vmem:[#allocation33_spill] sm:$0xff]  ;;  %v5184_v14 = vld [vmem:[#allocation32_spill] sm:$0xff]  ;;  %v5185_v17 = vld [vmem:[#allocation35_spill] sm:$0xff]  ;;  %s2190_s8 = sshll.u32 %s692_s30, 3  ;;  %s2198_s13 = sshll.u32 %s1050_s10, 3 }
  0xa1   : > { %2784 = vmatprep.subr.bf16.mxu1 %v2783_v59  ;;  %v2761_v56 = vpack.c.bf16 %v5183_v15, %v5182_v12  ;;  %v2791_v57 = vpack.c.bf16 %v5185_v17, %v5184_v14  ;;  %v5186_v19 = vld [vmem:[#allocation37_spill] sm:$0xff]  ;;  %v5187_v22 = vld [vmem:[#allocation40_spill] sm:$0xff]  ;;  %v5189_v21 = vld [vmem:[#allocation39_spill] sm:$0xff]  ;;  %v5290_v15 = vmov 0.0|0.0   ;;  %s1047_s9 = scalar_lea.vmem [#allocation11], %s2190_s8  ;;  %s1393_s14 = scalar_lea.vmem [#allocation11], %s2198_s13 }
  0xa2   : > { %2786 = vmatpush3.bf16.msra.mxu1 %v2783_v59  ;;  %v2763_v53 = vpack.c.bf16 %v5187_v22, %v5186_v19  ;;  %v278_v2 = vld [vmem:[%s4181_s4] sm:$0xff]  ;;  %v5190_v20 = vld [vmem:[#allocation38_spill] sm:$0xff]  ;;  %v5191_v23 = vld [vmem:[#allocation41_spill] sm:$0xff]  ;;  %s1396_s15 = ssub.s32 5, %s4656_s29  ;;  %s1740_s16 = ssub.s32 4, %s4656_s29 }
  0xa3   : > { %2758 = vmatpush1.bf16.msra.mxu0 %v2757_v61  ;;  %2788 = vmatprep.subr.bf16.mxu1 %v2787_v0  ;;  %v5188_v18 = vld [vmem:[#allocation36_spill] sm:$0xff]  ;;  %v2795_v61 = vpack.c.bf16 %v5191_v23, %v5190_v20  ;;  %v5192_v25 = vld [vmem:[#allocation43_spill] sm:$0xff]  ;;  %v5193_v28 = vld [vmem:[#allocation46_spill] sm:$0xff]  ;;  %s2206_s17 = sshll.u32 %s1396_s15, 3  ;;  %s2214_s2 = sshll.u32 %s1740_s16, 3 }
  0xa4   : > { %2760 = vmatprep.subr.bf16.mxu0 %v2759_v1  ;;  %2427 = vmatprep.mubr.f32.mxu1 %v278_v2  ;;  %v2765_v59 = vpack.c.bf16 %v5189_v21, %v5188_v18  ;;  %v2767_v1 = vpack.c.bf16 %v5193_v28, %v5192_v25  ;;  %v5194_v24 = vld [vmem:[#allocation42_spill] sm:$0xff]  ;;  %v5195_v27 = vld [vmem:[#allocation45_spill] sm:$0xff]  ;;  %v5196_v26 = vld [vmem:[#allocation44_spill] sm:$0xff]  ;;  %s1737_s0 = scalar_lea.vmem [#allocation11], %s2206_s17  ;;  %s2081_s11 = scalar_lea.vmem [#allocation11], %s2214_s2 }
  0xa5   : > { %v2769_v3 = vpack.c.bf16 %v5195_v27, %v5194_v24  ;;  %v5197_v29 = vld [vmem:[#allocation47_spill] sm:$0xff]  ;;  %v5198_v31 = vld [vmem:[#allocation49_spill] sm:$0xff]  ;;  %v5199_v34 = vld [vmem:[#allocation52_spill] sm:$0xff]  ;;  %p268_p10 = scmp.ge.s32.totalorder %s271_s23, 2  }
  0xa6   : > { %2790 = vmatpush3.bf16.msra.mxu1 %v2787_v0  ;;  %v2799_v0 = vpack.c.bf16 %v5197_v29, %v5196_v26  ;;  %v5200_v30 = vld [vmem:[#allocation48_spill] sm:$0xff]  ;;  %v5201_v33 = vld [vmem:[#allocation51_spill] sm:$0xff]  ;;  %v5202_v32 = vld [vmem:[#allocation50_spill] sm:$0xff]  ;;  %s3650_s12 = smov (%p268_p10), [#allocation11]   ;;  %s3651_s19 = smov (%p268_p10), [#allocation10]  }
  0xa7   : > { %2762 = vmatpush1.bf16.msra.mxu0 %v2761_v56  ;;  %2792 = vmatprep.subr.bf16.mxu1 %v2791_v57  ;;  %v2771_v56 = vpack.c.bf16 %v5199_v34, %v5198_v31  ;;  %v5203_v35 = vld [vmem:[#allocation53_spill] sm:$0xff]  ;;  %v5204_v37 = vld [vmem:[#allocation55_spill] sm:$0xff]  ;;  %v5205_v40 = vld [vmem:[#allocation58_spill] sm:$0xff]  ;;  %s2103_s18 = sshll.u32 (%p268_p10), %s3650_s12, 4  ;;  %s2091_s20 = sshll.u32 (%p268_p10), %s3651_s19, 4  ;;  %s2104_s18 = int_to_ptr.vmem [resolvable:$true] %s2103_s18  ;;  %s4872_s20 = int_to_ptr.vmem [resolvable:$true] %s2091_s20 }
  0xa8   : > { %2764 = vmatprep.subr.bf16.mxu0 %v2763_v53  ;;  %v2773_v53 = vpack.c.bf16 %v5201_v33, %v5200_v30  ;;  %v5206_v36 = vld [vmem:[#allocation54_spill] sm:$0xff]  ;;  %v5207_v39 = vld [vmem:[#allocation57_spill] sm:$0xff]  ;;  %v5208_v38 = vld [vmem:[#allocation56_spill] sm:$0xff]  ;;  %s3542_s21 = scalar_lea.vmem (%p268_p10), %s2104_s18, 1024  ;;  %p3547_p12 = scmp.lt.s32.totalorder (%p268_p10), %s2104_s18, %s2104_s18 }
  0xa9   : > { %v5209_v41 = vld [vmem:[#allocation59_spill] sm:$0xff]  ;;  %v5210_v43 = vld [vmem:[#allocation61_spill] sm:$0xff]  ;;  %v5211_v46 = vld [vmem:[#allocation64_spill] sm:$0xff]  ;;  %p3543_p11 = scmp.ne.s32.totalorder (%p268_p10), %s2104_s18, %s3542_s21  ;;  %p3548_p13 = scmp.lt.s32.totalorder (%p268_p10), %s3542_s21, %s3542_s21 }
  0xaa   : > { %2794 = vmatpush3.bf16.msra.mxu1 %v2791_v57  ;;  %v2803_v57 = vpack.c.bf16 %v5203_v35, %v5202_v32  ;;  %v5212_v42 = vld [vmem:[#allocation60_spill] sm:$0xff]  ;;  %v5213_v45 = vld [vmem:[#allocation63_spill] sm:$0xff]  ;;  %v5214_v44 = vld [vmem:[#allocation62_spill] sm:$0xff] }
  0xab   : > { %2766 = vmatpush1.bf16.msra.mxu0 %v2765_v59  ;;  %2796 = vmatprep.subr.bf16.mxu1 %v2795_v61  ;;  %v2775_v59 = vpack.c.bf16 %v5205_v40, %v5204_v37  ;;  %v5215_v47 = vld [vmem:[#allocation65_spill] sm:$0xff]  ;;  %v5216_v49 = vld [vmem:[#allocation67_spill] sm:$0xff]  ;;  %v5217_v52 = vld [vmem:[#allocation70_spill] sm:$0xff]  ;;  %p3549_p0 = por (%p268_p10), %p3548_p13, %p3547_p12 }
  0xac   : > { %2768 = vmatprep.subr.bf16.mxu0 %v2767_v1  ;;  %v2777_v1 = vpack.c.bf16 %v5207_v39, %v5206_v36  ;;  %v5218_v48 = vld [vmem:[#allocation66_spill] sm:$0xff]  ;;  %v5219_v51 = vld [vmem:[#allocation69_spill] sm:$0xff]  ;;  %v5222_v4 = vld [vmem:[#allocation68_spill] sm:$0xff] }
  0xad   : > { %v5220_v55 = vld [vmem:[#allocation73_spill] sm:$0xff]  ;;  %v5223_v5 = vld [vmem:[#allocation71_spill] sm:$0xff]  ;;  %v5257_v13 = vld [vmem:[#allocation104_spill] sm:$0xff]  ;;  %p3550_p1 = pnand (%p268_p10), %p3549_p0, %p3543_p11 }
  0xae   : > { %2798 = vmatpush3.bf16.msra.mxu1 %v2795_v61  ;;  %v2779_v61 = vpack.c.bf16 %v5211_v46, %v5210_v43  ;;  %v2847_v6 = vpack.c.bf16 %v5223_v5, %v5222_v4  ;;  %v5225_v7 = vld [vmem:[#allocation75_spill] sm:$0xff]  ;;  %v279_v8 = vld [vmem:[%s4181_s4 + $0x8] sm:$0xff]  ;;  %v5308_v21 = vld [vmem:[#allocation146_spill] sm:$0xff] }
  0xaf   : > { %2770 = vmatpush1.bf16.msra.mxu0 %v2769_v3  ;;  %2800 = vmatprep.subr.bf16.mxu1 %v2799_v0  ;;  %v2807_v3 = vpack.c.bf16 %v5209_v41, %v5208_v38  ;;  %v5227_v9 = vld [vmem:[#allocation79_spill] sm:$0xff]  ;;  %v5230_v11 = vld [vmem:[#allocation77_spill] sm:$0xff]  ;;  %v5315_v24 = vld [vmem:[#allocation160_spill] sm:$0xff] }
  0xb0   : > { %2772 = vmatprep.subr.bf16.mxu0 %v2771_v56  ;;  %v2781_v56 = vpack.c.bf16 %v5213_v45, %v5212_v42  ;;  %v5232_v4 = vld [vmem:[#allocation81_spill] sm:$0xff]  ;;  %v5318_v25 = vld [vmem:[#allocation155_spill] sm:$0xff]  ;;  %v5324_v27 = vld [vmem:[#allocation166_spill] sm:$0xff] }
  0xb1   : > { %v5259_v14 = vld [vmem:[#allocation109_spill] sm:$0xff]  ;;  %v5321_v26 = vld [vmem:[#allocation159_spill] sm:$0xff]  ;;  %v5332_v30 = vld [vmem:[#allocation172_spill] sm:$0xff] }
  0xb2   : > { %2802 = vmatpush3.bf16.msra.mxu1 %v2799_v0  ;;  %v2811_v0 = vpack.c.bf16 %v5215_v47, %v5214_v44  ;;  %v5309_v22 = vld [vmem:[#allocation149_spill] sm:$0xff]  ;;  %v5347_v37 = vld [vmem:[#allocation180_spill] sm:$0xff]  ;;  %v5348_v38 = vld [vmem:[#allocation183_spill] sm:$0xff] }
  0xb3   : > { %2774 = vmatpush1.bf16.msra.mxu0 %v2773_v53  ;;  %2804 = vmatprep.subr.bf16.mxu1 %v2803_v57  ;;  %v2815_v53 = vpack.c.bf16 %v5217_v52, %v5216_v49  ;;  %v5312_v23 = vld [vmem:[#allocation153_spill] sm:$0xff]  ;;  %v5350_v39 = vld [vmem:[#allocation190_spill] sm:$0xff]  ;;  %v5356_v42 = vld [vmem:[#allocation196_spill] sm:$0xff] }
  0xb4   : > { %2776 = vmatprep.subr.bf16.mxu0 %v2775_v59  ;;  %v2817_v59 = vpack.c.bf16 %v5219_v51, %v5218_v48  ;;  %v5327_v28 = vld [vmem:[#allocation161_spill] sm:$0xff]  ;;  %v5358_v43 = vld [vmem:[#allocation191_spill] sm:$0xff]  ;;  %v5362_v63 = vld [vmem:[#allocation202_spill] sm:$0xff] }
  0xb5   : > { %v5330_v29 = vld [vmem:[#allocation165_spill] sm:$0xff]  ;;  %v5360_v44 = vld [vmem:[#allocation195_spill] sm:$0xff]  ;;  %v5368_v58 = vld [vmem:[#allocation208_spill] sm:$0xff] }
  0xb6   : > { %2806 = vmatpush3.bf16.msra.mxu1 %v2803_v57  ;;  %v5221_v57 = vld [vmem:[#allocation76_spill] sm:$0xff]  ;;  %v5352_v40 = vld [vmem:[#allocation185_spill] sm:$0xff]  ;;  %v5361_v60 = vld [vmem:[#allocation199_spill] sm:$0xff] }
  0xb7   : > { %2778 = vmatpush1.bf16.msra.mxu0 %v2777_v1  ;;  %2808 = vmatprep.subr.bf16.mxu1 %v2807_v3  ;;  %v2819_v1 = vpack.c.bf16 %v5221_v57, %v5220_v55  ;;  %v5229_v57 = vld [vmem:[#allocation74_spill] sm:$0xff]  ;;  %v5354_v41 = vld [vmem:[#allocation189_spill] sm:$0xff]  ;;  %v5369_v45 = vld [vmem:[#allocation200_spill] sm:$0xff] }
  0xb8   : > { %2780 = vmatprep.subr.bf16.mxu0 %v2779_v61  ;;  %v5224_v61 = vld [vmem:[#allocation72_spill] sm:$0xff]  ;;  %v2851_v12 = vpack.c.bf16 %v5230_v11, %v5229_v57  ;;  %v5240_v57 = vld [vmem:[#allocation94_spill] sm:$0xff]  ;;  %v5366_v62 = vld [vmem:[#allocation201_spill] sm:$0xff] }
  0xb9   : > { %v5367_v50 = vld [vmem:[#allocation205_spill] sm:$0xff]  ;;  %v5370_v46 = vld [vmem:[#allocation203_spill] sm:$0xff]  ;;  %v5373_v48 = vld [vmem:[#allocation206_spill] sm:$0xff] }
  0xba   : > { %2810 = vmatpush3.bf16.msra.mxu1 %v2807_v3  ;;  %v2821_v3 = vpack.c.bf16 %v5225_v7, %v5224_v61  ;;  %v280_v7 = vld [vmem:[%s4181_s4 + $0x10] sm:$0xff]  ;;  %v5236_v61 = vld [vmem:[#allocation83_spill] sm:$0xff]  ;;  %v5374_v49 = vld [vmem:[#allocation209_spill] sm:$0xff] }
  0xbb   : > { %2782 = vmatpush1.bf16.msra.mxu0 %v2781_v56  ;;  %2812 = vmatprep.subr.bf16.mxu1 %v2811_v0  ;;  %v5226_v56 = vmov 0.0   ;;  %v5372_v47 = vld [vmem:[#allocation207_spill] sm:$0xff] }
  0xbc   : > { %2816 = vmatprep.subr.bf16.mxu0 %v2815_v53  ;;  %v5228_v53 = vld [vmem:[#allocation82_spill] sm:$0xff] }
  0xbd   : > { %v2823_v10 = vpack.c.bf16 %v5228_v53, %v5227_v9  ;;  %v281_v53 = vld [vmem:[%s4181_s4 + $0x18] sm:$0xff] }
  0xbe   : > { %363 = vmatmul.mubr.f32.vlgmr.msra.gmra.mrb[0].mxu0 %v278_v2  ;;  %2814 = vmatpush3.bf16.msra.mxu1 %v2811_v0  ;;  %v5231_v2 = vld [vmem:[#allocation78_spill] sm:$0xff]  ;;  %v5233_v0 = vld [vmem:[#allocation85_spill] sm:$0xff] }
  0xbf   : > { %2818 = vmatpush1.bf16.msra.mxu0 %v2817_v59  ;;  %368 = vmatprep.mubr.f32.mxu0 %v5226_v56  ;;  %v2825_v5 = vpack.c.bf16 %v5232_v4, %v5231_v2  ;;  %v5234_v59 = vld [vmem:[#allocation88_spill] sm:$0xff]  ;;  %v5241_v4 = vld [vmem:[#allocation86_spill] sm:$0xff] }
  0xc0   : > { %2820 = vmatprep.subr.bf16.mxu0 %v2819_v1  ;;  %2848 = vmatprep.subr.bf16.mxu1 %v2847_v6  ;;  %v2827_v9 = vpack.c.bf16 %v5234_v59, %v5233_v0  ;;  %v5235_v1 = vld [vmem:[#allocation80_spill] sm:$0xff]  ;;  %v5242_v0 = vld [vmem:[#allocation89_spill] sm:$0xff] }
  0xc1   : > { %2428 = vmatmul.mubr.f32.vlgmr.msra.gmra.mrb[0].mxu1 %v279_v8  ;;  %v2855_v11 = vpack.c.bf16 %v5236_v61, %v5235_v1  ;;  %v2859_v59 = vpack.c.bf16 %v5242_v0, %v5241_v4  ;;  %v5245_v1 = vld [vmem:[#allocation92_spill] sm:$0xff]  ;;  %v5246_v61 = vld [vmem:[#allocation95_spill] sm:$0xff]  ;;  %v5251_v4 = vld [vmem:[#allocation98_spill] sm:$0xff] }
  0xc2   : > { %369 = vmatmul.mubr.f32.gmra.mrb[2].mxu0 %v279_v8  ;;  %2850 = vmatpush3.bf16.msra.mxu1 %v2847_v6  ;;  %v5237_v6 = vld [vmem:[#allocation84_spill] sm:$0xff]  ;;  %v5238_v8 = vld [vmem:[#allocation87_spill] sm:$0xff]  ;;  %v5252_v0 = vld [vmem:[#allocation101_spill] sm:$0xff] }
  0xc3   : > { %2822 = vmatpush1.bf16.msra.mxu0 %v2821_v3  ;;  %374 = vmatprep.mubr.f32.mxu0 %v5226_v56  ;;  %v2829_v3 = vpack.c.bf16 %v5238_v8, %v5237_v6  ;;  %v2863_v6 = vpack.c.bf16 %v5246_v61, %v5245_v1  ;;  %v5248_v8 = vld [vmem:[#allocation100_spill] sm:$0xff]  ;;  %v5255_v61 = vld [vmem:[#allocation102_spill] sm:$0xff] }
  0xc4   : > { %2824 = vmatprep.subr.bf16.mxu0 %v2823_v10  ;;  %2852 = vmatprep.subr.bf16.mxu1 %v2851_v12  ;;  %v5239_v10 = vld [vmem:[#allocation91_spill] sm:$0xff] }
  0xc5   : > { %2430 = vmatprep.mubr.f32.mxu1 %v280_v7  ;;  %v2831_v2 = vpack.c.bf16 %v5240_v57, %v5239_v10  ;;  %v485_v57 = vld [vmem:[%s4252_s27] sm:$0xff] }
  0xc6   : > { %375 = vmatmul.mubr.f32.gmra.mrb[4].mxu0 %v280_v7  ;;  %2854 = vmatpush3.bf16.msra.mxu1 %v2851_v12  ;;  %v5243_v12 = vld [vmem:[#allocation90_spill] sm:$0xff] }
  0xc7   : > { %2826 = vmatpush1.bf16.msra.mxu0 %v2825_v5  ;;  %380 = vmatprep.mubr.f32.mxu0 %v5226_v56  ;;  %v5244_v5 = vld [vmem:[#allocation93_spill] sm:$0xff] }
  0xc8   : > { %2828 = vmatprep.subr.bf16.mxu0 %v2827_v9  ;;  %2856 = vmatprep.subr.bf16.mxu1 %v2855_v11  ;;  %v2833_v7 = vpack.c.bf16 %v5244_v5, %v5243_v12  ;;  %v5247_v9 = vld [vmem:[#allocation97_spill] sm:$0xff]  ;;  %v2867_v12 = vpack.c.bf16 %v5252_v0, %v5251_v4  ;;  %v5254_v5 = vld [vmem:[#allocation106_spill] sm:$0xff]  ;;  %v5261_v4 = vld [vmem:[#allocation108_spill] sm:$0xff] }
  0xc9   : > { %2431 = vmatmul.mubr.f32.gmra.mrb[2].mxu1 %v281_v53  ;;  %v2835_v10 = vpack.c.bf16 %v5248_v8, %v5247_v9  ;;  %v5256_v9 = vld [vmem:[#allocation105_spill] sm:$0xff] }
  0xca   : > { %381 = vmatmul.mubr.f32.gmra.mrb[6].mxu0 %v281_v53  ;;  %2858 = vmatpush3.bf16.msra.mxu1 %v2855_v11  ;;  %v5249_v11 = vld [vmem:[#allocation96_spill] sm:$0xff]  ;;  %v2841_v8 = vpack.c.bf16 %v5256_v9, %v5255_v61  ;;  %v5266_v61 = vld [vmem:[#allocation118_spill] sm:$0xff] }
  0xcb   : > { %2830 = vmatpush1.bf16.msra.mxu0 %v2829_v3  ;;  %569 = vmatprep.mubr.f32.mxu0 %v5226_v56  ;;  %v5250_v3 = vld [vmem:[#allocation99_spill] sm:$0xff] }
  0xcc   : > { %2832 = vmatprep.subr.bf16.mxu0 %v2831_v2  ;;  %2860 = vmatprep.subr.bf16.mxu1 %v2859_v59  ;;  %v2837_v53 = vpack.c.bf16 %v5250_v3, %v5249_v11  ;;  %v5253_v2 = vld [vmem:[#allocation103_spill] sm:$0xff]  ;;  %v5260_v11 = vld [vmem:[#allocation112_spill] sm:$0xff] }
  0xcd   : > { %2465 = vmatprep.mubr.f32.mxu1 %v485_v57  ;;  %v2839_v1 = vpack.c.bf16 %v5254_v5, %v5253_v2  ;;  %v2843_v3 = vpack.c.bf16 %v5260_v11, %v5259_v14  ;;  %v5263_v2 = vld [vmem:[#allocation110_spill] sm:$0xff]  ;;  %v5265_v5 = vld [vmem:[#allocation115_spill] sm:$0xff]  ;;  %v5271_v11 = vld [vmem:[#allocation116_spill] sm:$0xff] }
  0xce   : > { %2862 = vmatpush3.bf16.msra.mxu1 %v2859_v59  ;;  %v5258_v59 = vld [vmem:[#allocation107_spill] sm:$0xff]  ;;  %v4273_v9 = vpack.c.bf16 %v5266_v61, %v5265_v5  ;;  %v5276_v5 = vld [vmem:[#allocation130_spill] sm:$0xff] }
  0xcf   : > { %2834 = vmatpush1.bf16.msra.mxu0 %v2833_v7  ;;  %2864 = vmatprep.subr.bf16.mxu1 %v2863_v6  ;;  %v2871_v7 = vpack.c.bf16 %v5258_v59, %v5257_v13  ;;  %v5267_v13 = vld [vmem:[#allocation114_spill] sm:$0xff] }
  0xd0   : > { %2836 = vmatprep.subr.bf16.mxu0 %v2835_v10  ;;  %v5262_v10 = vld [vmem:[#allocation111_spill] sm:$0xff]  ;;  %v5277_v61 = vld [vmem:[#allocation122_spill] sm:$0xff] }
  0xd1   : > { %v2845_v0 = vpack.c.bf16 %v5262_v10, %v5261_v4  ;;  %v5274_v10 = vld [vmem:[#allocation123_spill] sm:$0xff] }
  0xd2   : > { %2866 = vmatpush3.bf16.msra.mxu1 %v2863_v6  ;;  %v5264_v6 = vld [vmem:[#allocation113_spill] sm:$0xff] }
  0xd3   : > { %2838 = vmatpush1.bf16.msra.mxu0 %v2837_v53  ;;  %2868 = vmatprep.subr.bf16.mxu1 %v2867_v12  ;;  %v2875_v53 = vpack.c.bf16 %v5264_v6, %v5263_v2  ;;  %v486_v2 = vld [vmem:[%s4252_s27 + $0x8] sm:$0xff]  ;;  %v5275_v6 = vld [vmem:[#allocation127_spill] sm:$0xff] }
  0xd4   : > { %2840 = vmatprep.subr.bf16.mxu0 %v2839_v1  ;;  %v5268_v1 = vld [vmem:[#allocation117_spill] sm:$0xff] }
  0xd5   : > { %v4277_v14 = vpack.c.bf16 %v5268_v1, %v5267_v13  ;;  %v5278_v13 = vld [vmem:[#allocation125_spill] sm:$0xff] }
  0xd6   : > { %2870 = vmatpush3.bf16.msra.mxu1 %v2867_v12  ;;  %v5269_v12 = vld [vmem:[#allocation121_spill] sm:$0xff]  ;;  %v4304_v1 = vpack.c.bf16 %v5278_v13, %v5277_v61  ;;  %v5285_v13 = vld [vmem:[#allocation132_spill] sm:$0xff] }
  0xd7   : > { %2842 = vmatpush1.bf16.msra.mxu0 %v2841_v8  ;;  %2872 = vmatprep.subr.bf16.mxu1 %v2871_v7  ;;  %v5270_v8 = vld [vmem:[#allocation124_spill] sm:$0xff] }
  0xd8   : > { %2844 = vmatprep.subr.bf16.mxu0 %v2843_v3  ;;  %v4282_v59 = vpack.c.bf16 %v5270_v8, %v5269_v12  ;;  %v5272_v3 = vld [vmem:[#allocation119_spill] sm:$0xff]  ;;  %v5279_v12 = vld [vmem:[#allocation126_spill] sm:$0xff]  ;;  %v5280_v8 = vld [vmem:[#allocation129_spill] sm:$0xff] }
  0xd9   : > { %v4286_v4 = vpack.c.bf16 %v5272_v3, %v5271_v11  ;;  %v4309_v11 = vpack.c.bf16 %v5280_v8, %v5279_v12  ;;  %v487_v3 = vld [vmem:[%s4252_s27 + $0x10] sm:$0xff]  ;;  %v5286_v12 = vld [vmem:[#allocation135_spill] sm:$0xff] }
  0xda   : > { %2874 = vmatpush3.bf16.msra.mxu1 %v2871_v7  ;;  %v5273_v7 = vld [vmem:[#allocation120_spill] sm:$0xff]  ;;  %v4327_v8 = vpack.c.bf16 %v5286_v12, %v5285_v13  ;;  %v5293_v13 = vld [vmem:[#allocation138_spill] sm:$0xff]  ;;  %v5294_v12 = vld [vmem:[#allocation141_spill] sm:$0xff] }
  0xdb   : > { %2846 = vmatpush1.bf16.msra.mxu0 %v2845_v0  ;;  %2876 = vmatprep.subr.bf16.mxu1 %v2875_v53  ;;  %v4291_v0 = vpack.c.bf16 %v5274_v10, %v5273_v7  ;;  %v5281_v7 = vld [vmem:[#allocation133_spill] sm:$0xff]  ;;  %v5282_v10 = vld [vmem:[#allocation136_spill] sm:$0xff]  ;;  %v4345_v17 = vpack.c.bf16 %v5294_v12, %v5293_v13  ;;  %v5303_v12 = vld [vmem:[#allocation147_spill] sm:$0xff] }
  0xdc   : > { %2880 = vmatprep.subr.bf16.mxu0 %v4273_v9  ;;  %v5302_v13 = vld [vmem:[#allocation144_spill] sm:$0xff] }
  0xdd   : > { %5295 = vst [vmem:[#allocation216_spill] sm:$0xff] %v4345_v17  ;;  %v4364_v19 = vpack.c.bf16 %v5303_v12, %v5302_v13  ;;  %v5314_v12 = vld [vmem:[#allocation157_spill] sm:$0xff] }
  0xde   : > { %570 = vmatmul.mubr.f32.vlgmr.msra.gmra.mrb[8].mxu0 %v485_v57  ;;  %2878 = vmatpush3.bf16.msra.mxu1 %v2875_v53  ;;  %v4298_v57 = vpack.c.bf16 %v5276_v5, %v5275_v6  ;;  %v4939_v53 = vmov 0.0|0.0   ;;  %v5283_v6 = vld [vmem:[#allocation128_spill] sm:$0xff]  ;;  %v5284_v5 = vld [vmem:[#allocation131_spill] sm:$0xff] }
  0xdf   : > { %2882 = vmatpush1.bf16.msra.mxu0 %v4277_v14  ;;  %575 = vmatprep.mubr.f32.mxu0 %v5226_v56  ;;  %v4322_v61 = vpack.c.bf16 %v5284_v5, %v5283_v6  ;;  %v5291_v6 = vld [vmem:[#allocation134_spill] sm:$0xff]  ;;  %v5292_v5 = vld [vmem:[#allocation137_spill] sm:$0xff]  ;;  %5304 = vst [vmem:[#allocation219_spill] sm:$0xff] %v4364_v19 }
  0xe0   : > { %2884 = vmatprep.subr.bf16.mxu0 %v4282_v59  ;;  %2911 = vmatprep.subr.bf16.mxu1 %v4939_v53  ;;  %v4340_v16 = vpack.c.bf16 %v5292_v5, %v5291_v6  ;;  %v5300_v6 = vld [vmem:[#allocation143_spill] sm:$0xff] }
  0xe1   : > { %2466 = vmatmul.mubr.f32.vlgmr.msra.gmra.mrb[4].mxu1 %v486_v2 }
  0xe2   : > { %576 = vmatmul.mubr.f32.gmra.mrb[10].mxu0 %v486_v2  ;;  %2913 = vmatpush3.bf16.msra.mxu1 %v4286_v4  ;;  %v4316_v2 = vpack.c.bf16 %v5282_v10, %v5281_v7  ;;  %v488_v7 = vld [vmem:[%s4252_s27 + $0x18] sm:$0xff] }
  0xe3   : > { %2886 = vmatpush1.bf16.msra.mxu0 %v4291_v0  ;;  %581 = vmatprep.mubr.f32.mxu0 %v5226_v56  ;;  %v5287_v10 = vld [vmem:[#allocation139_spill] sm:$0xff] }
  0xe4   : > { %2888 = vmatprep.subr.bf16.mxu0 %v4298_v57  ;;  %2914 = vmatprep.subr.bf16.mxu1 %v4939_v53  ;;  %v5288_v53 = vld [vmem:[#allocation142_spill] sm:$0xff] }
  0xe5   : > { %2468 = vmatprep.mubr.f32.mxu1 %v487_v3 }
  0xe6   : > { %582 = vmatmul.mubr.f32.gmra.mrb[12].mxu0 %v487_v3  ;;  %2916 = vmatpush3.bf16.msra.mxu1 %v4304_v1  ;;  %v4334_v3 = vpack.c.bf16 %v5288_v53, %v5287_v10  ;;  %v5296_v53 = vld [vmem:[#allocation145_spill] sm:$0xff]  ;;  %v5297_v10 = vld [vmem:[#allocation148_spill] sm:$0xff] }
  0xe7   : > { %2890 = vmatpush1.bf16.msra.mxu0 %v4309_v11  ;;  %587 = vmatprep.mubr.f32.mxu0 %v5226_v56  ;;  %v4351_v18 = vpack.c.bf16 %v5297_v10, %v5296_v53  ;;  %v5305_v53 = vld [vmem:[#allocation151_spill] sm:$0xff]  ;;  %v5306_v10 = vld [vmem:[#allocation154_spill] sm:$0xff] }
  0xe8   : > { %2892 = vmatprep.subr.bf16.mxu0 %v4316_v2  ;;  %5289 = vst [vmem:[#allocation215_spill] sm:$0xff] %v4334_v3  ;;  %2917 = vmatprep.subr.bf16.mxu1 %v5290_v15  ;;  %v4370_v20 = vpack.c.bf16 %v5306_v10, %v5305_v53  ;;  %v4386_v53 = vpack.c.bf16 %v5315_v24, %v5314_v12  ;;  %v5317_v10 = vld [vmem:[#allocation152_spill] sm:$0xff]  ;;  %v5326_v12 = vld [vmem:[#allocation158_spill] sm:$0xff] }
  0xe9   : > { %2469 = vmatmul.mubr.f32.gmra.mrb[6].mxu1 %v488_v7  ;;  %5298 = vst [vmem:[#allocation217_spill] sm:$0xff] %v4351_v18 }
  0xea   : > { %588 = vmatmul.mubr.f32.gmra.mrb[14].mxu0 %v488_v7  ;;  %2919 = vmatpush3.bf16.msra.mxu1 %v4322_v61  ;;  %v5299_v7 = vld [vmem:[#allocation140_spill] sm:$0xff]  ;;  %5307 = vst [vmem:[#allocation220_spill] sm:$0xff] %v4370_v20  ;;  %5316 = vst [vmem:[#allocation223_spill] sm:$0xff] %v4386_v53 }
  0xeb   : > { %2894 = vmatpush1.bf16.msra.mxu0 %v4327_v8  ;;  %769 = vmatprep.mubr.f32.mxu0 %v5226_v56  ;;  %v4359_v5 = vpack.c.bf16 %v5300_v6, %v5299_v7  ;;  %v4375_v7 = vpack.c.bf16 %v5309_v22, %v5308_v21  ;;  %v5311_v6 = vld [vmem:[#allocation150_spill] sm:$0xff]  ;;  %v4391_v21 = vpack.c.bf16 %v5318_v25, %v5317_v10  ;;  %v5320_v22 = vld [vmem:[#allocation156_spill] sm:$0xff] }
  0xec   : > { %2896 = vmatprep.subr.bf16.mxu0 %v4334_v3  ;;  %2920 = vmatprep.subr.bf16.mxu1 %v5290_v15  ;;  %v4380_v13 = vpack.c.bf16 %v5312_v23, %v5311_v6  ;;  %v4396_v23 = vpack.c.bf16 %v5321_v26, %v5320_v22  ;;  %v5323_v6 = vld [vmem:[#allocation163_spill] sm:$0xff]  ;;  %v4407_v25 = vpack.c.bf16 %v5327_v28, %v5326_v12  ;;  %v5329_v10 = vld [vmem:[#allocation162_spill] sm:$0xff]  ;;  %v5331_v22 = vld [vmem:[#allocation169_spill] sm:$0xff] }
  0xed   : > { %2503 = vmatprep.mubr.msk.f32.mxu1 %vm3649_vm0, %v5226_v56  ;;  %5301 = vst [vmem:[#allocation218_spill] sm:$0xff] %v4359_v5  ;;  %5310 = vst [vmem:[#allocation221_spill] sm:$0xff] %v4375_v7  ;;  %v4402_v24 = vpack.c.bf16 %v5324_v27, %v5323_v6  ;;  %v4412_v26 = vpack.c.bf16 %v5330_v29, %v5329_v10  ;;  %v4418_v27 = vpack.c.bf16 %v5332_v30, %v5331_v22  ;;  %v5333_v28 = vld [vmem:[#allocation164_spill] sm:$0xff]  ;;  %v5334_v6 = vld [vmem:[#allocation167_spill] sm:$0xff] }
  0xee   : > { %2922 = vmatpush3.bf16.msra.mxu1 %v4340_v16  ;;  %5313 = vst [vmem:[#allocation222_spill] sm:$0xff] %v4380_v13  ;;  %5319 = vst [vmem:[#allocation224_spill] sm:$0xff] %v4391_v21  ;;  %v4424_v12 = vpack.c.bf16 %v5334_v6, %v5333_v28  ;;  %v5335_v29 = vld [vmem:[#allocation168_spill] sm:$0xff]  ;;  %v5336_v10 = vld [vmem:[#allocation171_spill] sm:$0xff] }
  0xef   : > { %2898 = vmatpush1.bf16.msra.mxu0 %v4345_v17  ;;  %2923 = vmatprep.subr.bf16.mxu1 %v5290_v15  ;;  %5322 = vst [vmem:[#allocation225_spill] sm:$0xff] %v4396_v23  ;;  %5325 = vst [vmem:[#allocation226_spill] sm:$0xff] %v4402_v24  ;;  %v4429_v31 = vpack.c.bf16 %v5336_v10, %v5335_v29  ;;  %v5337_v30 = vld [vmem:[#allocation175_spill] sm:$0xff]  ;;  %v5338_v22 = vld [vmem:[#allocation178_spill] sm:$0xff] }
  0xf0   : > { %2900 = vmatprep.subr.bf16.mxu0 %v4351_v18  ;;  %5328 = vst [vmem:[#allocation227_spill] sm:$0xff] %v4407_v25  ;;  %v4435_v32 = vpack.c.bf16 %v5338_v22, %v5337_v30  ;;  %v5339_v28 = vld [vmem:[#allocation170_spill] sm:$0xff]  ;;  %v5340_v6 = vld [vmem:[#allocation173_spill] sm:$0xff]  ;;  %v5344_v22 = vld [vmem:[#allocation184_spill] sm:$0xff] }
  0xf1   : > { %v4442_v33 = vpack.c.bf16 %v5340_v6, %v5339_v28  ;;  %v5341_v29 = vld [vmem:[#allocation174_spill] sm:$0xff]  ;;  %v5342_v10 = vld [vmem:[#allocation177_spill] sm:$0xff]  ;;  %v5345_v28 = vld [vmem:[#allocation176_spill] sm:$0xff] }
  0xf2   : > { %2925 = vmatpush3.bf16.msra.mxu1 %v4359_v5  ;;  %v4449_v34 = vpack.c.bf16 %v5342_v10, %v5341_v29  ;;  %v5343_v30 = vld [vmem:[#allocation181_spill] sm:$0xff]  ;;  %v5346_v6 = vld [vmem:[#allocation179_spill] sm:$0xff]  ;;  %v4465_v29 = vpack.c.bf16 %v5348_v38, %v5347_v37 }
  0xf3   : > { %2902 = vmatpush1.bf16.msra.mxu0 %v4364_v19  ;;  %2926 = vmatprep.subr.bf16.mxu1 %v5290_v15  ;;  %v4455_v35 = vpack.c.bf16 %v5344_v22, %v5343_v30  ;;  %v4460_v36 = vpack.c.bf16 %v5346_v6, %v5345_v28  ;;  %v5349_v10 = vld [vmem:[#allocation187_spill] sm:$0xff]  ;;  %v5351_v22 = vld [vmem:[#allocation182_spill] sm:$0xff]  ;;  %v5355_v38 = vld [vmem:[#allocation193_spill] sm:$0xff] }
  0xf4   : > { %2904 = vmatprep.subr.bf16.mxu0 %v4370_v20  ;;  %v4471_v30 = vpack.c.bf16 %v5350_v39, %v5349_v10  ;;  %v4476_v28 = vpack.c.bf16 %v5352_v40, %v5351_v22  ;;  %v5353_v6 = vld [vmem:[#allocation186_spill] sm:$0xff]  ;;  %v4487_v39 = vpack.c.bf16 %v5356_v42, %v5355_v38  ;;  %v5357_v10 = vld [vmem:[#allocation188_spill] sm:$0xff]  ;;  %v4503_v42 = vpack.c.bf16 %v5362_v63, %v5361_v60  ;;  %v5364_v38 = vld [vmem:[#allocation197_spill] sm:$0xff] }
  0xf5   : > { %v4481_v37 = vpack.c.bf16 %v5354_v41, %v5353_v6  ;;  %v4492_v40 = vpack.c.bf16 %v5358_v43, %v5357_v10  ;;  %v5359_v22 = vld [vmem:[#allocation192_spill] sm:$0xff]  ;;  %v5363_v6 = vld [vmem:[#allocation194_spill] sm:$0xff] }
  0xf6   : > { %2928 = vmatpush3.bf16.msra.mxu1 %v4375_v7  ;;  %v4497_v41 = vpack.c.bf16 %v5360_v44, %v5359_v22  ;;  %v4508_v43 = vpack.c.bf16 %v5364_v38, %v5363_v6  ;;  %v5365_v10 = vld [vmem:[#allocation198_spill] sm:$0xff]  ;;  %v4519_v22 = vpack.c.bf16 %v5368_v58, %v5367_v50  ;;  %v4524_v6 = vpack.c.bf16 %v5370_v46, %v5369_v45  ;;  %v5371_v38 = vld [vmem:[#allocation204_spill] sm:$0xff] }
  0xf7   : > { %2906 = vmatpush1.bf16.msra.mxu0 %v4380_v13  ;;  %2929 = vmatprep.subr.bf16.mxu1 %v5290_v15  ;;  %v4513_v44 = vpack.c.bf16 %v5366_v62, %v5365_v10  ;;  %v4529_v10 = vpack.c.bf16 %v5372_v47, %v5371_v38  ;;  %v4536_v50 = vpack.c.bf16 %v5374_v49, %v5373_v48  ;;  %v5375_v45 = vld [vmem:[#allocation214_spill] sm:$0xff]  ;;  %v283_v46 = vlaneseq }
  0xf8   : > { %2908 = vmatprep.subr.bf16.mxu0 %v4386_v53  ;;  %v5376_v49 = vld [vmem:[#allocation210_spill] sm:$0xff] }
  0xf9   : > { %v284_v47 = vshrl.u32 %v283_v46, 7 }
  0xfa   : > { %2931 = vmatpush3.bf16.msra.mxu1 %v4391_v21 }
  0xfb   : > { %2910 = vmatpush1.bf16.msra.mxu0 %v4396_v23  ;;  %2932 = vmatprep.subr.bf16.mxu1 %v5290_v15  ;;  %v293_v48 = vsub.s32 2, %v284_v47 }
  0xfc   : > { %2936 = vmatprep.subr.bf16.mxu0 %v4402_v24 }
  0xfd   : > { %v294_v38 = vrot.slane %v5376_v49, %v293_v48 }
  0xfe   : > { %770 = vmatmul.mubr.f32.vlgmr.msra.gmra.mrb[0].mxu0 %v3634_v54  ;;  %2934 = vmatpush3.bf16.msra.mxu1 %v4407_v25 }
  0xff   : > { %2938 = vmatpush1.bf16.msra.mxu0 %v4412_v26  ;;  %2967 = vmatprep.subr.bf16.mxu1 %v5290_v15 }
 0x100   : > { %2940 = vmatprep.subr.bf16.mxu0 %v4418_v27  ;;  %910 = vmatprep.mubr.f32.mxu0 %v5226_v56 }
 0x101   : > { %2504 = vmatmul.mubr.f32.vlgmr.msra.gmra.mrb[8].mxu1 %v3634_v54 }
 0x102   : > { %2969 = vmatpush3.bf16.msra.mxu1 %v4424_v12  ;;  %2538 = vmatprep.mubr.msk.f32.mxu1 %vm3649_vm0, %v5226_v56 }
 0x103   : > { %2942 = vmatpush1.bf16.msra.mxu0 %v4429_v31  ;;  %2970 = vmatprep.subr.bf16.mxu1 %v5290_v15 }
 0x104   : > { %2944 = vmatprep.subr.bf16.mxu0 %v4435_v32 }
 0x106   : > { %2972 = vmatpush3.bf16.msra.mxu1 %v4442_v33 }
 0x107   : > { %2946 = vmatpush1.bf16.msra.mxu0 %v4449_v34  ;;  %2973 = vmatprep.subr.bf16.mxu1 %v5290_v15 }
 0x108   : > { %2948 = vmatprep.subr.bf16.mxu0 %v4455_v35 }
 0x10a   : > { %2975 = vmatpush3.bf16.msra.mxu1 %v4460_v36 }
 0x10b   : > { %2950 = vmatpush1.bf16.msra.mxu0 %v4465_v29  ;;  %2976 = vmatprep.subr.bf16.mxu1 %v5290_v15 }
 0x10c   : > { %2952 = vmatprep.subr.bf16.mxu0 %v4471_v30 }
 0x10e   : > { %2978 = vmatpush3.bf16.msra.mxu1 %v4476_v28 }
 0x10f   : > { %2954 = vmatpush1.bf16.msra.mxu0 %v4481_v37  ;;  %2979 = vmatprep.subr.bf16.mxu1 %v5290_v15 }
 0x110   : > { %2956 = vmatprep.subr.bf16.mxu0 %v4487_v39 }
 0x112   : > { %2981 = vmatpush3.bf16.msra.mxu1 %v4492_v40 }
 0x113   : > { %2958 = vmatpush1.bf16.msra.mxu0 %v4497_v41  ;;  %2982 = vmatprep.subr.bf16.mxu1 %v5290_v15 }
 0x114   : > { %2960 = vmatprep.subr.bf16.mxu0 %v4503_v42 }
 0x116   : > { %2984 = vmatpush3.bf16.msra.mxu1 %v4508_v43 }
 0x117   : > { %2962 = vmatpush1.bf16.msra.mxu0 %v4513_v44  ;;  %2985 = vmatprep.subr.bf16.mxu1 %v5290_v15 }
 0x118   : > { %2964 = vmatprep.subr.bf16.mxu0 %v4519_v22 }
 0x11a   : > { %2987 = vmatpush3.bf16.msra.mxu1 %v4524_v6 }
 0x11b   : > { %2966 = vmatpush1.bf16.msra.mxu0 %v4529_v10  ;;  %2988 = vmatprep.subr.bf16.mxu1 %v5290_v15 }
 0x11c   : > { %2992 = vmatprep.subr.bf16.mxu0 %v4273_v9 }
 0x11e   : > { %911 = vmatmul.mubr.f32.vlgmr.msra.gmra.mrb[14].mxu0 %v5375_v45  ;;  %2990 = vmatpush3.bf16.msra.mxu1 %v4536_v50 }
 0x11f   : > { %3023 = vmatprep.subr.bf16.mxu1 %v5290_v15  ;;  %2994 = vmatpush1.bf16.msra.mxu0 %v4277_v14 }
 0x120   : > { %2996 = vmatprep.subr.bf16.mxu0 %v4282_v59  ;;  %1127 = vmatprep.mubr.f32.mxu0 %v5226_v56 }
 0x121   : > { %2539 = vmatmul.mubr.f32.vlgmr.msra.gmra.mrb[10].mxu1 %v5375_v45 }
 0x122   : > { %3025 = vmatpush3.bf16.msra.mxu1 %v4286_v4  ;;  %2573 = vmatprep.mubr.msk.f32.mxu1 %vm3649_vm0, %v5226_v56 }
 0x123   : > { %3026 = vmatprep.subr.bf16.mxu1 %v5290_v15  ;;  %2998 = vmatpush1.bf16.msra.mxu0 %v4291_v0 }
 0x124   : > { %3000 = vmatprep.subr.bf16.mxu0 %v4298_v57 }
 0x126   : > { %3028 = vmatpush3.bf16.msra.mxu1 %v4304_v1 }
 0x127   : > { %3029 = vmatprep.subr.bf16.mxu1 %v5290_v15  ;;  %3002 = vmatpush1.bf16.msra.mxu0 %v4309_v11 }
 0x128   : > { %3004 = vmatprep.subr.bf16.mxu0 %v4316_v2 }
 0x12a   : > { %3031 = vmatpush3.bf16.msra.mxu1 %v4322_v61 }
 0x12b   : > { %3032 = vmatprep.subr.bf16.mxu1 %v5290_v15  ;;  %3006 = vmatpush1.bf16.msra.mxu0 %v4327_v8 }
 0x12c   : > { %3008 = vmatprep.subr.bf16.mxu0 %v4334_v3 }
 0x12e   : > { %3034 = vmatpush3.bf16.msra.mxu1 %v4340_v16 }
 0x12f   : > { %3035 = vmatprep.subr.bf16.mxu1 %v5290_v15  ;;  %3010 = vmatpush1.bf16.msra.mxu0 %v4345_v17 }
 0x130   : > { %3012 = vmatprep.subr.bf16.mxu0 %v4351_v18 }
 0x132   : > { %3037 = vmatpush3.bf16.msra.mxu1 %v4359_v5  ;;  %v5385_v5 = vld [vmem:[#allocation212_spill] sm:$0xff] }
 0x133   : > { %3038 = vmatprep.subr.bf16.mxu1 %v5290_v15  ;;  %3014 = vmatpush1.bf16.msra.mxu0 %v4364_v19 }
 0x134   : > { %3016 = vmatprep.subr.bf16.mxu0 %v4370_v20 }
 0x136   : > { %3040 = vmatpush3.bf16.msra.mxu1 %v4375_v7 }
 0x137   : > { %3041 = vmatprep.subr.bf16.mxu1 %v5290_v15  ;;  %3018 = vmatpush1.bf16.msra.mxu0 %v4380_v13 }
 0x138   : > { %3020 = vmatprep.subr.bf16.mxu0 %v4386_v53 }
 0x13a   : > { %3043 = vmatpush3.bf16.msra.mxu1 %v4391_v21 }
 0x13b   : > { %3044 = vmatprep.subr.bf16.mxu1 %v5290_v15  ;;  %3022 = vmatpush1.bf16.msra.mxu0 %v4396_v23 }
 0x13c   : > { %3048 = vmatprep.subr.bf16.mxu0 %v4402_v24  ;;  %v5380_v24 = vld [vmem:[#allocation211_spill] sm:$0xff] }
 0x13d   : > { %v4588_v23 = vrot.slane %v5380_v24, %v293_v48 }
 0x13e   : > { %3046 = vmatpush3.bf16.msra.mxu1 %v4407_v25 }
 0x13f   : > { %3079 = vmatprep.subr.bf16.mxu1 %v5290_v15 }
 0x194   : > { %v2429_v51 = vpop.f32.mrb[0].mxu1 }
 0x195   : > { %v4581_v52 = vadd.f32 %v2429_v51, %v294_v38  ;;  %v453_v55 = vpop.f32.mrb[1].mxu1 }
 0x196   : > { %v454_v3 = vadd.f32 %v453_v55, %v294_v38 }
 0x197   : > { %5377 = vst [vmem:[#allocation214_spill] sm:$0xff] %v4581_v52 }
 0x19c   : > { %v2432_v58 = vpop.f32.mrb[2].mxu1 }
 0x19d   : > { %v4583_v60 = vadd.f32 %v2432_v58, %v294_v38  ;;  %v463_v62 = vpop.f32.mrb[3].mxu1 }
 0x19e   : > { %v4585_v63 = vadd.f32 %v463_v62, %v294_v38  ;;  %v289_v62 = vsub.s32 1, %v284_v47 }
 0x19f   : > { %5378 = vst [vmem:[#allocation228_spill] sm:$0xff] %v4583_v60  ;;  %v285_v60 = vsub.s32 0, %v284_v47 }
 0x1a0   : > { %5379 = vst [vmem:[#allocation229_spill] sm:$0xff] %v4585_v63  ;;  %v4605_v13 = vrot.slane %v5376_v49, %v289_v62 }
 0x1a1   : > { %v4602_v63 = vrot.slane %v5376_v49, %v285_v60 }
 0x1a3   : > { %5384 = vst [vmem:[#allocation233_spill] sm:$0xff] %v4602_v63 }
 0x1b4   : > { %v2467_v25 = vpop.f32.mrb[4].mxu1 }
 0x1b5   : > { %v4591_v53 = vadd.f32 %v2467_v25, %v4588_v23  ;;  %v660_v46 = vpop.f32.mrb[5].mxu1 }
 0x1b6   : > { %v4594_v21 = vadd.f32 %v660_v46, %v4588_v23 }
 0x1b7   : > { %5381 = vst [vmem:[#allocation230_spill] sm:$0xff] %v4591_v53 }
 0x1b8   : > { %5382 = vst [vmem:[#allocation231_spill] sm:$0xff] %v4594_v21 }
 0x1bc   : > { %v4596_v51 = vpop.f32.mrb[6].mxu1 }
 0x1bd   : > { %v670_v52 = vpop.f32.mrb[7].mxu1 }
 0x1be   : > { %v4599_v58 = vadd.f32 %v670_v52, %v4588_v23 }
 0x1c0   : > { %5383 = vst [vmem:[#allocation232_spill] sm:$0xff] %v4599_v58 }
 0x1d1   : > { %v771_v48 = vpop.f32.mrb[0].mxu0 }
 0x1d2   : > { %v3327_v25 = vadd.f32 %v771_v48, %v4602_v63  ;;  %v773_v53 = vpop.f32.mrb[1].mxu0 }
 0x1d3   : > { %v3328_v20 = vadd.f32 %v773_v53, %v4605_v13 }
 0x1d4   : > { %v2183_v46 = vmul.f32 -1.442695, %v3327_v25  ;;  %v842_v21 = vpop.f32.mrb[8].mxu1  ;;  %v4611_v25 = vrot.slane %v5380_v24, %v285_v60 }
 0x1d5   : > { %v2505_v7 = vpop.f32.mrb[9].mxu1  ;;  %v2184_v52 = vmul.f32 -1.442695, %v3328_v20  ;;  %v1007_v17 = vadd.f32 %v5385_v5, %v842_v21 }
 0x1d6   : > { %3396 = vpow2.f32 %v2183_v46  ;;  %v4614_v7 = vrot.slane %v5380_v24, %v289_v62 }
 0x1d7   : > { %3398 = vpow2.f32 %v2184_v52 }
 0x1e0   : > { %v3397_v58 = vpop.eup %3396 }
 0x1e1   : > { %v991_v47 = vadd.f32 1.0, %v3397_v58  ;;  %v3399_v19 = vpop.eup %3398 }
 0x1e2   : > { %v998_v18 = vadd.f32 1.0, %v3399_v19 }
 0x1e3   : > { %3400 = vrcp.f32 %v991_v47 }
 0x1e4   : > { %3402 = vrcp.f32 %v998_v18 }
 0x1ed   : > { %v3401_v49 = vpop.eup %3400 }
 0x1ee   : > { %v1008_v48 = vmul.f32 %v3401_v49, %v1007_v17  ;;  %v3403_v17 = vpop.eup %3402 }
 0x1ef   : > { %v1011_v60 = vsub.f32 1.0, %v3403_v17  ;;  %v1013_v38 = vmul.f32 %v3634_v54, %v3403_v17 }
 0x1f0   : > { %v1009_v63 = vadd.f32 %v1008_v48, %v454_v3  ;;  %v5386_v48 = vld [vmem:[#allocation213_spill] sm:$0xff] }
 0x1f1   : > { %v912_v53 = vpop.f32.mrb[14].mxu0 }
 0x1f2   : > { %3404 = vtanh.f32 %v1009_v63  ;;  %v3341_v20 = vadd.f32 %v912_v53, %v4611_v25  ;;  %v914_v58 = vpop.f32.mrb[15].mxu0 }
 0x1f3   : > { %v3342_v21 = vadd.f32 %v914_v58, %v4614_v7  ;;  %v676_v58 = vadd.f32 %v4596_v51, %v4588_v23 }
 0x1f4   : > { %v2186_v19 = vmul.f32 -1.442695, %v3341_v20  ;;  %v983_v46 = vpop.f32.mrb[10].mxu1 }
 0x1f5   : > { %v2540_v55 = vpop.f32.mrb[11].mxu1  ;;  %v2187_v18 = vmul.f32 -1.442695, %v3342_v21  ;;  %v1035_v53 = vadd.f32 %v5386_v48, %v983_v46 }
 0x1f6   : > { %3406 = vpow2.f32 %v2186_v19 }
 0x1f7   : > { %3408 = vpow2.f32 %v2187_v18 }
 0x1fc   : > { %v3405_v49 = vpop.eup %3404 }
 0x1fd   : > { %v1012_v3 = vmul.f32 %v3405_v49, %v1011_v60  ;;  %v5388_v60 = vld [vmem:[#allocation216_spill] sm:$0xff]  ;;  %v5389_v49 = vld [vmem:[#allocation218_spill] sm:$0xff] }
 0x1ff   : > { %v4619_v62 = vadd.f32 %v1013_v38, %v1012_v3  ;;  %v5390_v3 = vld [vmem:[#allocation217_spill] sm:$0xff]  ;;  %v5391_v38 = vld [vmem:[#allocation219_spill] sm:$0xff] }
 0x200   : > { %v3407_v63 = vpop.eup %3406 }
 0x201   : > { %v1019_v52 = vadd.f32 1.0, %v3407_v63  ;;  %1045 = vst [vmem:[%s4623_s28] sm:$0xff] %v4619_v62  ;;  %1128 = vmatmul.mubr.f32.vlgmr.msra.gmra.mrb[2].mxu0 %v4619_v62  ;;  %2574 = vmatmul.mubr.f32.vlgmr.msra.gmra.mrb[12].mxu1 %v4619_v62  ;;  %v3409_v54 = vpop.eup %3408  ;;  %v5392_v63 = vld [vmem:[#allocation221_spill] sm:$0xff] }
 0x202   : > { %3050 = vmatpush1.bf16.msra.mxu0 %v4412_v26  ;;  %3081 = vmatpush3.bf16.msra.mxu1 %v4424_v12  ;;  %v1026_v47 = vadd.f32 1.0, %v3409_v54  ;;  %v5394_v54 = vld [vmem:[#allocation222_spill] sm:$0xff] }
 0x203   : > { %3410 = vrcp.f32 %v1019_v52  ;;  %3052 = vmatprep.subr.bf16.mxu0 %v4418_v27  ;;  %3082 = vmatprep.subr.bf16.mxu1 %v5290_v15  ;;  %v5393_v52 = vld [vmem:[#allocation220_spill] sm:$0xff] }
 0x204   : > { %1268 = vmatprep.mubr.f32.mxu0 %v5226_v56  ;;  %2608 = vmatprep.mubr.msk.f32.mxu1 %vm3649_vm0, %v5226_v56  ;;  %3412 = vrcp.f32 %v1026_v47  ;;  %v5395_v47 = vld [vmem:[#allocation224_spill] sm:$0xff] }
 0x206   : > { %3054 = vmatpush1.bf16.msra.mxu0 %v4429_v31  ;;  %3084 = vmatpush3.bf16.msra.mxu1 %v4442_v33 }
 0x207   : > { %3056 = vmatprep.subr.bf16.mxu0 %v4435_v32  ;;  %3085 = vmatprep.subr.bf16.mxu1 %v5290_v15 }
 0x20a   : > { %3058 = vmatpush1.bf16.msra.mxu0 %v4449_v34  ;;  %3087 = vmatpush3.bf16.msra.mxu1 %v4460_v36 }
 0x20b   : > { %3060 = vmatprep.subr.bf16.mxu0 %v4455_v35  ;;  %3088 = vmatprep.subr.bf16.mxu1 %v5290_v15 }
 0x20d   : > { %v3411_v20 = vpop.eup %3410 }
 0x20e   : > { %v1036_v19 = vmul.f32 %v3411_v20, %v1035_v53  ;;  %3062 = vmatpush1.bf16.msra.mxu0 %v4465_v29  ;;  %3090 = vmatpush3.bf16.msra.mxu1 %v4476_v28  ;;  %v3413_v23 = vpop.eup %3412  ;;  %v5396_v53 = vld [vmem:[#allocation223_spill] sm:$0xff]  ;;  %v5397_v20 = vld [vmem:[#allocation225_spill] sm:$0xff] }
 0x20f   : > { %3064 = vmatprep.subr.bf16.mxu0 %v4471_v30  ;;  %3091 = vmatprep.subr.bf16.mxu1 %v5290_v15  ;;  %v1039_v51 = vsub.f32 1.0, %v3413_v23  ;;  %v1041_v17 = vmul.f32 %v5375_v45, %v3413_v23  ;;  %v5387_v45 = vld [vmem:[#allocation215_spill] sm:$0xff] }
 0x210   : > { %v1037_v46 = vadd.f32 %v1036_v19, %v676_v58  ;;  %v5398_v58 = vld [vmem:[#allocation227_spill] sm:$0xff]  ;;  %v5399_v19 = vld [vmem:[#allocation226_spill] sm:$0xff] }
 0x212   : > { %3414 = vtanh.f32 %v1037_v46  ;;  %3066 = vmatpush1.bf16.msra.mxu0 %v4481_v37  ;;  %3093 = vmatpush3.bf16.msra.mxu1 %v4492_v40 }
 0x213   : > { %3068 = vmatprep.subr.bf16.mxu0 %v4487_v39  ;;  %3094 = vmatprep.subr.bf16.mxu1 %v5290_v15 }
 0x216   : > { %3070 = vmatpush1.bf16.msra.mxu0 %v4497_v41  ;;  %3096 = vmatpush3.bf16.msra.mxu1 %v4508_v43 }
 0x217   : > { %3072 = vmatprep.subr.bf16.mxu0 %v4503_v42  ;;  %3097 = vmatprep.subr.bf16.mxu1 %v5290_v15 }
 0x21a   : > { %3074 = vmatpush1.bf16.msra.mxu0 %v4513_v44  ;;  %3099 = vmatpush3.bf16.msra.mxu1 %v4524_v6 }
 0x21b   : > { %3076 = vmatprep.subr.bf16.mxu0 %v4519_v22  ;;  %3100 = vmatprep.subr.bf16.mxu1 %v5290_v15 }
 0x21c   : > { %v3415_v21 = vpop.eup %3414 }
 0x21d   : > { %v1040_v55 = vmul.f32 %v3415_v21, %v1039_v51  ;;  %v5400_v51 = vld [vmem:[#allocation233_spill] sm:$0xff] }
 0x21e   : > { %3078 = vmatpush1.bf16.msra.mxu0 %v4529_v10  ;;  %3102 = vmatpush3.bf16.msra.mxu1 %v4536_v50 }
 0x21f   : > { %v4670_v18 = vadd.f32 %v1041_v17, %v1040_v55  ;;  %3104 = vmatprep.subr.bf16.mxu0 %v4273_v9  ;;  %3135 = vmatprep.subr.bf16.mxu1 %v5290_v15 }
 0x221   : > { %1048 = vst [vmem:[%s1047_s9] sm:$0xff] %v4670_v18  ;;  %1269 = vmatmul.mubr.f32.vlgmr.msra.gmra.mrb[12].mxu0 %v4670_v18  ;;  %2609 = vmatmul.mubr.f32.vlgmr.msra.gmra.mrb[14].mxu1 %v4670_v18 }
 0x222   : > { %3106 = vmatpush1.bf16.msra.mxu0 %v4277_v14  ;;  %3137 = vmatpush3.bf16.msra.mxu1 %v4286_v4 }
 0x223   : > { %3108 = vmatprep.subr.bf16.mxu0 %v4282_v59  ;;  %3138 = vmatprep.subr.bf16.mxu1 %v5290_v15 }
 0x224   : > { %1471 = vmatprep.mubr.f32.mxu0 %v5226_v56  ;;  %2643 = vmatprep.mubr.msk.f32.mxu1 %vm3649_vm0, %v5226_v56 }
 0x226   : > { %3110 = vmatpush1.bf16.msra.mxu0 %v4291_v0  ;;  %3140 = vmatpush3.bf16.msra.mxu1 %v4304_v1 }
 0x227   : > { %3112 = vmatprep.subr.bf16.mxu0 %v4298_v57  ;;  %3141 = vmatprep.subr.bf16.mxu1 %v5290_v15 }
 0x22a   : > { %3114 = vmatpush1.bf16.msra.mxu0 %v4309_v11  ;;  %3143 = vmatpush3.bf16.msra.mxu1 %v4322_v61 }
 0x22b   : > { %3116 = vmatprep.subr.bf16.mxu0 %v4316_v2  ;;  %3144 = vmatprep.subr.bf16.mxu1 %v5290_v15 }
 0x22e   : > { %3118 = vmatpush1.bf16.msra.mxu0 %v4327_v8  ;;  %3146 = vmatpush3.bf16.msra.mxu1 %v4340_v16 }
 0x22f   : > { %3120 = vmatprep.subr.bf16.mxu0 %v5387_v45  ;;  %3147 = vmatprep.subr.bf16.mxu1 %v5290_v15 }
 0x232   : > { %3122 = vmatpush1.bf16.msra.mxu0 %v5388_v60  ;;  %3149 = vmatpush3.bf16.msra.mxu1 %v5389_v49 }
 0x233   : > { %3124 = vmatprep.subr.bf16.mxu0 %v5390_v3  ;;  %3150 = vmatprep.subr.bf16.mxu1 %v5290_v15  ;;  %v5401_v3 = vld [vmem:[#allocation214_spill] sm:$0xff] }
 0x236   : > { %3126 = vmatpush1.bf16.msra.mxu0 %v5391_v38  ;;  %3152 = vmatpush3.bf16.msra.mxu1 %v5392_v63 }
 0x237   : > { %3128 = vmatprep.subr.bf16.mxu0 %v5393_v52  ;;  %3153 = vmatprep.subr.bf16.mxu1 %v5290_v15 }
 0x23a   : > { %3130 = vmatpush1.bf16.msra.mxu0 %v5394_v54  ;;  %3155 = vmatpush3.bf16.msra.mxu1 %v5395_v47 }
 0x23b   : > { %3132 = vmatprep.subr.bf16.mxu0 %v5396_v53  ;;  %3156 = vmatprep.subr.bf16.mxu1 %v5290_v15 }
 0x23e   : > { %3134 = vmatpush1.bf16.msra.mxu0 %v5397_v20  ;;  %3158 = vmatpush3.bf16.msra.mxu1 %v5398_v58 }
 0x23f   : > { %3160 = vmatprep.subr.bf16.mxu0 %v5399_v19  ;;  %3191 = vmatprep.subr.bf16.mxu1 %v5290_v15 }
 0x2d4   : > { %v1129_v46 = vpop.f32.mrb[2].mxu0  ;;  %v1200_v23 = vpop.f32.mrb[12].mxu1 }
 0x2d5   : > { %v3329_v21 = vadd.f32 %v1129_v46, %v5400_v51  ;;  %v1131_v55 = vpop.f32.mrb[3].mxu0  ;;  %v2575_v17 = vpop.f32.mrb[13].mxu1  ;;  %v1359_v19 = vadd.f32 %v5385_v5, %v1200_v23 }
 0x2d6   : > { %v3330_v47 = vadd.f32 %v1131_v55, %v4605_v13 }
 0x2d7   : > { %v2191_v24 = vmul.f32 -1.442695, %v3329_v21 }
 0x2d8   : > { %v2192_v53 = vmul.f32 -1.442695, %v3330_v47 }
 0x2d9   : > { %3416 = vpow2.f32 %v2191_v24 }
 0x2da   : > { %3418 = vpow2.f32 %v2192_v53 }
 0x2e3   : > { %v3417_v54 = vpop.eup %3416 }
 0x2e4   : > { %v1349_v20 = vadd.f32 1.0, %v3417_v54  ;;  %v3419_v58 = vpop.eup %3418 }
 0x2e5   : > { %v1356_v52 = vadd.f32 1.0, %v3419_v58 }
 0x2e6   : > { %3420 = vrcp.f32 %v1349_v20 }
 0x2e7   : > { %3422 = vrcp.f32 %v1356_v52 }
 0x2f0   : > { %v3421_v63 = vpop.eup %3420 }
 0x2f1   : > { %v1360_v38 = vmul.f32 %v3421_v63, %v1359_v19  ;;  %v3423_v20 = vpop.eup %3422 }
 0x2f2   : > { %v1363_v23 = vsub.f32 1.0, %v3423_v20 }
 0x2f3   : > { %v1361_v46 = vadd.f32 %v1360_v38, %v5401_v3  ;;  %v1365_v3 = vmul.f32 %v3423_v20, %v4619_v62 }
 0x2f4   : > { %v1270_v51 = vpop.f32.mrb[12].mxu0  ;;  %v1341_v17 = vpop.f32.mrb[14].mxu1 }
 0x2f5   : > { %3424 = vtanh.f32 %v1361_v46  ;;  %v3339_v21 = vadd.f32 %v1270_v51, %v4611_v25  ;;  %v1272_v24 = vpop.f32.mrb[13].mxu0  ;;  %v2610_v47 = vpop.f32.mrb[15].mxu1  ;;  %v1381_v46 = vadd.f32 %v5386_v48, %v1341_v17 }
 0x2f6   : > { %v3340_v54 = vadd.f32 %v1272_v24, %v4614_v7  ;;  %v5402_v47 = vld [vmem:[#allocation232_spill] sm:$0xff] }
 0x2f7   : > { %v2193_v53 = vmul.f32 -1.442695, %v3339_v21 }
 0x2f8   : > { %v2194_v58 = vmul.f32 -1.442695, %v3340_v54 }
 0x2f9   : > { %3426 = vpow2.f32 %v2193_v53 }
 0x2fa   : > { %3428 = vpow2.f32 %v2194_v58 }
 0x2ff   : > { %v3425_v55 = vpop.eup %3424 }
 0x300   : > { %v1364_v63 = vmul.f32 %v3425_v55, %v1363_v23 }
 0x302   : > { %v4719_v38 = vadd.f32 %v1365_v3, %v1364_v63 }
 0x303   : > { %v3427_v52 = vpop.eup %3426 }
 0x304   : > { %v1371_v19 = vadd.f32 1.0, %v3427_v52  ;;  %2197 = vst [vmem:[%s4623_s28 + $0x8] sm:$0xff] %v4719_v38  ;;  %1472 = vmatmul.mubr.f32.vlgmr.msra.gmra.mrb[4].mxu0 %v4719_v38  ;;  %2644 = vmatmul.mubr.f32.vlgmr.msra.gmra.mrb[16].mxu1 %v4719_v38  ;;  %v3429_v62 = vpop.eup %3428 }
 0x305   : > { %3162 = vmatpush1.bf16.msra.mxu0 %v4412_v26  ;;  %3193 = vmatpush3.bf16.msra.mxu1 %v4424_v12  ;;  %v1378_v51 = vadd.f32 1.0, %v3429_v62 }
 0x306   : > { %3430 = vrcp.f32 %v1371_v19  ;;  %3164 = vmatprep.subr.bf16.mxu0 %v4418_v27  ;;  %3194 = vmatprep.subr.bf16.mxu1 %v5290_v15 }
 0x307   : > { %1612 = vmatprep.mubr.f32.mxu0 %v5226_v56  ;;  %2678 = vmatprep.mubr.msk.f32.mxu1 %vm3649_vm0, %v5226_v56  ;;  %3432 = vrcp.f32 %v1378_v51 }
 0x309   : > { %3166 = vmatpush1.bf16.msra.mxu0 %v4429_v31  ;;  %3196 = vmatpush3.bf16.msra.mxu1 %v4442_v33 }
 0x30a   : > { %3168 = vmatprep.subr.bf16.mxu0 %v4435_v32  ;;  %3197 = vmatprep.subr.bf16.mxu1 %v5290_v15 }
 0x30d   : > { %3170 = vmatpush1.bf16.msra.mxu0 %v4449_v34  ;;  %3199 = vmatpush3.bf16.msra.mxu1 %v4460_v36 }
 0x30e   : > { %3172 = vmatprep.subr.bf16.mxu0 %v4455_v35  ;;  %3200 = vmatprep.subr.bf16.mxu1 %v5290_v15 }
 0x310   : > { %v3431_v21 = vpop.eup %3430 }
 0x311   : > { %v1382_v24 = vmul.f32 %v3431_v21, %v1381_v46  ;;  %3174 = vmatpush1.bf16.msra.mxu0 %v4465_v29  ;;  %3202 = vmatpush3.bf16.msra.mxu1 %v4476_v28  ;;  %v3433_v17 = vpop.eup %3432 }
 0x312   : > { %3176 = vmatprep.subr.bf16.mxu0 %v4471_v30  ;;  %3203 = vmatprep.subr.bf16.mxu1 %v5290_v15  ;;  %v1385_v54 = vsub.f32 1.0, %v3433_v17  ;;  %v1387_v23 = vmul.f32 %v3433_v17, %v4670_v18  ;;  %v5413_v18 = vld [vmem:[#allocation233_spill] sm:$0xff] }
 0x313   : > { %v1383_v53 = vadd.f32 %v1382_v24, %v5402_v47 }
 0x315   : > { %3434 = vtanh.f32 %v1383_v53  ;;  %3178 = vmatpush1.bf16.msra.mxu0 %v4481_v37  ;;  %3205 = vmatpush3.bf16.msra.mxu1 %v4492_v40  ;;  %v5414_v53 = vld [vmem:[#allocation229_spill] sm:$0xff] }
 0x316   : > { %3180 = vmatprep.subr.bf16.mxu0 %v4487_v39  ;;  %3206 = vmatprep.subr.bf16.mxu1 %v5290_v15 }
 0x319   : > { %3182 = vmatpush1.bf16.msra.mxu0 %v4497_v41  ;;  %3208 = vmatpush3.bf16.msra.mxu1 %v4508_v43 }
 0x31a   : > { %3184 = vmatprep.subr.bf16.mxu0 %v4503_v42  ;;  %3209 = vmatprep.subr.bf16.mxu1 %v5290_v15 }
 0x31d   : > { %3186 = vmatpush1.bf16.msra.mxu0 %v4513_v44  ;;  %3211 = vmatpush3.bf16.msra.mxu1 %v4524_v6 }
 0x31e   : > { %3188 = vmatprep.subr.bf16.mxu0 %v4519_v22  ;;  %3212 = vmatprep.subr.bf16.mxu1 %v5290_v15 }
 0x31f   : > { %v3435_v20 = vpop.eup %3434 }
 0x320   : > { %v1386_v58 = vmul.f32 %v3435_v20, %v1385_v54 }
 0x321   : > { %3190 = vmatpush1.bf16.msra.mxu0 %v4529_v10  ;;  %3214 = vmatpush3.bf16.msra.mxu1 %v4536_v50 }
 0x322   : > { %v4762_v55 = vadd.f32 %v1387_v23, %v1386_v58  ;;  %3216 = vmatprep.subr.bf16.mxu0 %v4273_v9  ;;  %3247 = vmatprep.subr.bf16.mxu1 %v5290_v15  ;;  %v5403_v9 = vld [vmem:[#allocation217_spill] sm:$0xff] }
 0x324   : > { %1394 = vst [vmem:[%s1393_s14] sm:$0xff] %v4762_v55  ;;  %1613 = vmatmul.mubr.f32.vlgmr.msra.gmra.mrb[10].mxu0 %v4762_v55  ;;  %2679 = vmatmul.mubr.f32.vlgmr.msra.gmra.mrb[18].mxu1 %v4762_v55 }
 0x325   : > { %3218 = vmatpush1.bf16.msra.mxu0 %v4277_v14  ;;  %3249 = vmatpush3.bf16.msra.mxu1 %v4286_v4  ;;  %v5404_v14 = vld [vmem:[#allocation219_spill] sm:$0xff]  ;;  %v5406_v4 = vld [vmem:[#allocation220_spill] sm:$0xff] }
 0x326   : > { %3220 = vmatprep.subr.bf16.mxu0 %v4282_v59  ;;  %3250 = vmatprep.subr.bf16.mxu1 %v5290_v15  ;;  %v5405_v59 = vld [vmem:[#allocation221_spill] sm:$0xff] }
 0x327   : > { %1815 = vmatprep.mubr.f32.mxu0 %v5226_v56  ;;  %2713 = vmatprep.mubr.msk.f32.mxu1 %vm3649_vm0, %v5226_v56 }
 0x329   : > { %3222 = vmatpush1.bf16.msra.mxu0 %v4291_v0  ;;  %3252 = vmatpush3.bf16.msra.mxu1 %v4304_v1  ;;  %v5408_v0 = vld [vmem:[#allocation224_spill] sm:$0xff]  ;;  %v5410_v1 = vld [vmem:[#allocation225_spill] sm:$0xff] }
 0x32a   : > { %3224 = vmatprep.subr.bf16.mxu0 %v4298_v57  ;;  %3253 = vmatprep.subr.bf16.mxu1 %v5290_v15  ;;  %v5409_v57 = vld [vmem:[#allocation223_spill] sm:$0xff] }
 0x32d   : > { %3226 = vmatpush1.bf16.msra.mxu0 %v4309_v11  ;;  %3255 = vmatpush3.bf16.msra.mxu1 %v4322_v61  ;;  %v5411_v11 = vld [vmem:[#allocation227_spill] sm:$0xff] }
 0x32e   : > { %3228 = vmatprep.subr.bf16.mxu0 %v4316_v2  ;;  %3256 = vmatprep.subr.bf16.mxu1 %v5290_v15  ;;  %v5412_v2 = vld [vmem:[#allocation226_spill] sm:$0xff] }
 0x331   : > { %3230 = vmatpush1.bf16.msra.mxu0 %v4327_v8  ;;  %3258 = vmatpush3.bf16.msra.mxu1 %v4340_v16  ;;  %v5407_v16 = vld [vmem:[#allocation222_spill] sm:$0xff] }
 0x332   : > { %3232 = vmatprep.subr.bf16.mxu0 %v5387_v45  ;;  %3259 = vmatprep.subr.bf16.mxu1 %v5290_v15 }
 0x335   : > { %3234 = vmatpush1.bf16.msra.mxu0 %v5388_v60  ;;  %3261 = vmatpush3.bf16.msra.mxu1 %v5389_v49 }
 0x336   : > { %3236 = vmatprep.subr.bf16.mxu0 %v5403_v9  ;;  %3262 = vmatprep.subr.bf16.mxu1 %v5290_v15 }
 0x339   : > { %3238 = vmatpush1.bf16.msra.mxu0 %v5404_v14  ;;  %3264 = vmatpush3.bf16.msra.mxu1 %v5405_v59 }
 0x33a   : > { %3240 = vmatprep.subr.bf16.mxu0 %v5406_v4  ;;  %3265 = vmatprep.subr.bf16.mxu1 %v5290_v15 }
 0x33d   : > { %3242 = vmatpush1.bf16.msra.mxu0 %v5407_v16  ;;  %3267 = vmatpush3.bf16.msra.mxu1 %v5408_v0 }
 0x33e   : > { %3244 = vmatprep.subr.bf16.mxu0 %v5409_v57  ;;  %3268 = vmatprep.subr.bf16.mxu1 %v5290_v15 }
 0x341   : > { %3246 = vmatpush1.bf16.msra.mxu0 %v5410_v1  ;;  %3270 = vmatpush3.bf16.msra.mxu1 %v5411_v11 }
 0x342   : > { %3272 = vmatprep.subr.bf16.mxu0 %v5412_v2  ;;  %3303 = vmatprep.subr.bf16.mxu1 %v5290_v15 }
 0x3d7   : > { %v1473_v61 = vpop.f32.mrb[4].mxu0  ;;  %v1544_v8 = vpop.f32.mrb[16].mxu1 }
 0x3d8   : > { %v3331_v45 = vadd.f32 %v1473_v61, %v5413_v18  ;;  %v1475_v60 = vpop.f32.mrb[5].mxu0  ;;  %v2645_v49 = vpop.f32.mrb[17].mxu1  ;;  %v1703_v21 = vadd.f32 %v5385_v5, %v1544_v8 }
 0x3d9   : > { %v3332_v3 = vadd.f32 %v1475_v60, %v4605_v13  ;;  %v5416_v60 = vld [vmem:[#allocation228_spill] sm:$0xff] }
 0x3da   : > { %v2199_v63 = vmul.f32 -1.442695, %v3331_v45 }
 0x3db   : > { %v2200_v52 = vmul.f32 -1.442695, %v3332_v3 }
 0x3dc   : > { %3436 = vpow2.f32 %v2199_v63 }
 0x3dd   : > { %3438 = vpow2.f32 %v2200_v52 }
 0x3e6   : > { %v3437_v19 = vpop.eup %3436 }
 0x3e7   : > { %v1693_v62 = vadd.f32 1.0, %v3437_v19  ;;  %v3439_v51 = vpop.eup %3438 }
 0x3e8   : > { %v1700_v46 = vadd.f32 1.0, %v3439_v51 }
 0x3e9   : > { %3440 = vrcp.f32 %v1693_v62 }
 0x3ea   : > { %3442 = vrcp.f32 %v1700_v46 }
 0x3f3   : > { %v3441_v24 = vpop.eup %3440 }
 0x3f4   : > { %v1704_v47 = vmul.f32 %v3441_v24, %v1703_v21  ;;  %v3443_v4 = vpop.eup %3442 }
 0x3f5   : > { %v1707_v0 = vsub.f32 1.0, %v3443_v4  ;;  %v1709_v11 = vmul.f32 %v3443_v4, %v4719_v38 }
 0x3f6   : > { %v1705_v17 = vadd.f32 %v1704_v47, %v5414_v53 }
 0x3f7   : > { %v1614_v54 = vpop.f32.mrb[10].mxu0  ;;  %v1685_v20 = vpop.f32.mrb[18].mxu1 }
 0x3f8   : > { %3444 = vtanh.f32 %v1705_v17  ;;  %v3337_v58 = vadd.f32 %v1614_v54, %v4611_v25  ;;  %v1616_v23 = vpop.f32.mrb[11].mxu0  ;;  %v2680_v9 = vpop.f32.mrb[19].mxu1 }
 0x3f9   : > { %v3338_v59 = vadd.f32 %v1616_v23, %v4614_v7 }
 0x3fa   : > { %v2201_v14 = vmul.f32 -1.442695, %v3337_v58 }
 0x3fb   : > { %v2202_v16 = vmul.f32 -1.442695, %v3338_v59 }
 0x3fc   : > { %3446 = vpow2.f32 %v2201_v14  ;;  %v5417_v14 = vld [vmem:[#allocation231_spill] sm:$0xff] }
 0x3fd   : > { %3448 = vpow2.f32 %v2202_v16 }
 0x402   : > { %v3445_v57 = vpop.eup %3444 }
 0x403   : > { %v1708_v1 = vmul.f32 %v3445_v57, %v1707_v0 }
 0x405   : > { %v4811_v2 = vadd.f32 %v1709_v11, %v1708_v1 }
 0x406   : > { %v3447_v61 = vpop.eup %3446 }
 0x407   : > { %v1715_v8 = vadd.f32 1.0, %v3447_v61  ;;  %2205 = vst [vmem:[%s4623_s28 + $0x10] sm:$0xff] %v4811_v2  ;;  %1816 = vmatmul.mubr.f32.vlgmr.msra.gmra.mrb[6].mxu0 %v4811_v2  ;;  %2714 = vmatmul.mubr.f32.vlgmr.msra.gmra.mrb[20].mxu1 %v4811_v2  ;;  %v3449_v38 = vpop.eup %3448 }
 0x408   : > { %3274 = vmatpush1.bf16.msra.mxu0 %v4412_v26  ;;  %3305 = vmatpush3.bf16.msra.mxu1 %v4424_v12  ;;  %v1722_v26 = vadd.f32 1.0, %v3449_v38 }
 0x409   : > { %3450 = vrcp.f32 %v1715_v8  ;;  %3276 = vmatprep.subr.bf16.mxu0 %v4418_v27  ;;  %3306 = vmatprep.subr.bf16.mxu1 %v5290_v15 }
 0x40a   : > { %1956 = vmatprep.mubr.f32.mxu0 %v5226_v56  ;;  %2748 = vmatprep.mubr.msk.f32.mxu1 %vm3649_vm0, %v5226_v56  ;;  %v1725_v56 = vadd.f32 %v5386_v48, %v1685_v20  ;;  %3452 = vrcp.f32 %v1722_v26 }
 0x40c   : > { %3278 = vmatpush1.bf16.msra.mxu0 %v4429_v31  ;;  %3308 = vmatpush3.bf16.msra.mxu1 %v4442_v33 }
 0x40d   : > { %3280 = vmatprep.subr.bf16.mxu0 %v4435_v32  ;;  %3309 = vmatprep.subr.bf16.mxu1 %v5290_v15  ;;  %v5415_v32 = vld [vmem:[#allocation230_spill] sm:$0xff] }
 0x410   : > { %3282 = vmatpush1.bf16.msra.mxu0 %v4449_v34  ;;  %3311 = vmatpush3.bf16.msra.mxu1 %v4460_v36 }
 0x411   : > { %3284 = vmatprep.subr.bf16.mxu0 %v4455_v35  ;;  %3312 = vmatprep.subr.bf16.mxu1 %v5290_v15 }
 0x413   : > { %v3451_v27 = vpop.eup %3450 }
 0x414   : > { %v1726_v31 = vmul.f32 %v3451_v27, %v1725_v56  ;;  %3286 = vmatpush1.bf16.msra.mxu0 %v4465_v29  ;;  %3314 = vmatpush3.bf16.msra.mxu1 %v4476_v28  ;;  %v3453_v34 = vpop.eup %3452 }
 0x415   : > { %3288 = vmatprep.subr.bf16.mxu0 %v4471_v30  ;;  %3315 = vmatprep.subr.bf16.mxu1 %v5290_v15  ;;  %v1729_v35 = vsub.f32 1.0, %v3453_v34  ;;  %v1731_v29 = vmul.f32 %v3453_v34, %v4762_v55 }
 0x416   : > { %v1727_v33 = vadd.f32 %v1726_v31, %v5415_v32 }
 0x418   : > { %3454 = vtanh.f32 %v1727_v33  ;;  %3290 = vmatpush1.bf16.msra.mxu0 %v4481_v37  ;;  %3317 = vmatpush3.bf16.msra.mxu1 %v4492_v40 }
 0x419   : > { %3292 = vmatprep.subr.bf16.mxu0 %v4487_v39  ;;  %3318 = vmatprep.subr.bf16.mxu1 %v5290_v15 }
 0x41c   : > { %3294 = vmatpush1.bf16.msra.mxu0 %v4497_v41  ;;  %3320 = vmatpush3.bf16.msra.mxu1 %v4508_v43 }
 0x41d   : > { %3296 = vmatprep.subr.bf16.mxu0 %v4503_v42  ;;  %3321 = vmatprep.subr.bf16.mxu1 %v5290_v15 }
 0x420   : > { %3298 = vmatpush1.bf16.msra.mxu0 %v4513_v44  ;;  %3323 = vmatpush3.bf16.msra.mxu1 %v4524_v6 }
 0x421   : > { %3300 = vmatprep.subr.bf16.mxu0 %v4519_v22  ;;  %3324 = vmatprep.subr.bf16.mxu1 %v5290_v15 }
 0x422   : > { %v3455_v36 = vpop.eup %3454 }
 0x423   : > { %v1730_v12 = vmul.f32 %v3455_v36, %v1729_v35 }
 0x424   : > { %3302 = vmatpush1.bf16.msra.mxu0 %v4529_v10  ;;  %3326 = vmatpush3.bf16.msra.mxu1 %v4536_v50 }
 0x425   : > { %v1732_v30 = vadd.f32 %v1731_v29, %v1730_v12 }
 0x427   : > { %1738 = vst [vmem:[%s1737_s0] sm:$0xff] %v1732_v30  ;;  %1957 = vmatmul.mubr.f32.vlgmr.msra.gmra.mrb[8].mxu0 %v1732_v30  ;;  %2749 = vmatmul.mubr.f32.vlgmr.msra.gmra.mrb[22].mxu1 %v1732_v30 }
 0x4da   : > { %v1817_v28 = vpop.f32.mrb[6].mxu0  ;;  %v1888_v37 = vpop.f32.mrb[20].mxu1 }
 0x4db   : > { %v3333_v39 = vadd.f32 %v1817_v28, %v5413_v18  ;;  %v1819_v40 = vpop.f32.mrb[7].mxu0  ;;  %v2715_v15 = vpop.f32.mrb[21].mxu1  ;;  %v2047_v10 = vadd.f32 %v5385_v5, %v1888_v37 }
 0x4dc   : > { %v3334_v42 = vadd.f32 %v1819_v40, %v4605_v13 }
 0x4dd   : > { %v2207_v41 = vmul.f32 -1.442695, %v3333_v39 }
 0x4de   : > { %v2208_v43 = vmul.f32 -1.442695, %v3334_v42 }
 0x4df   : > { %3456 = vpow2.f32 %v2207_v41 }
 0x4e0   : > { %3458 = vpow2.f32 %v2208_v43 }
 0x4e9   : > { %v3457_v44 = vpop.eup %3456 }
 0x4ea   : > { %v2037_v22 = vadd.f32 1.0, %v3457_v44  ;;  %v3459_v50 = vpop.eup %3458 }
 0x4eb   : > { %v2044_v6 = vadd.f32 1.0, %v3459_v50 }
 0x4ec   : > { %3460 = vrcp.f32 %v2037_v22 }
 0x4ed   : > { %3462 = vrcp.f32 %v2044_v6 }
 0x4f6   : > { %v3461_v55 = vpop.eup %3460 }
 0x4f7   : > { %v2048_v45 = vmul.f32 %v3461_v55, %v2047_v10  ;;  %v3463_v51 = vpop.eup %3462 }
 0x4f8   : > { %v2051_v21 = vsub.f32 1.0, %v3463_v51  ;;  %v2053_v53 = vmul.f32 %v3463_v51, %v4811_v2 }
 0x4f9   : > { %v2049_v18 = vadd.f32 %v2048_v45, %v5416_v60 }
 0x4fa   : > { %v1958_v49 = vpop.f32.mrb[8].mxu0  ;;  %v2029_v63 = vpop.f32.mrb[22].mxu1 }
 0x4fb   : > { %3464 = vtanh.f32 %v2049_v18  ;;  %v3335_v13 = vadd.f32 %v1958_v49, %v4611_v25  ;;  %v1960_v3 = vpop.f32.mrb[9].mxu0  ;;  %v2750_v52 = vpop.f32.mrb[23].mxu1  ;;  %v2069_v23 = vadd.f32 %v5386_v48, %v2029_v63 }
 0x4fc   : > { %v3336_v62 = vadd.f32 %v1960_v3, %v4614_v7 }
 0x4fd   : > { %v2209_v19 = vmul.f32 -1.442695, %v3335_v13 }
 0x4fe   : > { %v2210_v46 = vmul.f32 -1.442695, %v3336_v62 }
 0x4ff   : > { %3466 = vpow2.f32 %v2209_v19 }
 0x500   : > { %3468 = vpow2.f32 %v2210_v46 }
 0x505   : > { %v3465_v24 = vpop.eup %3464 }
 0x506   : > { %v2052_v47 = vmul.f32 %v3465_v24, %v2051_v21 }
 0x508   : > { %v2054_v17 = vadd.f32 %v2053_v53, %v2052_v47  }
 0x509   : > { %v3467_v54 = vpop.eup %3466 }
 0x50a   : > { %2213 = vst [vmem:[%s4623_s28 + $0x18] sm:$0xff] %v2054_v17  ;;  %v2059_v20 = vadd.f32 1.0, %v3467_v54  ;;  %v3469_v25 = vpop.eup %3468  ;;  %v5419_v54 = vmov %v2054_v17  ;;  %2083 = vst [vmem:[#allocation13] sm:$0xff] (%p268_p10), %v2054_v17 }
 0x50b   : > { %v2066_v58 = vadd.f32 1.0, %v3469_v25 }
 0x50c   : > { %3470 = vrcp.f32 %v2059_v20 }
 0x50d   : > { %3472 = vrcp.f32 %v2066_v58 }
 0x516   : > { %v3471_v7 = vpop.eup %3470 }
 0x517   : > { %v2070_v9 = vmul.f32 %v3471_v7, %v2069_v23  ;;  %v3473_v4 = vpop.eup %3472 }
 0x518   : > { %v2073_v16 = vsub.f32 1.0, %v3473_v4  ;;  %v2075_v1 = vmul.f32 %v3473_v4, %v1732_v30 }
 0x519   : > { %v2071_v59 = vadd.f32 %v2070_v9, %v5417_v14 }
 0x51b   : > { %3474 = vtanh.f32 %v2071_v59 }
 0x524   :  { %270 = sbr.rel (!%p268_p10) target bundleno = 155 (0x9b), region = 98 }
 0x525   : > { %v3475_v0 = vpop.eup %3474 }
 0x526   : > { %v2074_v57 = vmul.f32 %v3475_v0, %v2073_v16 }
 0x528   : > { %v2076_v11 = vadd.f32 %v2075_v1, %v2074_v57  }
 0x52a   : > { %2082 = vst [vmem:[%s2081_s11] sm:$0xff] %v2076_v11  ;;  %v5418_v59 = vmov %v2076_v11  ;;  %2085 = vst [vmem:[#allocation13 + $0x8] sm:$0xff] (%p268_p10), %v2076_v11 }
 0x52b   :  { %3553 = shalt.err (!%p3550_p1)
}
 0x52c   :  { %s3554_s23 = scalar_lea.hbm %s4930_s6, 1024 }
 0x52d   :  { %p3555_p2 = scmp.ne.s32.totalorder %s4930_s6, %s3554_s23  ;;  %p3558_p3 = scmp.lt.u32.totalorder %s3554_s23, %s4930_s6 }
 0x52f   :  { %p3560_p4 = pnand %p3558_p3, %p3555_p2 }
 0x531   :  { %3563 = shalt.err (!%p3560_p4)
}
 0x532   :  { %2109 = dma.vmem_to_hbm [thread:$0]  %s2104_s18, 1024, %s4930_s6, [#allocation12], %s3644_s1, %s3644_s1, %s3645_s25  }
 0x533   :  { %s3564_s30 = scalar_lea.vmem %s4872_s20, 1024  ;;  %p3569_p6 = scmp.lt.s32.totalorder %s4872_s20, %s4872_s20 }
 0x534   :  { %p3565_p5 = scmp.ne.s32.totalorder %s4872_s20, %s3564_s30  ;;  %p3570_p7 = scmp.lt.s32.totalorder %s3564_s30, %s3564_s30 }
 0x536   :  { %p3571_p8 = por %p3570_p7, %p3569_p6 }
 0x538   :  { %p3572_p9 = pnand %p3571_p8, %p3565_p5 }
 0x53a   :  { %3575 = shalt.err (!%p3572_p9)
}
 0x53b   :  { %s3576_s10 = scalar_lea.hbm %s4929_s5, 1024 }
 0x53c   :  { %p3577_p10 = scmp.ne.s32.totalorder %s4929_s5, %s3576_s10  ;;  %p3580_p11 = scmp.lt.u32.totalorder %s3576_s10, %s4929_s5 }
 0x53e   :  { %p3582_p12 = pnand %p3580_p11, %p3577_p10 }
 0x540   :  { %3585 = shalt.err (!%p3582_p12)
}
 0x541   :  { %2097 = dma.vmem_to_hbm [thread:$0]  %s4872_s20, 1024, %s4929_s5, [#allocation6], %s3644_s1, %s3644_s1, %s3645_s25  }
 0x542   :  { %s3652_s16 = smov [#allocation13]  }
 0x543   :  { %s2115_s2 = sshll.u32 %s3652_s16, 4  ;;  %s2116_s2 = int_to_ptr.vmem [resolvable:$true] %s2115_s2 }
 0x544   :  { %s3586_s11 = scalar_lea.vmem %s2116_s2, 256  ;;  %p3591_p0 = scmp.lt.s32.totalorder %s2116_s2, %s2116_s2 }
 0x545   :  { %p3587_p13 = scmp.ne.s32.totalorder %s2116_s2, %s3586_s11  ;;  %p3592_p1 = scmp.lt.s32.totalorder %s3586_s11, %s3586_s11 }
 0x547   :  { %p3593_p2 = por %p3592_p1, %p3591_p0 }
 0x549   :  { %p3594_p3 = pnand %p3593_p2, %p3587_p13 }
 0x54b   :  { %3597 = shalt.err (!%p3594_p3)
}
 0x54c   :  { %s3598_s19 = scalar_lea.hbm %s4931_s7, 256 }
 0x54d   :  { %p3599_p4 = scmp.ne.s32.totalorder %s4931_s7, %s3598_s19  ;;  %p3602_p5 = scmp.lt.u32.totalorder %s3598_s19, %s4931_s7 }
 0x54f   :  { %p3604_p6 = pnand %p3602_p5, %p3599_p4 }
 0x551   :  { %3607 = shalt.err (!%p3604_p6)
}
 0x552   :  { %2121 = dma.vmem_to_hbm [thread:$0]  %s2116_s2, 256, %s4931_s7, [#allocation12], %s3644_s1, %s3644_s1, %s3645_s25  }
 0x553   :  { %3624 = dma.done.wait [#allocation6], 1024  }
 0x554   :  { %3625 = vsyncadd [#allocation6], 4294966272 }
 0x555   :  { %3626 = dma.done.wait [#allocation12], 1280  }
 0x556   :  { %3627 = vsyncadd [#allocation12], 4294966016 }
 0x557   :  { %2131 = vsyncpa [#allocation5], 1 }
 0x558   :  { %2132 = vsyncpa [#allocation8], 1 }
 0x559   :  { %2133 = vsyncpa [#allocation6], 1 }
 0x55a   :  { %2134 = vsyncpa [#allocation12], 1 }

</bundles_post_ra>
